<compile_context>
chip_gen: v7x
topology: tpu7x:2x2x1
jax: 0.10.0
libtpu: 0.0.40
codegen_flags: <defaults>
</compile_context>

<pallas_src>
import functools
import math

import jax
import jax.numpy as jnp
from jax.experimental import pallas as pl
from jax.experimental.pallas import tpu as pltpu


def _taps_and_epilogue(get_patch, w_ref, b_ref, o_ref, acc_ref, *,
                       th, w_out, k, scale, neg_slope, gain):
    """K*K shifted-window matmuls accumulated in f32, then fused bias + leaky_relu * gain."""
    for kh in range(k):
        for kw in range(k):
            patch = get_patch(kh, kw)                           # (th, W, Cin)
            patch = patch.reshape(th * w_out, patch.shape[-1])  # (th*W, Cin)
            tap = jnp.dot(patch, w_ref[kh * k + kw],
                          preferred_element_type=jnp.float32,
                          precision=jax.lax.Precision.HIGHEST)
            if kh == 0 and kw == 0:
                acc_ref[...] = tap
            else:
                acc_ref[...] += tap
    t = acc_ref[...] * scale + b_ref[...].astype(jnp.float32)
    y = jnp.where(t >= 0, t, neg_slope * t) * gain
    o_ref[...] = y[None].astype(o_ref.dtype)


def _whole_image_kernel(w_ref, b_ref, x_ref, o_ref, acc_ref, *,
                        th, w_out, k, scale, neg_slope, gain):
    # x_ref: (Hp, Wp, Cin) padded image block, auto-pipelined by BlockSpec across batch.
    _taps_and_epilogue(
        lambda kh, kw: x_ref[kh:kh + th, kw:kw + w_out, :],
        w_ref, b_ref, o_ref, acc_ref,
        th=th, w_out=w_out, k=k, scale=scale, neg_slope=neg_slope, gain=gain)


def _tiled_kernel(w_ref, b_ref, x_hbm, o_ref, acc_ref, xwin_ref, sem, *,
                  th, w_out, k, pad, scale, neg_slope, gain):
    b = pl.program_id(0)
    i = pl.program_id(1)
    n = pl.num_programs(1)
    win_rows = th + 2 * pad
    slot = i & 1

    def start_copy(tile_idx, slot_idx):
        pltpu.make_async_copy(
            x_hbm.at[b, pl.ds(tile_idx * th, win_rows)],
            xwin_ref.at[slot_idx],
            sem.at[slot_idx]).start()

    # First tile of each image: nobody prefetched it, start its copy now.
    @pl.when(i == 0)
    def _():
        start_copy(0, 0)

    # Prefetch the next tile's halo window into the other slot (hidden behind this
    # tile's K*K matmuls).  No cross-image prefetch: keeps the pattern valid under
    # megacore splitting of the batch axis.
    @pl.when(i + 1 < n)
    def _():
        start_copy(i + 1, 1 - slot)

    # Wait for the current tile's window (started either above at i==0 or by the
    # previous iteration's prefetch).
    pltpu.make_async_copy(
        x_hbm.at[b, pl.ds(i * th, win_rows)],
        xwin_ref.at[slot],
        sem.at[slot]).wait()

    _taps_and_epilogue(
        lambda kh, kw: xwin_ref[slot, kh:kh + th, kw:kw + w_out, :],
        w_ref, b_ref, o_ref, acc_ref,
        th=th, w_out=w_out, k=k, scale=scale, neg_slope=neg_slope, gain=gain)


def _pick_row_tile(H, W, pad, cin, cout, itemsize, budget=6 * 1024 * 1024):
    """Largest row tile TH (divisor of H) whose per-step VMEM footprint fits a conservative
    budget (default scoped VMEM is 16 MiB on v5e, 32 MiB on v6e/v7x; the resident weight block
    also lives in VMEM)."""
    Wp = W + 2 * pad

    def footprint(th):
        win = 2 * (th + 2 * pad) * Wp * cin * itemsize   # double-buffered halo window
        acc = th * W * cout * 4                          # f32 accumulator
        out = 2 * th * W * cout * itemsize               # double-buffered output tile
        return win + acc + out

    divisors = [t for t in range(1, H + 1) if H % t == 0]
    # (8,128) rule: output block's second-to-last dim (th*W) must be a multiple of 8
    # unless it spans the full H*W extent.
    valid = [t for t in divisors if (t * W) % 8 == 0 or t == H]
    under = [t for t in valid if footprint(t) <= budget]
    return max(under) if under else min(valid)


def conv_block(x, weight, bias, *, neg_slope=0.2, gain=math.sqrt(2.0), row_tile=None):
    """StyleGAN2 ConvBlock forward (downsample=False, activate=True, bias=True).

    x:      (B, Cin, H, W)   NCHW, as in PyTorch
    weight: (Cout, Cin, K, K)
    bias:   (Cout,)          FusedLeakyReLU bias
    returns (B, Cout, H, W)
    """
    B, Cin, H, W = x.shape
    Cout, Cin_w, K, K2 = weight.shape
    assert Cin_w == Cin and K2 == K
    pad = K // 2
    scale = 1.0 / math.sqrt(Cin * K * K)

    # Channels-last (lane-dense) layout + spatial zero-padding, done once in the wrapper.
    x_nhwc = jnp.transpose(x, (0, 2, 3, 1))
    x_pad = jnp.pad(x_nhwc, ((0, 0), (pad, pad), (pad, pad), (0, 0)))
    Hp, Wp = H + 2 * pad, W + 2 * pad

    # Weight taps as (K*K, Cin, Cout) so each tap is a plain MXU matmul.
    w_mat = jnp.transpose(weight, (2, 3, 1, 0)).reshape(K * K, Cin, Cout).astype(x.dtype)
    bias2d = bias.reshape(1, Cout).astype(jnp.float32)

    itemsize = jnp.dtype(x.dtype).itemsize
    th = row_tile if row_tile is not None else _pick_row_tile(H, W, pad, Cin, Cout, itemsize)
    assert H % th == 0, "row tile must divide H"

    if th == H:
        # Whole padded image fits comfortably: pure BlockSpec pipelining (input DMA for
        # image b+1 overlaps compute of image b).
        kernel = functools.partial(
            _whole_image_kernel, th=H, w_out=W, k=K, scale=scale,
            neg_slope=neg_slope, gain=gain)
        out = pl.pallas_call(
            kernel,
            out_shape=jax.ShapeDtypeStruct((B, H * W, Cout), x.dtype),
            grid=(B,),
            in_specs=[
                pl.BlockSpec((K * K, Cin, Cout), lambda b: (0, 0, 0)),   # weights (resident)
                pl.BlockSpec((1, Cout), lambda b: (0, 0)),               # bias (resident)
                pl.BlockSpec((None, Hp, Wp, Cin), lambda b: (b, 0, 0, 0)),  # padded image
            ],
            out_specs=pl.BlockSpec((1, H * W, Cout), lambda b: (b, 0, 0)),
            scratch_shapes=[pltpu.VMEM((H * W, Cout), jnp.float32)],
            compiler_params=pltpu.CompilerParams(
                dimension_semantics=("parallel",)),
        )(w_mat, bias2d, x_pad)
    else:
        n_tiles = H // th
        win_rows = th + 2 * pad
        kernel = functools.partial(
            _tiled_kernel, th=th, w_out=W, k=K, pad=pad, scale=scale,
            neg_slope=neg_slope, gain=gain)
        out = pl.pallas_call(
            kernel,
            out_shape=jax.ShapeDtypeStruct((B, H * W, Cout), x.dtype),
            grid=(B, n_tiles),
            in_specs=[
                pl.BlockSpec((K * K, Cin, Cout), lambda b, i: (0, 0, 0)),  # weights (resident)
                pl.BlockSpec((1, Cout), lambda b, i: (0, 0)),              # bias (resident)
                pl.BlockSpec(memory_space=pl.ANY),                         # padded input, HBM
            ],
            out_specs=pl.BlockSpec((1, th * W, Cout), lambda b, i: (b, i, 0)),
            scratch_shapes=[
                pltpu.VMEM((th * W, Cout), jnp.float32),          # f32 accumulator
                pltpu.VMEM((2, win_rows, Wp, Cin), x.dtype),      # double-buffered halo window
                pltpu.SemaphoreType.DMA((2,)),                    # per-slot DMA semaphores
            ],
            compiler_params=pltpu.CompilerParams(
                dimension_semantics=("parallel", "arbitrary")),
        )(w_mat, bias2d, x_pad)

    out = out.reshape(B, H, W, Cout)
    return jnp.transpose(out, (0, 3, 1, 2))


def _reference(x, weight, bias, neg_slope=0.2, gain=math.sqrt(2.0)):
    B, Cin, H, W = x.shape
    Cout, _, K, _ = weight.shape
    scale = 1.0 / math.sqrt(Cin * K * K)
    ref = jax.lax.conv_general_dilated(
        x, weight * scale, window_strides=(1, 1),
        padding=((K // 2, K // 2), (K // 2, K // 2)),
        dimension_numbers=("NCHW", "OIHW", "NCHW"),
        precision=jax.lax.Precision.HIGHEST)
    t = ref + bias.reshape(1, Cout, 1, 1)
    return jnp.where(t >= 0, t, neg_slope * t) * gain


if __name__ == "__main__":
    key = jax.random.PRNGKey(0)
    k1, k2, k3 = jax.random.split(key, 3)

    B, Cin, Cout, H, W, K = 2, 4, 8, 16, 16, 3
    x = jax.random.normal(k1, (B, Cin, H, W), dtype=jnp.float32)
    weight = jax.random.normal(k2, (Cout, Cin, K, K), dtype=jnp.float32)
    bias = 0.1 * jax.random.normal(k3, (Cout,), dtype=jnp.float32)

    ref = _reference(x, weight, bias)

    # Path A: whole-image (BlockSpec-pipelined) path.
    y_a = conv_block(x, weight, bias)
    jax.block_until_ready(y_a)
    assert y_a.shape == (B, Cout, H, W)
    assert jnp.allclose(y_a, ref, atol=1e-3, rtol=1e-3), float(jnp.max(jnp.abs(y_a - ref)))

    # Path B: tiled halo path with double-buffered manual DMA (forced via row_tile).
    y_b = conv_block(x, weight, bias, row_tile=4)
    jax.block_until_ready(y_b)
    assert y_b.shape == (B, Cout, H, W)
    assert jnp.allclose(y_b, ref, atol=1e-3, rtol=1e-3), float(jnp.max(jnp.abs(y_b - ref)))

    print("KERNEL_OK")
</pallas_src>

<mosaic_0001>
module attributes {stable_mosaic.version = 11 : i64} {
  func.func @_whole_image_kernel(%arg0: i32, %arg1: memref<9x4x8xf32, #tpu.memory_space<vmem>>, %arg2: memref<1x8xf32, #tpu.memory_space<vmem>>, %arg3: memref<1x18x18x4xf32, #tpu.memory_space<vmem>>, %arg4: memref<1x256x8xf32, #tpu.memory_space<vmem>>, %arg5: memref<256x8xf32, #tpu.memory_space<vmem>>) attributes {dimension_semantics = [#tpu.dimension_semantics<parallel>], iteration_bounds = array<i64: 2>, scalar_prefetch = 0 : i64, scratch_operands = 1 : i64, tpu.core_type = #tpu.core_type<tc>, window_params = [{pipeline_mode = #tpu.pipeline_mode<synchronous>, transform_indices = @transform_0, window_bounds = array<i64: 9, 4, 8>}, {pipeline_mode = #tpu.pipeline_mode<synchronous>, transform_indices = @transform_1, window_bounds = array<i64: 1, 8>}, {transform_indices = @transform_2, window_bounds = array<i64: 1, 18, 18, 4>}, {transform_indices = @transform_3, window_bounds = array<i64: 1, 256, 8>}]} {
    %c0 = arith.constant 0 : index
    %c0_0 = arith.constant 0 : index
    %c0_1 = arith.constant 0 : index
    %c0_2 = arith.constant 0 : index
    %0 = vector.load %arg3[%c0, %c0_0, %c0_1, %c0_2] : memref<1x18x18x4xf32, #tpu.memory_space<vmem>>, vector<1x16x16x4xf32>
    %1 = vector.shape_cast %0 : vector<1x16x16x4xf32> to vector<16x16x4xf32>
    %2 = vector.shape_cast %1 : vector<16x16x4xf32> to vector<256x4xf32>
    %c0_3 = arith.constant 0 : index
    %c0_4 = arith.constant 0 : index
    %c0_5 = arith.constant 0 : index
    %3 = vector.load %arg1[%c0_3, %c0_4, %c0_5] : memref<9x4x8xf32, #tpu.memory_space<vmem>>, vector<1x4x8xf32>
    %4 = vector.shape_cast %3 : vector<1x4x8xf32> to vector<4x8xf32>
    %cst = arith.constant dense<0.000000e+00> : vector<256x8xf32>
    %5 = tpu.matmul %2, %4, %cst {dimension_numbers = #tpu.dot_dimension_numbers<[1], [0], [0], [1], [0, 0, 1, 1], [], []>, precision = #tpu.contract_precision<fp32>} : vector<256x4xf32>, vector<4x8xf32>, vector<256x8xf32> -> vector<256x8xf32>
    %c0_6 = arith.constant 0 : index
    %c0_7 = arith.constant 0 : index
    %6 = vector.load %arg5[%c0_6, %c0_7] : memref<256x8xf32, #tpu.memory_space<vmem>>, vector<256x8xf32>
    tpu.vector_store %arg5[%c0_6, %c0_7], %5 {strides = array<i32>} : memref<256x8xf32, #tpu.memory_space<vmem>>, vector<256x8xf32>,
    %c0_8 = arith.constant 0 : index
    %c0_9 = arith.constant 0 : index
    %c1 = arith.constant 1 : index
    %c0_10 = arith.constant 0 : index
    %7 = vector.load %arg3[%c0_8, %c0_9, %c1, %c0_10] : memref<1x18x18x4xf32, #tpu.memory_space<vmem>>, vector<1x16x16x4xf32>
    %8 = vector.shape_cast %7 : vector<1x16x16x4xf32> to vector<16x16x4xf32>
    %9 = vector.shape_cast %8 : vector<16x16x4xf32> to vector<256x4xf32>
    %c1_11 = arith.constant 1 : index
    %c0_12 = arith.constant 0 : index
    %c0_13 = arith.constant 0 : index
    %10 = vector.load %arg1[%c1_11, %c0_12, %c0_13] : memref<9x4x8xf32, #tpu.memory_space<vmem>>, vector<1x4x8xf32>
    %11 = vector.shape_cast %10 : vector<1x4x8xf32> to vector<4x8xf32>
    %cst_14 = arith.constant dense<0.000000e+00> : vector<256x8xf32>
    %12 = tpu.matmul %9, %11, %cst_14 {dimension_numbers = #tpu.dot_dimension_numbers<[1], [0], [0], [1], [0, 0, 1, 1], [], []>, precision = #tpu.contract_precision<fp32>} : vector<256x4xf32>, vector<4x8xf32>, vector<256x8xf32> -> vector<256x8xf32>
    %c0_15 = arith.constant 0 : index
    %c0_16 = arith.constant 0 : index
    %13 = vector.load %arg5[%c0_15, %c0_16] : memref<256x8xf32, #tpu.memory_space<vmem>>, vector<256x8xf32>
    %14 = arith.addf %13, %12 : vector<256x8xf32>
    %c0_17 = arith.constant 0 : index
    %c0_18 = arith.constant 0 : index
    %15 = vector.load %arg5[%c0_17, %c0_18] : memref<256x8xf32, #tpu.memory_space<vmem>>, vector<256x8xf32>
    tpu.vector_store %arg5[%c0_17, %c0_18], %14 {strides = array<i32>} : memref<256x8xf32, #tpu.memory_space<vmem>>, vector<256x8xf32>,
    %c0_19 = arith.constant 0 : index
    %c0_20 = arith.constant 0 : index
    %c2 = arith.constant 2 : index
    %c0_21 = arith.constant 0 : index
    %16 = vector.load %arg3[%c0_19, %c0_20, %c2, %c0_21] : memref<1x18x18x4xf32, #tpu.memory_space<vmem>>, vector<1x16x16x4xf32>
    %17 = vector.shape_cast %16 : vector<1x16x16x4xf32> to vector<16x16x4xf32>
    %18 = vector.shape_cast %17 : vector<16x16x4xf32> to vector<256x4xf32>
    %c2_22 = arith.constant 2 : index
    %c0_23 = arith.constant 0 : index
    %c0_24 = arith.constant 0 : index
    %19 = vector.load %arg1[%c2_22, %c0_23, %c0_24] : memref<9x4x8xf32, #tpu.memory_space<vmem>>, vector<1x4x8xf32>
    %20 = vector.shape_cast %19 : vector<1x4x8xf32> to vector<4x8xf32>
    %cst_25 = arith.constant dense<0.000000e+00> : vector<256x8xf32>
    %21 = tpu.matmul %18, %20, %cst_25 {dimension_numbers = #tpu.dot_dimension_numbers<[1], [0], [0], [1], [0, 0, 1, 1], [], []>, precision = #tpu.contract_precision<fp32>} : vector<256x4xf32>, vector<4x8xf32>, vector<256x8xf32> -> vector<256x8xf32>
    %c0_26 = arith.constant 0 : index
    %c0_27 = arith.constant 0 : index
    %22 = vector.load %arg5[%c0_26, %c0_27] : memref<256x8xf32, #tpu.memory_space<vmem>>, vector<256x8xf32>
    %23 = arith.addf %22, %21 : vector<256x8xf32>
    %c0_28 = arith.constant 0 : index
    %c0_29 = arith.constant 0 : index
    %24 = vector.load %arg5[%c0_28, %c0_29] : memref<256x8xf32, #tpu.memory_space<vmem>>, vector<256x8xf32>
    tpu.vector_store %arg5[%c0_28, %c0_29], %23 {strides = array<i32>} : memref<256x8xf32, #tpu.memory_space<vmem>>, vector<256x8xf32>,
    %c0_30 = arith.constant 0 : index
    %c1_31 = arith.constant 1 : index
    %c0_32 = arith.constant 0 : index
    %c0_33 = arith.constant 0 : index
    %25 = vector.load %arg3[%c0_30, %c1_31, %c0_32, %c0_33] : memref<1x18x18x4xf32, #tpu.memory_space<vmem>>, vector<1x16x16x4xf32>
    %26 = vector.shape_cast %25 : vector<1x16x16x4xf32> to vector<16x16x4xf32>
    %27 = vector.shape_cast %26 : vector<16x16x4xf32> to vector<256x4xf32>
    %c3 = arith.constant 3 : index
    %c0_34 = arith.constant 0 : index
    %c0_35 = arith.constant 0 : index
    %28 = vector.load %arg1[%c3, %c0_34, %c0_35] : memref<9x4x8xf32, #tpu.memory_space<vmem>>, vector<1x4x8xf32>
    %29 = vector.shape_cast %28 : vector<1x4x8xf32> to vector<4x8xf32>
    %cst_36 = arith.constant dense<0.000000e+00> : vector<256x8xf32>
    %30 = tpu.matmul %27, %29, %cst_36 {dimension_numbers = #tpu.dot_dimension_numbers<[1], [0], [0], [1], [0, 0, 1, 1], [], []>, precision = #tpu.contract_precision<fp32>} : vector<256x4xf32>, vector<4x8xf32>, vector<256x8xf32> -> vector<256x8xf32>
    %c0_37 = arith.constant 0 : index
    %c0_38 = arith.constant 0 : index
    %31 = vector.load %arg5[%c0_37, %c0_38] : memref<256x8xf32, #tpu.memory_space<vmem>>, vector<256x8xf32>
    %32 = arith.addf %31, %30 : vector<256x8xf32>
    %c0_39 = arith.constant 0 : index
    %c0_40 = arith.constant 0 : index
    %33 = vector.load %arg5[%c0_39, %c0_40] : memref<256x8xf32, #tpu.memory_space<vmem>>, vector<256x8xf32>
    tpu.vector_store %arg5[%c0_39, %c0_40], %32 {strides = array<i32>} : memref<256x8xf32, #tpu.memory_space<vmem>>, vector<256x8xf32>,
    %c0_41 = arith.constant 0 : index
    %c1_42 = arith.constant 1 : index
    %c1_43 = arith.constant 1 : index
    %c0_44 = arith.constant 0 : index
    %34 = vector.load %arg3[%c0_41, %c1_42, %c1_43, %c0_44] : memref<1x18x18x4xf32, #tpu.memory_space<vmem>>, vector<1x16x16x4xf32>
    %35 = vector.shape_cast %34 : vector<1x16x16x4xf32> to vector<16x16x4xf32>
    %36 = vector.shape_cast %35 : vector<16x16x4xf32> to vector<256x4xf32>
    %c4 = arith.constant 4 : index
    %c0_45 = arith.constant 0 : index
    %c0_46 = arith.constant 0 : index
    %37 = vector.load %arg1[%c4, %c0_45, %c0_46] : memref<9x4x8xf32, #tpu.memory_space<vmem>>, vector<1x4x8xf32>
    %38 = vector.shape_cast %37 : vector<1x4x8xf32> to vector<4x8xf32>
    %cst_47 = arith.constant dense<0.000000e+00> : vector<256x8xf32>
    %39 = tpu.matmul %36, %38, %cst_47 {dimension_numbers = #tpu.dot_dimension_numbers<[1], [0], [0], [1], [0, 0, 1, 1], [], []>, precision = #tpu.contract_precision<fp32>} : vector<256x4xf32>, vector<4x8xf32>, vector<256x8xf32> -> vector<256x8xf32>
    %c0_48 = arith.constant 0 : index
    %c0_49 = arith.constant 0 : index
    %40 = vector.load %arg5[%c0_48, %c0_49] : memref<256x8xf32, #tpu.memory_space<vmem>>, vector<256x8xf32>
    %41 = arith.addf %40, %39 : vector<256x8xf32>
    %c0_50 = arith.constant 0 : index
    %c0_51 = arith.constant 0 : index
    %42 = vector.load %arg5[%c0_50, %c0_51] : memref<256x8xf32, #tpu.memory_space<vmem>>, vector<256x8xf32>
    tpu.vector_store %arg5[%c0_50, %c0_51], %41 {strides = array<i32>} : memref<256x8xf32, #tpu.memory_space<vmem>>, vector<256x8xf32>,
    %c0_52 = arith.constant 0 : index
    %c1_53 = arith.constant 1 : index
    %c2_54 = arith.constant 2 : index
    %c0_55 = arith.constant 0 : index
    %43 = vector.load %arg3[%c0_52, %c1_53, %c2_54, %c0_55] : memref<1x18x18x4xf32, #tpu.memory_space<vmem>>, vector<1x16x16x4xf32>
    %44 = vector.shape_cast %43 : vector<1x16x16x4xf32> to vector<16x16x4xf32>
    %45 = vector.shape_cast %44 : vector<16x16x4xf32> to vector<256x4xf32>
    %c5 = arith.constant 5 : index
    %c0_56 = arith.constant 0 : index
    %c0_57 = arith.constant 0 : index
    %46 = vector.load %arg1[%c5, %c0_56, %c0_57] : memref<9x4x8xf32, #tpu.memory_space<vmem>>, vector<1x4x8xf32>
    %47 = vector.shape_cast %46 : vector<1x4x8xf32> to vector<4x8xf32>
    %cst_58 = arith.constant dense<0.000000e+00> : vector<256x8xf32>
    %48 = tpu.matmul %45, %47, %cst_58 {dimension_numbers = #tpu.dot_dimension_numbers<[1], [0], [0], [1], [0, 0, 1, 1], [], []>, precision = #tpu.contract_precision<fp32>} : vector<256x4xf32>, vector<4x8xf32>, vector<256x8xf32> -> vector<256x8xf32>
    %c0_59 = arith.constant 0 : index
    %c0_60 = arith.constant 0 : index
    %49 = vector.load %arg5[%c0_59, %c0_60] : memref<256x8xf32, #tpu.memory_space<vmem>>, vector<256x8xf32>
    %50 = arith.addf %49, %48 : vector<256x8xf32>
    %c0_61 = arith.constant 0 : index
    %c0_62 = arith.constant 0 : index
    %51 = vector.load %arg5[%c0_61, %c0_62] : memref<256x8xf32, #tpu.memory_space<vmem>>, vector<256x8xf32>
    tpu.vector_store %arg5[%c0_61, %c0_62], %50 {strides = array<i32>} : memref<256x8xf32, #tpu.memory_space<vmem>>, vector<256x8xf32>,
    %c0_63 = arith.constant 0 : index
    %c2_64 = arith.constant 2 : index
    %c0_65 = arith.constant 0 : index
    %c0_66 = arith.constant 0 : index
    %52 = vector.load %arg3[%c0_63, %c2_64, %c0_65, %c0_66] : memref<1x18x18x4xf32, #tpu.memory_space<vmem>>, vector<1x16x16x4xf32>
    %53 = vector.shape_cast %52 : vector<1x16x16x4xf32> to vector<16x16x4xf32>
    %54 = vector.shape_cast %53 : vector<16x16x4xf32> to vector<256x4xf32>
    %c6 = arith.constant 6 : index
    %c0_67 = arith.constant 0 : index
    %c0_68 = arith.constant 0 : index
    %55 = vector.load %arg1[%c6, %c0_67, %c0_68] : memref<9x4x8xf32, #tpu.memory_space<vmem>>, vector<1x4x8xf32>
    %56 = vector.shape_cast %55 : vector<1x4x8xf32> to vector<4x8xf32>
    %cst_69 = arith.constant dense<0.000000e+00> : vector<256x8xf32>
    %57 = tpu.matmul %54, %56, %cst_69 {dimension_numbers = #tpu.dot_dimension_numbers<[1], [0], [0], [1], [0, 0, 1, 1], [], []>, precision = #tpu.contract_precision<fp32>} : vector<256x4xf32>, vector<4x8xf32>, vector<256x8xf32> -> vector<256x8xf32>
    %c0_70 = arith.constant 0 : index
    %c0_71 = arith.constant 0 : index
    %58 = vector.load %arg5[%c0_70, %c0_71] : memref<256x8xf32, #tpu.memory_space<vmem>>, vector<256x8xf32>
    %59 = arith.addf %58, %57 : vector<256x8xf32>
    %c0_72 = arith.constant 0 : index
    %c0_73 = arith.constant 0 : index
    %60 = vector.load %arg5[%c0_72, %c0_73] : memref<256x8xf32, #tpu.memory_space<vmem>>, vector<256x8xf32>
    tpu.vector_store %arg5[%c0_72, %c0_73], %59 {strides = array<i32>} : memref<256x8xf32, #tpu.memory_space<vmem>>, vector<256x8xf32>,
    %c0_74 = arith.constant 0 : index
    %c2_75 = arith.constant 2 : index
    %c1_76 = arith.constant 1 : index
    %c0_77 = arith.constant 0 : index
    %61 = vector.load %arg3[%c0_74, %c2_75, %c1_76, %c0_77] : memref<1x18x18x4xf32, #tpu.memory_space<vmem>>, vector<1x16x16x4xf32>
    %62 = vector.shape_cast %61 : vector<1x16x16x4xf32> to vector<16x16x4xf32>
    %63 = vector.shape_cast %62 : vector<16x16x4xf32> to vector<256x4xf32>
    %c7 = arith.constant 7 : index
    %c0_78 = arith.constant 0 : index
    %c0_79 = arith.constant 0 : index
    %64 = vector.load %arg1[%c7, %c0_78, %c0_79] : memref<9x4x8xf32, #tpu.memory_space<vmem>>, vector<1x4x8xf32>
    %65 = vector.shape_cast %64 : vector<1x4x8xf32> to vector<4x8xf32>
    %cst_80 = arith.constant dense<0.000000e+00> : vector<256x8xf32>
    %66 = tpu.matmul %63, %65, %cst_80 {dimension_numbers = #tpu.dot_dimension_numbers<[1], [0], [0], [1], [0, 0, 1, 1], [], []>, precision = #tpu.contract_precision<fp32>} : vector<256x4xf32>, vector<4x8xf32>, vector<256x8xf32> -> vector<256x8xf32>
    %c0_81 = arith.constant 0 : index
    %c0_82 = arith.constant 0 : index
    %67 = vector.load %arg5[%c0_81, %c0_82] : memref<256x8xf32, #tpu.memory_space<vmem>>, vector<256x8xf32>
    %68 = arith.addf %67, %66 : vector<256x8xf32>
    %c0_83 = arith.constant 0 : index
    %c0_84 = arith.constant 0 : index
    %69 = vector.load %arg5[%c0_83, %c0_84] : memref<256x8xf32, #tpu.memory_space<vmem>>, vector<256x8xf32>
    tpu.vector_store %arg5[%c0_83, %c0_84], %68 {strides = array<i32>} : memref<256x8xf32, #tpu.memory_space<vmem>>, vector<256x8xf32>,
    %c0_85 = arith.constant 0 : index
    %c2_86 = arith.constant 2 : index
    %c2_87 = arith.constant 2 : index
    %c0_88 = arith.constant 0 : index
    %70 = vector.load %arg3[%c0_85, %c2_86, %c2_87, %c0_88] : memref<1x18x18x4xf32, #tpu.memory_space<vmem>>, vector<1x16x16x4xf32>
    %71 = vector.shape_cast %70 : vector<1x16x16x4xf32> to vector<16x16x4xf32>
    %72 = vector.shape_cast %71 : vector<16x16x4xf32> to vector<256x4xf32>
    %c8 = arith.constant 8 : index
    %c0_89 = arith.constant 0 : index
    %c0_90 = arith.constant 0 : index
    %73 = vector.load %arg1[%c8, %c0_89, %c0_90] : memref<9x4x8xf32, #tpu.memory_space<vmem>>, vector<1x4x8xf32>
    %74 = vector.shape_cast %73 : vector<1x4x8xf32> to vector<4x8xf32>
    %cst_91 = arith.constant dense<0.000000e+00> : vector<256x8xf32>
    %75 = tpu.matmul %72, %74, %cst_91 {dimension_numbers = #tpu.dot_dimension_numbers<[1], [0], [0], [1], [0, 0, 1, 1], [], []>, precision = #tpu.contract_precision<fp32>} : vector<256x4xf32>, vector<4x8xf32>, vector<256x8xf32> -> vector<256x8xf32>
    %c0_92 = arith.constant 0 : index
    %c0_93 = arith.constant 0 : index
    %76 = vector.load %arg5[%c0_92, %c0_93] : memref<256x8xf32, #tpu.memory_space<vmem>>, vector<256x8xf32>
    %77 = arith.addf %76, %75 : vector<256x8xf32>
    %c0_94 = arith.constant 0 : index
    %c0_95 = arith.constant 0 : index
    %78 = vector.load %arg5[%c0_94, %c0_95] : memref<256x8xf32, #tpu.memory_space<vmem>>, vector<256x8xf32>
    tpu.vector_store %arg5[%c0_94, %c0_95], %77 {strides = array<i32>} : memref<256x8xf32, #tpu.memory_space<vmem>>, vector<256x8xf32>,
    %c0_96 = arith.constant 0 : index
    %c0_97 = arith.constant 0 : index
    %79 = vector.load %arg5[%c0_96, %c0_97] : memref<256x8xf32, #tpu.memory_space<vmem>>, vector<256x8xf32>
    %cst_98 = arith.constant 0.166666672 : f32
    %80 = vector.broadcast %cst_98 : f32 to vector<256x8xf32>
    %81 = arith.mulf %79, %80 : vector<256x8xf32>
    %c0_99 = arith.constant 0 : index
    %c0_100 = arith.constant 0 : index
    %82 = vector.load %arg2[%c0_99, %c0_100] : memref<1x8xf32, #tpu.memory_space<vmem>>, vector<1x8xf32>
    %83 = vector.broadcast %82 : vector<1x8xf32> to vector<256x8xf32>
    %84 = arith.addf %81, %83 : vector<256x8xf32>
    %cst_101 = arith.constant 0.000000e+00 : f32
    %85 = vector.broadcast %cst_101 : f32 to vector<256x8xf32>
    %86 = arith.cmpf oge, %84, %85 : vector<256x8xf32>
    %cst_102 = arith.constant 2.000000e-01 : f32
    %87 = vector.broadcast %cst_102 : f32 to vector<256x8xf32>
    %88 = arith.mulf %87, %84 : vector<256x8xf32>
    %89 = arith.select %86, %84, %88 : vector<256x8xi1>, vector<256x8xf32>
    %cst_103 = arith.constant 1.41421354 : f32
    %90 = vector.broadcast %cst_103 : f32 to vector<256x8xf32>
    %91 = arith.mulf %89, %90 : vector<256x8xf32>
    %92 = vector.shape_cast %91 : vector<256x8xf32> to vector<1x256x8xf32>
    %c0_104 = arith.constant 0 : index
    %c0_105 = arith.constant 0 : index
    %c0_106 = arith.constant 0 : index
    %93 = vector.load %arg4[%c0_104, %c0_105, %c0_106] : memref<1x256x8xf32, #tpu.memory_space<vmem>>, vector<1x256x8xf32>
    tpu.vector_store %arg4[%c0_104, %c0_105, %c0_106], %92 {strides = array<i32>} : memref<1x256x8xf32, #tpu.memory_space<vmem>>, vector<1x256x8xf32>,
    return
  }
  func.func @transform_0(%arg0: i32) -> (i32, i32, i32) {
    %c0_i32 = arith.constant 0 : i32
    %c0_i32_0 = arith.constant 0 : i32
    %c0_i32_1 = arith.constant 0 : i32
    %c0_i32_2 = arith.constant 0 : i32
    return %c0_i32, %c0_i32_0, %c0_i32_1 : i32, i32, i32
  }
  func.func @transform_1(%arg0: i32) -> (i32, i32) {
    %c0_i32 = arith.constant 0 : i32
    %c0_i32_0 = arith.constant 0 : i32
    %c0_i32_1 = arith.constant 0 : i32
    return %c0_i32, %c0_i32_0 : i32, i32
  }
  func.func @transform_2(%arg0: i32) -> (i32, i32, i32, i32) {
    %c0_i32 = arith.constant 0 : i32
    %c0_i32_0 = arith.constant 0 : i32
    %c0_i32_1 = arith.constant 0 : i32
    %c0_i32_2 = arith.constant 0 : i32
    return %arg0, %c0_i32, %c0_i32_0, %c0_i32_1 : i32, i32, i32, i32
  }
  func.func @transform_3(%arg0: i32) -> (i32, i32, i32) {
    %c0_i32 = arith.constant 0 : i32
    %c0_i32_0 = arith.constant 0 : i32
    %c0_i32_1 = arith.constant 0 : i32
    return %arg0, %c0_i32, %c0_i32_0 : i32, i32, i32
  }
}

</mosaic_0001>

<bundles_post_ra>
// kernel: tpu_custom_call.1
= control target key start
LH: loop header
LB: loop body
LE: loop exit
PB: predicated region body
PF: predicated region fallthrough
CT: control target
= control target key end

     0   :  { %s24672_s12 = smov 0   ;;  %s31339_s0 = inlined_call_operand.vmem [shape: f32[9,4,8], index: 0, kind: input, shape index: {}]   ;;  %s31340_s1 = inlined_call_operand.vmem [shape: f32[1,8], index: 1, kind: input, shape index: {}]   ;;  %s31341_s2 = inlined_call_operand.vmem [shape: f32[2,18,18,4], index: 2, kind: input, shape index: {}]   ;;  %s31342_s3 = inlined_call_operand.vmem [shape: f32[2,256,8], index: 3, kind: output, shape index: {}]  }
   0x1 LB: > { %s18501_s13 = sadd.s32 4294967295, %s24650_s12   ;;  %p18505_p0 = scmp.ge.s32.totalorder %s24650_s12, 1  ;;  %s24650_s12 = sphi %s24672_s12, %s13_s12  }
   0x2   : > { %p137_p1 = scmp.lt.s32.totalorder %s24650_s12, 3 }
   0x4   : > { %p138_p2 = pnand %p18505_p0, %p137_p1 }
   0x6   : > { %141 = sbr.rel (%p138_p2) target bundleno = 2031 (0x7ef), region = 32 }
   0xd   : > { %v203_v0 = vld [vmem:[%s31339_s0] sm:$0xf]  ;;  %vm301_vm0 = vcmask 1043456   ;;  %p161_p3 = scmp.lt.s32.totalorder %s18501_s13, 1  ;;  %vm204_vm1 = vcmask 31744   ;;  %vm2084_vm2 = vcmask 64512  }
   0xe   : > { %v303_v1 = vsel %vm301_vm0, %v203_v0, 0 }
   0xf   : > { %v24684_v2 = vand.u32 4294901760, %v303_v1  ;;  %s34246_s13 = smov (!%p161_p3, %s18501_s13), 1 }
  0x10   : > { %s24635_s16 = smul.u32 432, %s34246_s13  ;;  %s18712_s11 = sshll.u32 %s34246_s13, 8 }
  0x11   : > { %20645 = vmatprep.subr.mxu0 %v24684_v2  ;;  %20495 = vmatprep.subr.mxu1 %v24684_v2  ;;  %v24692_v3 = vsub.f32 %v303_v1, %v24684_v2  ;;  %s31132_s15 = scalar_lea.vmem %s31342_s3, %s18712_s11 }
  0x12   : > { %20646 = vmatpush3.msra.mxu0 %v24684_v2  ;;  %20496 = vmatpush3.msra.mxu1 %v24684_v2  ;;  %s24699_s19 = scalar_lea.vmem %s31341_s2, %s24635_s16 }
  0x13   : > { %v694_v4 = vand.u32 4294901760, %v24692_v3  ;;  %v171_v5 = vld [vmem:[%s24699_s19] sm:$0xff]  ;;  %v172_v6 = vld [vmem:[%s24699_s19 + $0x8] sm:$0xff]  ;;  %v173_v7 = vld [vmem:[%s24699_s19 + $0x18] sm:$0xff] }
  0x14   : > { %v206_v8 = vsel %vm204_vm1, %v171_v5, 0  ;;  %v209_v9 = vsel %vm204_vm1, %v172_v6, 0  ;;  %v212_v11 = vsel %vm204_vm1, %v173_v7, 0  ;;  %v174_v12 = vld [vmem:[%s24699_s19 + $0x20] sm:$0xff]  ;;  %v175_v13 = vld [vmem:[%s24699_s19 + $0x30] sm:$0xff]  ;;  %v176_v14 = vld [vmem:[%s24699_s19 + $0x38] sm:$0xff] }
  0x15   : > { %v695_v10 = vsub.f32 %v24692_v3, %v694_v4  ;;  %20695 = vmatprep.subr.mxu0 %v694_v4  ;;  %v24712_v15 = vand.u32 4294901760, %v206_v8  ;;  %v24714_v16 = vand.u32 4294901760, %v209_v9  ;;  %v24716_v17 = vand.u32 4294901760, %v212_v11  ;;  %v177_v19 = vld [vmem:[%s24699_s19 + $0x48] sm:$0xff]  ;;  %v178_v20 = vld [vmem:[%s24699_s19 + $0x50] sm:$0xff]  ;;  %v179_v49 = vld [vmem:[%s24699_s19 + $0x60] sm:$0xff] }
  0x16   : > { %v215_v18 = vsel %vm204_vm1, %v174_v12, 0  ;;  %v218_v23 = vsel %vm204_vm1, %v175_v13, 0  ;;  %v221_v24 = vsel %vm204_vm1, %v176_v14, 0  ;;  %v224_v31 = vsel %vm204_vm1, %v177_v19, 0  ;;  %v180_v50 = vld [vmem:[%s24699_s19 + $0x68] sm:$0xff]  ;;  %v181_v51 = vld [vmem:[%s24699_s19 + $0x78] sm:$0xff] }
  0x17   : > { %v696_v21 = vand.u32 4294901760, %v695_v10  ;;  %v24721_v22 = vand.u32 4294901760, %v215_v18  ;;  %v24726_v25 = vsub.f32 %v206_v8, %v24712_v15  ;;  %v24729_v26 = vsub.f32 %v209_v9, %v24714_v16  ;;  %v182_v59 = vld [vmem:[%s24699_s19 + $0x80] sm:$0xff]  ;;  %v183_v60 = vld [vmem:[%s24699_s19 + $0x90] sm:$0xff]  ;;  %v184_v7 = vld [vmem:[%s24699_s19 + $0x98] sm:$0xff] }
  0x18   : > { %v24732_v27 = vsub.f32 %v212_v11, %v24716_v17  ;;  %v24734_v28 = vand.u32 4294901760, %v218_v23  ;;  %v24739_v30 = vand.u32 4294901760, %v221_v24  ;;  %v227_v32 = vsel %vm204_vm1, %v178_v20, 0  ;;  %v185_v12 = vld [vmem:[%s24699_s19 + $0xa8] sm:$0xff] }
  0x19   : > { %20545 = vmatprep.subr.mxu1 %v696_v21  ;;  %v24737_v29 = vsub.f32 %v215_v18, %v24721_v22  ;;  %v373_v33 = vand.u32 4294901760, %v24726_v25  ;;  %v383_v34 = vand.u32 4294901760, %v24729_v26  ;;  %v24753_v39 = vand.u32 4294901760, %v224_v31 }
  0x1a   : > { %v393_v35 = vand.u32 4294901760, %v24732_v27  ;;  %v24747_v36 = vsub.f32 %v218_v23, %v24734_v28  ;;  %v24751_v38 = vsub.f32 %v221_v24, %v24739_v30  ;;  %v24755_v40 = vand.u32 4294901760, %v227_v32 }
  0x1b   : > { %v403_v37 = vand.u32 4294901760, %v24737_v29  ;;  %20647 = vmatprep.mubr.f32.mxu0 %v373_v33  ;;  %v374_v41 = vsub.f32 %v24726_v25, %v373_v33  ;;  %v384_v42 = vsub.f32 %v24729_v26, %v383_v34  ;;  %v24764_v47 = vsub.f32 %v224_v31, %v24753_v39  ;;  %v186_v31 = vld [vmem:[%s24699_s19 + $0xb0] sm:$0xff] }
  0x1c   : > { %v394_v43 = vsub.f32 %v24732_v27, %v393_v35  ;;  %v413_v44 = vand.u32 4294901760, %v24747_v36  ;;  %20648 = vmatmul.mubr.f32.vlgmr.msra.gmra.mrb[0].mxu0 %v383_v34  ;;  %v423_v46 = vand.u32 4294901760, %v24751_v38  ;;  %v24767_v48 = vsub.f32 %v227_v32, %v24755_v40 }
  0x1d   : > { %v404_v45 = vsub.f32 %v24737_v29, %v403_v37  ;;  %v375_v52 = vand.u32 4294901760, %v374_v41  ;;  %20650 = vmatprep.mubr.f32.mxu0 %v393_v35  ;;  %v385_v53 = vand.u32 4294901760, %v384_v42  ;;  %20696 = vmatpush3.msra.mxu0 %v694_v4  ;;  %v433_v56 = vand.u32 4294901760, %v24764_v47 }
  0x1e   : > { %32349 = vst [vmem:[#allocation3_spill] sm:$0xff] %v24767_v48  ;;  %v395_v54 = vand.u32 4294901760, %v394_v43  ;;  %v414_v55 = vsub.f32 %v24747_v36, %v413_v44  ;;  %v424_v57 = vsub.f32 %v24751_v38, %v423_v46  ;;  %v443_v58 = vand.u32 4294901760, %v24767_v48  ;;  %20745 = vmatprep.subr.mxu0 %v24684_v2 }
  0x1f   : > { %20497 = vmatprep.mubr.f32.mxu1 %v375_v52  ;;  %v405_v61 = vand.u32 4294901760, %v404_v45  ;;  %v230_v62 = vsel %vm204_vm1, %v179_v49, 0  ;;  %v233_v63 = vsel %vm204_vm1, %v180_v50, 0  ;;  %v236_v0 = vsel %vm204_vm1, %v181_v51, 0  ;;  %v187_v52 = vld [vmem:[%s24699_s19 + $0xc0] sm:$0xff] }
  0x20   : > { %20498 = vmatmul.mubr.f32.vlgmr.msra.gmra.mrb[0].mxu1 %v385_v53  ;;  %20651 = vmatmul.mubr.f32.gmra.mrb[2].mxu0 %v403_v37  ;;  %v415_v1 = vand.u32 4294901760, %v414_v55  ;;  %v425_v4 = vand.u32 4294901760, %v424_v57  ;;  %v434_v5 = vsub.f32 %v24764_v47, %v433_v56  ;;  %v24783_v6 = vand.u32 4294901760, %v230_v62 }
  0x21   : > { %20546 = vmatpush3.msra.mxu1 %v696_v21  ;;  %20500 = vmatprep.mubr.f32.mxu1 %v395_v54  ;;  %v24786_v8 = vand.u32 4294901760, %v233_v63  ;;  %v24788_v9 = vand.u32 4294901760, %v236_v0  ;;  %v239_v10 = vsel %vm204_vm1, %v182_v59, 0  ;;  %v242_v11 = vsel %vm204_vm1, %v183_v60, 0  ;;  %v189_v60 = vld [vmem:[%s24699_s19 + $0xd8] sm:$0xff] }
  0x22   : > { %20653 = vmatprep.mubr.f32.mxu0 %v413_v44  ;;  %v435_v13 = vand.u32 4294901760, %v434_v5  ;;  %v24794_v14 = vsub.f32 %v230_v62, %v24783_v6  ;;  %v444_v18 = vsub.f32 %v24767_v48, %v443_v58  ;;  %v24797_v19 = vand.u32 4294901760, %v239_v10  ;;  %20595 = vmatprep.subr.mxu1 %v24692_v3 }
  0x23   : > { %v24801_v20 = vsub.f32 %v233_v63, %v24786_v8  ;;  %v24804_v21 = vsub.f32 %v236_v0, %v24788_v9  ;;  %v24806_v23 = vand.u32 4294901760, %v242_v11  ;;  %v245_v24 = vsel %vm204_vm1, %v184_v7, 0  ;;  %v191_v7 = vld [vmem:[%s24699_s19 + $0xf0] sm:$0xff] }
  0x24   : > { %32350 = vst [vmem:[#allocation4_spill] sm:$0xff] %v24794_v14  ;;  %20501 = vmatmul.mubr.f32.gmra.mrb[2].mxu1 %v405_v61  ;;  %20654 = vmatmul.mubr.f32.gmra.mrb[4].mxu0 %v423_v46  ;;  %v453_v32 = vand.u32 4294901760, %v24794_v14  ;;  %v24812_v33 = vsub.f32 %v239_v10, %v24797_v19  ;;  %v24814_v34 = vand.u32 4294901760, %v245_v24  ;;  %v248_v35 = vsel %vm204_vm1, %v185_v12, 0 }
  0x25   : > { %32351 = vst [vmem:[#allocation5_spill] sm:$0xff] %v24801_v20  ;;  %32352 = vst [vmem:[#allocation6_spill] sm:$0xff] %v24804_v21  ;;  %20503 = vmatprep.mubr.f32.mxu1 %v415_v1  ;;  %20656 = vmatprep.mubr.f32.mxu0 %v433_v56  ;;  %v463_v37 = vand.u32 4294901760, %v24801_v20  ;;  %v473_v41 = vand.u32 4294901760, %v24804_v21  ;;  %v24820_v42 = vsub.f32 %v242_v11, %v24806_v23  ;;  %v24822_v43 = vand.u32 4294901760, %v248_v35  ;;  %v188_v56 = vld [vmem:[%s24699_s19 + $0xc8] sm:$0xff] }
  0x26   : > { %32353 = vst [vmem:[#allocation7_spill] sm:$0xff] %v24812_v33  ;;  %v454_v44 = vsub.f32 %v24794_v14, %v453_v32  ;;  %v483_v45 = vand.u32 4294901760, %v24812_v33  ;;  %v24827_v46 = vsub.f32 %v245_v24, %v24814_v34  ;;  %v251_v49 = vsel %vm204_vm1, %v186_v31, 0  ;;  %v201_v14 = vld [vmem:[%s24699_s19 + $0x168] sm:$0xff] }
  0x27   : > { %32354 = vst [vmem:[#allocation8_spill] sm:$0xff] %v24820_v42  ;;  %v493_v50 = vand.u32 4294901760, %v24820_v42  ;;  %v24832_v51 = vsub.f32 %v248_v35, %v24822_v43  ;;  %v445_v53 = vand.u32 4294901760, %v444_v18  ;;  %v464_v54 = vsub.f32 %v24801_v20, %v463_v37  ;;  %v192_v35 = vld [vmem:[%s24699_s19 + $0xf8] sm:$0xff] }
  0x28   : > { %32355 = vst [vmem:[#allocation9_spill] sm:$0xff] %v24827_v46  ;;  %20504 = vmatmul.mubr.f32.gmra.mrb[4].mxu1 %v425_v4  ;;  %20657 = vmatmul.mubr.f32.gmra.mrb[6].mxu0 %v443_v58  ;;  %v24836_v55 = vand.u32 4294901760, %v251_v49  ;;  %v455_v57 = vand.u32 4294901760, %v454_v44  ;;  %v474_v59 = vsub.f32 %v24804_v21, %v473_v41  ;;  %v484_v61 = vsub.f32 %v24812_v33, %v483_v45  ;;  %v190_v58 = vld [vmem:[%s24699_s19 + $0xe0] sm:$0xff]  ;;  %v193_v44 = vld [vmem:[%s24699_s19 + $0x108] sm:$0xff] }
  0x29   : > { %32356 = vst [vmem:[#allocation10_spill] sm:$0xff] %v24832_v51  ;;  %20506 = vmatprep.mubr.f32.mxu1 %v435_v13  ;;  %20659 = vmatprep.mubr.f32.mxu0 %v453_v32  ;;  %v503_v62 = vand.u32 4294901760, %v24827_v46  ;;  %v254_v63 = vsel %vm204_vm1, %v187_v52, 0  ;;  %v494_v0 = vsub.f32 %v24820_v42, %v493_v50  ;;  %v513_v1 = vand.u32 4294901760, %v24832_v51 }
  0x2a   : > { %v24847_v4 = vand.u32 4294901760, %v254_v63  ;;  %v257_v5 = vsel %vm204_vm1, %v188_v56, 0  ;;  %v465_v10 = vand.u32 4294901760, %v464_v54  ;;  %v24852_v11 = vsub.f32 %v251_v49, %v24836_v55 }
  0x2b   : > { %v24854_v12 = vand.u32 4294901760, %v257_v5  ;;  %v260_v13 = vsel %vm204_vm1, %v189_v60, 0  ;;  %v475_v18 = vand.u32 4294901760, %v474_v59  ;;  %v263_v32 = vsel %vm204_vm1, %v190_v58, 0  ;;  %v194_v58 = vld [vmem:[%s24699_s19 + $0x110] sm:$0xff] }
  0x2c   : > { %20507 = vmatmul.mubr.f32.gmra.mrb[6].mxu1 %v445_v53  ;;  %20660 = vmatmul.mubr.f32.gmra.mrb[8].mxu0 %v463_v37  ;;  %32357 = vst [vmem:[#allocation11_spill] sm:$0xff] %v24852_v11  ;;  %v24858_v24 = vsub.f32 %v254_v63, %v24847_v4  ;;  %v24860_v31 = vand.u32 4294901760, %v260_v13  ;;  %v266_v37 = vsel %vm204_vm1, %v191_v7, 0  ;;  %v485_v49 = vand.u32 4294901760, %v484_v61 }
  0x2d   : > { %20509 = vmatprep.mubr.f32.mxu1 %v455_v57  ;;  %20662 = vmatprep.mubr.f32.mxu0 %v473_v41  ;;  %v495_v52 = vand.u32 4294901760, %v494_v0  ;;  %v504_v53 = vsub.f32 %v24827_v46, %v503_v62  ;;  %v514_v41 = vsub.f32 %v24832_v51, %v513_v1  ;;  %v523_v54 = vand.u32 4294901760, %v24852_v11  ;;  %v195_v0 = vld [vmem:[%s24699_s19 + $0x120] sm:$0xff] }
  0x2e   : > { %32358 = vst [vmem:[#allocation12_spill] sm:$0xff] %v24858_v24  ;;  %v24870_v56 = vsub.f32 %v257_v5, %v24854_v12  ;;  %v24872_v57 = vand.u32 4294901760, %v263_v32  ;;  %v269_v59 = vsel %vm204_vm1, %v192_v35, 0  ;;  %v533_v60 = vand.u32 4294901760, %v24858_v24 }
  0x2f   : > { %v24877_v61 = vsub.f32 %v260_v13, %v24860_v31  ;;  %v24879_v63 = vand.u32 4294901760, %v266_v37  ;;  %v505_v7 = vand.u32 4294901760, %v504_v53  ;;  %v515_v5 = vand.u32 4294901760, %v514_v41 }
  0x30   : > { %20510 = vmatmul.mubr.f32.gmra.mrb[8].mxu1 %v465_v10  ;;  %20663 = vmatmul.mubr.f32.gmra.mrb[10].mxu0 %v483_v45  ;;  %32359 = vst [vmem:[#allocation13_spill] sm:$0xff] %v24870_v56  ;;  %v272_v45 = vsel %vm204_vm1, %v193_v44, 0  ;;  %v24884_v10 = vand.u32 4294901760, %v269_v59  ;;  %v543_v13 = vand.u32 4294901760, %v24870_v56  ;;  %v275_v35 = vsel %vm204_vm1, %v194_v58, 0 }
  0x31   : > { %20512 = vmatprep.mubr.f32.mxu1 %v475_v18  ;;  %20665 = vmatprep.mubr.f32.mxu0 %v493_v50  ;;  %32360 = vst [vmem:[#allocation14_spill] sm:$0xff] %v24877_v61  ;;  %v24886_v51 = vand.u32 4294901760, %v272_v45  ;;  %v524_v50 = vsub.f32 %v24852_v11, %v523_v54  ;;  %v24891_v18 = vsub.f32 %v263_v32, %v24872_v57  ;;  %v553_v53 = vand.u32 4294901760, %v24877_v61 }
  0x32   : > { %v534_v44 = vsub.f32 %v24858_v24, %v533_v60  ;;  %v24897_v41 = vsub.f32 %v266_v37, %v24879_v63  ;;  %v24902_v11 = vsub.f32 %v269_v59, %v24884_v10  ;;  %v24907_v58 = vand.u32 4294901760, %v275_v35 }
  0x33   : > { %32361 = vst [vmem:[#allocation15_spill] sm:$0xff] %v24891_v18  ;;  %v24905_v32 = vsub.f32 %v272_v45, %v24886_v51  ;;  %v544_v37 = vsub.f32 %v24870_v56, %v543_v13  ;;  %v563_v24 = vand.u32 4294901760, %v24891_v18  ;;  %v554_v45 = vsub.f32 %v24877_v61, %v553_v53 }
  0x34   : > { %20513 = vmatmul.mubr.f32.gmra.mrb[10].mxu1 %v485_v49  ;;  %20666 = vmatmul.mubr.f32.gmra.mrb[12].mxu0 %v503_v62  ;;  %32362 = vst [vmem:[#allocation16_spill] sm:$0xff] %v24897_v41  ;;  %v278_v62 = vsel %vm204_vm1, %v195_v0, 0  ;;  %v196_v49 = vld [vmem:[%s24699_s19 + $0x128] sm:$0xff]  ;;  %32363 = vst [vmem:[#allocation17_spill] sm:$0xff] %v24902_v11  ;;  %v535_v59 = vand.u32 4294901760, %v534_v44  ;;  %v573_v46 = vand.u32 4294901760, %v24897_v41  ;;  %v24922_v33 = vsub.f32 %v275_v35, %v24907_v58 }
  0x35   : > { %20515 = vmatprep.mubr.f32.mxu1 %v495_v52  ;;  %20668 = vmatprep.mubr.f32.mxu0 %v513_v1  ;;  %32364 = vst [vmem:[#allocation18_spill] sm:$0xff] %v24905_v32  ;;  %v197_v1 = vld [vmem:[%s24699_s19 + $0x138] sm:$0xff]  ;;  %v525_v52 = vand.u32 4294901760, %v524_v50  ;;  %v24912_v0 = vand.u32 4294901760, %v278_v62  ;;  %v281_v42 = vsel %vm204_vm1, %v196_v49, 0  ;;  %v583_v50 = vand.u32 4294901760, %v24902_v11 }
  0x36   : > { %v593_v56 = vand.u32 4294901760, %v24905_v32  ;;  %32365 = vst [vmem:[#allocation19_spill] sm:$0xff] %v24922_v33  ;;  %v564_v44 = vsub.f32 %v24891_v18, %v563_v24  ;;  %v555_v61 = vand.u32 4294901760, %v554_v45  ;;  %v574_v21 = vsub.f32 %v24897_v41, %v573_v46 }
  0x37   : > { %v24927_v49 = vsub.f32 %v278_v62, %v24912_v0  ;;  %v603_v18 = vand.u32 4294901760, %v24922_v33 }
  0x38   : > { %20516 = vmatmul.mubr.f32.gmra.mrb[12].mxu1 %v505_v7  ;;  %20669 = vmatmul.mubr.f32.gmra.mrb[14].mxu0 %v523_v54  ;;  %v284_v7 = vsel %vm204_vm1, %v197_v1, 0  ;;  %v198_v54 = vld [vmem:[%s24699_s19 + $0x140] sm:$0xff]  ;;  %v24929_v1 = vand.u32 4294901760, %v281_v42  ;;  %v594_v62 = vsub.f32 %v24905_v32, %v593_v56 }
  0x39   : > { %20518 = vmatprep.mubr.f32.mxu1 %v515_v5  ;;  %20671 = vmatprep.mubr.f32.mxu0 %v533_v60  ;;  %v199_v5 = vld [vmem:[%s24699_s19 + $0x150] sm:$0xff]  ;;  %v545_v60 = vand.u32 4294901760, %v544_v37  ;;  %32366 = vst [vmem:[#allocation20_spill] sm:$0xff] %v24927_v49  ;;  %v24932_v20 = vand.u32 4294901760, %v284_v7  ;;  %v287_v35 = vsel %vm204_vm1, %v198_v54, 0  ;;  %v584_v37 = vsub.f32 %v24902_v11, %v583_v50 }
  0x3a   : > { %v24943_v45 = vsub.f32 %v281_v42, %v24929_v1  ;;  %v24945_v54 = vand.u32 4294901760, %v287_v35  ;;  %v595_v48 = vand.u32 4294901760, %v594_v62  ;;  %v604_v42 = vsub.f32 %v24922_v33, %v603_v18 }
  0x3b   : > { %v24948_v11 = vsub.f32 %v284_v7, %v24932_v20 }
  0x3c   : > { %20519 = vmatmul.mubr.f32.gmra.mrb[14].mxu1 %v525_v52  ;;  %20672 = vmatmul.mubr.f32.gmra.mrb[16].mxu0 %v543_v13  ;;  %v290_v13 = vsel %vm204_vm1, %v199_v5, 0  ;;  %v200_v52 = vld [vmem:[%s24699_s19 + $0x158] sm:$0xff]  ;;  %v575_v5 = vand.u32 4294901760, %v574_v21  ;;  %v605_v62 = vand.u32 4294901760, %v604_v42 }
  0x3d   : > { %20521 = vmatprep.mubr.f32.mxu1 %v535_v59  ;;  %20674 = vmatprep.mubr.f32.mxu0 %v553_v53  ;;  %v565_v53 = vand.u32 4294901760, %v564_v44  ;;  %v613_v59 = vand.u32 4294901760, %v24927_v49  ;;  %v24950_v41 = vand.u32 4294901760, %v290_v13  ;;  %v293_v32 = vsel %vm204_vm1, %v200_v52, 0 }
  0x3e   : > { %v585_v44 = vand.u32 4294901760, %v584_v37  ;;  %v24961_v7 = vand.u32 4294901760, %v293_v32 }
  0x3f   : > { %v614_v21 = vsub.f32 %v24927_v49, %v613_v59  ;;  %v24965_v52 = vsub.f32 %v290_v13, %v24950_v41 }
  0x40   : > { %20522 = vmatmul.mubr.f32.gmra.mrb[16].mxu1 %v545_v60  ;;  %20675 = vmatmul.mubr.f32.gmra.mrb[18].mxu0 %v563_v24  ;;  %v296_v24 = vsel %vm204_vm1, %v201_v14, 0  ;;  %v202_v60 = vld [vmem:[%s24699_s19 + $0x170] sm:$0xff]  ;;  %v633_v14 = vand.u32 4294901760, %v24948_v11  ;;  %v24973_v49 = vsub.f32 %v293_v32, %v24961_v7 }
  0x41   : > { %20524 = vmatprep.mubr.f32.mxu1 %v555_v61  ;;  %20677 = vmatprep.mubr.f32.mxu0 %v573_v46  ;;  %v623_v61 = vand.u32 4294901760, %v24943_v45  ;;  %v24959_v46 = vsub.f32 %v287_v35, %v24945_v54  ;;  %v24967_v37 = vand.u32 4294901760, %v296_v24  ;;  %v615_v13 = vand.u32 4294901760, %v614_v21 }
  0x42   : > { %v653_v33 = vand.u32 4294901760, %v24965_v52  ;;  %v663_v32 = vand.u32 4294901760, %v24973_v49 }
  0x43   : > { %v643_v35 = vand.u32 4294901760, %v24959_v46 }
  0x44   : > { %20525 = vmatmul.mubr.f32.gmra.mrb[18].mxu1 %v565_v53  ;;  %20678 = vmatmul.mubr.f32.gmra.mrb[20].mxu0 %v583_v50  ;;  %v299_v50 = vsel %vm204_vm1, %v202_v60, 0  ;;  %v624_v53 = vsub.f32 %v24943_v45, %v623_v61  ;;  %v24980_v60 = vsub.f32 %v296_v24, %v24967_v37 }
  0x45   : > { %20527 = vmatprep.mubr.f32.mxu1 %v575_v5  ;;  %20680 = vmatprep.mubr.f32.mxu0 %v593_v56  ;;  %v24975_v56 = vand.u32 4294901760, %v299_v50  ;;  %v634_v5 = vsub.f32 %v24948_v11, %v633_v14 }
  0x46   : > { %v673_v21 = vand.u32 4294901760, %v24980_v60 }
  0x47   : > { %v24985_v42 = vsub.f32 %v299_v50, %v24975_v56 }
  0x48   : > { %20528 = vmatmul.mubr.f32.gmra.mrb[20].mxu1 %v585_v44  ;;  %20681 = vmatmul.mubr.f32.gmra.mrb[22].mxu0 %v603_v18  ;;  %v625_v18 = vand.u32 4294901760, %v624_v53  ;;  %v644_v44 = vsub.f32 %v24959_v46, %v643_v35  ;;  %v674_v50 = vsub.f32 %v24980_v60, %v673_v21 }
  0x49   : > { %20530 = vmatprep.mubr.f32.mxu1 %v595_v48  ;;  %20683 = vmatprep.mubr.f32.mxu0 %v613_v59  ;;  %v635_v48 = vand.u32 4294901760, %v634_v5  ;;  %v654_v59 = vsub.f32 %v24965_v52, %v653_v33 }
  0x4a   : > { %v645_v24 = vand.u32 4294901760, %v644_v44  ;;  %v675_v5 = vand.u32 4294901760, %v674_v50 }
  0x4b   : > { %v655_v53 = vand.u32 4294901760, %v654_v59 }
  0x4c   : > { %20531 = vmatmul.mubr.f32.gmra.mrb[22].mxu1 %v605_v62  ;;  %20684 = vmatmul.mubr.f32.gmra.mrb[24].mxu0 %v623_v61  ;;  %v664_v61 = vsub.f32 %v24973_v49, %v663_v32  ;;  %v683_v62 = vand.u32 4294901760, %v24985_v42 }
  0x4d   : > { %20533 = vmatprep.mubr.f32.mxu1 %v615_v13  ;;  %20686 = vmatprep.mubr.f32.mxu0 %v633_v14 }
  0x4e   : > { %v665_v14 = vand.u32 4294901760, %v664_v61  ;;  %v684_v13 = vsub.f32 %v24985_v42, %v683_v62 }
  0x50   : > { %20534 = vmatmul.mubr.f32.gmra.mrb[24].mxu1 %v625_v18  ;;  %20687 = vmatmul.mubr.f32.gmra.mrb[26].mxu0 %v643_v35  ;;  %v18510_v35 = vld [vmem:[%s31339_s0 + $0x8] sm:$0xf]  ;;  %v685_v18 = vand.u32 4294901760, %v684_v13 }
  0x51   : > { %20536 = vmatprep.mubr.f32.mxu1 %v635_v48  ;;  %20689 = vmatprep.mubr.f32.mxu0 %v653_v33  ;;  %v18509_v33 = vld [vmem:[%s31339_s0 + $0x4] sm:$0xf]  ;;  %v4256_v44 = vsel %vm301_vm0, %v18510_v35, 0  ;;  %v4129_v35 = vld [vmem:[%s24699_s19 + $0x32] sm:$0xff] }
  0x52   : > { %v25004_v48 = vand.u32 4294901760, %v4256_v44 }
  0x54   : > { %20537 = vmatmul.mubr.f32.gmra.mrb[26].mxu1 %v645_v24  ;;  %20690 = vmatmul.mubr.f32.gmra.mrb[28].mxu0 %v663_v32  ;;  %v25002_v32 = vsel %vm301_vm0, %v18509_v33, 0 }
  0x55   : > { %20539 = vmatprep.mubr.f32.mxu1 %v655_v53  ;;  %20692 = vmatprep.mubr.f32.mxu0 %v673_v21  ;;  %v25011_v59 = vand.u32 4294901760, %v25002_v32 }
  0x57   : > { %32367 = vst [vmem:[#allocation21_spill] sm:$0xff] %v25011_v59 }
  0x58   : > { %20540 = vmatmul.mubr.f32.gmra.mrb[28].mxu1 %v665_v14  ;;  %20693 = vmatmul.mubr.f32.gmra.mrb[30].mxu0 %v683_v62 }
  0x59   : > { %20542 = vmatprep.mubr.f32.mxu1 %v675_v5  ;;  %20697 = vmatprep.mubr.f32.mxu0 %v24712_v15  ;;  %v2119_v5 = vld [vmem:[%s24699_s19 + $0x19] sm:$0xff] }
  0x5c   : > { %20543 = vmatmul.mubr.f32.gmra.mrb[30].mxu1 %v685_v18  ;;  %20698 = vmatmul.mubr.f32.vlgmr.msra.gmra.mrb[0].mxu0 %v24714_v16  ;;  %v32377_v18 = vld [vmem:[#allocation5_spill] sm:$0xff] }
  0x5d   : > { %20547 = vmatprep.mubr.f32.mxu1 %v24712_v15  ;;  %20700 = vmatprep.mubr.f32.mxu0 %v24716_v17 }
  0x5e   : > { %20746 = vmatpush3.msra.mxu0 %v24684_v2  ;;  %v25065_v2 = vsub.f32 %v4256_v44, %v25004_v48  ;;  %v2120_v44 = vld [vmem:[%s24699_s19 + $0x21] sm:$0xff] }
  0x5f   : > { %21095 = vmatprep.subr.mxu0 %v25004_v48 }
  0x60   : > { %20548 = vmatmul.mubr.f32.vlgmr.msra.gmra.mrb[0].mxu1 %v24714_v16  ;;  %20701 = vmatmul.mubr.f32.gmra.mrb[2].mxu0 %v24721_v22  ;;  %v25076_v21 = vand.u32 4294901760, %v25065_v2 }
  0x61   : > { %20596 = vmatpush3.msra.mxu1 %v24692_v3  ;;  %20550 = vmatprep.mubr.f32.mxu1 %v24716_v17  ;;  %v25073_v3 = vsub.f32 %v25002_v32, %v25011_v59  ;;  %v32380_v32 = vld [vmem:[#allocation6_spill] sm:$0xff] }
  0x62   : > { %20703 = vmatprep.mubr.f32.mxu0 %v24734_v28  ;;  %20795 = vmatprep.subr.mxu1 %v25011_v59  ;;  %32368 = vst [vmem:[#allocation22_spill] sm:$0xff] %v25076_v21  ;;  %v4648_v61 = vsub.f32 %v25065_v2, %v25076_v21 }
  0x63   : > { %v25083_v24 = vand.u32 4294901760, %v25073_v3 }
  0x64   : > { %20551 = vmatmul.mubr.f32.gmra.mrb[2].mxu1 %v24721_v22  ;;  %20704 = vmatmul.mubr.f32.gmra.mrb[4].mxu0 %v24739_v30  ;;  %v25093_v53 = vand.u32 4294901760, %v4648_v61 }
  0x65   : > { %20553 = vmatprep.mubr.f32.mxu1 %v24734_v28  ;;  %20706 = vmatprep.mubr.f32.mxu0 %v24753_v39  ;;  %32369 = vst [vmem:[#allocation23_spill] sm:$0xff] %v25083_v24  ;;  %v2640_v62 = vsub.f32 %v25073_v3, %v25083_v24 }
  0x67   : > { %v25100_v50 = vand.u32 4294901760, %v2640_v62  ;;  %v2158_v62 = vsel %vm204_vm1, %v2119_v5, 0  ;;  %v4131_v5 = vld [vmem:[%s24699_s19 + $0x4a] sm:$0xff] }
  0x68   : > { %20554 = vmatmul.mubr.f32.gmra.mrb[4].mxu1 %v24739_v30  ;;  %20707 = vmatmul.mubr.f32.gmra.mrb[6].mxu0 %v24755_v40 }
  0x69   : > { %20556 = vmatprep.mubr.f32.mxu1 %v24753_v39  ;;  %20709 = vmatprep.mubr.f32.mxu0 %v24783_v6 }
  0x6c   : > { %20557 = vmatmul.mubr.f32.gmra.mrb[6].mxu1 %v24755_v40  ;;  %20710 = vmatmul.mubr.f32.gmra.mrb[8].mxu0 %v24786_v8 }
  0x6d   : > { %20559 = vmatprep.mubr.f32.mxu1 %v24783_v6  ;;  %20712 = vmatprep.mubr.f32.mxu0 %v24788_v9 }
  0x70   : > { %20560 = vmatmul.mubr.f32.gmra.mrb[8].mxu1 %v24786_v8  ;;  %20713 = vmatmul.mubr.f32.gmra.mrb[10].mxu0 %v24797_v19 }
  0x71   : > { %20562 = vmatprep.mubr.f32.mxu1 %v24788_v9  ;;  %20715 = vmatprep.mubr.f32.mxu0 %v24806_v23 }
  0x74   : > { %20563 = vmatmul.mubr.f32.gmra.mrb[10].mxu1 %v24797_v19  ;;  %20716 = vmatmul.mubr.f32.gmra.mrb[12].mxu0 %v24814_v34 }
  0x75   : > { %20565 = vmatprep.mubr.f32.mxu1 %v24806_v23  ;;  %20718 = vmatprep.mubr.f32.mxu0 %v24822_v43 }
  0x78   : > { %20566 = vmatmul.mubr.f32.gmra.mrb[12].mxu1 %v24814_v34  ;;  %20719 = vmatmul.mubr.f32.gmra.mrb[14].mxu0 %v24836_v55 }
  0x79   : > { %20568 = vmatprep.mubr.f32.mxu1 %v24822_v43  ;;  %20721 = vmatprep.mubr.f32.mxu0 %v24847_v4 }
  0x7c   : > { %20569 = vmatmul.mubr.f32.gmra.mrb[14].mxu1 %v24836_v55  ;;  %20722 = vmatmul.mubr.f32.gmra.mrb[16].mxu0 %v24854_v12 }
  0x7d   : > { %20571 = vmatprep.mubr.f32.mxu1 %v24847_v4  ;;  %20724 = vmatprep.mubr.f32.mxu0 %v24860_v31 }
  0x80   : > { %20572 = vmatmul.mubr.f32.gmra.mrb[16].mxu1 %v24854_v12  ;;  %20725 = vmatmul.mubr.f32.gmra.mrb[18].mxu0 %v24872_v57 }
  0x81   : > { %20574 = vmatprep.mubr.f32.mxu1 %v24860_v31  ;;  %20727 = vmatprep.mubr.f32.mxu0 %v24879_v63 }
  0x84   : > { %20575 = vmatmul.mubr.f32.gmra.mrb[18].mxu1 %v24872_v57  ;;  %20728 = vmatmul.mubr.f32.gmra.mrb[20].mxu0 %v24884_v10 }
  0x85   : > { %20577 = vmatprep.mubr.f32.mxu1 %v24879_v63  ;;  %20730 = vmatprep.mubr.f32.mxu0 %v24886_v51 }
  0x88   : > { %20578 = vmatmul.mubr.f32.gmra.mrb[20].mxu1 %v24884_v10  ;;  %20731 = vmatmul.mubr.f32.gmra.mrb[22].mxu0 %v24907_v58 }
  0x89   : > { %20580 = vmatprep.mubr.f32.mxu1 %v24886_v51  ;;  %20733 = vmatprep.mubr.f32.mxu0 %v24912_v0 }
  0x8c   : > { %20581 = vmatmul.mubr.f32.gmra.mrb[22].mxu1 %v24907_v58  ;;  %20734 = vmatmul.mubr.f32.gmra.mrb[24].mxu0 %v24929_v1 }
  0x8d   : > { %20583 = vmatprep.mubr.f32.mxu1 %v24912_v0  ;;  %20736 = vmatprep.mubr.f32.mxu0 %v24932_v20 }
  0x90   : > { %20584 = vmatmul.mubr.f32.gmra.mrb[24].mxu1 %v24929_v1  ;;  %20737 = vmatmul.mubr.f32.gmra.mrb[26].mxu0 %v24945_v54 }
  0x91   : > { %20586 = vmatprep.mubr.f32.mxu1 %v24932_v20  ;;  %20739 = vmatprep.mubr.f32.mxu0 %v24950_v41 }
  0x94   : > { %20587 = vmatmul.mubr.f32.gmra.mrb[26].mxu1 %v24945_v54  ;;  %20740 = vmatmul.mubr.f32.gmra.mrb[28].mxu0 %v24961_v7 }
  0x95   : > { %20589 = vmatprep.mubr.f32.mxu1 %v24950_v41  ;;  %20742 = vmatprep.mubr.f32.mxu0 %v24967_v37 }
  0x98   : > { %20590 = vmatmul.mubr.f32.gmra.mrb[28].mxu1 %v24961_v7  ;;  %20743 = vmatmul.mubr.f32.gmra.mrb[30].mxu0 %v24975_v56 }
  0x99   : > { %20592 = vmatprep.mubr.f32.mxu1 %v24967_v37  ;;  %20747 = vmatprep.mubr.f32.mxu0 %v24712_v15  ;;  %v4125_v15 = vld [vmem:[%s24699_s19 + $0x2] sm:$0xff] }
  0x9c   : > { %20593 = vmatmul.mubr.f32.gmra.mrb[30].mxu1 %v24975_v56  ;;  %20748 = vmatmul.mubr.f32.vlgmr.msra.gmra.mrb[0].mxu0 %v24714_v16  ;;  %v4160_v16 = vsel %vm204_vm1, %v4125_v15, 0  ;;  %v4172_v15 = vsel %vm204_vm1, %v4129_v35, 0  ;;  %v2122_v35 = vld [vmem:[%s24699_s19 + $0x39] sm:$0xff] }
  0x9d   : > { %20597 = vmatprep.mubr.f32.mxu1 %v24726_v25  ;;  %20750 = vmatprep.mubr.f32.mxu0 %v24716_v17  ;;  %v4126_v17 = vld [vmem:[%s24699_s19 + $0xa] sm:$0xff]  ;;  %v4127_v25 = vld [vmem:[%s24699_s19 + $0x1a] sm:$0xff] }
  0x9e   : > { %21096 = vmatpush3.msra.mxu0 %v25004_v48 }
  0x9f   : > { %21145 = vmatprep.subr.mxu0 %v25093_v53 }
  0xa0   : > { %20598 = vmatmul.mubr.f32.vlgmr.msra.gmra.mrb[0].mxu1 %v24729_v26  ;;  %20751 = vmatmul.mubr.f32.gmra.mrb[2].mxu0 %v24721_v22  ;;  %v2117_v22 = vld [vmem:[%s24699_s19 + $0x1] sm:$0xff]  ;;  %v2118_v26 = vld [vmem:[%s24699_s19 + $0x9] sm:$0xff] }
  0xa1   : > { %20796 = vmatpush3.msra.mxu1 %v25011_v59  ;;  %20600 = vmatprep.mubr.f32.mxu1 %v24732_v27  ;;  %v4128_v27 = vld [vmem:[%s24699_s19 + $0x22] sm:$0xff] }
  0xa2   : > { %20753 = vmatprep.mubr.f32.mxu0 %v24734_v28  ;;  %20845 = vmatprep.subr.mxu1 %v25100_v50  ;;  %v25124_v28 = vand.u32 4294901760, %v4160_v16 }
  0xa4   : > { %20601 = vmatmul.mubr.f32.gmra.mrb[2].mxu1 %v24737_v29  ;;  %20754 = vmatmul.mubr.f32.gmra.mrb[4].mxu0 %v24739_v30  ;;  %32370 = vst [vmem:[#allocation24_spill] sm:$0xff] %v25124_v28  ;;  %v4163_v29 = vsel %vm204_vm1, %v4126_v17, 0  ;;  %v32371_v30 = vld [vmem:[#allocation3_spill] sm:$0xff]  ;;  %v25138_v14 = vsub.f32 %v4160_v16, %v25124_v28  ;;  %v2121_v17 = vld [vmem:[%s24699_s19 + $0x31] sm:$0xff] }
  0xa5   : > { %20603 = vmatprep.mubr.f32.mxu1 %v24747_v36  ;;  %20756 = vmatprep.mubr.f32.mxu0 %v24753_v39  ;;  %v2152_v36 = vsel %vm204_vm1, %v2117_v22, 0  ;;  %v32372_v39 = vld [vmem:[#allocation4_spill] sm:$0xff]  ;;  %v4130_v16 = vld [vmem:[%s24699_s19 + $0x3a] sm:$0xff] }
  0xa6   : > { %32374 = vst [vmem:[#allocation4_spill] sm:$0xff] %v25138_v14 }
  0xa8   : > { %20604 = vmatmul.mubr.f32.gmra.mrb[4].mxu1 %v24751_v38  ;;  %20757 = vmatmul.mubr.f32.gmra.mrb[6].mxu0 %v24755_v40  ;;  %v4166_v38 = vsel %vm204_vm1, %v4127_v25, 0  ;;  %v2155_v40 = vsel %vm204_vm1, %v2118_v26, 0  ;;  %v32384_v26 = vld [vmem:[#allocation7_spill] sm:$0xff] }
  0xa9   : > { %20606 = vmatprep.mubr.f32.mxu1 %v24764_v47  ;;  %20759 = vmatprep.mubr.f32.mxu0 %v24783_v6  ;;  %v4169_v47 = vsel %vm204_vm1, %v4128_v27, 0  ;;  %v25135_v6 = vand.u32 4294901760, %v4163_v29  ;;  %v25142_v13 = vand.u32 4294901760, %v4166_v38 }
  0xaa   : > { %v25150_v33 = vand.u32 4294901760, %v4169_v47 }
  0xab   : > { %32373 = vst [vmem:[#allocation3_spill] sm:$0xff] %v25135_v6  ;;  %32376 = vst [vmem:[#allocation26_spill] sm:$0xff] %v25142_v13  ;;  %v25156_v61 = vsub.f32 %v4163_v29, %v25135_v6  ;;  %v25167_v25 = vsub.f32 %v4166_v38, %v25142_v13  ;;  %v25182_v38 = vand.u32 4294901760, %v4172_v15 }
  0xac   : > { %20607 = vmatmul.mubr.f32.gmra.mrb[6].mxu1 %v32371_v30  ;;  %20760 = vmatmul.mubr.f32.gmra.mrb[8].mxu0 %v24786_v8  ;;  %v25140_v8 = vand.u32 4294901760, %v2152_v36  ;;  %32379 = vst [vmem:[#allocation27_spill] sm:$0xff] %v25150_v33  ;;  %v25176_v29 = vsub.f32 %v4169_v47, %v25150_v33  ;;  %v32387_v30 = vld [vmem:[#allocation8_spill] sm:$0xff] }
  0xad   : > { %20609 = vmatprep.mubr.f32.mxu1 %v32372_v39  ;;  %20762 = vmatprep.mubr.f32.mxu0 %v24788_v9  ;;  %v25148_v9 = vand.u32 4294901760, %v2155_v40  ;;  %32381 = vst [vmem:[#allocation6_spill] sm:$0xff] %v25156_v61  ;;  %32383 = vst [vmem:[#allocation29_spill] sm:$0xff] %v25167_v25  ;;  %v4175_v39 = vsel %vm204_vm1, %v4130_v16, 0  ;;  %v4133_v16 = vld [vmem:[%s24699_s19 + $0x62] sm:$0xff] }
  0xae   : > { %32375 = vst [vmem:[#allocation25_spill] sm:$0xff] %v25140_v8  ;;  %v25164_v22 = vsub.f32 %v2152_v36, %v25140_v8  ;;  %32386 = vst [vmem:[#allocation30_spill] sm:$0xff] %v25176_v29  ;;  %v25180_v36 = vand.u32 4294901760, %v2158_v62  ;;  %v25204_v24 = vand.u32 4294901760, %v4175_v39 }
  0xaf   : > { %32378 = vst [vmem:[#allocation5_spill] sm:$0xff] %v25148_v9  ;;  %v25173_v27 = vsub.f32 %v2155_v40, %v25148_v9  ;;  %32389 = vst [vmem:[#allocation31_spill] sm:$0xff] %v25182_v38 }
  0xb0   : > { %20610 = vmatmul.mubr.f32.gmra.mrb[8].mxu1 %v32377_v18  ;;  %20763 = vmatmul.mubr.f32.gmra.mrb[10].mxu0 %v24797_v19  ;;  %v31365_v19 = vand.u32 4294901760, %v25138_v14  ;;  %32382 = vst [vmem:[#allocation28_spill] sm:$0xff] %v25164_v22  ;;  %32388 = vst [vmem:[#allocation8_spill] sm:$0xff] %v25180_v36  ;;  %v32394_v18 = vld [vmem:[#allocation10_spill] sm:$0xff] }
  0xb1   : > { %20612 = vmatprep.mubr.f32.mxu1 %v32380_v32  ;;  %20765 = vmatprep.mubr.f32.mxu0 %v24806_v23  ;;  %v2161_v23 = vsel %vm204_vm1, %v2120_v44, 0  ;;  %32385 = vst [vmem:[#allocation7_spill] sm:$0xff] %v25173_v27  ;;  %v4132_v32 = vld [vmem:[%s24699_s19 + $0x52] sm:$0xff] }
  0xb2   : > { %v25187_v40 = vand.u32 4294901760, %v2161_v23  ;;  %v25193_v47 = vsub.f32 %v25138_v14, %v31365_v19  ;;  %v4178_v19 = vsel %vm204_vm1, %v4131_v5, 0  ;;  %v4181_v14 = vsel %vm204_vm1, %v4132_v32, 0 }
  0xb3   : > { %v25240_v32 = vand.u32 4294901760, %v4178_v19 }
  0xb4   : > { %20613 = vmatmul.mubr.f32.gmra.mrb[10].mxu1 %v32384_v26  ;;  %20766 = vmatmul.mubr.f32.gmra.mrb[12].mxu0 %v24814_v34  ;;  %v2164_v34 = vsel %vm204_vm1, %v2121_v17, 0  ;;  %32390 = vst [vmem:[#allocation32_spill] sm:$0xff] %v25187_v40  ;;  %v2123_v26 = vld [vmem:[%s24699_s19 + $0x49] sm:$0xff]  ;;  %v25220_v17 = vsub.f32 %v2161_v23, %v25187_v40  ;;  %v32400_v23 = vand.u32 4294901760, %v25167_v25  ;;  %v2125_v40 = vld [vmem:[%s24699_s19 + $0x61] sm:$0xff] }
  0xb5   : > { %20615 = vmatprep.mubr.f32.mxu1 %v32387_v30  ;;  %20768 = vmatprep.mubr.f32.mxu0 %v24822_v43  ;;  %v32391_v30 = vld [vmem:[#allocation9_spill] sm:$0xff]  ;;  %v25206_v21 = vand.u32 4294901760, %v2164_v34  ;;  %v25213_v43 = vsub.f32 %v2158_v62, %v25180_v36  ;;  %v2170_v5 = vsel %vm204_vm1, %v2123_v26, 0  ;;  %v32399_v62 = vand.u32 4294901760, %v25164_v22  ;;  %32401 = vst [vmem:[#allocation36_spill] sm:$0xff] %v25240_v32  ;;  %v32402_v26 = vld [vmem:[#allocation11_spill] sm:$0xff] }
  0xb6   : > { %32392 = vst [vmem:[#allocation9_spill] sm:$0xff] %v25204_v24  ;;  %32397 = vst [vmem:[#allocation35_spill] sm:$0xff] %v25220_v17  ;;  %v25279_v59 = vsub.f32 %v4178_v19, %v25240_v32  ;;  %v32445_v36 = vld [vmem:[#allocation20_spill] sm:$0xff] }
  0xb7   : > { %32393 = vst [vmem:[#allocation33_spill] sm:$0xff] %v25206_v21  ;;  %32395 = vst [vmem:[#allocation10_spill] sm:$0xff] %v25213_v43 }
  0xb8   : > { %20616 = vmatmul.mubr.f32.gmra.mrb[12].mxu1 %v32391_v30  ;;  %20769 = vmatmul.mubr.f32.gmra.mrb[14].mxu0 %v24836_v55  ;;  %v25216_v30 = vsub.f32 %v4172_v15, %v25182_v38  ;;  %v2167_v55 = vsel %vm204_vm1, %v2122_v35, 0  ;;  %v25233_v15 = vsub.f32 %v25164_v22, %v32399_v62  ;;  %v25238_v35 = vsub.f32 %v25167_v25, %v32400_v23  ;;  %v32406_v22 = vld [vmem:[#allocation12_spill] sm:$0xff]  ;;  %v32413_v38 = vld [vmem:[#allocation13_spill] sm:$0xff] }
  0xb9   : > { %20618 = vmatprep.mubr.f32.mxu1 %v32394_v18  ;;  %20771 = vmatprep.mubr.f32.mxu0 %v24847_v4  ;;  %v4184_v18 = vsel %vm204_vm1, %v4133_v16, 0  ;;  %v32398_v4 = vand.u32 4294901760, %v25156_v61  ;;  %v25251_v62 = vand.u32 4294901760, %v2167_v55  ;;  %v32407_v23 = vand.u32 4294901760, %v25173_v27  ;;  %32412 = vst [vmem:[#allocation41_spill] sm:$0xff] %v25279_v59 }
  0xba   : > { %32396 = vst [vmem:[#allocation34_spill] sm:$0xff] %v25216_v30  ;;  %v25262_v16 = vand.u32 4294901760, %v2170_v5  ;;  %v32411_v25 = vand.u32 4294901760, %v25176_v29 }
  0xbb   : > { %v25228_v44 = vsub.f32 %v25156_v61, %v32398_v4  ;;  %v25246_v4 = vsub.f32 %v4175_v39, %v25204_v24  ;;  %v25249_v61 = vsub.f32 %v2164_v34, %v25206_v21  ;;  %32405 = vst [vmem:[#allocation38_spill] sm:$0xff] %v25251_v62  ;;  %v25264_v39 = vand.u32 4294901760, %v4184_v18  ;;  %v2124_v34 = vld [vmem:[%s24699_s19 + $0x51] sm:$0xff] }
  0xbc   : > { %20619 = vmatmul.mubr.f32.gmra.mrb[14].mxu1 %v32402_v26  ;;  %20772 = vmatmul.mubr.f32.gmra.mrb[16].mxu0 %v24854_v12  ;;  %v25258_v26 = vsub.f32 %v25173_v27, %v32407_v23  ;;  %v25260_v12 = vand.u32 4294901760, %v4181_v14  ;;  %32409 = vst [vmem:[#allocation39_spill] sm:$0xff] %v25262_v16  ;;  %v25286_v23 = vsub.f32 %v2167_v55, %v25251_v62  ;;  %v2173_v24 = vsel %vm204_vm1, %v2124_v34, 0  ;;  %v4134_v27 = vld [vmem:[%s24699_s19 + $0x6a] sm:$0xff]  ;;  %v4135_v55 = vld [vmem:[%s24699_s19 + $0x7a] sm:$0xff] }
  0xbd   : > { %32403 = vst [vmem:[#allocation11_spill] sm:$0xff] %v25246_v4  ;;  %32404 = vst [vmem:[#allocation37_spill] sm:$0xff] %v25249_v61  ;;  %20621 = vmatprep.mubr.f32.mxu1 %v32406_v22  ;;  %20774 = vmatprep.mubr.f32.mxu0 %v24860_v31  ;;  %v25270_v22 = vsub.f32 %v25176_v29, %v32411_v25  ;;  %v32415_v31 = vld [vmem:[#allocation14_spill] sm:$0xff]  ;;  %v25301_v21 = vsub.f32 %v4184_v18, %v25264_v39  ;;  %v32419_v25 = vand.u32 4294901760, %v25213_v43  ;;  %v2126_v18 = vld [vmem:[%s24699_s19 + $0x69] sm:$0xff] }
  0xbe   : > { %32408 = vst [vmem:[#allocation12_spill] sm:$0xff] %v25260_v12  ;;  %32410 = vst [vmem:[#allocation40_spill] sm:$0xff] %v25264_v39  ;;  %v25322_v39 = vand.u32 4294901760, %v2173_v24  ;;  %v4187_v34 = vsel %vm204_vm1, %v4134_v27, 0  ;;  %v4190_v27 = vsel %vm204_vm1, %v4135_v55, 0  ;;  %v32433_v62 = vand.u32 4294901760, %v25286_v23 }
  0xbf   : > { %32414 = vst [vmem:[#allocation13_spill] sm:$0xff] %v25286_v23  ;;  %32418 = vst [vmem:[#allocation43_spill] sm:$0xff] %v25301_v21  ;;  %v25348_v55 = vand.u32 4294901760, %v4187_v34 }
  0xc0   : > { %20622 = vmatmul.mubr.f32.gmra.mrb[16].mxu1 %v32413_v38  ;;  %20775 = vmatmul.mubr.f32.gmra.mrb[18].mxu0 %v24872_v57  ;;  %v25295_v57 = vsub.f32 %v4181_v14, %v25260_v12  ;;  %v25298_v38 = vsub.f32 %v2170_v5, %v25262_v16  ;;  %v32421_v14 = vand.u32 4294901760, %v25220_v17  ;;  %32422 = vst [vmem:[#allocation44_spill] sm:$0xff] %v25322_v39  ;;  %v32432_v16 = vld [vmem:[#allocation17_spill] sm:$0xff] }
  0xc1   : > { %20624 = vmatprep.mubr.f32.mxu1 %v32415_v31  ;;  %20777 = vmatprep.mubr.f32.mxu0 %v24879_v63  ;;  %v25308_v31 = vsub.f32 %v25213_v43, %v32419_v25  ;;  %v32420_v63 = vand.u32 4294901760, %v25216_v30  ;;  %v2176_v25 = vsel %vm204_vm1, %v2125_v40, 0  ;;  %v32423_v43 = vld [vmem:[#allocation15_spill] sm:$0xff]  ;;  %v32426_v40 = vld [vmem:[#allocation16_spill] sm:$0xff] }
  0xc2   : > { %32416 = vst [vmem:[#allocation14_spill] sm:$0xff] %v25295_v57  ;;  %32417 = vst [vmem:[#allocation42_spill] sm:$0xff] %v25298_v38  ;;  %v25318_v5 = vsub.f32 %v25220_v17, %v32421_v14  ;;  %v32425_v14 = vand.u32 4294901760, %v25249_v61  ;;  %v2127_v17 = vld [vmem:[%s24699_s19 + $0x79] sm:$0xff]  ;;  %v32437_v12 = vand.u32 4294901760, %v25298_v38 }
  0xc3   : > { %v25313_v19 = vsub.f32 %v25216_v30, %v32420_v63  ;;  %v32424_v63 = vand.u32 4294901760, %v25246_v4  ;;  %32427 = vst [vmem:[#allocation15_spill] sm:$0xff] %v25348_v55 }
  0xc4   : > { %20625 = vmatmul.mubr.f32.gmra.mrb[18].mxu1 %v32423_v43  ;;  %20778 = vmatmul.mubr.f32.gmra.mrb[20].mxu0 %v24884_v10  ;;  %v25336_v29 = vsub.f32 %v25249_v61, %v32425_v14  ;;  %v25350_v61 = vand.u32 4294901760, %v2176_v25  ;;  %v32429_v10 = vand.u32 4294901760, %v25279_v59  ;;  %v4137_v14 = vld [vmem:[%s24699_s19 + $0x92] sm:$0xff] }
  0xc5   : > { %v25331_v30 = vsub.f32 %v25246_v4, %v32424_v63  ;;  %20627 = vmatprep.mubr.f32.mxu1 %v32426_v40  ;;  %20780 = vmatprep.mubr.f32.mxu0 %v24886_v51  ;;  %v2179_v4 = vsel %vm204_vm1, %v2126_v18, 0  ;;  %v4136_v40 = vld [vmem:[%s24699_s19 + $0x82] sm:$0xff]  ;;  %v25360_v63 = vsub.f32 %v2173_v24, %v25322_v39  ;;  %v25362_v18 = vand.u32 4294901760, %v4190_v27  ;;  %v32435_v39 = vld [vmem:[#allocation18_spill] sm:$0xff] }
  0xc6   : > { %32428 = vst [vmem:[#allocation16_spill] sm:$0xff] %v25350_v61  ;;  %v25357_v43 = vsub.f32 %v25279_v59, %v32429_v10  ;;  %v25373_v10 = vsub.f32 %v25286_v23, %v32433_v62  ;;  %v25375_v24 = vand.u32 4294901760, %v2179_v4  ;;  %v2128_v59 = vld [vmem:[%s24699_s19 + $0x81] sm:$0xff]  ;;  %v25388_v51 = vsub.f32 %v25298_v38, %v32437_v12 }
  0xc7   : > { %32430 = vst [vmem:[#allocation45_spill] sm:$0xff] %v25360_v63  ;;  %32431 = vst [vmem:[#allocation46_spill] sm:$0xff] %v25362_v18  ;;  %v32438_v62 = vand.u32 4294901760, %v25301_v21  ;;  %v4193_v32 = vsel %vm204_vm1, %v4136_v40, 0  ;;  %v4196_v12 = vsel %vm204_vm1, %v4137_v14, 0  ;;  %v2185_v40 = vsel %vm204_vm1, %v2128_v59, 0 }
  0xc8   : > { %20628 = vmatmul.mubr.f32.gmra.mrb[20].mxu1 %v32432_v16  ;;  %20781 = vmatmul.mubr.f32.gmra.mrb[22].mxu0 %v24907_v58  ;;  %32434 = vst [vmem:[#allocation17_spill] sm:$0xff] %v25375_v24  ;;  %v32436_v16 = vand.u32 4294901760, %v25295_v57  ;;  %v25417_v14 = vand.u32 4294901760, %v4193_v32  ;;  %v32449_v59 = vand.u32 4294901760, %v25360_v63 }
  0xc9   : > { %20630 = vmatprep.mubr.f32.mxu1 %v32435_v39  ;;  %20783 = vmatprep.mubr.f32.mxu0 %v24912_v0  ;;  %v25393_v23 = vsub.f32 %v25301_v21, %v32438_v62  ;;  %v4138_v39 = vld [vmem:[%s24699_s19 + $0x9a] sm:$0xff]  ;;  %v25398_v0 = vsub.f32 %v4187_v34, %v25348_v55  ;;  %v25408_v62 = vsub.f32 %v4190_v27, %v25362_v18  ;;  %v2129_v27 = vld [vmem:[%s24699_s19 + $0x91] sm:$0xff] }
  0xca   : > { %v25383_v58 = vsub.f32 %v25295_v57, %v32436_v16  ;;  %v25401_v16 = vsub.f32 %v2176_v25, %v25350_v61  ;;  %v2182_v57 = vsel %vm204_vm1, %v2127_v17, 0  ;;  %v32442_v34 = vld [vmem:[#allocation19_spill] sm:$0xff]  ;;  %v25415_v17 = vsub.f32 %v2179_v4, %v25375_v24  ;;  %32444 = vst [vmem:[#allocation49_spill] sm:$0xff] %v25417_v14  ;;  %v4139_v4 = vld [vmem:[%s24699_s19 + $0xaa] sm:$0xff] }
  0xcb   : > { %32439 = vst [vmem:[#allocation18_spill] sm:$0xff] %v25398_v0  ;;  %32441 = vst [vmem:[#allocation48_spill] sm:$0xff] %v25408_v62  ;;  %v4199_v38 = vsel %vm204_vm1, %v4138_v39, 0  ;;  %v25427_v25 = vand.u32 4294901760, %v4196_v12  ;;  %v2130_v21 = vld [vmem:[%s24699_s19 + $0x99] sm:$0xff]  ;;  %v25434_v61 = vand.u32 4294901760, %v2185_v40  ;;  %v25451_v39 = vsub.f32 %v4193_v32, %v25417_v14 }
  0xcc   : > { %32440 = vst [vmem:[#allocation47_spill] sm:$0xff] %v25401_v16  ;;  %20631 = vmatmul.mubr.f32.gmra.mrb[22].mxu1 %v32442_v34  ;;  %20784 = vmatmul.mubr.f32.gmra.mrb[24].mxu0 %v24929_v1  ;;  %32443 = vst [vmem:[#allocation19_spill] sm:$0xff] %v25415_v17  ;;  %v25425_v34 = vand.u32 4294901760, %v2182_v57  ;;  %v25441_v1 = vsub.f32 %v25360_v63, %v32449_v59  ;;  %v25444_v33 = vand.u32 4294901760, %v4199_v38  ;;  %v2188_v9 = vsel %vm204_vm1, %v2129_v27, 0 }
  0xcd   : > { %20633 = vmatprep.mubr.f32.mxu1 %v32445_v36  ;;  %20786 = vmatprep.mubr.f32.mxu0 %v24932_v20  ;;  %32447 = vst [vmem:[#allocation50_spill] sm:$0xff] %v25427_v25  ;;  %32448 = vst [vmem:[#allocation51_spill] sm:$0xff] %v25434_v61  ;;  %v4140_v36 = vld [vmem:[%s24699_s19 + $0xb2] sm:$0xff]  ;;  %v2131_v20 = vld [vmem:[%s24699_s19 + $0xa9] sm:$0xff]  ;;  %v4202_v18 = vsel %vm204_vm1, %v4139_v4, 0  ;;  %v2191_v59 = vsel %vm204_vm1, %v2130_v21, 0  ;;  %v25476_v21 = vsub.f32 %v2185_v40, %v25434_v61 }
  0xce   : > { %32446 = vst [vmem:[#allocation20_spill] sm:$0xff] %v25425_v34  ;;  %32450 = vst [vmem:[#allocation52_spill] sm:$0xff] %v25444_v33  ;;  %v25458_v27 = vsub.f32 %v2182_v57, %v25425_v34  ;;  %v2194_v24 = vsel %vm204_vm1, %v2131_v20, 0  ;;  %v32454_v32 = vand.u32 4294901760, %v25398_v0  ;;  %v25478_v57 = vand.u32 4294901760, %v2188_v9 }
  0xcf   : > { %32451 = vst [vmem:[#allocation53_spill] sm:$0xff] %v25451_v39  ;;  %32456 = vst [vmem:[#allocation56_spill] sm:$0xff] %v25476_v21  ;;  %v25483_v20 = vsub.f32 %v4199_v38, %v25444_v33  ;;  %v25485_v55 = vand.u32 4294901760, %v4202_v18  ;;  %v2132_v38 = vld [vmem:[%s24699_s19 + $0xb1] sm:$0xff] }
  0xd0   : > { %20634 = vmatmul.mubr.f32.gmra.mrb[24].mxu1 %v24943_v45  ;;  %20787 = vmatmul.mubr.f32.gmra.mrb[26].mxu0 %v24945_v54  ;;  %32452 = vst [vmem:[#allocation54_spill] sm:$0xff] %v25458_v27  ;;  %v25461_v45 = vsub.f32 %v4196_v12, %v25427_v25  ;;  %v4205_v54 = vsel %vm204_vm1, %v4140_v36, 0  ;;  %v25468_v4 = vsub.f32 %v25398_v0, %v32454_v32  ;;  %32457 = vst [vmem:[#allocation57_spill] sm:$0xff] %v25478_v57  ;;  %v4141_v12 = vld [vmem:[%s24699_s19 + $0xc2] sm:$0xff] }
  0xd1   : > { %20636 = vmatprep.mubr.f32.mxu1 %v24948_v11  ;;  %20789 = vmatprep.mubr.f32.mxu0 %v24950_v41  ;;  %v32455_v11 = vand.u32 4294901760, %v25401_v16  ;;  %32458 = vst [vmem:[#allocation58_spill] sm:$0xff] %v25483_v20  ;;  %32459 = vst [vmem:[#allocation59_spill] sm:$0xff] %v25485_v55  ;;  %v25487_v32 = vand.u32 4294901760, %v2191_v59  ;;  %v25497_v0 = vand.u32 4294901760, %v4205_v54  ;;  %v25499_v36 = vand.u32 4294901760, %v2194_v24 }
  0xd2   : > { %32453 = vst [vmem:[#allocation55_spill] sm:$0xff] %v25461_v45  ;;  %v32474_v61 = vand.u32 4294901760, %v25461_v45 }
  0xd3   : > { %v25473_v41 = vsub.f32 %v25401_v16, %v32455_v11  ;;  %32460 = vst [vmem:[#allocation60_spill] sm:$0xff] %v25487_v32  ;;  %v32461_v11 = vand.u32 4294901760, %v25408_v62  ;;  %32462 = vst [vmem:[#allocation61_spill] sm:$0xff] %v25497_v0  ;;  %v4208_v16 = vsel %vm204_vm1, %v4141_v12, 0  ;;  %v2197_v12 = vsel %vm204_vm1, %v2132_v38, 0 }
  0xd4   : > { %20637 = vmatmul.mubr.f32.gmra.mrb[26].mxu1 %v24959_v46  ;;  %20790 = vmatmul.mubr.f32.gmra.mrb[28].mxu0 %v24961_v7  ;;  %32463 = vst [vmem:[#allocation62_spill] sm:$0xff] %v25499_v36  ;;  %v32464_v46 = vand.u32 4294901760, %v25415_v17  ;;  %v25534_v63 = vsub.f32 %v2194_v24, %v25499_v36  ;;  %v32471_v38 = vand.u32 4294901760, %v25193_v47  ;;  %v32475_v47 = vand.u32 4294901760, %v25476_v21 }
  0xd5   : > { %v25494_v40 = vsub.f32 %v25408_v62, %v32461_v11  ;;  %20639 = vmatprep.mubr.f32.mxu1 %v24965_v52  ;;  %20792 = vmatprep.mubr.f32.mxu0 %v24967_v37  ;;  %v25516_v37 = vsub.f32 %v2188_v9, %v25478_v57  ;;  %v25523_v11 = vsub.f32 %v2191_v59, %v25487_v32  ;;  %v4142_v62 = vld [vmem:[%s24699_s19 + $0xca] sm:$0xff]  ;;  %v2133_v59 = vld [vmem:[%s24699_s19 + $0xc1] sm:$0xff] }
  0xd6   : > { %v25507_v7 = vsub.f32 %v25415_v17, %v32464_v46  ;;  %v25520_v46 = vsub.f32 %v4202_v18, %v25485_v55  ;;  %v25531_v9 = vsub.f32 %v4205_v54, %v25497_v0  ;;  %32469 = vst [vmem:[#allocation67_spill] sm:$0xff] %v25534_v63  ;;  %v25536_v18 = vand.u32 4294901760, %v4208_v16 }
  0xd7   : > { %32465 = vst [vmem:[#allocation63_spill] sm:$0xff] %v25516_v37  ;;  %32467 = vst [vmem:[#allocation65_spill] sm:$0xff] %v25523_v11  ;;  %v32473_v54 = vand.u32 4294901760, %v25458_v27  ;;  %v25556_v52 = vsub.f32 %v25461_v45, %v32474_v61  ;;  %v2200_v17 = vsel %vm204_vm1, %v2133_v59, 0  ;;  %v32480_v45 = vand.u32 4294901760, %v25233_v15  ;;  %v4144_v59 = vld [vmem:[%s24699_s19 + $0xe2] sm:$0xff] }
  0xd8   : > { %32466 = vst [vmem:[#allocation64_spill] sm:$0xff] %v25520_v46  ;;  %20640 = vmatmul.mubr.f32.gmra.mrb[28].mxu1 %v24973_v49  ;;  %20793 = vmatmul.mubr.f32.gmra.mrb[30].mxu0 %v24975_v56  ;;  %32468 = vst [vmem:[#allocation66_spill] sm:$0xff] %v25531_v9  ;;  %v32472_v56 = vand.u32 4294901760, %v25451_v39  ;;  %v32483_v15 = vand.u32 4294901760, %v25516_v37  ;;  %v32490_v49 = vand.u32 4294901760, %v25270_v22 }
  0xd9   : > { %32470 = vst [vmem:[#allocation68_spill] sm:$0xff] %v25536_v18  ;;  %20642 = vmatprep.mubr.f32.mxu1 %v24980_v60  ;;  %21097 = vmatprep.mubr.f32.mxu0 %v32471_v38  ;;  %v25551_v24 = vsub.f32 %v25458_v27, %v32473_v54  ;;  %v4143_v60 = vld [vmem:[%s24699_s19 + $0xda] sm:$0xff]  ;;  %v25562_v38 = vsub.f32 %v25476_v21, %v32475_v47  ;;  %v32477_v54 = vand.u32 4294901760, %v25483_v20  ;;  %v32478_v47 = vand.u32 4294901760, %v25228_v44  ;;  %v4145_v44 = vld [vmem:[%s24699_s19 + $0xf2] sm:$0xff] }
  0xda   : > { %v25546_v33 = vsub.f32 %v25451_v39, %v32472_v56  ;;  %v25565_v56 = vand.u32 4294901760, %v2197_v12  ;;  %v4211_v39 = vsel %vm204_vm1, %v4142_v62, 0  ;;  %v4214_v61 = vsel %vm204_vm1, %v4143_v60, 0  ;;  %v4146_v21 = vld [vmem:[%s24699_s19 + $0xfa] sm:$0xff] }
  0xdb   : > { %v25571_v27 = vsub.f32 %v25483_v20, %v32477_v54  ;;  %v25582_v54 = vsub.f32 %v4208_v16, %v25536_v18  ;;  %v25592_v62 = vand.u32 4294901760, %v4211_v39  ;;  %v2134_v16 = vld [vmem:[%s24699_s19 + $0xc9] sm:$0xff]  ;;  %v32486_v20 = vand.u32 4294901760, %v25520_v46 }
  0xdc   : > { %32476 = vst [vmem:[#allocation69_spill] sm:$0xff] %v25565_v56  ;;  %20643 = vmatmul.mubr.f32.gmra.mrb[30].mxu1 %v24985_v42  ;;  %21098 = vmatmul.mubr.f32.vlgmr.msra.gmra.mrb[32].mxu0 %v32478_v47  ;;  %v32481_v42 = vand.u32 4294901760, %v25238_v35  ;;  %v25600_v35 = vsub.f32 %v25516_v37, %v32483_v15  ;;  %v2135_v47 = vld [vmem:[%s24699_s19 + $0xd9] sm:$0xff]  ;;  %v32487_v60 = vand.u32 4294901760, %v25523_v11  ;;  %v25621_v37 = vand.u32 4294901760, %v4214_v61 }
  0xdd   : > { %32479 = vst [vmem:[#allocation70_spill] sm:$0xff] %v25582_v54  ;;  %20797 = vmatprep.mubr.f32.mxu1 %v32480_v45  ;;  %32482 = vst [vmem:[#allocation71_spill] sm:$0xff] %v25592_v62  ;;  %21146 = vmatpush3.msra.mxu0 %v25093_v53  ;;  %v25603_v45 = vsub.f32 %v2197_v12, %v25565_v56  ;;  %v25614_v53 = vsub.f32 %v25520_v46, %v32486_v20  ;;  %v2136_v12 = vld [vmem:[%s24699_s19 + $0xe1] sm:$0xff]  ;;  %v32489_v56 = vand.u32 4294901760, %v25258_v26 }
  0xde   : > { %21100 = vmatprep.mubr.f32.mxu0 %v32481_v42  ;;  %v25605_v42 = vand.u32 4294901760, %v2200_v17  ;;  %v25619_v15 = vsub.f32 %v25523_v11, %v32487_v60  ;;  %32488 = vst [vmem:[#allocation74_spill] sm:$0xff] %v25621_v37  ;;  %21195 = vmatprep.subr.mxu0 %v25065_v2  ;;  %v32491_v20 = vand.u32 4294901760, %v25531_v9  ;;  %v32492_v60 = vand.u32 4294901760, %v25534_v63 }
  0xdf   : > { %32484 = vst [vmem:[#allocation72_spill] sm:$0xff] %v25603_v45  ;;  %v31474_v18 = vand.u32 4294901760, %v25582_v54  ;;  %v2203_v36 = vsel %vm204_vm1, %v2134_v16, 0  ;;  %v32493_v26 = vand.u32 4294901760, %v25308_v31  ;;  %v25646_v22 = vsub.f32 %v4211_v39, %v25592_v62 }
  0xe0   : > { %32485 = vst [vmem:[#allocation73_spill] sm:$0xff] %v25605_v42  ;;  %20798 = vmatmul.mubr.f32.vlgmr.msra.gmra.mrb[32].mxu1 %v32489_v56  ;;  %21101 = vmatmul.mubr.f32.gmra.mrb[34].mxu0 %v32490_v49  ;;  %v25633_v46 = vsub.f32 %v25531_v9, %v32491_v20  ;;  %v25638_v11 = vsub.f32 %v25534_v63, %v32492_v60  ;;  %v4217_v49 = vsel %vm204_vm1, %v4144_v59, 0  ;;  %v2206_v56 = vsel %vm204_vm1, %v2135_v47, 0  ;;  %v2138_v63 = vld [vmem:[%s24699_s19 + $0xf9] sm:$0xff] }
  0xe1   : > { %20846 = vmatpush3.msra.mxu1 %v25100_v50  ;;  %20800 = vmatprep.mubr.f32.mxu1 %v32493_v26  ;;  %32494 = vst [vmem:[#allocation75_spill] sm:$0xff] %v25646_v22  ;;  %v4220_v20 = vsel %vm204_vm1, %v4145_v44, 0  ;;  %v32495_v60 = vand.u32 4294901760, %v25313_v19  ;;  %v25655_v50 = vsub.f32 %v2200_v17, %v25605_v42  ;;  %v2209_v31 = vsel %vm204_vm1, %v2136_v12, 0  ;;  %v2137_v44 = vld [vmem:[%s24699_s19 + $0xf1] sm:$0xff]  ;;  %v2139_v42 = vld [vmem:[%s24699_s19 + $0x109] sm:$0xff] }
  0xe2   : > { %v4223_v39 = vsel %vm204_vm1, %v4146_v21, 0  ;;  %20895 = vmatprep.subr.mxu1 %v25073_v3  ;;  %v25663_v19 = vsub.f32 %v4214_v61, %v25621_v37  ;;  %v25665_v47 = vand.u32 4294901760, %v2203_v36  ;;  %v32499_v26 = vand.u32 4294901760, %v25318_v5  ;;  %v4147_v61 = vld [vmem:[%s24699_s19 + $0x10a] sm:$0xff] }
  0xe3   : > { %21103 = vmatprep.mubr.f32.mxu0 %v32495_v60  ;;  %32496 = vst [vmem:[#allocation76_spill] sm:$0xff] %v25655_v50  ;;  %v32500_v17 = vand.u32 4294901760, %v25331_v30  ;;  %v25672_v12 = vand.u32 4294901760, %v4217_v49  ;;  %v25674_v60 = vand.u32 4294901760, %v2206_v56  ;;  %v25676_v59 = vand.u32 4294901760, %v4220_v20 }
  0xe4   : > { %32497 = vst [vmem:[#allocation77_spill] sm:$0xff] %v25663_v19  ;;  %32498 = vst [vmem:[#allocation78_spill] sm:$0xff] %v25665_v47  ;;  %20801 = vmatmul.mubr.f32.gmra.mrb[34].mxu1 %v32499_v26  ;;  %v32504_v16 = vand.u32 4294901760, %v25336_v29  ;;  %v32505_v5 = vand.u32 4294901760, %v25357_v43  ;;  %v25687_v30 = vsub.f32 %v25582_v54, %v31474_v18  ;;  %v25692_v21 = vand.u32 4294901760, %v4223_v39  ;;  %v4148_v29 = vld [vmem:[%s24699_s19 + $0x112] sm:$0xff] }
  0xe5   : > { %21104 = vmatmul.mubr.f32.gmra.mrb[36].mxu0 %v32500_v17  ;;  %32501 = vst [vmem:[#allocation79_spill] sm:$0xff] %v25672_v12  ;;  %32502 = vst [vmem:[#allocation80_spill] sm:$0xff] %v25674_v60  ;;  %v25690_v17 = vand.u32 4294901760, %v2209_v31  ;;  %v32508_v43 = vand.u32 4294901760, %v25603_v45  ;;  %v25705_v26 = vsub.f32 %v2203_v36, %v25665_v47  ;;  %v2212_v54 = vsel %vm204_vm1, %v2137_v44, 0 }
  0xe6   : > { %32503 = vst [vmem:[#allocation81_spill] sm:$0xff] %v25676_v59  ;;  %20803 = vmatprep.mubr.f32.mxu1 %v32504_v16  ;;  %21106 = vmatprep.mubr.f32.mxu0 %v32505_v5  ;;  %32507 = vst [vmem:[#allocation83_spill] sm:$0xff] %v25692_v21  ;;  %v4226_v37 = vsel %vm204_vm1, %v4147_v61, 0  ;;  %v32510_v16 = vand.u32 4294901760, %v25373_v10  ;;  %v25716_v9 = vsub.f32 %v4217_v49, %v25672_v12  ;;  %v2215_v44 = vsel %vm204_vm1, %v2138_v63, 0  ;;  %v4149_v63 = vld [vmem:[%s24699_s19 + $0x122] sm:$0xff] }
  0xe7   : > { %32506 = vst [vmem:[#allocation82_spill] sm:$0xff] %v25690_v17  ;;  %v25700_v5 = vsub.f32 %v25603_v45, %v32508_v43  ;;  %32509 = vst [vmem:[#allocation84_spill] sm:$0xff] %v25705_v26  ;;  %v32511_v43 = vand.u32 4294901760, %v25383_v58  ;;  %v25719_v18 = vsub.f32 %v2206_v56, %v25674_v60  ;;  %v25722_v36 = vsub.f32 %v4220_v20, %v25676_v59 }
  0xe8   : > { %20804 = vmatmul.mubr.f32.gmra.mrb[36].mxu1 %v32510_v16  ;;  %32512 = vst [vmem:[#allocation85_spill] sm:$0xff] %v25716_v9  ;;  %v32515_v61 = vand.u32 4294901760, %v25388_v51  ;;  %v32516_v10 = vand.u32 4294901760, %v25393_v23  ;;  %v32517_v16 = vand.u32 4294901760, %v25646_v22  ;;  %v25736_v56 = vsub.f32 %v2209_v31, %v25690_v17 }
  0xe9   : > { %21107 = vmatmul.mubr.f32.gmra.mrb[38].mxu0 %v32511_v43  ;;  %32513 = vst [vmem:[#allocation86_spill] sm:$0xff] %v25719_v18  ;;  %32514 = vst [vmem:[#allocation87_spill] sm:$0xff] %v25722_v36  ;;  %v25739_v20 = vsub.f32 %v4223_v39, %v25692_v21  ;;  %v25742_v43 = vand.u32 4294901760, %v2212_v54  ;;  %v25744_v51 = vand.u32 4294901760, %v4226_v37  ;;  %v4229_v23 = vsel %vm204_vm1, %v4148_v29, 0 }
  0xea   : > { %20806 = vmatprep.mubr.f32.mxu1 %v32515_v61  ;;  %21109 = vmatprep.mubr.f32.mxu0 %v32516_v10  ;;  %v25733_v49 = vsub.f32 %v25646_v22, %v32517_v16  ;;  %32518 = vst [vmem:[#allocation88_spill] sm:$0xff] %v25736_v56  ;;  %v2218_v61 = vsel %vm204_vm1, %v2139_v42, 0  ;;  %v32522_v10 = vand.u32 4294901760, %v25655_v50  ;;  %v32523_v31 = vand.u32 4294901760, %v25663_v19 }
  0xeb   : > { %32519 = vst [vmem:[#allocation89_spill] sm:$0xff] %v25739_v20  ;;  %32520 = vst [vmem:[#allocation90_spill] sm:$0xff] %v25742_v43  ;;  %v25759_v22 = vand.u32 4294901760, %v2215_v44  ;;  %v32525_v45 = vand.u32 4294901760, %v25441_v1  ;;  %v32526_v29 = vand.u32 4294901760, %v25468_v4  ;;  %v32528_v39 = vand.u32 4294901760, %v25494_v40 }
  0xec   : > { %32521 = vst [vmem:[#allocation91_spill] sm:$0xff] %v25744_v51  ;;  %v25751_v16 = vsub.f32 %v25655_v50, %v32522_v10  ;;  %v25756_v58 = vsub.f32 %v25663_v19, %v32523_v31  ;;  %v4232_v31 = vsel %vm204_vm1, %v4149_v63, 0  ;;  %v32527_v19 = vand.u32 4294901760, %v25473_v41  ;;  %v4150_v63 = vld [vmem:[%s24699_s19 + $0x12a] sm:$0xff] }
  0xed   : > { %32524 = vst [vmem:[#allocation92_spill] sm:$0xff] %v25759_v22  ;;  %20807 = vmatmul.mubr.f32.gmra.mrb[38].mxu1 %v32525_v45  ;;  %21110 = vmatmul.mubr.f32.gmra.mrb[40].mxu0 %v32526_v29  ;;  %v25775_v45 = vand.u32 4294901760, %v4229_v23  ;;  %v25777_v29 = vand.u32 4294901760, %v2218_v61  ;;  %v25782_v41 = vsub.f32 %v2212_v54, %v25742_v43  ;;  %v25785_v40 = vsub.f32 %v4226_v37, %v25744_v51 }
  0xee   : > { %20809 = vmatprep.mubr.f32.mxu1 %v32527_v19  ;;  %21112 = vmatprep.mubr.f32.mxu0 %v32528_v39  ;;  %v2140_v19 = vld [vmem:[%s24699_s19 + $0x111] sm:$0xff]  ;;  %v32533_v1 = vand.u32 4294901760, %v25705_v26  ;;  %v25795_v10 = vsub.f32 %v2215_v44, %v25759_v22  ;;  %v25797_v50 = vand.u32 4294901760, %v4232_v31  ;;  %v32536_v54 = vand.u32 4294901760, %v25507_v7 }
  0xef   : > { %32529 = vst [vmem:[#allocation93_spill] sm:$0xff] %v25775_v45  ;;  %32530 = vst [vmem:[#allocation94_spill] sm:$0xff] %v25777_v29  ;;  %v32537_v37 = vand.u32 4294901760, %v25546_v33  ;;  %v32538_v39 = vand.u32 4294901760, %v25716_v9  ;;  %v4151_v33 = vld [vmem:[%s24699_s19 + $0x13a] sm:$0xff]  ;;  %v32542_v42 = vand.u32 4294901760, %v25556_v52 }
  0xf0   : > { %32531 = vst [vmem:[#allocation95_spill] sm:$0xff] %v25782_v41  ;;  %32532 = vst [vmem:[#allocation96_spill] sm:$0xff] %v25785_v40  ;;  %v25792_v4 = vsub.f32 %v25705_v26, %v32533_v1  ;;  %v32539_v1 = vand.u32 4294901760, %v25719_v18  ;;  %v32540_v26 = vand.u32 4294901760, %v25722_v36  ;;  %v32549_v52 = vand.u32 4294901760, %v25571_v27 }
  0xf1   : > { %32534 = vst [vmem:[#allocation97_spill] sm:$0xff] %v25795_v10  ;;  %32535 = vst [vmem:[#allocation98_spill] sm:$0xff] %v25797_v50  ;;  %20810 = vmatmul.mubr.f32.gmra.mrb[40].mxu1 %v32536_v54  ;;  %21113 = vmatmul.mubr.f32.gmra.mrb[42].mxu0 %v32537_v37  ;;  %v25808_v51 = vsub.f32 %v25716_v9, %v32538_v39  ;;  %v2141_v54 = vld [vmem:[%s24699_s19 + $0x121] sm:$0xff]  ;;  %v32541_v37 = vand.u32 4294901760, %v25551_v24  ;;  %v32543_v39 = vand.u32 4294901760, %v25736_v56  ;;  %v32546_v24 = vand.u32 4294901760, %v25739_v20 }
  0xf2   : > { %v25813_v44 = vsub.f32 %v25719_v18, %v32539_v1  ;;  %v25818_v7 = vsub.f32 %v25722_v36, %v32540_v26  ;;  %21115 = vmatprep.mubr.f32.mxu0 %v32542_v42  ;;  %v25832_v1 = vsub.f32 %v4229_v23, %v25775_v45  ;;  %v25835_v18 = vsub.f32 %v2218_v61, %v25777_v29  ;;  %v2143_v42 = vld [vmem:[%s24699_s19 + $0x139] sm:$0xff] }
  0xf3   : > { %20812 = vmatprep.mubr.f32.mxu1 %v32541_v37  ;;  %v25829_v9 = vsub.f32 %v25736_v56, %v32543_v39  ;;  %v2221_v26 = vsel %vm204_vm1, %v2140_v19, 0  ;;  %v25841_v37 = vsub.f32 %v25739_v20, %v32546_v24  ;;  %v4235_v39 = vsel %vm204_vm1, %v4150_v63, 0  ;;  %v2142_v20 = vld [vmem:[%s24699_s19 + $0x129] sm:$0xff] }
  0xf4   : > { %32544 = vst [vmem:[#allocation99_spill] sm:$0xff] %v25832_v1  ;;  %32545 = vst [vmem:[#allocation100_spill] sm:$0xff] %v25835_v18  ;;  %v25848_v56 = vsub.f32 %v4232_v31, %v25797_v50  ;;  %v2224_v61 = vsel %vm204_vm1, %v2141_v54, 0  ;;  %v4238_v19 = vsel %vm204_vm1, %v4151_v33, 0  ;;  %v32548_v24 = vand.u32 4294901760, %v25562_v38  ;;  %v4152_v63 = vld [vmem:[%s24699_s19 + $0x142] sm:$0xff] }
  0xf5   : > { %21116 = vmatmul.mubr.f32.gmra.mrb[44].mxu0 %v32549_v52  ;;  %v25859_v23 = vand.u32 4294901760, %v2221_v26  ;;  %v32551_v54 = vand.u32 4294901760, %v25600_v35  ;;  %v32552_v33 = vand.u32 4294901760, %v25614_v53  ;;  %v32554_v31 = vand.u32 4294901760, %v25782_v41  ;;  %v4153_v38 = vld [vmem:[%s24699_s19 + $0x152] sm:$0xff] }
  0xf6   : > { %32547 = vst [vmem:[#allocation101_spill] sm:$0xff] %v25848_v56  ;;  %20813 = vmatmul.mubr.f32.gmra.mrb[42].mxu1 %v32548_v24  ;;  %v25869_v24 = vand.u32 4294901760, %v4235_v39  ;;  %v32555_v35 = vand.u32 4294901760, %v25785_v40  ;;  %v32558_v50 = vand.u32 4294901760, %v25795_v10  ;;  %v2227_v52 = vsel %vm204_vm1, %v2142_v20, 0 }
  0xf7   : > { %32550 = vst [vmem:[#allocation102_spill] sm:$0xff] %v25859_v23  ;;  %20815 = vmatprep.mubr.f32.mxu1 %v32551_v54  ;;  %21118 = vmatprep.mubr.f32.mxu0 %v32552_v33  ;;  %v25876_v36 = vsub.f32 %v25782_v41, %v32554_v31  ;;  %v25883_v54 = vand.u32 4294901760, %v2224_v61  ;;  %v25885_v33 = vand.u32 4294901760, %v4238_v19  ;;  %v25901_v29 = vsub.f32 %v2221_v26, %v25859_v23 }
  0xf8   : > { %32553 = vst [vmem:[#allocation103_spill] sm:$0xff] %v25869_v24  ;;  %v25881_v53 = vsub.f32 %v25785_v40, %v32555_v35  ;;  %v25893_v31 = vsub.f32 %v25795_v10, %v32558_v50  ;;  %v32559_v35 = vand.u32 4294901760, %v25619_v15  ;;  %v32560_v40 = vand.u32 4294901760, %v25633_v46 }
  0xf9   : > { %32556 = vst [vmem:[#allocation104_spill] sm:$0xff] %v25883_v54  ;;  %32557 = vst [vmem:[#allocation105_spill] sm:$0xff] %v25885_v33  ;;  %v4241_v27 = vsel %vm204_vm1, %v4152_v63, 0  ;;  %v2230_v45 = vsel %vm204_vm1, %v2143_v42, 0  ;;  %v32562_v50 = vand.u32 4294901760, %v25638_v11  ;;  %v32563_v41 = vand.u32 4294901760, %v25687_v30 }
  0xfa   : > { %20816 = vmatmul.mubr.f32.gmra.mrb[44].mxu1 %v32559_v35  ;;  %21119 = vmatmul.mubr.f32.gmra.mrb[46].mxu0 %v32560_v40  ;;  %32561 = vst [vmem:[#allocation106_spill] sm:$0xff] %v25901_v29  ;;  %v32564_v46 = vand.u32 4294901760, %v25832_v1  ;;  %v32565_v40 = vand.u32 4294901760, %v25835_v18  ;;  %v25921_v26 = vsub.f32 %v4235_v39, %v25869_v24  ;;  %v4244_v11 = vsel %vm204_vm1, %v4153_v38, 0  ;;  %v2144_v42 = vld [vmem:[%s24699_s19 + $0x141] sm:$0xff]  ;;  %v2145_v38 = vld [vmem:[%s24699_s19 + $0x151] sm:$0xff] }
  0xfb   : > { %20818 = vmatprep.mubr.f32.mxu1 %v32562_v50  ;;  %21121 = vmatprep.mubr.f32.mxu0 %v32563_v41  ;;  %v2520_v30 = vand.u32 4294901760, %v25876_v36  ;;  %v4548_v41 = vand.u32 4294901760, %v25881_v53  ;;  %v25928_v63 = vsub.f32 %v2224_v61, %v25883_v54  ;;  %v25931_v35 = vsub.f32 %v4238_v19, %v25885_v33  ;;  %v4154_v50 = vld [vmem:[%s24699_s19 + $0x15a] sm:$0xff] }
  0xfc   : > { %v25913_v15 = vsub.f32 %v25832_v1, %v32564_v46  ;;  %v25918_v20 = vsub.f32 %v25835_v18, %v32565_v40  ;;  %32566 = vst [vmem:[#allocation107_spill] sm:$0xff] %v25921_v26  ;;  %v25935_v40 = vand.u32 4294901760, %v2227_v52  ;;  %v25937_v39 = vand.u32 4294901760, %v4241_v27  ;;  %v4155_v1 = vld [vmem:[%s24699_s19 + $0x16a] sm:$0xff] }
  0xfd   : > { %32567 = vst [vmem:[#allocation108_spill] sm:$0xff] %v25928_v63  ;;  %32568 = vst [vmem:[#allocation109_spill] sm:$0xff] %v25931_v35  ;;  %v25939_v18 = vand.u32 4294901760, %v2230_v45  ;;  %v32572_v36 = vand.u32 4294901760, %v25700_v5  ;;  %v32573_v61 = vand.u32 4294901760, %v25733_v49  ;;  %v32574_v19 = vand.u32 4294901760, %v25848_v56 }
  0xfe   : > { %32569 = vst [vmem:[#allocation110_spill] sm:$0xff] %v25935_v40  ;;  %32570 = vst [vmem:[#allocation111_spill] sm:$0xff] %v25937_v39  ;;  %v25953_v10 = vand.u32 4294901760, %v4244_v11  ;;  %v2233_v33 = vsel %vm204_vm1, %v2144_v42, 0  ;;  %v32576_v54 = vand.u32 4294901760, %v25751_v16  ;;  %v32577_v5 = vand.u32 4294901760, %v25756_v58 }
  0xff   : > { %32571 = vst [vmem:[#allocation112_spill] sm:$0xff] %v25939_v18  ;;  %20819 = vmatmul.mubr.f32.gmra.mrb[46].mxu1 %v32572_v36  ;;  %21122 = vmatmul.mubr.f32.gmra.mrb[48].mxu0 %v32573_v61  ;;  %v25950_v53 = vsub.f32 %v25848_v56, %v32574_v19  ;;  %v4558_v49 = vand.u32 4294901760, %v25913_v15  ;;  %v2540_v36 = vand.u32 4294901760, %v25918_v20  ;;  %v4247_v19 = vsel %vm204_vm1, %v4154_v50, 0  ;;  %v4156_v58 = vld [vmem:[%s24699_s19 + $0x172] sm:$0xff]  ;;  %v2147_v46 = vld [vmem:[%s24699_s19 + $0x169] sm:$0xff] }
 0x100   : > { %32575 = vst [vmem:[#allocation113_spill] sm:$0xff] %v25953_v10  ;;  %20821 = vmatprep.mubr.f32.mxu1 %v32576_v54  ;;  %21124 = vmatprep.mubr.f32.mxu0 %v32577_v5  ;;  %v2236_v42 = vsel %vm204_vm1, %v2145_v38, 0  ;;  %v4250_v16 = vsel %vm204_vm1, %v4155_v1, 0  ;;  %v2146_v54 = vld [vmem:[%s24699_s19 + $0x159] sm:$0xff]  ;;  %v25971_v5 = vsub.f32 %v2227_v52, %v25935_v40  ;;  %v25974_v15 = vsub.f32 %v4241_v27, %v25937_v39 }
 0x101   : > { %v25977_v20 = vsub.f32 %v2230_v45, %v25939_v18  ;;  %v25979_v50 = vand.u32 4294901760, %v2233_v33  ;;  %v32579_v56 = vand.u32 4294901760, %v25792_v4  ;;  %v32580_v38 = vand.u32 4294901760, %v25808_v51 }
 0x102   : > { %v4568_v1 = vand.u32 4294901760, %v25950_v53  ;;  %v32581_v52 = vand.u32 4294901760, %v25901_v29  ;;  %v25991_v61 = vsub.f32 %v4244_v11, %v25953_v10  ;;  %v25993_v45 = vand.u32 4294901760, %v4247_v19  ;;  %v2148_v10 = vld [vmem:[%s24699_s19 + $0x171] sm:$0xff] }
 0x103   : > { %32578 = vst [vmem:[#allocation114_spill] sm:$0xff] %v25979_v50  ;;  %20822 = vmatmul.mubr.f32.gmra.mrb[48].mxu1 %v32579_v56  ;;  %21125 = vmatmul.mubr.f32.gmra.mrb[50].mxu0 %v32580_v38  ;;  %v32583_v18 = vand.u32 4294901760, %v25813_v44  ;;  %v32584_v56 = vand.u32 4294901760, %v25818_v7  ;;  %v25999_v51 = vand.u32 4294901760, %v2236_v42  ;;  %v26001_v4 = vand.u32 4294901760, %v4250_v16 }
 0x104   : > { %v2549_v27 = vsub.f32 %v25901_v29, %v32581_v52  ;;  %32582 = vst [vmem:[#allocation115_spill] sm:$0xff] %v25993_v45  ;;  %v2239_v53 = vsel %vm204_vm1, %v2146_v54, 0  ;;  %v4253_v38 = vsel %vm204_vm1, %v4156_v58, 0  ;;  %v32587_v52 = vand.u32 4294901760, %v25921_v26 }
 0x105   : > { %20824 = vmatprep.mubr.f32.mxu1 %v32583_v18  ;;  %21127 = vmatprep.mubr.f32.mxu0 %v32584_v56  ;;  %32585 = vst [vmem:[#allocation116_spill] sm:$0xff] %v25999_v51  ;;  %32586 = vst [vmem:[#allocation117_spill] sm:$0xff] %v26001_v4  ;;  %v32588_v29 = vand.u32 4294901760, %v25928_v63  ;;  %v32589_v18 = vand.u32 4294901760, %v25931_v35  ;;  %v2242_v56 = vsel %vm204_vm1, %v2147_v46, 0  ;;  %v26020_v40 = vsub.f32 %v2233_v33, %v25979_v50 }
 0x106   : > { %v4577_v11 = vsub.f32 %v25921_v26, %v32587_v52  ;;  %v32590_v52 = vand.u32 4294901760, %v25829_v9  ;;  %v26028_v46 = vsub.f32 %v4247_v19, %v25993_v45  ;;  %v26032_v39 = vand.u32 4294901760, %v4253_v38 }
 0x107   : > { %v2559_v44 = vsub.f32 %v25928_v63, %v32588_v29  ;;  %v4587_v7 = vsub.f32 %v25931_v35, %v32589_v18  ;;  %v32591_v29 = vand.u32 4294901760, %v25841_v37  ;;  %v26030_v35 = vand.u32 4294901760, %v2239_v53 }
 0x108   : > { %20825 = vmatmul.mubr.f32.gmra.mrb[50].mxu1 %v32590_v52  ;;  %32593 = vst [vmem:[#allocation119_spill] sm:$0xff] %v26032_v39  ;;  %v26035_v33 = vsub.f32 %v2236_v42, %v25999_v51  ;;  %v26038_v9 = vsub.f32 %v4250_v16, %v26001_v4  ;;  %v26040_v52 = vand.u32 4294901760, %v2242_v56  ;;  %v2245_v37 = vsel %vm204_vm1, %v2148_v10, 0 }
 0x109   : > { %21128 = vmatmul.mubr.f32.gmra.mrb[52].mxu0 %v32591_v29  ;;  %32592 = vst [vmem:[#allocation118_spill] sm:$0xff] %v26030_v35  ;;  %20827 = vmatprep.mubr.f32.mxu1 %v2520_v30  ;;  %v2550_v29 = vand.u32 4294901760, %v2549_v27  ;;  %v4578_v18 = vand.u32 4294901760, %v4577_v11  ;;  %v2560_v19 = vand.u32 4294901760, %v2559_v44  ;;  %v4588_v58 = vand.u32 4294901760, %v4587_v7 }
 0x10a   : > { %21130 = vmatprep.mubr.f32.mxu0 %v4548_v41  ;;  %32594 = vst [vmem:[#allocation120_spill] sm:$0xff] %v26040_v52  ;;  %v32595_v54 = vand.u32 4294901760, %v25971_v5  ;;  %v32596_v30 = vand.u32 4294901760, %v25974_v15  ;;  %v32597_v42 = vand.u32 4294901760, %v25977_v20  ;;  %v31541_v26 = vand.u32 4294901760, %v26020_v40 }
 0x10b   : > { %v32598_v10 = vand.u32 4294901760, %v25893_v31  ;;  %v26057_v11 = vsub.f32 %v2239_v53, %v26030_v35  ;;  %v26060_v44 = vsub.f32 %v4253_v38, %v26032_v39  ;;  %v26062_v7 = vand.u32 4294901760, %v2245_v37 }
 0x10c   : > { %v2569_v63 = vsub.f32 %v25971_v5, %v32595_v54  ;;  %v4597_v41 = vsub.f32 %v25974_v15, %v32596_v30  ;;  %v2579_v16 = vsub.f32 %v25977_v20, %v32597_v42  ;;  %v32601_v54 = vand.u32 4294901760, %v25991_v61 }
 0x10d   : > { %20828 = vmatmul.mubr.f32.gmra.mrb[52].mxu1 %v32598_v10  ;;  %21131 = vmatmul.mubr.f32.gmra.mrb[54].mxu0 %v4558_v49  ;;  %32599 = vst [vmem:[#allocation121_spill] sm:$0xff] %v26057_v11  ;;  %32600 = vst [vmem:[#allocation122_spill] sm:$0xff] %v26062_v7  ;;  %v31546_v31 = vand.u32 4294901760, %v26035_v33  ;;  %v26070_v42 = vsub.f32 %v2242_v56, %v26040_v52  ;;  %v2589_v38 = vsub.f32 %v26020_v40, %v31541_v26 }
 0x10e   : > { %20830 = vmatprep.mubr.f32.mxu1 %v2540_v36  ;;  %21133 = vmatprep.mubr.f32.mxu0 %v4568_v1  ;;  %v4607_v30 = vsub.f32 %v25991_v61, %v32601_v54  ;;  %v2570_v53 = vand.u32 4294901760, %v2569_v63  ;;  %v4598_v10 = vand.u32 4294901760, %v4597_v41  ;;  %v2580_v27 = vand.u32 4294901760, %v2579_v16 }
 0x10f   : > { %v32602_v36 = vand.u32 4294901760, %v26028_v46  ;;  %v31545_v54 = vand.u32 4294901760, %v26057_v11  ;;  %v31542_v49 = vand.u32 4294901760, %v26060_v44  ;;  %v26081_v56 = vsub.f32 %v2245_v37, %v26062_v7 }
 0x110   : > { %v4608_v63 = vand.u32 4294901760, %v4607_v30  ;;  %v2599_v41 = vsub.f32 %v26035_v33, %v31546_v31  ;;  %v31544_v16 = vand.u32 4294901760, %v26070_v42  ;;  %v32624_v31 = vld [vmem:[#allocation62_spill] sm:$0xff] }
 0x111   : > { %20831 = vmatmul.mubr.f32.gmra.mrb[54].mxu1 %v2550_v29  ;;  %21134 = vmatmul.mubr.f32.gmra.mrb[56].mxu0 %v4578_v18  ;;  %v4617_v1 = vsub.f32 %v26028_v46, %v32602_v36  ;;  %v32603_v18 = vand.u32 4294901760, %v26038_v9  ;;  %v2590_v36 = vand.u32 4294901760, %v2589_v38  ;;  %v2609_v37 = vsub.f32 %v26057_v11, %v31545_v54  ;;  %v32623_v54 = vld [vmem:[#allocation52_spill] sm:$0xff] }
 0x112   : > { %20833 = vmatprep.mubr.f32.mxu1 %v2560_v19  ;;  %21136 = vmatprep.mubr.f32.mxu0 %v4588_v58  ;;  %v4637_v58 = vsub.f32 %v26060_v44, %v31542_v49  ;;  %v31543_v19 = vand.u32 4294901760, %v26081_v56  ;;  %v2600_v30 = vand.u32 4294901760, %v2599_v41  ;;  %v32607_v41 = vld [vmem:[#allocation31_spill] sm:$0xff] }
 0x113   : > { %v4627_v29 = vsub.f32 %v26038_v9, %v32603_v18  ;;  %v4618_v26 = vand.u32 4294901760, %v4617_v1 }
 0x114   : > { %v4638_v38 = vand.u32 4294901760, %v4637_v58  ;;  %v2629_v1 = vsub.f32 %v26081_v56, %v31543_v19  ;;  %v32611_v58 = vld [vmem:[#allocation33_spill] sm:$0xff] }
 0x115   : > { %20834 = vmatmul.mubr.f32.gmra.mrb[56].mxu1 %v2570_v53  ;;  %21137 = vmatmul.mubr.f32.gmra.mrb[58].mxu0 %v4598_v10  ;;  %v4628_v18 = vand.u32 4294901760, %v4627_v29  ;;  %v2619_v53 = vsub.f32 %v26070_v42, %v31544_v16  ;;  %v2610_v10 = vand.u32 4294901760, %v2609_v37  ;;  %v32608_v29 = vld [vmem:[#allocation21_spill] sm:$0xff]  ;;  %v32622_v16 = vld [vmem:[#allocation51_spill] sm:$0xff] }
 0x116   : > { %20836 = vmatprep.mubr.f32.mxu1 %v2580_v27  ;;  %21139 = vmatprep.mubr.f32.mxu0 %v4608_v63  ;;  %v2630_v27 = vand.u32 4294901760, %v2629_v1  ;;  %v32605_v63 = vld [vmem:[#allocation27_spill] sm:$0xff]  ;;  %v32610_v37 = vld [vmem:[#allocation9_spill] sm:$0xff]  ;;  %v32619_v1 = vld [vmem:[#allocation16_spill] sm:$0xff] }
 0x117   : > { %v2620_v49 = vand.u32 4294901760, %v2619_v53  ;;  %v32615_v53 = vld [vmem:[#allocation39_spill] sm:$0xff]  ;;  %v32621_v19 = vld [vmem:[#allocation17_spill] sm:$0xff] }
 0x119   : > { %20837 = vmatmul.mubr.f32.gmra.mrb[58].mxu1 %v2590_v36  ;;  %21140 = vmatmul.mubr.f32.gmra.mrb[60].mxu0 %v4618_v26  ;;  %v32604_v26 = vld [vmem:[#allocation5_spill] sm:$0xff]  ;;  %v32609_v36 = vld [vmem:[#allocation32_spill] sm:$0xff] }
 0x11a   : > { %20839 = vmatprep.mubr.f32.mxu1 %v2600_v30  ;;  %21142 = vmatprep.mubr.f32.mxu0 %v4628_v18  ;;  %v32613_v30 = vld [vmem:[#allocation38_spill] sm:$0xff]  ;;  %v32614_v18 = vld [vmem:[#allocation12_spill] sm:$0xff] }
 0x11d   : > { %20840 = vmatmul.mubr.f32.gmra.mrb[60].mxu1 %v2610_v10  ;;  %21143 = vmatmul.mubr.f32.gmra.mrb[62].mxu0 %v4638_v38  ;;  %v32617_v10 = vld [vmem:[#allocation44_spill] sm:$0xff]  ;;  %v32618_v38 = vld [vmem:[#allocation15_spill] sm:$0xff] }
 0x11e   : > { %20842 = vmatprep.mubr.f32.mxu1 %v2620_v49  ;;  %21147 = vmatprep.mubr.f32.mxu0 %v25124_v28  ;;  %v32606_v49 = vld [vmem:[#allocation8_spill] sm:$0xff] }
 0x121   : > { %20843 = vmatmul.mubr.f32.gmra.mrb[62].mxu1 %v2630_v27  ;;  %21148 = vmatmul.mubr.f32.vlgmr.msra.gmra.mrb[32].mxu0 %v25135_v6  ;;  %v32620_v27 = vld [vmem:[#allocation46_spill] sm:$0xff]  ;;  %v32675_v6 = vld [vmem:[#allocation76_spill] sm:$0xff] }
 0x122   : > { %20847 = vmatprep.mubr.f32.mxu1 %v25140_v8  ;;  %21150 = vmatprep.mubr.f32.mxu0 %v25142_v13  ;;  %v32674_v13 = vld [vmem:[#allocation75_spill] sm:$0xff] }
 0x123   : > { %21196 = vmatpush3.msra.mxu0 %v25065_v2  ;;  %v32612_v2 = vld [vmem:[#allocation36_spill] sm:$0xff] }
 0x124   : > { %21245 = vmatprep.subr.mxu0 %v25004_v48 }
 0x125   : > { %20848 = vmatmul.mubr.f32.vlgmr.msra.gmra.mrb[32].mxu1 %v32604_v26  ;;  %21151 = vmatmul.mubr.f32.gmra.mrb[34].mxu0 %v32605_v63  ;;  %v32671_v63 = vld [vmem:[#allocation67_spill] sm:$0xff] }
 0x126   : > { %20896 = vmatpush3.msra.mxu1 %v25073_v3  ;;  %20850 = vmatprep.mubr.f32.mxu1 %v32606_v49  ;;  %v32616_v3 = vld [vmem:[#allocation40_spill] sm:$0xff] }
 0x127   : > { %21153 = vmatprep.mubr.f32.mxu0 %v32607_v41  ;;  %20945 = vmatprep.subr.mxu1 %v32608_v29  ;;  %v32670_v41 = vld [vmem:[#allocation66_spill] sm:$0xff] }
 0x129   : > { %20851 = vmatmul.mubr.f32.gmra.mrb[34].mxu1 %v32609_v36  ;;  %21154 = vmatmul.mubr.f32.gmra.mrb[36].mxu0 %v32610_v37 }
 0x12a   : > { %20853 = vmatprep.mubr.f32.mxu1 %v32611_v58  ;;  %21156 = vmatprep.mubr.f32.mxu0 %v32612_v2 }
 0x12d   : > { %20854 = vmatmul.mubr.f32.gmra.mrb[36].mxu1 %v32613_v30  ;;  %21157 = vmatmul.mubr.f32.gmra.mrb[38].mxu0 %v32614_v18  ;;  %v32667_v18 = vld [vmem:[#allocation63_spill] sm:$0xff]  ;;  %v32668_v30 = vld [vmem:[#allocation64_spill] sm:$0xff] }
 0x12e   : > { %20856 = vmatprep.mubr.f32.mxu1 %v32615_v53  ;;  %21159 = vmatprep.mubr.f32.mxu0 %v32616_v3  ;;  %v32666_v3 = vld [vmem:[#allocation58_spill] sm:$0xff] }
 0x131   : > { %20857 = vmatmul.mubr.f32.gmra.mrb[38].mxu1 %v32617_v10  ;;  %21160 = vmatmul.mubr.f32.gmra.mrb[40].mxu0 %v32618_v38  ;;  %v32665_v10 = vld [vmem:[#allocation56_spill] sm:$0xff] }
 0x132   : > { %20859 = vmatprep.mubr.f32.mxu1 %v32619_v1  ;;  %21162 = vmatprep.mubr.f32.mxu0 %v32620_v27 }
 0x135   : > { %20860 = vmatmul.mubr.f32.gmra.mrb[40].mxu1 %v32621_v19  ;;  %21163 = vmatmul.mubr.f32.gmra.mrb[42].mxu0 %v25417_v14  ;;  %v32625_v19 = vld [vmem:[#allocation68_spill] sm:$0xff]  ;;  %v32626_v14 = vld [vmem:[#allocation69_spill] sm:$0xff] }
 0x136   : > { %20862 = vmatprep.mubr.f32.mxu1 %v25425_v34  ;;  %21165 = vmatprep.mubr.f32.mxu0 %v25427_v25  ;;  %v32627_v25 = vld [vmem:[#allocation73_spill] sm:$0xff] }
 0x139   : > { %20863 = vmatmul.mubr.f32.gmra.mrb[42].mxu1 %v32622_v16  ;;  %21166 = vmatmul.mubr.f32.gmra.mrb[44].mxu0 %v32623_v54  ;;  %v32628_v16 = vld [vmem:[#allocation74_spill] sm:$0xff] }
 0x13a   : > { %20865 = vmatprep.mubr.f32.mxu1 %v25478_v57  ;;  %21168 = vmatprep.mubr.f32.mxu0 %v25485_v55  ;;  %v32663_v55 = vld [vmem:[#allocation54_spill] sm:$0xff]  ;;  %v32664_v57 = vld [vmem:[#allocation55_spill] sm:$0xff] }
 0x13d   : > { %20866 = vmatmul.mubr.f32.gmra.mrb[44].mxu1 %v25487_v32  ;;  %21169 = vmatmul.mubr.f32.gmra.mrb[46].mxu0 %v25497_v0  ;;  %v32661_v0 = vld [vmem:[#allocation19_spill] sm:$0xff]  ;;  %v32662_v32 = vld [vmem:[#allocation53_spill] sm:$0xff] }
 0x13e   : > { %20868 = vmatprep.mubr.f32.mxu1 %v32624_v31  ;;  %21171 = vmatprep.mubr.f32.mxu0 %v32625_v19 }
 0x141   : > { %20869 = vmatmul.mubr.f32.gmra.mrb[46].mxu1 %v32626_v14  ;;  %21172 = vmatmul.mubr.f32.gmra.mrb[48].mxu0 %v25592_v62  ;;  %v32629_v14 = vld [vmem:[#allocation91_spill] sm:$0xff]  ;;  %v32660_v62 = vld [vmem:[#allocation48_spill] sm:$0xff] }
 0x142   : > { %20871 = vmatprep.mubr.f32.mxu1 %v32627_v25  ;;  %21174 = vmatprep.mubr.f32.mxu0 %v32628_v16  ;;  %v32630_v25 = vld [vmem:[#allocation93_spill] sm:$0xff]  ;;  %v32631_v16 = vld [vmem:[#allocation94_spill] sm:$0xff] }
 0x145   : > { %20872 = vmatmul.mubr.f32.gmra.mrb[48].mxu1 %v25665_v47  ;;  %21175 = vmatmul.mubr.f32.gmra.mrb[50].mxu0 %v25672_v12  ;;  %v32632_v47 = vld [vmem:[#allocation98_spill] sm:$0xff]  ;;  %v32659_v12 = vld [vmem:[#allocation47_spill] sm:$0xff] }
 0x146   : > { %20874 = vmatprep.mubr.f32.mxu1 %v25674_v60  ;;  %21177 = vmatprep.mubr.f32.mxu0 %v25676_v59  ;;  %v32633_v59 = vld [vmem:[#allocation104_spill] sm:$0xff]  ;;  %v32658_v60 = vld [vmem:[#allocation18_spill] sm:$0xff] }
 0x149   : > { %20875 = vmatmul.mubr.f32.gmra.mrb[50].mxu1 %v25690_v17  ;;  %21178 = vmatmul.mubr.f32.gmra.mrb[52].mxu0 %v25692_v21  ;;  %v32634_v17 = vld [vmem:[#allocation105_spill] sm:$0xff]  ;;  %v32635_v21 = vld [vmem:[#allocation110_spill] sm:$0xff] }
 0x14a   : > { %20877 = vmatprep.mubr.f32.mxu1 %v25742_v43  ;;  %21180 = vmatprep.mubr.f32.mxu0 %v32629_v14  ;;  %v32636_v43 = vld [vmem:[#allocation111_spill] sm:$0xff]  ;;  %v32637_v14 = vld [vmem:[#allocation112_spill] sm:$0xff] }
 0x14d   : > { %20878 = vmatmul.mubr.f32.gmra.mrb[52].mxu1 %v25759_v22  ;;  %21181 = vmatmul.mubr.f32.gmra.mrb[54].mxu0 %v32630_v25  ;;  %v32638_v22 = vld [vmem:[#allocation113_spill] sm:$0xff] }
 0x14e   : > { %20880 = vmatprep.mubr.f32.mxu1 %v32631_v16  ;;  %21183 = vmatprep.mubr.f32.mxu0 %v32632_v47  ;;  %v32655_v47 = vld [vmem:[#allocation42_spill] sm:$0xff]  ;;  %v32656_v16 = vld [vmem:[#allocation43_spill] sm:$0xff]  ;;  %v32657_v25 = vld [vmem:[#allocation45_spill] sm:$0xff] }
 0x151   : > { %20881 = vmatmul.mubr.f32.gmra.mrb[54].mxu1 %v25859_v23  ;;  %21184 = vmatmul.mubr.f32.gmra.mrb[56].mxu0 %v25869_v24  ;;  %v32653_v24 = vld [vmem:[#allocation13_spill] sm:$0xff]  ;;  %v32654_v23 = vld [vmem:[#allocation14_spill] sm:$0xff] }
 0x152   : > { %20883 = vmatprep.mubr.f32.mxu1 %v32633_v59  ;;  %21186 = vmatprep.mubr.f32.mxu0 %v32634_v17  ;;  %v32651_v17 = vld [vmem:[#allocation37_spill] sm:$0xff] }
 0x153   : > { %v32652_v59 = vld [vmem:[#allocation41_spill] sm:$0xff] }
 0x155   : > { %20884 = vmatmul.mubr.f32.gmra.mrb[56].mxu1 %v32635_v21  ;;  %21187 = vmatmul.mubr.f32.gmra.mrb[58].mxu0 %v32636_v43  ;;  %v32639_v21 = vld [vmem:[#allocation4_spill] sm:$0xff]  ;;  %v32650_v43 = vld [vmem:[#allocation11_spill] sm:$0xff] }
 0x156   : > { %20886 = vmatprep.mubr.f32.mxu1 %v32637_v14  ;;  %21189 = vmatprep.mubr.f32.mxu0 %v32638_v22  ;;  %v32640_v14 = vld [vmem:[#allocation6_spill] sm:$0xff]  ;;  %v32641_v22 = vld [vmem:[#allocation28_spill] sm:$0xff] }
 0x159   : > { %20887 = vmatmul.mubr.f32.gmra.mrb[58].mxu1 %v25979_v50  ;;  %21190 = vmatmul.mubr.f32.gmra.mrb[60].mxu0 %v25993_v45  ;;  %v32642_v50 = vld [vmem:[#allocation29_spill] sm:$0xff]  ;;  %v32649_v45 = vld [vmem:[#allocation35_spill] sm:$0xff] }
 0x15a   : > { %20889 = vmatprep.mubr.f32.mxu1 %v25999_v51  ;;  %21192 = vmatprep.mubr.f32.mxu0 %v26001_v4  ;;  %v32643_v51 = vld [vmem:[#allocation22_spill] sm:$0xff]  ;;  %v32644_v4 = vld [vmem:[#allocation7_spill] sm:$0xff] }
 0x15d   : > { %20890 = vmatmul.mubr.f32.gmra.mrb[60].mxu1 %v26030_v35  ;;  %21193 = vmatmul.mubr.f32.gmra.mrb[62].mxu0 %v26032_v39  ;;  %v32645_v35 = vld [vmem:[#allocation30_spill] sm:$0xff] }
 0x15e   : > { %20892 = vmatprep.mubr.f32.mxu1 %v26040_v52  ;;  %21197 = vmatprep.mubr.f32.mxu0 %v32639_v21  ;;  %v32646_v52 = vld [vmem:[#allocation10_spill] sm:$0xff] }
 0x15f   : > { %v32647_v39 = vld [vmem:[#allocation34_spill] sm:$0xff] }
 0x161   : > { %20893 = vmatmul.mubr.f32.gmra.mrb[62].mxu1 %v26062_v7  ;;  %21198 = vmatmul.mubr.f32.vlgmr.msra.gmra.mrb[32].mxu0 %v32640_v14  ;;  %v32648_v7 = vld [vmem:[#allocation23_spill] sm:$0xff] }
 0x162   : > { %20897 = vmatprep.mubr.f32.mxu1 %v32641_v22  ;;  %21200 = vmatprep.mubr.f32.mxu0 %v32642_v50 }
 0x163   : > { %21246 = vmatpush3.msra.mxu0 %v25004_v48 }
 0x164   : > { %21295 = vmatprep.subr.mxu0 %v32643_v51 }
 0x165   : > { %20898 = vmatmul.mubr.f32.vlgmr.msra.gmra.mrb[32].mxu1 %v32644_v4  ;;  %21201 = vmatmul.mubr.f32.gmra.mrb[34].mxu0 %v32645_v35 }
 0x166   : > { %20946 = vmatpush3.msra.mxu1 %v32608_v29  ;;  %20900 = vmatprep.mubr.f32.mxu1 %v32646_v52 }
 0x167   : > { %21203 = vmatprep.mubr.f32.mxu0 %v32647_v39  ;;  %20995 = vmatprep.subr.mxu1 %v32648_v7 }
 0x169   : > { %20901 = vmatmul.mubr.f32.gmra.mrb[34].mxu1 %v32649_v45  ;;  %21204 = vmatmul.mubr.f32.gmra.mrb[36].mxu0 %v32650_v43 }
 0x16a   : > { %20903 = vmatprep.mubr.f32.mxu1 %v32651_v17  ;;  %21206 = vmatprep.mubr.f32.mxu0 %v32652_v59 }
 0x16d   : > { %20904 = vmatmul.mubr.f32.gmra.mrb[36].mxu1 %v32653_v24  ;;  %21207 = vmatmul.mubr.f32.gmra.mrb[38].mxu0 %v32654_v23 }
 0x16e   : > { %20906 = vmatprep.mubr.f32.mxu1 %v32655_v47  ;;  %21209 = vmatprep.mubr.f32.mxu0 %v32656_v16 }
 0x16f   : > { %v20749_v19 = vpop.f32.mrb[0].mxu0 }
 0x170   : > { %v1894_v31 = vpop.f32.mrb[1].mxu0 }
 0x171   : > { %20907 = vmatmul.mubr.f32.gmra.mrb[38].mxu1 %v32657_v25  ;;  %21210 = vmatmul.mubr.f32.gmra.mrb[40].mxu0 %v32658_v60 }
 0x172   : > { %20909 = vmatprep.mubr.f32.mxu1 %v32659_v12  ;;  %21212 = vmatprep.mubr.f32.mxu0 %v32660_v62 }
 0x173   : > { %v20599_v54 = vpop.f32.mrb[0].mxu1  ;;  %v20752_v34 = vpop.f32.mrb[2].mxu0 }
 0x174   : > { %v23195_v27 = vadd.f32 %v20749_v19, %v20599_v54  ;;  %v1023_v1 = vpop.f32.mrb[1].mxu1  ;;  %v1906_v38 = vpop.f32.mrb[3].mxu0  ;;  %v32669_v19 = vld [vmem:[#allocation65_spill] sm:$0xff] }
 0x175   : > { %20910 = vmatmul.mubr.f32.gmra.mrb[40].mxu1 %v32661_v0  ;;  %21213 = vmatmul.mubr.f32.gmra.mrb[42].mxu0 %v32662_v32  ;;  %v23196_v53 = vadd.f32 %v1894_v31, %v1023_v1  ;;  %v32672_v31 = vld [vmem:[#allocation70_spill] sm:$0xff] }
 0x176   : > { %20912 = vmatprep.mubr.f32.mxu1 %v32663_v55  ;;  %21215 = vmatprep.mubr.f32.mxu0 %v32664_v57  ;;  %2086 = vst.msk [vmem:[#allocation2 + $0x8] sm:$0xff] %vm2084_vm2, %v23195_v27 }
 0x177   : > { %2085 = vst.msk [vmem:[#allocation2] sm:$0xff] %vm2084_vm2, %v23196_v53  ;;  %v20602_v2 = vpop.f32.mrb[2].mxu1  ;;  %v20755_v58 = vpop.f32.mrb[4].mxu0 }
 0x178   : > { %v23197_v37 = vadd.f32 %v20752_v34, %v20602_v2  ;;  %v1037_v36 = vpop.f32.mrb[3].mxu1  ;;  %v1918_v54 = vpop.f32.mrb[5].mxu0  ;;  %v32673_v2 = vld [vmem:[#allocation72_spill] sm:$0xff] }
 0x179   : > { %20913 = vmatmul.mubr.f32.gmra.mrb[42].mxu1 %v32665_v10  ;;  %21216 = vmatmul.mubr.f32.gmra.mrb[44].mxu0 %v32666_v3  ;;  %v23198_v49 = vadd.f32 %v1906_v38, %v1037_v36  ;;  %v32676_v36 = vld [vmem:[#allocation77_spill] sm:$0xff] }
 0x17a   : > { %20915 = vmatprep.mubr.f32.mxu1 %v32667_v18  ;;  %21218 = vmatprep.mubr.f32.mxu0 %v32668_v30  ;;  %2088 = vst.msk [vmem:[#allocation2 + $0x18] sm:$0xff] %vm2084_vm2, %v23197_v37 }
 0x17b   : > { %2087 = vst.msk [vmem:[#allocation2 + $0x10] sm:$0xff] %vm2084_vm2, %v23198_v49  ;;  %v20605_v1 = vpop.f32.mrb[4].mxu1  ;;  %v20758_v53 = vpop.f32.mrb[6].mxu0 }
 0x17c   : > { %v23199_v27 = vadd.f32 %v20755_v58, %v20605_v1  ;;  %v1051_v26 = vpop.f32.mrb[5].mxu1  ;;  %v1930_v34 = vpop.f32.mrb[7].mxu0  ;;  %v32677_v1 = vld [vmem:[#allocation84_spill] sm:$0xff] }
 0x17d   : > { %20916 = vmatmul.mubr.f32.gmra.mrb[44].mxu1 %v32669_v19  ;;  %21219 = vmatmul.mubr.f32.gmra.mrb[46].mxu0 %v32670_v41  ;;  %v23200_v8 = vadd.f32 %v1918_v54, %v1051_v26  ;;  %v32680_v26 = vld [vmem:[#allocation87_spill] sm:$0xff] }
 0x17e   : > { %20918 = vmatprep.mubr.f32.mxu1 %v32671_v63  ;;  %21221 = vmatprep.mubr.f32.mxu0 %v32672_v31  ;;  %2090 = vst.msk [vmem:[#allocation2 + $0x28] sm:$0xff] %vm2084_vm2, %v23199_v27  ;;  %v32678_v31 = vld [vmem:[#allocation85_spill] sm:$0xff] }
 0x17f   : > { %2089 = vst.msk [vmem:[#allocation2 + $0x20] sm:$0xff] %vm2084_vm2, %v23200_v8  ;;  %v20608_v37 = vpop.f32.mrb[6].mxu1  ;;  %v20761_v49 = vpop.f32.mrb[8].mxu0 }
 0x180   : > { %v23201_v38 = vadd.f32 %v20758_v53, %v20608_v37  ;;  %v1065_v28 = vpop.f32.mrb[7].mxu1  ;;  %v1942_v58 = vpop.f32.mrb[9].mxu0  ;;  %v32681_v37 = vld [vmem:[#allocation88_spill] sm:$0xff] }
 0x181   : > { %20919 = vmatmul.mubr.f32.gmra.mrb[46].mxu1 %v32673_v2  ;;  %21222 = vmatmul.mubr.f32.gmra.mrb[48].mxu0 %v32674_v13  ;;  %v23202_v2 = vadd.f32 %v1930_v34, %v1065_v28  ;;  %v32679_v13 = vld [vmem:[#allocation86_spill] sm:$0xff]  ;;  %v32684_v28 = vld [vmem:[#allocation96_spill] sm:$0xff] }
 0x182   : > { %20921 = vmatprep.mubr.f32.mxu1 %v32675_v6  ;;  %21224 = vmatprep.mubr.f32.mxu0 %v32676_v36  ;;  %2092 = vst.msk [vmem:[#allocation2 + $0x38] sm:$0xff] %vm2084_vm2, %v23201_v38  ;;  %v32682_v6 = vld [vmem:[#allocation89_spill] sm:$0xff] }
 0x183   : > { %2091 = vst.msk [vmem:[#allocation2 + $0x30] sm:$0xff] %vm2084_vm2, %v23202_v2  ;;  %v20611_v54 = vpop.f32.mrb[8].mxu1  ;;  %v20764_v8 = vpop.f32.mrb[10].mxu0 }
 0x184   : > { %v23203_v27 = vadd.f32 %v20761_v49, %v20611_v54  ;;  %v1079_v36 = vpop.f32.mrb[9].mxu1  ;;  %v1954_v53 = vpop.f32.mrb[11].mxu0  ;;  %v32685_v54 = vld [vmem:[#allocation97_spill] sm:$0xff] }
 0x185   : > { %20922 = vmatmul.mubr.f32.gmra.mrb[48].mxu1 %v32677_v1  ;;  %21225 = vmatmul.mubr.f32.gmra.mrb[50].mxu0 %v32678_v31  ;;  %v23204_v1 = vadd.f32 %v1942_v58, %v1079_v36  ;;  %v32683_v31 = vld [vmem:[#allocation95_spill] sm:$0xff]  ;;  %v32688_v36 = vld [vmem:[#allocation101_spill] sm:$0xff] }
 0x186   : > { %20924 = vmatprep.mubr.f32.mxu1 %v32679_v13  ;;  %21227 = vmatprep.mubr.f32.mxu0 %v32680_v26  ;;  %2094 = vst.msk [vmem:[#allocation2 + $0x48] sm:$0xff] %vm2084_vm2, %v23203_v27  ;;  %v32686_v13 = vld [vmem:[#allocation99_spill] sm:$0xff] }
 0x187   : > { %2093 = vst.msk [vmem:[#allocation2 + $0x40] sm:$0xff] %vm2084_vm2, %v23204_v1  ;;  %v20614_v34 = vpop.f32.mrb[10].mxu1  ;;  %v20767_v2 = vpop.f32.mrb[12].mxu0 }
 0x188   : > { %v23205_v38 = vadd.f32 %v20764_v8, %v20614_v34  ;;  %v1093_v26 = vpop.f32.mrb[11].mxu1  ;;  %v1966_v49 = vpop.f32.mrb[13].mxu0  ;;  %v32689_v34 = vld [vmem:[#allocation106_spill] sm:$0xff] }
 0x189   : > { %20925 = vmatmul.mubr.f32.gmra.mrb[50].mxu1 %v32681_v37  ;;  %21228 = vmatmul.mubr.f32.gmra.mrb[52].mxu0 %v32682_v6  ;;  %v23206_v37 = vadd.f32 %v1954_v53, %v1093_v26  ;;  %v32687_v6 = vld [vmem:[#allocation100_spill] sm:$0xff]  ;;  %v32692_v26 = vld [vmem:[#allocation109_spill] sm:$0xff] }
 0x18a   : > { %20927 = vmatprep.mubr.f32.mxu1 %v32683_v31  ;;  %21230 = vmatprep.mubr.f32.mxu0 %v32684_v28  ;;  %2096 = vst.msk [vmem:[#allocation2 + $0x58] sm:$0xff] %vm2084_vm2, %v23205_v38  ;;  %v32690_v31 = vld [vmem:[#allocation107_spill] sm:$0xff] }
 0x18b   : > { %2095 = vst.msk [vmem:[#allocation2 + $0x50] sm:$0xff] %vm2084_vm2, %v23206_v37  ;;  %v20617_v58 = vpop.f32.mrb[12].mxu1  ;;  %v20770_v1 = vpop.f32.mrb[14].mxu0 }
 0x18c   : > { %v23207_v27 = vadd.f32 %v20767_v2, %v20617_v58  ;;  %v1107_v28 = vpop.f32.mrb[13].mxu1  ;;  %v1978_v8 = vpop.f32.mrb[15].mxu0 }
 0x18d   : > { %20928 = vmatmul.mubr.f32.gmra.mrb[52].mxu1 %v32685_v54  ;;  %21231 = vmatmul.mubr.f32.gmra.mrb[54].mxu0 %v32686_v13  ;;  %v23208_v54 = vadd.f32 %v1966_v49, %v1107_v28  ;;  %v32691_v13 = vld [vmem:[#allocation108_spill] sm:$0xff] }
 0x18e   : > { %20930 = vmatprep.mubr.f32.mxu1 %v32687_v6  ;;  %21233 = vmatprep.mubr.f32.mxu0 %v32688_v36  ;;  %2098 = vst.msk [vmem:[#allocation2 + $0x68] sm:$0xff] %vm2084_vm2, %v23207_v27 }
 0x18f   : > { %2097 = vst.msk [vmem:[#allocation2 + $0x60] sm:$0xff] %vm2084_vm2, %v23208_v54  ;;  %v20620_v53 = vpop.f32.mrb[14].mxu1  ;;  %v20773_v37 = vpop.f32.mrb[16].mxu0 }
 0x190   : > { %v23209_v38 = vadd.f32 %v20770_v1, %v20620_v53  ;;  %v1121_v36 = vpop.f32.mrb[15].mxu1  ;;  %v1990_v2 = vpop.f32.mrb[17].mxu0 }
 0x191   : > { %20931 = vmatmul.mubr.f32.gmra.mrb[54].mxu1 %v32689_v34  ;;  %21234 = vmatmul.mubr.f32.gmra.mrb[56].mxu0 %v32690_v31  ;;  %v23210_v58 = vadd.f32 %v1978_v8, %v1121_v36 }
 0x192   : > { %20933 = vmatprep.mubr.f32.mxu1 %v32691_v13  ;;  %21236 = vmatprep.mubr.f32.mxu0 %v32692_v26  ;;  %2100 = vst.msk [vmem:[#allocation2 + $0x78] sm:$0xff] %vm2084_vm2, %v23209_v38 }
 0x193   : > { %2099 = vst.msk [vmem:[#allocation2 + $0x70] sm:$0xff] %vm2084_vm2, %v23210_v58  ;;  %v20623_v28 = vpop.f32.mrb[16].mxu1  ;;  %v20776_v49 = vpop.f32.mrb[18].mxu0 }
 0x194   : > { %v23211_v54 = vadd.f32 %v20773_v37, %v20623_v28  ;;  %v1135_v27 = vpop.f32.mrb[17].mxu1  ;;  %v2002_v1 = vpop.f32.mrb[19].mxu0 }
 0x195   : > { %20934 = vmatmul.mubr.f32.gmra.mrb[56].mxu1 %v25971_v5  ;;  %21237 = vmatmul.mubr.f32.gmra.mrb[58].mxu0 %v25974_v15  ;;  %v23212_v53 = vadd.f32 %v1990_v2, %v1135_v27  ;;  %v32693_v2 = vand.u32 4294901760, %v32639_v21  ;;  %v32696_v21 = vand.u32 4294901760, %v32642_v50 }
 0x196   : > { %20936 = vmatprep.mubr.f32.mxu1 %v25977_v20  ;;  %21239 = vmatprep.mubr.f32.mxu0 %v25991_v61  ;;  %2102 = vst.msk [vmem:[#allocation2 + $0x88] sm:$0xff] %vm2084_vm2, %v23211_v54 }
 0x197   : > { %2101 = vst.msk [vmem:[#allocation2 + $0x80] sm:$0xff] %vm2084_vm2, %v23212_v53  ;;  %v20626_v36 = vpop.f32.mrb[18].mxu1  ;;  %v20779_v8 = vpop.f32.mrb[20].mxu0 }
 0x198   : > { %v23213_v38 = vadd.f32 %v20776_v49, %v20626_v36  ;;  %v1149_v58 = vpop.f32.mrb[19].mxu1  ;;  %v2014_v37 = vpop.f32.mrb[21].mxu0 }
 0x199   : > { %20937 = vmatmul.mubr.f32.gmra.mrb[58].mxu1 %v26020_v40  ;;  %21240 = vmatmul.mubr.f32.gmra.mrb[60].mxu0 %v26028_v46  ;;  %v23214_v28 = vadd.f32 %v2002_v1, %v1149_v58  ;;  %v32695_v58 = vand.u32 4294901760, %v32641_v22  ;;  %v32698_v22 = vand.u32 4294901760, %v32645_v35 }
 0x19a   : > { %20939 = vmatprep.mubr.f32.mxu1 %v26035_v33  ;;  %21242 = vmatprep.mubr.f32.mxu0 %v26038_v9  ;;  %2104 = vst.msk [vmem:[#allocation2 + $0x98] sm:$0xff] %vm2084_vm2, %v23213_v38 }
 0x19b   : > { %2103 = vst.msk [vmem:[#allocation2 + $0x90] sm:$0xff] %vm2084_vm2, %v23214_v28  ;;  %v20629_v54 = vpop.f32.mrb[20].mxu1  ;;  %v20782_v27 = vpop.f32.mrb[22].mxu0 }
 0x19c   : > { %v23215_v53 = vadd.f32 %v20779_v8, %v20629_v54  ;;  %v1163_v49 = vpop.f32.mrb[21].mxu1  ;;  %v2026_v36 = vpop.f32.mrb[23].mxu0 }
 0x19d   : > { %20940 = vmatmul.mubr.f32.gmra.mrb[60].mxu1 %v26057_v11  ;;  %21243 = vmatmul.mubr.f32.gmra.mrb[62].mxu0 %v26060_v44  ;;  %v32694_v11 = vand.u32 4294901760, %v32640_v14  ;;  %v23216_v1 = vadd.f32 %v2014_v37, %v1163_v49  ;;  %v32697_v37 = vand.u32 4294901760, %v32644_v4  ;;  %v32701_v49 = vand.u32 4294901760, %v32649_v45 }
 0x19e   : > { %20942 = vmatprep.mubr.f32.mxu1 %v26070_v42  ;;  %21247 = vmatprep.mubr.f32.mxu0 %v32693_v2  ;;  %2106 = vst.msk [vmem:[#allocation2 + $0xa8] sm:$0xff] %vm2084_vm2, %v23215_v53  ;;  %v32700_v2 = vand.u32 4294901760, %v32647_v39  ;;  %v32704_v39 = vand.u32 4294901760, %v32652_v59  ;;  %v32708_v59 = vand.u32 4294901760, %v32656_v16  ;;  %v32712_v16 = vand.u32 4294901760, %v32660_v62 }
 0x19f   : > { %2105 = vst.msk [vmem:[#allocation2 + $0xa0] sm:$0xff] %vm2084_vm2, %v23216_v1  ;;  %v20632_v8 = vpop.f32.mrb[22].mxu1  ;;  %v20785_v38 = vpop.f32.mrb[24].mxu0  ;;  %v32716_v62 = vand.u32 4294901760, %v32664_v57  ;;  %v32722_v57 = vand.u32 4294901760, %v32670_v41  ;;  %v32734_v41 = vld [vmem:[#allocation84_spill] sm:$0xff] }
 0x1a0   : > { %v23217_v28 = vadd.f32 %v20782_v27, %v20632_v8  ;;  %v1177_v14 = vpop.f32.mrb[23].mxu1 }
 0x1a1   : > { %20943 = vmatmul.mubr.f32.gmra.mrb[62].mxu1 %v26081_v56  ;;  %21248 = vmatmul.mubr.f32.vlgmr.msra.gmra.mrb[32].mxu0 %v32694_v11  ;;  %v2038_v11 = vpop.f32.mrb[25].mxu0  ;;  %v23218_v50 = vadd.f32 %v2026_v36, %v1177_v14  ;;  %v32703_v36 = vand.u32 4294901760, %v32651_v17 }
 0x1a2   : > { %20947 = vmatprep.mubr.f32.mxu1 %v32695_v58  ;;  %21250 = vmatprep.mubr.f32.mxu0 %v32696_v21  ;;  %2108 = vst.msk [vmem:[#allocation2 + $0xb8] sm:$0xff] %vm2084_vm2, %v23217_v28  ;;  %v32707_v28 = vand.u32 4294901760, %v32655_v47 }
 0x1a3   : > { %21296 = vmatpush3.msra.mxu0 %v32643_v51  ;;  %v32699_v51 = vand.u32 4294901760, %v32646_v52  ;;  %2107 = vst.msk [vmem:[#allocation2 + $0xb0] sm:$0xff] %vm2084_vm2, %v23218_v50  ;;  %v20635_v4 = vpop.f32.mrb[24].mxu1  ;;  %v20788_v54 = vpop.f32.mrb[26].mxu0  ;;  %v32702_v52 = vand.u32 4294901760, %v32650_v43  ;;  %v32706_v43 = vand.u32 4294901760, %v32654_v23 }
 0x1a4   : > { %21345 = vmatprep.subr.mxu0 %v25004_v48  ;;  %v23219_v27 = vadd.f32 %v20785_v38, %v20635_v4  ;;  %v1191_v35 = vpop.f32.mrb[25].mxu1  ;;  %v2050_v53 = vpop.f32.mrb[27].mxu0  ;;  %v32705_v38 = vand.u32 4294901760, %v32653_v24  ;;  %v32709_v50 = vand.u32 4294901760, %v32657_v25  ;;  %v32710_v23 = vand.u32 4294901760, %v32658_v60 }
 0x1a5   : > { %20948 = vmatmul.mubr.f32.vlgmr.msra.gmra.mrb[32].mxu1 %v32697_v37  ;;  %21251 = vmatmul.mubr.f32.gmra.mrb[34].mxu0 %v32698_v22  ;;  %v32713_v25 = vand.u32 4294901760, %v32661_v0  ;;  %v32714_v60 = vand.u32 4294901760, %v32662_v32  ;;  %v32718_v0 = vand.u32 4294901760, %v32666_v3  ;;  %v32719_v32 = vand.u32 4294901760, %v32667_v18  ;;  %v32726_v3 = vld [vmem:[#allocation72_spill] sm:$0xff]  ;;  %v32728_v18 = vld [vmem:[#allocation75_spill] sm:$0xff] }
 0x1a6   : > { %20996 = vmatpush3.msra.mxu1 %v32648_v7  ;;  %20950 = vmatprep.mubr.f32.mxu1 %v32699_v51  ;;  %v23220_v7 = vadd.f32 %v2038_v11, %v1191_v35  ;;  %2110 = vst.msk [vmem:[#allocation2 + $0xc8] sm:$0xff] %vm2084_vm2, %v23219_v27  ;;  %v32711_v51 = vand.u32 4294901760, %v32659_v12  ;;  %v32715_v12 = vand.u32 4294901760, %v32663_v55  ;;  %v32717_v35 = vand.u32 4294901760, %v32665_v10  ;;  %v32724_v10 = vld [vmem:[#allocation70_spill] sm:$0xff] }
 0x1a7   : > { %21253 = vmatprep.mubr.f32.mxu0 %v32700_v2  ;;  %21045 = vmatprep.subr.mxu1 %v32608_v29  ;;  %v20638_v1 = vpop.f32.mrb[26].mxu1  ;;  %v20791_v58 = vpop.f32.mrb[28].mxu0  ;;  %v32721_v55 = vand.u32 4294901760, %v32669_v19  ;;  %v32732_v19 = vld [vmem:[#allocation77_spill] sm:$0xff] }
 0x1a8   : > { %2109 = vst.msk [vmem:[#allocation2 + $0xc0] sm:$0xff] %vm2084_vm2, %v23220_v7  ;;  %v23221_v21 = vadd.f32 %v20788_v54, %v20638_v1  ;;  %v1205_v8 = vpop.f32.mrb[27].mxu1  ;;  %v2062_v45 = vpop.f32.mrb[29].mxu0  ;;  %v32727_v7 = vand.u32 4294901760, %v32726_v3  ;;  %v32733_v1 = vand.u32 4294901760, %v32732_v19  ;;  %v32783_v3 = vld [vmem:[#allocation32_spill] sm:$0xff] }
 0x1a9   : > { %20951 = vmatmul.mubr.f32.gmra.mrb[34].mxu1 %v32701_v49  ;;  %21254 = vmatmul.mubr.f32.gmra.mrb[36].mxu0 %v32702_v52  ;;  %v23222_v17 = vadd.f32 %v2050_v53, %v1205_v8  ;;  %v32720_v53 = vand.u32 4294901760, %v32668_v30  ;;  %v32723_v49 = vand.u32 4294901760, %v32671_v63  ;;  %v32725_v52 = vand.u32 4294901760, %v32724_v10  ;;  %v32730_v30 = vld [vmem:[#allocation76_spill] sm:$0xff]  ;;  %v32736_v63 = vld [vmem:[#allocation85_spill] sm:$0xff]  ;;  %v32738_v8 = vld [vmem:[#allocation86_spill] sm:$0xff] }
 0x1aa   : > { %20953 = vmatprep.mubr.f32.mxu1 %v32703_v36  ;;  %21256 = vmatprep.mubr.f32.mxu0 %v32704_v39  ;;  %2112 = vst.msk [vmem:[#allocation2 + $0xd8] sm:$0xff] %vm2084_vm2, %v23221_v21  ;;  %v32729_v36 = vand.u32 4294901760, %v32728_v18  ;;  %v32731_v39 = vand.u32 4294901760, %v32730_v30  ;;  %v32737_v21 = vand.u32 4294901760, %v32736_v63  ;;  %v32780_v10 = vld [vmem:[#allocation27_spill] sm:$0xff]  ;;  %v32786_v18 = vld [vmem:[#allocation36_spill] sm:$0xff] }
 0x1ab   : > { %2111 = vst.msk [vmem:[#allocation2 + $0xd0] sm:$0xff] %vm2084_vm2, %v23222_v17  ;;  %v20641_v14 = vpop.f32.mrb[28].mxu1  ;;  %v20794_v11 = vpop.f32.mrb[30].mxu0  ;;  %v32742_v17 = vld [vmem:[#allocation88_spill] sm:$0xff]  ;;  %v32795_v63 = vld [vmem:[#allocation17_spill] sm:$0xff] }
 0x1ac   : > { %v23223_v37 = vadd.f32 %v20791_v58, %v20641_v14  ;;  %v1219_v22 = vpop.f32.mrb[29].mxu1  ;;  %v2074_v24 = vpop.f32.mrb[31].mxu0  ;;  %v32735_v58 = vand.u32 4294901760, %v32734_v41  ;;  %v32788_v30 = vld [vmem:[#allocation12_spill] sm:$0xff] }
 0x1ad   : > { %20954 = vmatmul.mubr.f32.gmra.mrb[36].mxu1 %v32705_v38  ;;  %21257 = vmatmul.mubr.f32.gmra.mrb[38].mxu0 %v32706_v43  ;;  %v23224_v47 = vadd.f32 %v2062_v45, %v1219_v22  ;;  %v32739_v45 = vand.u32 4294901760, %v32738_v8  ;;  %v32740_v38 = vld [vmem:[#allocation87_spill] sm:$0xff]  ;;  %v32748_v22 = vld [vmem:[#allocation96_spill] sm:$0xff] }
 0x1ae   : > { %20956 = vmatprep.mubr.f32.mxu1 %v32707_v28  ;;  %21259 = vmatprep.mubr.f32.mxu0 %v32708_v59  ;;  %2114 = vst.msk [vmem:[#allocation2 + $0xe8] sm:$0xff] %vm2084_vm2, %v23223_v37  ;;  %v32741_v43 = vand.u32 4294901760, %v32740_v38  ;;  %v32743_v28 = vand.u32 4294901760, %v32742_v17  ;;  %v32744_v59 = vld [vmem:[#allocation89_spill] sm:$0xff]  ;;  %v32791_v19 = vld [vmem:[#allocation44_spill] sm:$0xff]  ;;  %v32799_v38 = vld [vmem:[#allocation51_spill] sm:$0xff] }
 0x1af   : > { %2113 = vst.msk [vmem:[#allocation2 + $0xe0] sm:$0xff] %vm2084_vm2, %v23224_v47  ;;  %v20644_v2 = vpop.f32.mrb[30].mxu1  ;;  %v32745_v14 = vand.u32 4294901760, %v32744_v59  ;;  %v32752_v47 = vld [vmem:[#allocation99_spill] sm:$0xff]  ;;  %v32793_v41 = vld [vmem:[#allocation16_spill] sm:$0xff]  ;;  %v32801_v17 = vld [vmem:[#allocation57_spill] sm:$0xff] }
 0x1b0   : > { %v23225_v4 = vadd.f32 %v20794_v11, %v20644_v2  ;;  %v1233_v54 = vpop.f32.mrb[31].mxu1  ;;  %v32746_v11 = vld [vmem:[#allocation95_spill] sm:$0xff]  ;;  %v32755_v2 = vld [vmem:[#allocation101_spill] sm:$0xff]  ;;  %v32797_v8 = vld [vmem:[#allocation20_spill] sm:$0xff] }
 0x1b1   : > { %20957 = vmatmul.mubr.f32.gmra.mrb[38].mxu1 %v32709_v50  ;;  %21260 = vmatmul.mubr.f32.gmra.mrb[40].mxu0 %v32710_v23  ;;  %v23226_v27 = vadd.f32 %v2074_v24, %v1233_v54  ;;  %v32747_v37 = vand.u32 4294901760, %v32746_v11  ;;  %v32749_v24 = vand.u32 4294901760, %v32748_v22  ;;  %v32750_v50 = vld [vmem:[#allocation97_spill] sm:$0xff]  ;;  %v32757_v54 = vand.u32 4294901760, %v32689_v34  ;;  %v32803_v59 = vld [vmem:[#allocation60_spill] sm:$0xff]  ;;  %v32805_v11 = vld [vmem:[#allocation62_spill] sm:$0xff] }
 0x1b2   : > { %20959 = vmatprep.mubr.f32.mxu1 %v32711_v51  ;;  %21262 = vmatprep.mubr.f32.mxu0 %v32712_v16  ;;  %2116 = vst.msk [vmem:[#allocation2 + $0xf8] sm:$0xff] %vm2084_vm2, %v23225_v4  ;;  %v32751_v23 = vand.u32 4294901760, %v32750_v50  ;;  %v32753_v51 = vand.u32 4294901760, %v32752_v47  ;;  %v32754_v16 = vand.u32 4294901760, %v32687_v6  ;;  %v32756_v4 = vand.u32 4294901760, %v32755_v2  ;;  %v32807_v22 = vld [vmem:[#allocation69_spill] sm:$0xff] }
 0x1b3   : > { %2115 = vst.msk [vmem:[#allocation2 + $0xf0] sm:$0xff] %vm2084_vm2, %v23226_v27  ;;  %v32760_v27 = vand.u32 4294901760, %v32692_v26  ;;  %v32762_v6 = vand.u32 4294901760, %v25974_v15  ;;  %v32764_v34 = vand.u32 4294901760, %v25991_v61  ;;  %v32767_v26 = vand.u32 4294901760, %v26035_v33  ;;  %v32809_v50 = vld [vmem:[#allocation73_spill] sm:$0xff] }
 0x1b4   : > { %v18576_v15 = vld [vmem:[%s31339_s0 + $0x10] sm:$0xf]  ;;  %v32771_v61 = vand.u32 4294901760, %v26060_v44  ;;  %v32772_v33 = vand.u32 4294901760, %v26070_v42  ;;  %v32775_v44 = vld [vmem:[#allocation3_spill] sm:$0xff]  ;;  %v32811_v47 = vld [vmem:[#allocation78_spill] sm:$0xff] }
 0x1b5   : > { %20960 = vmatmul.mubr.f32.gmra.mrb[40].mxu1 %v32713_v25  ;;  %21263 = vmatmul.mubr.f32.gmra.mrb[42].mxu0 %v32714_v60  ;;  %v32758_v25 = vand.u32 4294901760, %v32690_v31  ;;  %v32759_v60 = vand.u32 4294901760, %v32691_v13  ;;  %v32765_v31 = vand.u32 4294901760, %v26020_v40  ;;  %v32766_v13 = vand.u32 4294901760, %v26028_v46  ;;  %v18543_v40 = vld [vmem:[%s31339_s0 + $0xc] sm:$0xf] }
 0x1b6   : > { %20962 = vmatprep.mubr.f32.mxu1 %v32715_v12  ;;  %21265 = vmatprep.mubr.f32.mxu0 %v32716_v62  ;;  %v32761_v12 = vand.u32 4294901760, %v25971_v5  ;;  %v32763_v62 = vand.u32 4294901760, %v25977_v20  ;;  %v32768_v5 = vand.u32 4294901760, %v26038_v9  ;;  %v32769_v20 = vld [vmem:[#allocation121_spill] sm:$0xff]  ;;  %v8273_v46 = vsel %vm301_vm0, %v18576_v15, 0  ;;  %v32773_v9 = vld [vmem:[#allocation24_spill] sm:$0xff] }
 0x1b7   : > { %v32814_v2 = vld [vmem:[#allocation81_spill] sm:$0xff]  ;;  %v32827_v15 = vld [vmem:[#allocation110_spill] sm:$0xff] }
 0x1b9   : > { %20963 = vmatmul.mubr.f32.gmra.mrb[42].mxu1 %v32717_v35  ;;  %21266 = vmatmul.mubr.f32.gmra.mrb[44].mxu0 %v32718_v0  ;;  %v32770_v35 = vand.u32 4294901760, %v32769_v20  ;;  %v26410_v0 = vsel %vm301_vm0, %v18543_v40, 0  ;;  %v32828_v20 = vld [vmem:[#allocation111_spill] sm:$0xff] }
 0x1ba   : > { %20965 = vmatprep.mubr.f32.mxu1 %v32719_v32  ;;  %21268 = vmatprep.mubr.f32.mxu0 %v32720_v53  ;;  %v26412_v32 = vand.u32 4294901760, %v8273_v46  ;;  %v32774_v53 = vand.u32 4294901760, %v26081_v56  ;;  %v26421_v42 = vand.u32 4294901760, %v26410_v0  ;;  %v32781_v56 = vld [vmem:[#allocation8_spill] sm:$0xff] }
 0x1bc   : > { %32778 = vst [vmem:[#allocation21_spill] sm:$0xff] %v26421_v42  ;;  %v26483_v40 = vsub.f32 %v26410_v0, %v26421_v42  ;;  %v32838_v0 = vld [vmem:[#allocation119_spill] sm:$0xff] }
 0x1bd   : > { %20966 = vmatmul.mubr.f32.gmra.mrb[44].mxu1 %v32721_v55  ;;  %21269 = vmatmul.mubr.f32.gmra.mrb[46].mxu0 %v32722_v57  ;;  %v32776_v55 = vld [vmem:[#allocation25_spill] sm:$0xff]  ;;  %v32777_v57 = vld [vmem:[#allocation26_spill] sm:$0xff] }
 0x1be   : > { %20968 = vmatprep.mubr.f32.mxu1 %v32723_v49  ;;  %21271 = vmatprep.mubr.f32.mxu0 %v32725_v52  ;;  %v32779_v49 = vld [vmem:[#allocation5_spill] sm:$0xff]  ;;  %v32782_v52 = vld [vmem:[#allocation31_spill] sm:$0xff] }
 0x1c1   : > { %20969 = vmatmul.mubr.f32.gmra.mrb[46].mxu1 %v32727_v7  ;;  %21272 = vmatmul.mubr.f32.gmra.mrb[48].mxu0 %v32729_v36  ;;  %v32785_v7 = vld [vmem:[#allocation33_spill] sm:$0xff]  ;;  %v32787_v36 = vld [vmem:[#allocation38_spill] sm:$0xff] }
 0x1c2   : > { %20971 = vmatprep.mubr.f32.mxu1 %v32731_v39  ;;  %21274 = vmatprep.mubr.f32.mxu0 %v32733_v1  ;;  %v32789_v39 = vld [vmem:[#allocation39_spill] sm:$0xff] }
 0x1c3   : > { %v32792_v1 = vld [vmem:[#allocation15_spill] sm:$0xff] }
 0x1c5   : > { %20972 = vmatmul.mubr.f32.gmra.mrb[48].mxu1 %v32735_v58  ;;  %21275 = vmatmul.mubr.f32.gmra.mrb[50].mxu0 %v32737_v21  ;;  %v32794_v58 = vld [vmem:[#allocation46_spill] sm:$0xff]  ;;  %v32796_v21 = vld [vmem:[#allocation49_spill] sm:$0xff] }
 0x1c6   : > { %20974 = vmatprep.mubr.f32.mxu1 %v32739_v45  ;;  %21277 = vmatprep.mubr.f32.mxu0 %v32741_v43  ;;  %v32798_v45 = vld [vmem:[#allocation50_spill] sm:$0xff]  ;;  %v32800_v43 = vld [vmem:[#allocation52_spill] sm:$0xff] }
 0x1c9   : > { %20975 = vmatmul.mubr.f32.gmra.mrb[50].mxu1 %v32743_v28  ;;  %21278 = vmatmul.mubr.f32.gmra.mrb[52].mxu0 %v32745_v14  ;;  %v32802_v28 = vld [vmem:[#allocation59_spill] sm:$0xff]  ;;  %v32804_v14 = vld [vmem:[#allocation61_spill] sm:$0xff] }
 0x1ca   : > { %20977 = vmatprep.mubr.f32.mxu1 %v32747_v37  ;;  %21280 = vmatprep.mubr.f32.mxu0 %v32749_v24  ;;  %v32806_v37 = vld [vmem:[#allocation68_spill] sm:$0xff]  ;;  %v32808_v24 = vld [vmem:[#allocation71_spill] sm:$0xff] }
 0x1cd   : > { %20978 = vmatmul.mubr.f32.gmra.mrb[52].mxu1 %v32751_v23  ;;  %21281 = vmatmul.mubr.f32.gmra.mrb[54].mxu0 %v32753_v51  ;;  %v32810_v23 = vld [vmem:[#allocation74_spill] sm:$0xff]  ;;  %v32812_v51 = vld [vmem:[#allocation79_spill] sm:$0xff] }
 0x1ce   : > { %20980 = vmatprep.mubr.f32.mxu1 %v32754_v16  ;;  %21283 = vmatprep.mubr.f32.mxu0 %v32756_v4  ;;  %v32813_v16 = vld [vmem:[#allocation80_spill] sm:$0xff]  ;;  %v32815_v4 = vld [vmem:[#allocation82_spill] sm:$0xff] }
 0x1d1   : > { %20981 = vmatmul.mubr.f32.gmra.mrb[54].mxu1 %v32757_v54  ;;  %21284 = vmatmul.mubr.f32.gmra.mrb[56].mxu0 %v32758_v25  ;;  %v32816_v54 = vld [vmem:[#allocation83_spill] sm:$0xff]  ;;  %v32817_v25 = vld [vmem:[#allocation90_spill] sm:$0xff] }
 0x1d2   : > { %20983 = vmatprep.mubr.f32.mxu1 %v32759_v60  ;;  %21286 = vmatprep.mubr.f32.mxu0 %v32760_v27  ;;  %v32818_v60 = vld [vmem:[#allocation91_spill] sm:$0xff]  ;;  %v32819_v27 = vld [vmem:[#allocation92_spill] sm:$0xff] }
 0x1d5   : > { %20984 = vmatmul.mubr.f32.gmra.mrb[56].mxu1 %v32761_v12  ;;  %21287 = vmatmul.mubr.f32.gmra.mrb[58].mxu0 %v32762_v6  ;;  %v32820_v12 = vld [vmem:[#allocation93_spill] sm:$0xff]  ;;  %v32821_v6 = vld [vmem:[#allocation94_spill] sm:$0xff] }
 0x1d6   : > { %20986 = vmatprep.mubr.f32.mxu1 %v32763_v62  ;;  %21289 = vmatprep.mubr.f32.mxu0 %v32764_v34  ;;  %v32822_v62 = vld [vmem:[#allocation98_spill] sm:$0xff] }
 0x1d7   : > { %v32823_v34 = vld [vmem:[#allocation102_spill] sm:$0xff] }
 0x1d9   : > { %20987 = vmatmul.mubr.f32.gmra.mrb[58].mxu1 %v32765_v31  ;;  %21290 = vmatmul.mubr.f32.gmra.mrb[60].mxu0 %v32766_v13  ;;  %v32824_v31 = vld [vmem:[#allocation103_spill] sm:$0xff]  ;;  %v32825_v13 = vld [vmem:[#allocation104_spill] sm:$0xff] }
 0x1da   : > { %20989 = vmatprep.mubr.f32.mxu1 %v32767_v26  ;;  %21292 = vmatprep.mubr.f32.mxu0 %v32768_v5  ;;  %v32826_v26 = vld [vmem:[#allocation105_spill] sm:$0xff]  ;;  %v26475_v5 = vsub.f32 %v8273_v46, %v26412_v32  ;;  %v32834_v46 = vld [vmem:[#allocation116_spill] sm:$0xff] }
 0x1dd   : > { %20990 = vmatmul.mubr.f32.gmra.mrb[60].mxu1 %v32770_v35  ;;  %21293 = vmatmul.mubr.f32.gmra.mrb[62].mxu0 %v32771_v61  ;;  %v32829_v35 = vld [vmem:[#allocation112_spill] sm:$0xff]  ;;  %v32830_v61 = vld [vmem:[#allocation113_spill] sm:$0xff] }
 0x1de   : > { %20992 = vmatprep.mubr.f32.mxu1 %v32772_v33  ;;  %21297 = vmatprep.mubr.f32.mxu0 %v32773_v9  ;;  %v26486_v33 = vand.u32 4294901760, %v26475_v5 }
 0x1e0   : > { %32831 = vst [vmem:[#allocation4_spill] sm:$0xff] %v26486_v33 }
 0x1e1   : > { %20993 = vmatmul.mubr.f32.gmra.mrb[62].mxu1 %v32774_v53  ;;  %21298 = vmatmul.mubr.f32.vlgmr.msra.gmra.mrb[32].mxu0 %v32775_v44  ;;  %v32832_v53 = vld [vmem:[#allocation114_spill] sm:$0xff] }
 0x1e2   : > { %20997 = vmatprep.mubr.f32.mxu1 %v32776_v55  ;;  %21300 = vmatprep.mubr.f32.mxu0 %v32777_v57 }
 0x1e3   : > { %21346 = vmatpush3.msra.mxu0 %v25004_v48  ;;  %v32784_v48 = vld [vmem:[#allocation9_spill] sm:$0xff] }
 0x1e4   : > { %21695 = vmatprep.subr.mxu0 %v26412_v32 }
 0x1e5   : > { %20998 = vmatmul.mubr.f32.vlgmr.msra.gmra.mrb[32].mxu1 %v32779_v49  ;;  %21301 = vmatmul.mubr.f32.gmra.mrb[34].mxu0 %v32780_v10 }
 0x1e6   : > { %21046 = vmatpush3.msra.mxu1 %v32608_v29  ;;  %21000 = vmatprep.mubr.f32.mxu1 %v32781_v56  ;;  %v32790_v29 = vld [vmem:[#allocation40_spill] sm:$0xff] }
 0x1e7   : > { %21303 = vmatprep.mubr.f32.mxu0 %v32782_v52  ;;  %21395 = vmatprep.subr.mxu1 %v26421_v42 }
 0x1e9   : > { %21001 = vmatmul.mubr.f32.gmra.mrb[34].mxu1 %v32783_v3  ;;  %21304 = vmatmul.mubr.f32.gmra.mrb[36].mxu0 %v32784_v48 }
 0x1ea   : > { %21003 = vmatprep.mubr.f32.mxu1 %v32785_v7  ;;  %21306 = vmatprep.mubr.f32.mxu0 %v32786_v18 }
 0x1ed   : > { %21004 = vmatmul.mubr.f32.gmra.mrb[36].mxu1 %v32787_v36  ;;  %21307 = vmatmul.mubr.f32.gmra.mrb[38].mxu0 %v32788_v30 }
 0x1ee   : > { %21006 = vmatprep.mubr.f32.mxu1 %v32789_v39  ;;  %21309 = vmatprep.mubr.f32.mxu0 %v32790_v29 }
 0x1f1   : > { %21007 = vmatmul.mubr.f32.gmra.mrb[38].mxu1 %v32791_v19  ;;  %21310 = vmatmul.mubr.f32.gmra.mrb[40].mxu0 %v32792_v1 }
 0x1f2   : > { %21009 = vmatprep.mubr.f32.mxu1 %v32793_v41  ;;  %21312 = vmatprep.mubr.f32.mxu0 %v32794_v58 }
 0x1f5   : > { %21010 = vmatmul.mubr.f32.gmra.mrb[40].mxu1 %v32795_v63  ;;  %21313 = vmatmul.mubr.f32.gmra.mrb[42].mxu0 %v32796_v21 }
 0x1f6   : > { %21012 = vmatprep.mubr.f32.mxu1 %v32797_v8  ;;  %21315 = vmatprep.mubr.f32.mxu0 %v32798_v45 }
 0x1f9   : > { %21013 = vmatmul.mubr.f32.gmra.mrb[42].mxu1 %v32799_v38  ;;  %21316 = vmatmul.mubr.f32.gmra.mrb[44].mxu0 %v32800_v43 }
 0x1fa   : > { %21015 = vmatprep.mubr.f32.mxu1 %v32801_v17  ;;  %21318 = vmatprep.mubr.f32.mxu0 %v32802_v28 }
 0x1fd   : > { %21016 = vmatmul.mubr.f32.gmra.mrb[44].mxu1 %v32803_v59  ;;  %21319 = vmatmul.mubr.f32.gmra.mrb[46].mxu0 %v32804_v14 }
 0x1fe   : > { %21018 = vmatprep.mubr.f32.mxu1 %v32805_v11  ;;  %21321 = vmatprep.mubr.f32.mxu0 %v32806_v37 }
 0x201   : > { %21019 = vmatmul.mubr.f32.gmra.mrb[46].mxu1 %v32807_v22  ;;  %21322 = vmatmul.mubr.f32.gmra.mrb[48].mxu0 %v32808_v24 }
 0x202   : > { %21021 = vmatprep.mubr.f32.mxu1 %v32809_v50  ;;  %21324 = vmatprep.mubr.f32.mxu0 %v32810_v23 }
 0x205   : > { %21022 = vmatmul.mubr.f32.gmra.mrb[48].mxu1 %v32811_v47  ;;  %21325 = vmatmul.mubr.f32.gmra.mrb[50].mxu0 %v32812_v51 }
 0x206   : > { %21024 = vmatprep.mubr.f32.mxu1 %v32813_v16  ;;  %21327 = vmatprep.mubr.f32.mxu0 %v32814_v2 }
 0x209   : > { %21025 = vmatmul.mubr.f32.gmra.mrb[50].mxu1 %v32815_v4  ;;  %21328 = vmatmul.mubr.f32.gmra.mrb[52].mxu0 %v32816_v54 }
 0x20a   : > { %21027 = vmatprep.mubr.f32.mxu1 %v32817_v25  ;;  %21330 = vmatprep.mubr.f32.mxu0 %v32818_v60 }
 0x20d   : > { %21028 = vmatmul.mubr.f32.gmra.mrb[52].mxu1 %v32819_v27  ;;  %21331 = vmatmul.mubr.f32.gmra.mrb[54].mxu0 %v32820_v12 }
 0x20e   : > { %21030 = vmatprep.mubr.f32.mxu1 %v32821_v6  ;;  %21333 = vmatprep.mubr.f32.mxu0 %v32822_v62 }
 0x211   : > { %21031 = vmatmul.mubr.f32.gmra.mrb[54].mxu1 %v32823_v34  ;;  %21334 = vmatmul.mubr.f32.gmra.mrb[56].mxu0 %v32824_v31 }
 0x212   : > { %21033 = vmatprep.mubr.f32.mxu1 %v32825_v13  ;;  %21336 = vmatprep.mubr.f32.mxu0 %v32826_v26  ;;  %v32833_v26 = vld [vmem:[#allocation115_spill] sm:$0xff]  ;;  %v32839_v13 = vld [vmem:[#allocation120_spill] sm:$0xff] }
 0x215   : > { %21034 = vmatmul.mubr.f32.gmra.mrb[56].mxu1 %v32827_v15  ;;  %21337 = vmatmul.mubr.f32.gmra.mrb[58].mxu0 %v32828_v20  ;;  %v32835_v15 = vld [vmem:[#allocation117_spill] sm:$0xff]  ;;  %v26493_v20 = vand.u32 4294901760, %v26483_v40 }
 0x216   : > { %21036 = vmatprep.mubr.f32.mxu1 %v32829_v35  ;;  %21339 = vmatprep.mubr.f32.mxu0 %v32830_v61  ;;  %v8665_v61 = vsub.f32 %v26475_v5, %v26486_v33  ;;  %v32837_v35 = vld [vmem:[#allocation118_spill] sm:$0xff] }
 0x217   : > { %32836 = vst [vmem:[#allocation6_spill] sm:$0xff] %v26493_v20 }
 0x219   : > { %21037 = vmatmul.mubr.f32.gmra.mrb[58].mxu1 %v32832_v53  ;;  %21340 = vmatmul.mubr.f32.gmra.mrb[60].mxu0 %v32833_v26  ;;  %v6657_v26 = vsub.f32 %v26483_v40, %v26493_v20  ;;  %v18517_v20 = vld [vmem:[%s24699_s19 + $0x60] sm:$0xff] }
 0x21a   : > { %21039 = vmatprep.mubr.f32.mxu1 %v32834_v46  ;;  %21342 = vmatprep.mubr.f32.mxu0 %v32835_v15  ;;  %v26503_v46 = vand.u32 4294901760, %v8665_v61  ;;  %v32840_v15 = vld [vmem:[#allocation122_spill] sm:$0xff] }
 0x21b   : > { %v26510_v33 = vand.u32 4294901760, %v6657_v26  ;;  %v18548_v26 = vld [vmem:[%s24699_s19 + $0x49] sm:$0xff]  ;;  %v18514_v61 = vld [vmem:[%s24699_s19 + $0x38] sm:$0xff] }
 0x21d   : > { %21040 = vmatmul.mubr.f32.gmra.mrb[60].mxu1 %v32837_v35  ;;  %21343 = vmatmul.mubr.f32.gmra.mrb[62].mxu0 %v32838_v0 }
 0x21e   : > { %21042 = vmatprep.mubr.f32.mxu1 %v32839_v13  ;;  %21347 = vmatprep.mubr.f32.mxu0 %v32773_v9  ;;  %v18544_v9 = vld [vmem:[%s24699_s19 + $0x19] sm:$0xff] }
 0x221   : > { %21043 = vmatmul.mubr.f32.gmra.mrb[62].mxu1 %v32840_v15  ;;  %21348 = vmatmul.mubr.f32.vlgmr.msra.gmra.mrb[32].mxu0 %v32775_v44  ;;  %v8177_v44 = vsel %vm204_vm1, %v18544_v9, 0 }
 0x222   : > { %21047 = vmatprep.mubr.f32.mxu1 %v32776_v55  ;;  %21350 = vmatprep.mubr.f32.mxu0 %v32777_v57  ;;  %v18545_v55 = vld [vmem:[%s24699_s19 + $0x21] sm:$0xff]  ;;  %v18511_v57 = vld [vmem:[%s24699_s19 + $0x18] sm:$0xff] }
 0x223   : > { %21696 = vmatpush3.msra.mxu0 %v26412_v32 }
 0x224   : > { %21745 = vmatprep.subr.mxu0 %v26503_v46 }
 0x225   : > { %21048 = vmatmul.mubr.f32.vlgmr.msra.gmra.mrb[32].mxu1 %v32779_v49  ;;  %21351 = vmatmul.mubr.f32.gmra.mrb[34].mxu0 %v32780_v10  ;;  %v18546_v49 = vld [vmem:[%s24699_s19 + $0x31] sm:$0xff]  ;;  %v18512_v10 = vld [vmem:[%s24699_s19 + $0x20] sm:$0xff] }
 0x226   : > { %21396 = vmatpush3.msra.mxu1 %v26421_v42  ;;  %21050 = vmatprep.mubr.f32.mxu1 %v32781_v56  ;;  %v18547_v56 = vld [vmem:[%s24699_s19 + $0x39] sm:$0xff] }
 0x227   : > { %21353 = vmatprep.mubr.f32.mxu0 %v32782_v52  ;;  %21445 = vmatprep.subr.mxu1 %v26510_v33  ;;  %v26534_v52 = vand.u32 4294901760, %v8177_v44 }
 0x229   : > { %21051 = vmatmul.mubr.f32.gmra.mrb[34].mxu1 %v32783_v3  ;;  %21354 = vmatmul.mubr.f32.gmra.mrb[36].mxu0 %v32784_v48  ;;  %32841 = vst [vmem:[#allocation28_spill] sm:$0xff] %v26534_v52  ;;  %v8180_v3 = vsel %vm204_vm1, %v18545_v55, 0  ;;  %v6169_v48 = vsel %vm204_vm1, %v18511_v57, 0  ;;  %v8189_v55 = vsel %vm204_vm1, %v18548_v26, 0  ;;  %v18549_v57 = vld [vmem:[%s24699_s19 + $0x51] sm:$0xff] }
 0x22a   : > { %21053 = vmatprep.mubr.f32.mxu1 %v32785_v7  ;;  %21356 = vmatprep.mubr.f32.mxu0 %v32786_v18  ;;  %v8183_v7 = vsel %vm204_vm1, %v18546_v49, 0  ;;  %v6172_v18 = vsel %vm204_vm1, %v18512_v10, 0 }
 0x22d   : > { %21054 = vmatmul.mubr.f32.gmra.mrb[36].mxu1 %v32787_v36  ;;  %21357 = vmatmul.mubr.f32.gmra.mrb[38].mxu0 %v32788_v30  ;;  %v8186_v36 = vsel %vm204_vm1, %v18547_v56, 0  ;;  %v26545_v30 = vand.u32 4294901760, %v8180_v3 }
 0x22e   : > { %21056 = vmatprep.mubr.f32.mxu1 %v32789_v39  ;;  %21359 = vmatprep.mubr.f32.mxu0 %v32790_v29  ;;  %v26548_v39 = vsub.f32 %v8177_v44, %v26534_v52  ;;  %v26550_v29 = vand.u32 4294901760, %v6169_v48 }
 0x22f   : > { %32842 = vst [vmem:[#allocation29_spill] sm:$0xff] %v26545_v30  ;;  %v26566_v9 = vsub.f32 %v8180_v3, %v26545_v30 }
 0x230   : > { %32843 = vst [vmem:[#allocation22_spill] sm:$0xff] %v26548_v39  ;;  %32844 = vst [vmem:[#allocation7_spill] sm:$0xff] %v26550_v29  ;;  %v26574_v49 = vsub.f32 %v6169_v48, %v26550_v29  ;;  %v26592_v48 = vand.u32 4294901760, %v8189_v55 }
 0x231   : > { %21057 = vmatmul.mubr.f32.gmra.mrb[38].mxu1 %v32791_v19  ;;  %21360 = vmatmul.mubr.f32.gmra.mrb[40].mxu0 %v32792_v1  ;;  %v26552_v19 = vand.u32 4294901760, %v8183_v7  ;;  %v18513_v1 = vld [vmem:[%s24699_s19 + $0x30] sm:$0xff]  ;;  %32848 = vst [vmem:[#allocation23_spill] sm:$0xff] %v26566_v9 }
 0x232   : > { %21059 = vmatprep.mubr.f32.mxu1 %v32793_v41  ;;  %21362 = vmatprep.mubr.f32.mxu0 %v32794_v58  ;;  %v26558_v41 = vand.u32 4294901760, %v6172_v18  ;;  %v26560_v58 = vand.u32 4294901760, %v8186_v36  ;;  %v6175_v44 = vsel %vm204_vm1, %v18513_v1, 0  ;;  %32849 = vst [vmem:[#allocation35_spill] sm:$0xff] %v26574_v49  ;;  %32854 = vst [vmem:[#allocation14_spill] sm:$0xff] %v26592_v48  ;;  %v18516_v1 = vld [vmem:[%s24699_s19 + $0x50] sm:$0xff] }
 0x233   : > { %32845 = vst [vmem:[#allocation30_spill] sm:$0xff] %v26552_v19  ;;  %v26590_v3 = vand.u32 4294901760, %v6175_v44 }
 0x234   : > { %32846 = vst [vmem:[#allocation10_spill] sm:$0xff] %v26558_v41  ;;  %32847 = vst [vmem:[#allocation34_spill] sm:$0xff] %v26560_v58  ;;  %v26583_v10 = vsub.f32 %v6172_v18, %v26558_v41  ;;  %v26586_v56 = vsub.f32 %v8186_v36, %v26560_v58 }
 0x235   : > { %21060 = vmatmul.mubr.f32.gmra.mrb[40].mxu1 %v32795_v63  ;;  %21363 = vmatmul.mubr.f32.gmra.mrb[42].mxu0 %v32796_v21  ;;  %v18515_v63 = vld [vmem:[%s24699_s19 + $0x48] sm:$0xff]  ;;  %v31616_v21 = vand.u32 4294901760, %v26548_v39  ;;  %32853 = vst [vmem:[#allocation13_spill] sm:$0xff] %v26590_v3 }
 0x236   : > { %21062 = vmatprep.mubr.f32.mxu1 %v32797_v8  ;;  %21365 = vmatprep.mubr.f32.mxu0 %v32798_v45  ;;  %v26577_v8 = vsub.f32 %v8183_v7, %v26552_v19  ;;  %v6178_v45 = vsel %vm204_vm1, %v18514_v61, 0  ;;  %32851 = vst [vmem:[#allocation37_spill] sm:$0xff] %v26583_v10  ;;  %32852 = vst [vmem:[#allocation41_spill] sm:$0xff] %v26586_v56  ;;  %v18550_v7 = vld [vmem:[%s24699_s19 + $0x61] sm:$0xff]  ;;  %v18551_v61 = vld [vmem:[%s24699_s19 + $0x69] sm:$0xff] }
 0x237   : > { %v26597_v18 = vand.u32 4294901760, %v6178_v45  ;;  %v26603_v36 = vsub.f32 %v26548_v39, %v31616_v21  ;;  %v8195_v21 = vsel %vm204_vm1, %v18550_v7, 0  ;;  %v6187_v7 = vsel %vm204_vm1, %v18517_v20, 0  ;;  %v18519_v39 = vld [vmem:[%s24699_s19 + $0x78] sm:$0xff] }
 0x238   : > { %32850 = vst [vmem:[#allocation11_spill] sm:$0xff] %v26577_v8  ;;  %v26672_v20 = vand.u32 4294901760, %v6187_v7 }
 0x239   : > { %21063 = vmatmul.mubr.f32.gmra.mrb[42].mxu1 %v32799_v38  ;;  %21366 = vmatmul.mubr.f32.gmra.mrb[44].mxu0 %v32800_v43  ;;  %v8192_v38 = vsel %vm204_vm1, %v18549_v57, 0  ;;  %v6181_v43 = vsel %vm204_vm1, %v18515_v63, 0  ;;  %32855 = vst [vmem:[#allocation42_spill] sm:$0xff] %v26597_v18  ;;  %v18552_v57 = vld [vmem:[%s24699_s19 + $0x79] sm:$0xff]  ;;  %v26630_v63 = vsub.f32 %v6178_v45, %v26597_v18  ;;  %v32863_v45 = vand.u32 4294901760, %v26577_v8 }
 0x23a   : > { %21065 = vmatprep.mubr.f32.mxu1 %v32801_v17  ;;  %21368 = vmatprep.mubr.f32.mxu0 %v32802_v28  ;;  %v26614_v42 = vand.u32 4294901760, %v8192_v38  ;;  %v26616_v58 = vand.u32 4294901760, %v6181_v43  ;;  %v26623_v28 = vsub.f32 %v6175_v44, %v26590_v3  ;;  %v8198_v17 = vsel %vm204_vm1, %v18551_v61, 0  ;;  %32870 = vst [vmem:[#allocation58_spill] sm:$0xff] %v26672_v20 }
 0x23b   : > { %32860 = vst [vmem:[#allocation48_spill] sm:$0xff] %v26630_v63  ;;  %v32862_v44 = vand.u32 4294901760, %v26574_v49  ;;  %v26650_v61 = vand.u32 4294901760, %v8195_v21 }
 0x23c   : > { %32856 = vst [vmem:[#allocation43_spill] sm:$0xff] %v26614_v42  ;;  %32857 = vst [vmem:[#allocation45_spill] sm:$0xff] %v26616_v58 }
 0x23d   : > { %21066 = vmatmul.mubr.f32.gmra.mrb[44].mxu1 %v32803_v59  ;;  %21369 = vmatmul.mubr.f32.gmra.mrb[46].mxu0 %v32804_v14  ;;  %32858 = vst [vmem:[#allocation18_spill] sm:$0xff] %v26623_v28  ;;  %v26626_v59 = vsub.f32 %v8189_v55, %v26592_v48  ;;  %v6184_v14 = vsel %vm204_vm1, %v18516_v1, 0  ;;  %v26643_v55 = vsub.f32 %v26574_v49, %v32862_v44  ;;  %32864 = vst [vmem:[#allocation19_spill] sm:$0xff] %v26650_v61 }
 0x23e   : > { %21068 = vmatprep.mubr.f32.mxu1 %v32805_v11  ;;  %21371 = vmatprep.mubr.f32.mxu0 %v32806_v37  ;;  %v8201_v11 = vsel %vm204_vm1, %v18552_v57, 0  ;;  %v32861_v37 = vand.u32 4294901760, %v26566_v9  ;;  %v26648_v1 = vsub.f32 %v26577_v8, %v32863_v45  ;;  %v26656_v57 = vsub.f32 %v8192_v38, %v26614_v42 }
 0x23f   : > { %32859 = vst [vmem:[#allocation47_spill] sm:$0xff] %v26626_v59  ;;  %v26661_v44 = vand.u32 4294901760, %v6184_v14  ;;  %v32868_v45 = vand.u32 4294901760, %v26583_v10  ;;  %v26674_v38 = vand.u32 4294901760, %v8201_v11  ;;  %v32872_v8 = vand.u32 4294901760, %v26586_v56 }
 0x240   : > { %v26638_v26 = vsub.f32 %v26566_v9, %v32861_v37  ;;  %32865 = vst [vmem:[#allocation53_spill] sm:$0xff] %v26656_v57  ;;  %v26659_v37 = vsub.f32 %v6181_v43, %v26616_v58  ;;  %v18518_v43 = vld [vmem:[%s24699_s19 + $0x68] sm:$0xff]  ;;  %v26689_v58 = vsub.f32 %v8195_v21, %v26650_v61  ;;  %v26708_v21 = vsub.f32 %v6187_v7, %v26672_v20 }
 0x241   : > { %21069 = vmatmul.mubr.f32.gmra.mrb[46].mxu1 %v32807_v22  ;;  %21372 = vmatmul.mubr.f32.gmra.mrb[48].mxu0 %v32808_v24  ;;  %32867 = vst [vmem:[#allocation55_spill] sm:$0xff] %v26661_v44  ;;  %v26668_v22 = vsub.f32 %v26583_v10, %v32868_v45  ;;  %v26670_v24 = vand.u32 4294901760, %v8198_v17  ;;  %32871 = vst [vmem:[#allocation63_spill] sm:$0xff] %v26674_v38  ;;  %v26696_v45 = vsub.f32 %v6184_v14, %v26661_v44  ;;  %v18553_v10 = vld [vmem:[%s24699_s19 + $0x81] sm:$0xff]  ;;  %v18554_v14 = vld [vmem:[%s24699_s19 + $0x91] sm:$0xff] }
 0x242   : > { %32866 = vst [vmem:[#allocation54_spill] sm:$0xff] %v26659_v37  ;;  %21071 = vmatprep.mubr.f32.mxu1 %v32809_v50  ;;  %21374 = vmatprep.mubr.f32.mxu0 %v32810_v23  ;;  %v26680_v50 = vsub.f32 %v26586_v56, %v32872_v8  ;;  %v31631_v23 = vand.u32 4294901760, %v26623_v28  ;;  %32873 = vst [vmem:[#allocation64_spill] sm:$0xff] %v26689_v58  ;;  %v6190_v9 = vsel %vm204_vm1, %v18518_v43, 0  ;;  %v8204_v43 = vsel %vm204_vm1, %v18553_v10, 0 }
 0x243   : > { %32869 = vst [vmem:[#allocation56_spill] sm:$0xff] %v26670_v24  ;;  %32874 = vst [vmem:[#allocation65_spill] sm:$0xff] %v26696_v45  ;;  %v26711_v49 = vsub.f32 %v8201_v11, %v26674_v38  ;;  %v18520_v11 = vld [vmem:[%s24699_s19 + $0x80] sm:$0xff]  ;;  %v26732_v56 = vand.u32 4294901760, %v6190_v9  ;;  %v8207_v10 = vsel %vm204_vm1, %v18554_v14, 0  ;;  %v26758_v14 = vand.u32 4294901760, %v8204_v43 }
 0x244   : > { %32876 = vst [vmem:[#allocation67_spill] sm:$0xff] %v26708_v21  ;;  %v32899_v38 = vld [vmem:[#allocation105_spill] sm:$0xff] }
 0x245   : > { %21072 = vmatmul.mubr.f32.gmra.mrb[48].mxu1 %v32811_v47  ;;  %21375 = vmatmul.mubr.f32.gmra.mrb[50].mxu0 %v32812_v51  ;;  %v26705_v51 = vsub.f32 %v8198_v17, %v26670_v24  ;;  %32877 = vst [vmem:[#allocation100_spill] sm:$0xff] %v26711_v49  ;;  %v32879_v17 = vand.u32 4294901760, %v26630_v63  ;;  %32880 = vst [vmem:[#allocation106_spill] sm:$0xff] %v26732_v56 }
 0x246   : > { %21074 = vmatprep.mubr.f32.mxu1 %v32813_v16  ;;  %21377 = vmatprep.mubr.f32.mxu0 %v32814_v2  ;;  %v26718_v16 = vsub.f32 %v26623_v28, %v31631_v23  ;;  %v32878_v2 = vand.u32 4294901760, %v26626_v59  ;;  %v6193_v23 = vsel %vm204_vm1, %v18519_v39, 0  ;;  %32883 = vst [vmem:[#allocation107_spill] sm:$0xff] %v26758_v14  ;;  %v26770_v39 = vsub.f32 %v6190_v9, %v26732_v56 }
 0x247   : > { %32875 = vst [vmem:[#allocation66_spill] sm:$0xff] %v26705_v51  ;;  %v26728_v7 = vsub.f32 %v26630_v63, %v32879_v17  ;;  %v32882_v17 = vand.u32 4294901760, %v26659_v37  ;;  %v18521_v63 = vld [vmem:[%s24699_s19 + $0x90] sm:$0xff]  ;;  %v32888_v28 = vand.u32 4294901760, %v26696_v45 }
 0x248   : > { %v26723_v47 = vsub.f32 %v26626_v59, %v32878_v2  ;;  %v32881_v2 = vand.u32 4294901760, %v26656_v57  ;;  %32886 = vst [vmem:[#allocation109_spill] sm:$0xff] %v26770_v39 }
 0x249   : > { %21075 = vmatmul.mubr.f32.gmra.mrb[50].mxu1 %v32815_v4  ;;  %21378 = vmatmul.mubr.f32.gmra.mrb[52].mxu0 %v32816_v54  ;;  %v26746_v8 = vsub.f32 %v26659_v37, %v32882_v17  ;;  %v26760_v37 = vand.u32 4294901760, %v6193_v23  ;;  %v32885_v4 = vand.u32 4294901760, %v26689_v58  ;;  %v18556_v17 = vld [vmem:[%s24699_s19 + $0xa9] sm:$0xff] }
 0x24a   : > { %v26741_v59 = vsub.f32 %v26656_v57, %v32881_v2  ;;  %21077 = vmatprep.mubr.f32.mxu1 %v32817_v25  ;;  %21380 = vmatprep.mubr.f32.mxu0 %v32818_v60  ;;  %v6196_v2 = vsel %vm204_vm1, %v18520_v11, 0  ;;  %v18555_v25 = vld [vmem:[%s24699_s19 + $0x99] sm:$0xff]  ;;  %v26772_v11 = vand.u32 4294901760, %v8207_v10  ;;  %v32891_v57 = vand.u32 4294901760, %v26708_v21 }
 0x24b   : > { %32884 = vst [vmem:[#allocation108_spill] sm:$0xff] %v26760_v37  ;;  %v26767_v54 = vsub.f32 %v26689_v58, %v32885_v4  ;;  %v26783_v4 = vsub.f32 %v26696_v45, %v32888_v28  ;;  %v26785_v9 = vand.u32 4294901760, %v6196_v2  ;;  %v18522_v58 = vld [vmem:[%s24699_s19 + $0x98] sm:$0xff]  ;;  %v32892_v28 = vand.u32 4294901760, %v26711_v49 }
 0x24c   : > { %32887 = vst [vmem:[#allocation70_spill] sm:$0xff] %v26772_v11  ;;  %v26798_v60 = vsub.f32 %v26708_v21, %v32891_v57  ;;  %v8210_v56 = vsel %vm204_vm1, %v18555_v25, 0  ;;  %v8213_v57 = vsel %vm204_vm1, %v18556_v17, 0  ;;  %v6202_v25 = vsel %vm204_vm1, %v18522_v58, 0  ;;  %v32898_v21 = vld [vmem:[#allocation104_spill] sm:$0xff] }
 0x24d   : > { %21078 = vmatmul.mubr.f32.gmra.mrb[52].mxu1 %v32819_v27  ;;  %21381 = vmatmul.mubr.f32.gmra.mrb[54].mxu0 %v32820_v12  ;;  %32889 = vst [vmem:[#allocation72_spill] sm:$0xff] %v26785_v9  ;;  %v32890_v27 = vand.u32 4294901760, %v26705_v51  ;;  %v26803_v45 = vsub.f32 %v26711_v49, %v32892_v28  ;;  %v26818_v28 = vsub.f32 %v8207_v10, %v26772_v11  ;;  %v18523_v10 = vld [vmem:[%s24699_s19 + $0xa8] sm:$0xff]  ;;  %v18524_v49 = vld [vmem:[%s24699_s19 + $0xb0] sm:$0xff]  ;;  %v32906_v11 = vld [vmem:[#allocation111_spill] sm:$0xff] }
 0x24e   : > { %21080 = vmatprep.mubr.f32.mxu1 %v32821_v6  ;;  %21383 = vmatprep.mubr.f32.mxu0 %v32822_v62  ;;  %v18557_v6 = vld [vmem:[%s24699_s19 + $0xb1] sm:$0xff]  ;;  %v26808_v62 = vsub.f32 %v8204_v43, %v26758_v14  ;;  %v26827_v43 = vand.u32 4294901760, %v8210_v56  ;;  %v6205_v24 = vsel %vm204_vm1, %v18523_v10, 0 }
 0x24f   : > { %v26793_v12 = vsub.f32 %v26705_v51, %v32890_v27  ;;  %v26811_v27 = vsub.f32 %v6193_v23, %v26760_v37  ;;  %v6199_v51 = vsel %vm204_vm1, %v18521_v63, 0  ;;  %32895 = vst [vmem:[#allocation77_spill] sm:$0xff] %v26818_v28  ;;  %v26825_v63 = vsub.f32 %v6196_v2, %v26785_v9  ;;  %v18558_v2 = vld [vmem:[%s24699_s19 + $0xc1] sm:$0xff]  ;;  %v32905_v9 = vld [vmem:[#allocation110_spill] sm:$0xff]  ;;  %v32909_v14 = vld [vmem:[#allocation113_spill] sm:$0xff] }
 0x250   : > { %32893 = vst [vmem:[#allocation75_spill] sm:$0xff] %v26808_v62  ;;  %32897 = vst [vmem:[#allocation85_spill] sm:$0xff] %v26827_v43  ;;  %v8216_v17 = vsel %vm204_vm1, %v18557_v6, 0  ;;  %v26835_v58 = vand.u32 4294901760, %v6199_v51  ;;  %v26837_v23 = vand.u32 4294901760, %v8213_v57  ;;  %v26844_v37 = vand.u32 4294901760, %v6202_v25 }
 0x251   : > { %32894 = vst [vmem:[#allocation76_spill] sm:$0xff] %v26811_v27  ;;  %21081 = vmatmul.mubr.f32.gmra.mrb[54].mxu1 %v32823_v34  ;;  %21384 = vmatmul.mubr.f32.gmra.mrb[56].mxu0 %v32824_v31  ;;  %32896 = vst [vmem:[#allocation84_spill] sm:$0xff] %v26825_v63  ;;  %v32903_v34 = vand.u32 4294901760, %v26770_v39  ;;  %v26854_v20 = vand.u32 4294901760, %v8216_v17  ;;  %v26861_v44 = vsub.f32 %v8210_v56, %v26827_v43  ;;  %v8219_v61 = vsel %vm204_vm1, %v18558_v2, 0 }
 0x252   : > { %21083 = vmatprep.mubr.f32.mxu1 %v32898_v21  ;;  %21386 = vmatprep.mubr.f32.mxu0 %v32899_v38  ;;  %32900 = vst [vmem:[#allocation86_spill] sm:$0xff] %v26835_v58  ;;  %32901 = vst [vmem:[#allocation87_spill] sm:$0xff] %v26837_v23  ;;  %v18559_v21 = vld [vmem:[%s24699_s19 + $0xc9] sm:$0xff]  ;;  %v18525_v38 = vld [vmem:[%s24699_s19 + $0xc0] sm:$0xff]  ;;  %v26868_v10 = vsub.f32 %v6199_v51, %v26835_v58  ;;  %v32912_v56 = vand.u32 4294901760, %v26808_v62  ;;  %v26886_v51 = vsub.f32 %v6202_v25, %v26844_v37 }
 0x253   : > { %32902 = vst [vmem:[#allocation88_spill] sm:$0xff] %v26844_v37  ;;  %v26851_v31 = vsub.f32 %v26770_v39, %v32903_v34  ;;  %32904 = vst [vmem:[#allocation89_spill] sm:$0xff] %v26854_v20  ;;  %v6208_v34 = vsel %vm204_vm1, %v18524_v49, 0  ;;  %v32908_v39 = vld [vmem:[#allocation112_spill] sm:$0xff]  ;;  %v6211_v6 = vsel %vm204_vm1, %v18525_v38, 0  ;;  %v32913_v49 = vand.u32 4294901760, %v26811_v27 }
 0x254   : > { %32907 = vst [vmem:[#allocation95_spill] sm:$0xff] %v26861_v44  ;;  %32910 = vst [vmem:[#allocation96_spill] sm:$0xff] %v26868_v10  ;;  %v26878_v2 = vsub.f32 %v26808_v62, %v32912_v56  ;;  %v26893_v38 = vsub.f32 %v8216_v17, %v26854_v20  ;;  %v26897_v56 = vand.u32 4294901760, %v6208_v34  ;;  %v32919_v62 = vld [vmem:[#allocation115_spill] sm:$0xff]  ;;  %v18526_v17 = vld [vmem:[%s24699_s19 + $0xc8] sm:$0xff] }
 0x255   : > { %21084 = vmatmul.mubr.f32.gmra.mrb[56].mxu1 %v32905_v9  ;;  %21387 = vmatmul.mubr.f32.gmra.mrb[58].mxu0 %v32906_v11  ;;  %v26871_v9 = vsub.f32 %v8213_v57, %v26837_v23  ;;  %v8222_v11 = vsel %vm204_vm1, %v18559_v21, 0  ;;  %32914 = vst [vmem:[#allocation99_spill] sm:$0xff] %v26886_v51  ;;  %v18560_v57 = vld [vmem:[%s24699_s19 + $0xd9] sm:$0xff]  ;;  %v26895_v23 = vand.u32 4294901760, %v8219_v61  ;;  %v26909_v21 = vand.u32 4294901760, %v6211_v6  ;;  %v32923_v20 = vld [vmem:[#allocation116_spill] sm:$0xff] }
 0x256   : > { %21086 = vmatprep.mubr.f32.mxu1 %v32908_v39  ;;  %21389 = vmatprep.mubr.f32.mxu0 %v32909_v14  ;;  %v26883_v39 = vsub.f32 %v26811_v27, %v32913_v49  ;;  %v26888_v14 = vand.u32 4294901760, %v6205_v24  ;;  %32916 = vst [vmem:[#allocation121_spill] sm:$0xff] %v26893_v38  ;;  %32918 = vst [vmem:[#allocation3_spill] sm:$0xff] %v26897_v56  ;;  %v32920_v49 = vand.u32 4294901760, %v26818_v28  ;;  %v26907_v37 = vand.u32 4294901760, %v8222_v11  ;;  %v32924_v58 = vld [vmem:[#allocation117_spill] sm:$0xff] }
 0x257   : > { %32911 = vst [vmem:[#allocation97_spill] sm:$0xff] %v26871_v9  ;;  %32917 = vst [vmem:[#allocation24_spill] sm:$0xff] %v26895_v23  ;;  %v8225_v27 = vsel %vm204_vm1, %v18560_v57, 0  ;;  %v6214_v57 = vsel %vm204_vm1, %v18526_v17, 0  ;;  %v26944_v43 = vsub.f32 %v6211_v6, %v26909_v21  ;;  %v32932_v17 = vand.u32 4294901760, %v26603_v36 }
 0x258   : > { %32915 = vst [vmem:[#allocation101_spill] sm:$0xff] %v26888_v14  ;;  %v26904_v25 = vsub.f32 %v26818_v28, %v32920_v49  ;;  %32921 = vst [vmem:[#allocation25_spill] sm:$0xff] %v26907_v37  ;;  %v26933_v49 = vsub.f32 %v6208_v34, %v26897_v56  ;;  %v18561_v28 = vld [vmem:[%s24699_s19 + $0xe1] sm:$0xff]  ;;  %v18527_v34 = vld [vmem:[%s24699_s19 + $0xd8] sm:$0xff]  ;;  %v32935_v18 = vand.u32 4294901760, %v26871_v9  ;;  %v32936_v36 = vand.u32 4294901760, %v26886_v51 }
 0x259   : > { %21087 = vmatmul.mubr.f32.gmra.mrb[58].mxu1 %v32832_v53  ;;  %21390 = vmatmul.mubr.f32.gmra.mrb[60].mxu0 %v32919_v62  ;;  %32922 = vst [vmem:[#allocation26_spill] sm:$0xff] %v26909_v21  ;;  %v32925_v53 = vand.u32 4294901760, %v26825_v63  ;;  %32930 = vst [vmem:[#allocation32_spill] sm:$0xff] %v26944_v43 }
 0x25a   : > { %21089 = vmatprep.mubr.f32.mxu1 %v32923_v20  ;;  %21392 = vmatprep.mubr.f32.mxu0 %v32924_v58  ;;  %v26926_v58 = vsub.f32 %v6205_v24, %v26888_v14  ;;  %32928 = vst [vmem:[#allocation8_spill] sm:$0xff] %v26933_v49  ;;  %v26941_v24 = vsub.f32 %v8222_v11, %v26907_v37  ;;  %v32934_v11 = vand.u32 4294901760, %v26868_v10 }
 0x25b   : > { %v26917_v62 = vsub.f32 %v26825_v63, %v32925_v53  ;;  %v26930_v53 = vsub.f32 %v8219_v61, %v26895_v23  ;;  %v26946_v61 = vand.u32 4294901760, %v8225_v27  ;;  %v26966_v20 = vsub.f32 %v26871_v9, %v32935_v18 }
 0x25c   : > { %32926 = vst [vmem:[#allocation5_spill] sm:$0xff] %v26926_v58  ;;  %32929 = vst [vmem:[#allocation31_spill] sm:$0xff] %v26941_v24  ;;  %v26961_v6 = vsub.f32 %v26868_v10, %v32934_v11  ;;  %v32938_v11 = vand.u32 4294901760, %v26893_v38  ;;  %v6217_v63 = vsel %vm204_vm1, %v18527_v34, 0  ;;  %v32941_v9 = vand.u32 4294901760, %v26643_v55  ;;  %v18563_v34 = vld [vmem:[%s24699_s19 + $0xf9] sm:$0xff] }
 0x25d   : > { %32927 = vst [vmem:[#allocation27_spill] sm:$0xff] %v26930_v53  ;;  %21090 = vmatmul.mubr.f32.gmra.mrb[60].mxu1 %v32837_v35  ;;  %21393 = vmatmul.mubr.f32.gmra.mrb[62].mxu0 %v32838_v0  ;;  %32931 = vst [vmem:[#allocation9_spill] sm:$0xff] %v26946_v61  ;;  %v32933_v0 = vand.u32 4294901760, %v26861_v44  ;;  %v32944_v55 = vand.u32 4294901760, %v26926_v58  ;;  %v32951_v35 = vand.u32 4294901760, %v26680_v50 }
 0x25e   : > { %21092 = vmatprep.mubr.f32.mxu1 %v32839_v13  ;;  %21697 = vmatprep.mubr.f32.mxu0 %v32932_v17  ;;  %v18562_v13 = vld [vmem:[%s24699_s19 + $0xf1] sm:$0xff]  ;;  %v26972_v17 = vsub.f32 %v26886_v51, %v32936_v36  ;;  %v26981_v10 = vsub.f32 %v26893_v38, %v32938_v11  ;;  %v32939_v36 = vand.u32 4294901760, %v26638_v26  ;;  %v26992_v11 = vsub.f32 %v8225_v27, %v26946_v61  ;;  %v18528_v27 = vld [vmem:[%s24699_s19 + $0xe0] sm:$0xff]  ;;  %v18564_v26 = vld [vmem:[%s24699_s19 + $0x109] sm:$0xff] }
 0x25f   : > { %v26956_v42 = vsub.f32 %v26861_v44, %v32933_v0  ;;  %v26975_v0 = vand.u32 4294901760, %v6214_v57  ;;  %v8228_v44 = vsel %vm204_vm1, %v18561_v28, 0  ;;  %v8231_v18 = vsel %vm204_vm1, %v18562_v13, 0  ;;  %v18565_v51 = vld [vmem:[%s24699_s19 + $0x111] sm:$0xff] }
 0x260   : > { %32940 = vst [vmem:[#allocation36_spill] sm:$0xff] %v26992_v11  ;;  %v27002_v28 = vand.u32 4294901760, %v8228_v44  ;;  %v32947_v38 = vand.u32 4294901760, %v26930_v53  ;;  %v32948_v13 = vand.u32 4294901760, %v26933_v49  ;;  %v31722_v61 = vand.u32 4294901760, %v26992_v11 }
 0x261   : > { %32937 = vst [vmem:[#allocation33_spill] sm:$0xff] %v26975_v0  ;;  %21093 = vmatmul.mubr.f32.gmra.mrb[62].mxu1 %v32840_v15  ;;  %21698 = vmatmul.mubr.f32.vlgmr.msra.gmra.mrb[64].mxu0 %v32939_v36  ;;  %v32942_v15 = vand.u32 4294901760, %v26648_v1  ;;  %v27010_v1 = vsub.f32 %v26926_v58, %v32944_v55  ;;  %v18529_v36 = vld [vmem:[%s24699_s19 + $0xf0] sm:$0xff]  ;;  %v27031_v58 = vand.u32 4294901760, %v8231_v18  ;;  %v6220_v21 = vsel %vm204_vm1, %v18528_v27, 0 }
 0x262   : > { %21397 = vmatprep.mubr.f32.mxu1 %v32941_v9  ;;  %32943 = vst [vmem:[#allocation38_spill] sm:$0xff] %v27002_v28  ;;  %21746 = vmatpush3.msra.mxu0 %v26503_v46  ;;  %v27013_v9 = vsub.f32 %v6214_v57, %v26975_v0  ;;  %v27024_v46 = vsub.f32 %v26930_v53, %v32947_v38  ;;  %v18530_v57 = vld [vmem:[%s24699_s19 + $0xf8] sm:$0xff]  ;;  %v32950_v0 = vand.u32 4294901760, %v26668_v22  ;;  %v32952_v38 = vand.u32 4294901760, %v26941_v24 }
 0x263   : > { %21700 = vmatprep.mubr.f32.mxu0 %v32942_v15  ;;  %v27015_v15 = vand.u32 4294901760, %v6217_v63  ;;  %v27029_v55 = vsub.f32 %v26933_v49, %v32948_v13  ;;  %32949 = vst [vmem:[#allocation40_spill] sm:$0xff] %v27031_v58  ;;  %21795 = vmatprep.subr.mxu0 %v26475_v5  ;;  %v32953_v13 = vand.u32 4294901760, %v26944_v43  ;;  %v32954_v22 = vand.u32 4294901760, %v26718_v16 }
 0x264   : > { %32945 = vst [vmem:[#allocation12_spill] sm:$0xff] %v27013_v9  ;;  %v27043_v53 = vsub.f32 %v26941_v24, %v32952_v38  ;;  %v27056_v50 = vsub.f32 %v8228_v44, %v27002_v28  ;;  %v8237_v38 = vsel %vm204_vm1, %v18564_v26, 0  ;;  %v6226_v16 = vsel %vm204_vm1, %v18530_v57, 0  ;;  %v18531_v26 = vld [vmem:[%s24699_s19 + $0x108] sm:$0xff] }
 0x265   : > { %32946 = vst [vmem:[#allocation39_spill] sm:$0xff] %v27015_v15  ;;  %21398 = vmatmul.mubr.f32.vlgmr.msra.gmra.mrb[64].mxu1 %v32950_v0  ;;  %21701 = vmatmul.mubr.f32.gmra.mrb[66].mxu0 %v32951_v35  ;;  %v27048_v49 = vsub.f32 %v26944_v43, %v32953_v13  ;;  %v8234_v35 = vsel %vm204_vm1, %v18563_v34, 0  ;;  %v6223_v0 = vsel %vm204_vm1, %v18529_v36, 0  ;;  %v32956_v13 = vand.u32 4294901760, %v26723_v47  ;;  %v18532_v43 = vld [vmem:[%s24699_s19 + $0x110] sm:$0xff] }
 0x266   : > { %21446 = vmatpush3.msra.mxu1 %v26510_v33  ;;  %21400 = vmatprep.mubr.f32.mxu1 %v32954_v22  ;;  %32955 = vst [vmem:[#allocation44_spill] sm:$0xff] %v27056_v50  ;;  %v27065_v33 = vsub.f32 %v6217_v63, %v27015_v15  ;;  %v8240_v44 = vsel %vm204_vm1, %v18565_v51, 0  ;;  %v27073_v47 = vsub.f32 %v8231_v18, %v27031_v58  ;;  %v27075_v36 = vand.u32 4294901760, %v6220_v21  ;;  %v18566_v18 = vld [vmem:[%s24699_s19 + $0x121] sm:$0xff] }
 0x267   : > { %21703 = vmatprep.mubr.f32.mxu0 %v32956_v13  ;;  %21495 = vmatprep.subr.mxu1 %v26483_v40  ;;  %v32960_v22 = vand.u32 4294901760, %v26728_v7  ;;  %v32961_v63 = vand.u32 4294901760, %v26741_v59  ;;  %v27082_v57 = vand.u32 4294901760, %v8234_v35  ;;  %v27084_v13 = vand.u32 4294901760, %v6223_v0  ;;  %v18533_v15 = vld [vmem:[%s24699_s19 + $0x120] sm:$0xff] }
 0x268   : > { %32957 = vst [vmem:[#allocation15_spill] sm:$0xff] %v27065_v33  ;;  %32958 = vst [vmem:[#allocation16_spill] sm:$0xff] %v27073_v47  ;;  %v27086_v34 = vand.u32 4294901760, %v8237_v38  ;;  %v32965_v27 = vand.u32 4294901760, %v26746_v8  ;;  %v32966_v7 = vand.u32 4294901760, %v26767_v54  ;;  %v27097_v59 = vsub.f32 %v26992_v11, %v31722_v61  ;;  %v18567_v8 = vld [vmem:[%s24699_s19 + $0x129] sm:$0xff] }
 0x269   : > { %32959 = vst [vmem:[#allocation46_spill] sm:$0xff] %v27075_v36  ;;  %21401 = vmatmul.mubr.f32.gmra.mrb[66].mxu1 %v32960_v22  ;;  %21704 = vmatmul.mubr.f32.gmra.mrb[68].mxu0 %v32961_v63  ;;  %32962 = vst [vmem:[#allocation17_spill] sm:$0xff] %v27082_v57  ;;  %v27100_v63 = vand.u32 4294901760, %v6226_v16  ;;  %v27102_v51 = vand.u32 4294901760, %v8240_v44  ;;  %v32969_v54 = vand.u32 4294901760, %v27013_v9  ;;  %v27115_v22 = vsub.f32 %v6220_v21, %v27075_v36 }
 0x26a   : > { %32963 = vst [vmem:[#allocation49_spill] sm:$0xff] %v27084_v13  ;;  %32964 = vst [vmem:[#allocation20_spill] sm:$0xff] %v27086_v34  ;;  %21403 = vmatprep.mubr.f32.mxu1 %v32965_v27  ;;  %21706 = vmatprep.mubr.f32.mxu0 %v32966_v7  ;;  %v6229_v11 = vsel %vm204_vm1, %v18531_v26, 0  ;;  %v8243_v58 = vsel %vm204_vm1, %v18566_v18, 0  ;;  %v32971_v27 = vand.u32 4294901760, %v26783_v4  ;;  %v27126_v24 = vsub.f32 %v8234_v35, %v27082_v57 }
 0x26b   : > { %32967 = vst [vmem:[#allocation50_spill] sm:$0xff] %v27100_v63  ;;  %32968 = vst [vmem:[#allocation51_spill] sm:$0xff] %v27102_v51  ;;  %v27110_v7 = vsub.f32 %v27013_v9, %v32969_v54  ;;  %v32972_v54 = vand.u32 4294901760, %v26793_v12  ;;  %v27129_v61 = vsub.f32 %v6223_v0, %v27084_v13  ;;  %v27132_v21 = vsub.f32 %v8237_v38, %v27086_v34 }
 0x26c   : > { %32970 = vst [vmem:[#allocation52_spill] sm:$0xff] %v27115_v22  ;;  %32973 = vst [vmem:[#allocation57_spill] sm:$0xff] %v27126_v24  ;;  %v6232_v26 = vsel %vm204_vm1, %v18532_v43, 0  ;;  %v32976_v18 = vand.u32 4294901760, %v26798_v60  ;;  %v32977_v4 = vand.u32 4294901760, %v26803_v45  ;;  %v27146_v0 = vsub.f32 %v6226_v16, %v27100_v63  ;;  %v18568_v43 = vld [vmem:[%s24699_s19 + $0x139] sm:$0xff] }
 0x26d   : > { %21404 = vmatmul.mubr.f32.gmra.mrb[68].mxu1 %v32971_v27  ;;  %21707 = vmatmul.mubr.f32.gmra.mrb[70].mxu0 %v32972_v54  ;;  %32974 = vst [vmem:[#allocation59_spill] sm:$0xff] %v27129_v61  ;;  %32975 = vst [vmem:[#allocation60_spill] sm:$0xff] %v27132_v21  ;;  %v32978_v27 = vand.u32 4294901760, %v27056_v50  ;;  %v27149_v38 = vsub.f32 %v8240_v44, %v27102_v51  ;;  %v27152_v54 = vand.u32 4294901760, %v6229_v11  ;;  %v27154_v60 = vand.u32 4294901760, %v8243_v58 }
 0x26e   : > { %21406 = vmatprep.mubr.f32.mxu1 %v32976_v18  ;;  %21709 = vmatprep.mubr.f32.mxu0 %v32977_v4  ;;  %32979 = vst [vmem:[#allocation61_spill] sm:$0xff] %v27146_v0  ;;  %v8246_v45 = vsel %vm204_vm1, %v18567_v8, 0  ;;  %v6235_v18 = vsel %vm204_vm1, %v18533_v15, 0  ;;  %v32983_v4 = vand.u32 4294901760, %v27065_v33  ;;  %v32984_v16 = vand.u32 4294901760, %v27073_v47 }
 0x26f   : > { %v27143_v35 = vsub.f32 %v27056_v50, %v32978_v27  ;;  %32980 = vst [vmem:[#allocation62_spill] sm:$0xff] %v27149_v38  ;;  %32981 = vst [vmem:[#allocation68_spill] sm:$0xff] %v27152_v54  ;;  %v27169_v50 = vand.u32 4294901760, %v6232_v26  ;;  %v32986_v9 = vand.u32 4294901760, %v26851_v31  ;;  %v32987_v8 = vand.u32 4294901760, %v26878_v2 }
 0x270   : > { %32982 = vst [vmem:[#allocation69_spill] sm:$0xff] %v27154_v60  ;;  %v27161_v27 = vsub.f32 %v27065_v33, %v32983_v4  ;;  %v27166_v12 = vsub.f32 %v27073_v47, %v32984_v16  ;;  %v8249_v16 = vsel %vm204_vm1, %v18568_v43, 0  ;;  %v32988_v47 = vand.u32 4294901760, %v26883_v39  ;;  %v18569_v43 = vld [vmem:[%s24699_s19 + $0x141] sm:$0xff] }
 0x271   : > { %32985 = vst [vmem:[#allocation71_spill] sm:$0xff] %v27169_v50  ;;  %21407 = vmatmul.mubr.f32.gmra.mrb[70].mxu1 %v32986_v9  ;;  %21710 = vmatmul.mubr.f32.gmra.mrb[72].mxu0 %v32987_v8  ;;  %v32989_v44 = vand.u32 4294901760, %v26904_v25  ;;  %v27185_v9 = vand.u32 4294901760, %v8246_v45  ;;  %v27187_v8 = vand.u32 4294901760, %v6235_v18  ;;  %v27192_v39 = vsub.f32 %v6229_v11, %v27152_v54 }
 0x272   : > { %21409 = vmatprep.mubr.f32.mxu1 %v32988_v47  ;;  %v27195_v25 = vsub.f32 %v8243_v58, %v27154_v60  ;;  %v18534_v47 = vld [vmem:[%s24699_s19 + $0x128] sm:$0xff]  ;;  %v32994_v31 = vand.u32 4294901760, %v27115_v22  ;;  %v27205_v4 = vsub.f32 %v6232_v26, %v27169_v50  ;;  %v27207_v33 = vand.u32 4294901760, %v8249_v16 }
 0x273   : > { %21712 = vmatprep.mubr.f32.mxu0 %v32989_v44  ;;  %32990 = vst [vmem:[#allocation73_spill] sm:$0xff] %v27185_v9  ;;  %32991 = vst [vmem:[#allocation74_spill] sm:$0xff] %v27187_v8  ;;  %v32997_v11 = vand.u32 4294901760, %v26917_v62  ;;  %v32998_v58 = vand.u32 4294901760, %v26956_v42  ;;  %v32999_v44 = vand.u32 4294901760, %v27126_v24  ;;  %v18570_v42 = vld [vmem:[%s24699_s19 + $0x151] sm:$0xff] }
 0x274   : > { %32992 = vst [vmem:[#allocation78_spill] sm:$0xff] %v27192_v39  ;;  %32993 = vst [vmem:[#allocation79_spill] sm:$0xff] %v27195_v25  ;;  %v27202_v2 = vsub.f32 %v27115_v22, %v32994_v31  ;;  %v33000_v31 = vand.u32 4294901760, %v27129_v61  ;;  %v33001_v22 = vand.u32 4294901760, %v27132_v21  ;;  %v33003_v15 = vand.u32 4294901760, %v26966_v20 }
 0x275   : > { %32995 = vst [vmem:[#allocation80_spill] sm:$0xff] %v27205_v4  ;;  %32996 = vst [vmem:[#allocation81_spill] sm:$0xff] %v27207_v33  ;;  %21410 = vmatmul.mubr.f32.gmra.mrb[72].mxu1 %v32997_v11  ;;  %21713 = vmatmul.mubr.f32.gmra.mrb[74].mxu0 %v32998_v58  ;;  %v27218_v60 = vsub.f32 %v27126_v24, %v32999_v44  ;;  %v18535_v11 = vld [vmem:[%s24699_s19 + $0x138] sm:$0xff]  ;;  %v33002_v58 = vand.u32 4294901760, %v26961_v6  ;;  %v33004_v44 = vand.u32 4294901760, %v27146_v0  ;;  %v33007_v6 = vand.u32 4294901760, %v27149_v38 }
 0x276   : > { %v27223_v26 = vsub.f32 %v27129_v61, %v33000_v31  ;;  %v27228_v62 = vsub.f32 %v27132_v21, %v33001_v22  ;;  %21715 = vmatprep.mubr.f32.mxu0 %v33003_v15  ;;  %v27242_v31 = vsub.f32 %v8246_v45, %v27185_v9  ;;  %v27245_v61 = vsub.f32 %v6235_v18, %v27187_v8  ;;  %v18537_v15 = vld [vmem:[%s24699_s19 + $0x150] sm:$0xff] }
 0x277   : > { %21412 = vmatprep.mubr.f32.mxu1 %v33002_v58  ;;  %v27239_v24 = vsub.f32 %v27146_v0, %v33004_v44  ;;  %v6238_v22 = vsel %vm204_vm1, %v18534_v47, 0  ;;  %v27251_v58 = vsub.f32 %v27149_v38, %v33007_v6  ;;  %v8252_v44 = vsel %vm204_vm1, %v18569_v43, 0  ;;  %v18536_v38 = vld [vmem:[%s24699_s19 + $0x140] sm:$0xff] }
 0x278   : > { %33005 = vst [vmem:[#allocation82_spill] sm:$0xff] %v27242_v31  ;;  %33006 = vst [vmem:[#allocation83_spill] sm:$0xff] %v27245_v61  ;;  %v27258_v0 = vsub.f32 %v8249_v16, %v27207_v33  ;;  %v6241_v18 = vsel %vm204_vm1, %v18535_v11, 0  ;;  %v8255_v47 = vsel %vm204_vm1, %v18570_v42, 0  ;;  %v33009_v6 = vand.u32 4294901760, %v26972_v17  ;;  %v18571_v43 = vld [vmem:[%s24699_s19 + $0x159] sm:$0xff] }
 0x279   : > { %v33010_v20 = vand.u32 4294901760, %v26981_v10  ;;  %v27269_v45 = vand.u32 4294901760, %v6238_v22  ;;  %v33012_v11 = vand.u32 4294901760, %v27010_v1  ;;  %v33013_v42 = vand.u32 4294901760, %v27024_v46  ;;  %v18572_v17 = vld [vmem:[%s24699_s19 + $0x169] sm:$0xff] }
 0x27a   : > { %33008 = vst [vmem:[#allocation90_spill] sm:$0xff] %v27258_v0  ;;  %21413 = vmatmul.mubr.f32.gmra.mrb[74].mxu1 %v33009_v6  ;;  %v27279_v6 = vand.u32 4294901760, %v8252_v44  ;;  %v33015_v16 = vand.u32 4294901760, %v27192_v39  ;;  %v33016_v1 = vand.u32 4294901760, %v27195_v25  ;;  %v33019_v33 = vand.u32 4294901760, %v27205_v4 }
 0x27b   : > { %21716 = vmatmul.mubr.f32.gmra.mrb[76].mxu0 %v33010_v20  ;;  %33011 = vst [vmem:[#allocation91_spill] sm:$0xff] %v27269_v45  ;;  %21415 = vmatprep.mubr.f32.mxu1 %v33012_v11  ;;  %v27293_v11 = vand.u32 4294901760, %v6241_v18  ;;  %v27311_v8 = vsub.f32 %v6238_v22, %v27269_v45  ;;  %v6244_v20 = vsel %vm204_vm1, %v18536_v38, 0  ;;  %v8258_v10 = vsel %vm204_vm1, %v18571_v43, 0 }
 0x27c   : > { %21718 = vmatprep.mubr.f32.mxu0 %v33013_v42  ;;  %33014 = vst [vmem:[#allocation92_spill] sm:$0xff] %v27279_v6  ;;  %v27286_v21 = vsub.f32 %v27192_v39, %v33015_v16  ;;  %v27291_v46 = vsub.f32 %v27195_v25, %v33016_v1  ;;  %v27295_v42 = vand.u32 4294901760, %v8255_v47  ;;  %v27303_v16 = vsub.f32 %v27205_v4, %v33019_v33 }
 0x27d   : > { %33017 = vst [vmem:[#allocation93_spill] sm:$0xff] %v27293_v11  ;;  %v33020_v1 = vand.u32 4294901760, %v27029_v55  ;;  %v33021_v25 = vand.u32 4294901760, %v27043_v53  ;;  %33022 = vst [vmem:[#allocation98_spill] sm:$0xff] %v27311_v8  ;;  %v6247_v9 = vsel %vm204_vm1, %v18537_v15, 0  ;;  %v33023_v33 = vand.u32 4294901760, %v27048_v49 }
 0x27e   : > { %33018 = vst [vmem:[#allocation94_spill] sm:$0xff] %v27295_v42  ;;  %v33024_v39 = vand.u32 4294901760, %v27097_v59  ;;  %v33025_v53 = vand.u32 4294901760, %v27242_v31  ;;  %v27331_v22 = vsub.f32 %v8252_v44, %v27279_v6  ;;  %v8261_v49 = vsel %vm204_vm1, %v18572_v17, 0  ;;  %v18538_v15 = vld [vmem:[%s24699_s19 + $0x158] sm:$0xff]  ;;  %v18539_v17 = vld [vmem:[%s24699_s19 + $0x168] sm:$0xff] }
 0x27f   : > { %21416 = vmatmul.mubr.f32.gmra.mrb[76].mxu1 %v33020_v1  ;;  %21719 = vmatmul.mubr.f32.gmra.mrb[78].mxu0 %v33021_v25  ;;  %v33026_v25 = vand.u32 4294901760, %v27245_v61  ;;  %v6537_v59 = vand.u32 4294901760, %v27286_v21  ;;  %v27338_v43 = vsub.f32 %v6241_v18, %v27293_v11  ;;  %v27341_v1 = vsub.f32 %v8255_v47, %v27295_v42 }
 0x280   : > { %21418 = vmatprep.mubr.f32.mxu1 %v33023_v33  ;;  %21721 = vmatprep.mubr.f32.mxu0 %v33024_v39  ;;  %v27323_v55 = vsub.f32 %v27242_v31, %v33025_v53  ;;  %33027 = vst [vmem:[#allocation102_spill] sm:$0xff] %v27331_v22  ;;  %v8565_v39 = vand.u32 4294901760, %v27291_v46  ;;  %v18573_v33 = vld [vmem:[%s24699_s19 + $0x171] sm:$0xff]  ;;  %v27347_v44 = vand.u32 4294901760, %v8258_v10  ;;  %v18574_v31 = vld [vmem:[%s24699_s19 + $0x181] sm:$0xff]  ;;  %v33033_v21 = vand.u32 4294901760, %v27110_v7 }
 0x281   : > { %v27328_v38 = vsub.f32 %v27245_v61, %v33026_v25  ;;  %33028 = vst [vmem:[#allocation103_spill] sm:$0xff] %v27338_v43  ;;  %33029 = vst [vmem:[#allocation114_spill] sm:$0xff] %v27341_v1  ;;  %v27345_v25 = vand.u32 4294901760, %v6244_v20  ;;  %v27349_v61 = vand.u32 4294901760, %v6247_v9  ;;  %v33034_v18 = vand.u32 4294901760, %v27143_v35  ;;  %v18541_v53 = vld [vmem:[%s24699_s19 + $0x180] sm:$0xff] }
 0x282   : > { %33031 = vst [vmem:[#allocation119_spill] sm:$0xff] %v27347_v44  ;;  %v33035_v47 = vand.u32 4294901760, %v27258_v0  ;;  %v27363_v4 = vand.u32 4294901760, %v8261_v49  ;;  %v6250_v42 = vsel %vm204_vm1, %v18538_v15, 0  ;;  %v33037_v11 = vand.u32 4294901760, %v27161_v27 }
 0x283   : > { %33030 = vst [vmem:[#allocation118_spill] sm:$0xff] %v27345_v25  ;;  %33032 = vst [vmem:[#allocation120_spill] sm:$0xff] %v27349_v61  ;;  %21419 = vmatmul.mubr.f32.gmra.mrb[78].mxu1 %v33033_v21  ;;  %21722 = vmatmul.mubr.f32.gmra.mrb[80].mxu0 %v33034_v18  ;;  %v33038_v7 = vand.u32 4294901760, %v27166_v12  ;;  %v8575_v35 = vand.u32 4294901760, %v27323_v55  ;;  %v6557_v21 = vand.u32 4294901760, %v27328_v38  ;;  %v6253_v15 = vsel %vm204_vm1, %v18539_v17, 0 }
 0x284   : > { %v27360_v46 = vsub.f32 %v27258_v0, %v33035_v47  ;;  %33036 = vst [vmem:[#allocation122_spill] sm:$0xff] %v27363_v4  ;;  %21421 = vmatprep.mubr.f32.mxu1 %v33037_v11  ;;  %v8264_v47 = vsel %vm204_vm1, %v18573_v33, 0  ;;  %v8267_v27 = vsel %vm204_vm1, %v18574_v31, 0  ;;  %v18540_v11 = vld [vmem:[%s24699_s19 + $0x170] sm:$0xff]  ;;  %v27384_v55 = vsub.f32 %v8258_v10, %v27347_v44 }
 0x285   : > { %21724 = vmatprep.mubr.f32.mxu0 %v33038_v7  ;;  %v18575_v12 = vld [vmem:[%s24699_s19 + $0x189] sm:$0xff]  ;;  %v27381_v7 = vsub.f32 %v6244_v20, %v27345_v25  ;;  %v27387_v38 = vsub.f32 %v6247_v9, %v27349_v61  ;;  %v27389_v33 = vand.u32 4294901760, %v6250_v42  ;;  %v33040_v0 = vand.u32 4294901760, %v27202_v2 }
 0x286   : > { %v33041_v17 = vand.u32 4294901760, %v27218_v60  ;;  %v8585_v31 = vand.u32 4294901760, %v27360_v46  ;;  %v33042_v20 = vand.u32 4294901760, %v27311_v8  ;;  %v27401_v18 = vsub.f32 %v8261_v49, %v27363_v4  ;;  %v18542_v4 = vld [vmem:[%s24699_s19 + $0x188] sm:$0xff] }
 0x287   : > { %33039 = vst [vmem:[#allocation104_spill] sm:$0xff] %v27389_v33  ;;  %21422 = vmatmul.mubr.f32.gmra.mrb[80].mxu1 %v33040_v0  ;;  %v27403_v9 = vand.u32 4294901760, %v8264_v47  ;;  %v33044_v61 = vand.u32 4294901760, %v27223_v26  ;;  %v33045_v0 = vand.u32 4294901760, %v27228_v62  ;;  %v27409_v60 = vand.u32 4294901760, %v6253_v15 }
 0x288   : > { %21725 = vmatmul.mubr.f32.gmra.mrb[82].mxu0 %v33041_v17  ;;  %v6566_v10 = vsub.f32 %v27311_v8, %v33042_v20  ;;  %v27411_v2 = vand.u32 4294901760, %v8267_v27  ;;  %v6256_v46 = vsel %vm204_vm1, %v18540_v11, 0  ;;  %v8270_v17 = vsel %vm204_vm1, %v18575_v12, 0 }
 0x289   : > { %33043 = vst [vmem:[#allocation105_spill] sm:$0xff] %v27403_v9  ;;  %21424 = vmatprep.mubr.f32.mxu1 %v33044_v61  ;;  %21727 = vmatprep.mubr.f32.mxu0 %v33045_v0  ;;  %33046 = vst [vmem:[#allocation110_spill] sm:$0xff] %v27409_v60  ;;  %v33048_v20 = vand.u32 4294901760, %v27331_v22  ;;  %v33049_v8 = vand.u32 4294901760, %v27338_v43  ;;  %v33050_v61 = vand.u32 4294901760, %v27341_v1  ;;  %v6259_v0 = vsel %vm204_vm1, %v18541_v53, 0 }
 0x28a   : > { %33047 = vst [vmem:[#allocation111_spill] sm:$0xff] %v27411_v2  ;;  %v27430_v25 = vsub.f32 %v6250_v42, %v27389_v33  ;;  %v27438_v53 = vsub.f32 %v8264_v47, %v27403_v9  ;;  %v27442_v44 = vand.u32 4294901760, %v8270_v17  ;;  %v27445_v42 = vsub.f32 %v6253_v15, %v27409_v60 }
 0x28b   : > { %v8594_v49 = vsub.f32 %v27331_v22, %v33048_v20  ;;  %v6576_v26 = vsub.f32 %v27338_v43, %v33049_v8  ;;  %v8604_v62 = vsub.f32 %v27341_v1, %v33050_v61  ;;  %v33051_v20 = vand.u32 4294901760, %v27239_v24 }
 0x28c   : > { %v33052_v8 = vand.u32 4294901760, %v27251_v58  ;;  %v27440_v1 = vand.u32 4294901760, %v6256_v46  ;;  %33054 = vst [vmem:[#allocation113_spill] sm:$0xff] %v27442_v44  ;;  %v27448_v24 = vsub.f32 %v8267_v27, %v27411_v2  ;;  %v6262_v58 = vsel %vm204_vm1, %v18542_v4, 0 }
 0x28d   : > { %21425 = vmatmul.mubr.f32.gmra.mrb[82].mxu1 %v33051_v20  ;;  %v27450_v20 = vand.u32 4294901760, %v6259_v0  ;;  %v8595_v61 = vand.u32 4294901760, %v8594_v49  ;;  %v6577_v47 = vand.u32 4294901760, %v6576_v26  ;;  %v8605_v12 = vand.u32 4294901760, %v8604_v62 }
 0x28e   : > { %21728 = vmatmul.mubr.f32.gmra.mrb[84].mxu0 %v33052_v8  ;;  %33053 = vst [vmem:[#allocation112_spill] sm:$0xff] %v27440_v1  ;;  %21427 = vmatprep.mubr.f32.mxu1 %v6537_v59  ;;  %v6567_v8 = vand.u32 4294901760, %v6566_v10  ;;  %v33056_v11 = vand.u32 4294901760, %v27381_v7  ;;  %v33057_v59 = vand.u32 4294901760, %v27384_v55  ;;  %v33058_v15 = vand.u32 4294901760, %v27387_v38 }
 0x28f   : > { %21730 = vmatprep.mubr.f32.mxu0 %v8565_v39  ;;  %33055 = vst [vmem:[#allocation115_spill] sm:$0xff] %v27450_v20  ;;  %v31789_v22 = vand.u32 4294901760, %v27430_v25  ;;  %v33059_v4 = vand.u32 4294901760, %v27303_v16  ;;  %v27467_v49 = vsub.f32 %v6256_v46, %v27440_v1  ;;  %v27470_v26 = vsub.f32 %v8270_v17, %v27442_v44 }
 0x290   : > { %v6586_v43 = vsub.f32 %v27381_v7, %v33056_v11  ;;  %v8614_v39 = vsub.f32 %v27384_v55, %v33057_v59  ;;  %v6596_v27 = vsub.f32 %v27387_v38, %v33058_v15  ;;  %v27472_v62 = vand.u32 4294901760, %v6262_v58 }
 0x291   : > { %21428 = vmatmul.mubr.f32.gmra.mrb[84].mxu1 %v33059_v4  ;;  %v33061_v11 = vand.u32 4294901760, %v27401_v18  ;;  %v31794_v16 = vand.u32 4294901760, %v27445_v42  ;;  %v27480_v15 = vsub.f32 %v6259_v0, %v27450_v20  ;;  %v6606_v17 = vsub.f32 %v27430_v25, %v31789_v22 }
 0x292   : > { %21731 = vmatmul.mubr.f32.gmra.mrb[86].mxu0 %v8575_v35  ;;  %33060 = vst [vmem:[#allocation116_spill] sm:$0xff] %v27472_v62  ;;  %21430 = vmatprep.mubr.f32.mxu1 %v6557_v21  ;;  %v6587_v46 = vand.u32 4294901760, %v6586_v43  ;;  %v8615_v4 = vand.u32 4294901760, %v8614_v39  ;;  %v6597_v10 = vand.u32 4294901760, %v6596_v27  ;;  %v33062_v21 = vand.u32 4294901760, %v27438_v53 }
 0x293   : > { %21733 = vmatprep.mubr.f32.mxu0 %v8585_v31  ;;  %v8624_v59 = vsub.f32 %v27401_v18, %v33061_v11  ;;  %v31793_v11 = vand.u32 4294901760, %v27467_v49  ;;  %v31790_v35 = vand.u32 4294901760, %v27470_v26  ;;  %v27491_v0 = vsub.f32 %v6262_v58, %v27472_v62 }
 0x294   : > { %v8634_v31 = vsub.f32 %v27438_v53, %v33062_v21  ;;  %v6616_v39 = vsub.f32 %v27445_v42, %v31794_v16  ;;  %v31792_v27 = vand.u32 4294901760, %v27480_v15  ;;  %v6607_v21 = vand.u32 4294901760, %v6606_v17  ;;  %v33084_v16 = vld [vmem:[#allocation26_spill] sm:$0xff] }
 0x295   : > { %21431 = vmatmul.mubr.f32.gmra.mrb[86].mxu1 %v6567_v8  ;;  %v8625_v43 = vand.u32 4294901760, %v8624_v59  ;;  %v6626_v58 = vsub.f32 %v27467_v49, %v31793_v11  ;;  %v33083_v11 = vld [vmem:[#allocation89_spill] sm:$0xff] }
 0x296   : > { %21734 = vmatmul.mubr.f32.gmra.mrb[88].mxu0 %v8595_v61  ;;  %21433 = vmatprep.mubr.f32.mxu1 %v6577_v47  ;;  %v33063_v61 = vand.u32 4294901760, %v27448_v24  ;;  %v8635_v22 = vand.u32 4294901760, %v8634_v31  ;;  %v31791_v47 = vand.u32 4294901760, %v27491_v0  ;;  %v6617_v59 = vand.u32 4294901760, %v6616_v39  ;;  %v33067_v39 = vld [vmem:[#allocation43_spill] sm:$0xff] }
 0x297   : > { %21736 = vmatprep.mubr.f32.mxu0 %v8605_v12  ;;  %v8654_v12 = vsub.f32 %v27470_v26, %v31790_v35 }
 0x298   : > { %v8644_v8 = vsub.f32 %v27448_v24, %v33063_v61  ;;  %v6646_v31 = vsub.f32 %v27491_v0, %v31791_v47  ;;  %v33081_v47 = vld [vmem:[#allocation87_spill] sm:$0xff] }
 0x299   : > { %21434 = vmatmul.mubr.f32.gmra.mrb[88].mxu1 %v6587_v46  ;;  %v6636_v46 = vsub.f32 %v27480_v15, %v31792_v27  ;;  %v8655_v17 = vand.u32 4294901760, %v8654_v12  ;;  %v33072_v12 = vld [vmem:[#allocation58_spill] sm:$0xff]  ;;  %v33082_v27 = vld [vmem:[#allocation88_spill] sm:$0xff] }
 0x29a   : > { %21737 = vmatmul.mubr.f32.gmra.mrb[90].mxu0 %v8615_v4  ;;  %21436 = vmatprep.mubr.f32.mxu1 %v6597_v10  ;;  %v8645_v61 = vand.u32 4294901760, %v8644_v8  ;;  %v6627_v4 = vand.u32 4294901760, %v6626_v58  ;;  %v6647_v10 = vand.u32 4294901760, %v6646_v31  ;;  %v33068_v8 = vld [vmem:[#allocation45_spill] sm:$0xff]  ;;  %v33071_v58 = vld [vmem:[#allocation56_spill] sm:$0xff] }
 0x29b   : > { %21739 = vmatprep.mubr.f32.mxu0 %v8625_v43  ;;  %v6637_v35 = vand.u32 4294901760, %v6636_v46  ;;  %v33066_v43 = vld [vmem:[#allocation42_spill] sm:$0xff]  ;;  %v33076_v46 = vld [vmem:[#allocation108_spill] sm:$0xff]  ;;  %v33079_v31 = vld [vmem:[#allocation85_spill] sm:$0xff] }
 0x29d   : > { %21437 = vmatmul.mubr.f32.gmra.mrb[90].mxu1 %v6607_v21  ;;  %v33070_v21 = vld [vmem:[#allocation55_spill] sm:$0xff] }
 0x29e   : > { %21740 = vmatmul.mubr.f32.gmra.mrb[92].mxu0 %v8635_v22  ;;  %21439 = vmatprep.mubr.f32.mxu1 %v6617_v59  ;;  %v33064_v22 = vld [vmem:[#allocation34_spill] sm:$0xff] }
 0x29f   : > { %21742 = vmatprep.mubr.f32.mxu0 %v8645_v61  ;;  %v33074_v59 = vld [vmem:[#allocation106_spill] sm:$0xff]  ;;  %v33075_v61 = vld [vmem:[#allocation107_spill] sm:$0xff] }
 0x2a1   : > { %21440 = vmatmul.mubr.f32.gmra.mrb[92].mxu1 %v6627_v4  ;;  %v33077_v4 = vld [vmem:[#allocation70_spill] sm:$0xff] }
 0x2a2   : > { %21743 = vmatmul.mubr.f32.gmra.mrb[94].mxu0 %v8655_v17  ;;  %21442 = vmatprep.mubr.f32.mxu1 %v6637_v35  ;;  %v33065_v35 = vld [vmem:[#allocation21_spill] sm:$0xff]  ;;  %v33078_v17 = vld [vmem:[#allocation72_spill] sm:$0xff] }
 0x2a3   : > { %21747 = vmatprep.mubr.f32.mxu0 %v26534_v52  ;;  %v4033_v52 = vld [vmem:[#allocation2 + $0x20] sm:$0xff] }
 0x2a5   : > { %21443 = vmatmul.mubr.f32.gmra.mrb[94].mxu1 %v6647_v10  ;;  %v33080_v10 = vld [vmem:[#allocation86_spill] sm:$0xff] }
 0x2a6   : > { %21748 = vmatmul.mubr.f32.vlgmr.msra.gmra.mrb[64].mxu0 %v26545_v30  ;;  %21447 = vmatprep.mubr.f32.mxu1 %v26550_v29  ;;  %v33132_v29 = vld [vmem:[#allocation36_spill] sm:$0xff] }
 0x2a7   : > { %21750 = vmatprep.mubr.f32.mxu0 %v26552_v19  ;;  %21796 = vmatpush3.msra.mxu0 %v26475_v5  ;;  %v33069_v5 = vld [vmem:[#allocation19_spill] sm:$0xff]  ;;  %v33131_v19 = vld [vmem:[#allocation32_spill] sm:$0xff] }
 0x2a8   : > { %21845 = vmatprep.subr.mxu0 %v26412_v32 }
 0x2a9   : > { %21448 = vmatmul.mubr.f32.vlgmr.msra.gmra.mrb[64].mxu1 %v26558_v41  ;;  %v33129_v41 = vld [vmem:[#allocation8_spill] sm:$0xff] }
 0x2aa   : > { %21751 = vmatmul.mubr.f32.gmra.mrb[66].mxu0 %v33064_v22  ;;  %21496 = vmatpush3.msra.mxu1 %v26483_v40  ;;  %v33073_v40 = vld [vmem:[#allocation63_spill] sm:$0xff] }
 0x2ab   : > { %21450 = vmatprep.mubr.f32.mxu1 %v26590_v3  ;;  %21753 = vmatprep.mubr.f32.mxu0 %v26592_v48  ;;  %v4031_v3 = vld [vmem:[#allocation2 + $0x10] sm:$0xff] }
 0x2ac   : > { %21545 = vmatprep.subr.mxu1 %v33065_v35 }
 0x2ad   : > { %21451 = vmatmul.mubr.f32.gmra.mrb[66].mxu1 %v33066_v43  ;;  %v4032_v43 = vld [vmem:[#allocation2 + $0x18] sm:$0xff] }
 0x2ae   : > { %21754 = vmatmul.mubr.f32.gmra.mrb[68].mxu0 %v33067_v39  ;;  %21453 = vmatprep.mubr.f32.mxu1 %v33068_v8  ;;  %v33128_v8 = vld [vmem:[#allocation27_spill] sm:$0xff] }
 0x2af   : > { %21756 = vmatprep.mubr.f32.mxu0 %v33069_v5  ;;  %v33127_v5 = vld [vmem:[#allocation5_spill] sm:$0xff] }
 0x2b1   : > { %21454 = vmatmul.mubr.f32.gmra.mrb[68].mxu1 %v33070_v21 }
 0x2b2   : > { %21757 = vmatmul.mubr.f32.gmra.mrb[70].mxu0 %v33071_v58  ;;  %21456 = vmatprep.mubr.f32.mxu1 %v33072_v12  ;;  %v33125_v12 = vld [vmem:[#allocation99_spill] sm:$0xff]  ;;  %v33126_v58 = vld [vmem:[#allocation121_spill] sm:$0xff] }
 0x2b3   : > { %21759 = vmatprep.mubr.f32.mxu0 %v33073_v40 }
 0x2b5   : > { %21457 = vmatmul.mubr.f32.gmra.mrb[70].mxu1 %v33074_v59  ;;  %v4029_v59 = vld [vmem:[#allocation2] sm:$0xff] }
 0x2b6   : > { %21760 = vmatmul.mubr.f32.gmra.mrb[72].mxu0 %v33075_v61  ;;  %21459 = vmatprep.mubr.f32.mxu1 %v33076_v46 }
 0x2b7   : > { %21762 = vmatprep.mubr.f32.mxu0 %v33077_v4 }
 0x2b9   : > { %21460 = vmatmul.mubr.f32.gmra.mrb[72].mxu1 %v33078_v17  ;;  %v33085_v17 = vld [vmem:[#allocation9_spill] sm:$0xff] }
 0x2ba   : > { %21763 = vmatmul.mubr.f32.gmra.mrb[74].mxu0 %v33079_v31  ;;  %21462 = vmatprep.mubr.f32.mxu1 %v33080_v10  ;;  %v33086_v31 = vld [vmem:[#allocation33_spill] sm:$0xff]  ;;  %v4030_v10 = vld [vmem:[#allocation2 + $0x8] sm:$0xff] }
 0x2bb   : > { %21765 = vmatprep.mubr.f32.mxu0 %v33081_v47  ;;  %v33087_v47 = vld [vmem:[#allocation39_spill] sm:$0xff] }
 0x2bd   : > { %21463 = vmatmul.mubr.f32.gmra.mrb[74].mxu1 %v33082_v27  ;;  %v33088_v27 = vld [vmem:[#allocation40_spill] sm:$0xff] }
 0x2be   : > { %21766 = vmatmul.mubr.f32.gmra.mrb[76].mxu0 %v33083_v11  ;;  %21465 = vmatprep.mubr.f32.mxu1 %v26888_v14  ;;  %v33124_v14 = vld [vmem:[#allocation97_spill] sm:$0xff] }
 0x2bf   : > { %21768 = vmatprep.mubr.f32.mxu0 %v26895_v23  ;;  %v33123_v23 = vld [vmem:[#allocation96_spill] sm:$0xff] }
 0x2c1   : > { %21466 = vmatmul.mubr.f32.gmra.mrb[76].mxu1 %v26897_v56  ;;  %v33122_v56 = vld [vmem:[#allocation95_spill] sm:$0xff] }
 0x2c2   : > { %21769 = vmatmul.mubr.f32.gmra.mrb[78].mxu0 %v26907_v37  ;;  %21468 = vmatprep.mubr.f32.mxu1 %v33084_v16  ;;  %v33121_v37 = vld [vmem:[#allocation84_spill] sm:$0xff] }
 0x2c3   : > { %21771 = vmatprep.mubr.f32.mxu0 %v33085_v17 }
 0x2c5   : > { %21469 = vmatmul.mubr.f32.gmra.mrb[78].mxu1 %v33086_v31  ;;  %v33089_v31 = vld [vmem:[#allocation69_spill] sm:$0xff] }
 0x2c6   : > { %21772 = vmatmul.mubr.f32.gmra.mrb[80].mxu0 %v27002_v28  ;;  %21471 = vmatprep.mubr.f32.mxu1 %v33087_v47  ;;  %v33090_v47 = vld [vmem:[#allocation73_spill] sm:$0xff] }
 0x2c7   : > { %21774 = vmatprep.mubr.f32.mxu0 %v33088_v27  ;;  %v33091_v27 = vld [vmem:[#allocation74_spill] sm:$0xff]  ;;  %v33120_v28 = vld [vmem:[#allocation77_spill] sm:$0xff] }
 0x2c9   : > { %21472 = vmatmul.mubr.f32.gmra.mrb[80].mxu1 %v27075_v36  ;;  %v33092_v36 = vld [vmem:[#allocation81_spill] sm:$0xff] }
 0x2ca   : > { %21775 = vmatmul.mubr.f32.gmra.mrb[82].mxu0 %v27082_v57  ;;  %21474 = vmatprep.mubr.f32.mxu1 %v27084_v13  ;;  %v33118_v13 = vld [vmem:[#allocation75_spill] sm:$0xff]  ;;  %v33119_v57 = vld [vmem:[#allocation76_spill] sm:$0xff] }
 0x2cb   : > { %21777 = vmatprep.mubr.f32.mxu0 %v27086_v34  ;;  %v33093_v34 = vld [vmem:[#allocation93_spill] sm:$0xff] }
 0x2cd   : > { %21475 = vmatmul.mubr.f32.gmra.mrb[82].mxu1 %v27100_v63  ;;  %v33094_v63 = vld [vmem:[#allocation94_spill] sm:$0xff] }
 0x2ce   : > { %21778 = vmatmul.mubr.f32.gmra.mrb[84].mxu0 %v27102_v51  ;;  %21477 = vmatprep.mubr.f32.mxu1 %v27152_v54  ;;  %v33095_v51 = vld [vmem:[#allocation118_spill] sm:$0xff]  ;;  %v33096_v54 = vld [vmem:[#allocation119_spill] sm:$0xff] }
 0x2cf   : > { %21780 = vmatprep.mubr.f32.mxu0 %v33089_v31  ;;  %v33097_v31 = vld [vmem:[#allocation120_spill] sm:$0xff] }
 0x2d1   : > { %21478 = vmatmul.mubr.f32.gmra.mrb[84].mxu1 %v27169_v50  ;;  %v33098_v50 = vld [vmem:[#allocation122_spill] sm:$0xff] }
 0x2d2   : > { %21781 = vmatmul.mubr.f32.gmra.mrb[86].mxu0 %v33090_v47  ;;  %21480 = vmatprep.mubr.f32.mxu1 %v33091_v27  ;;  %v33116_v27 = vld [vmem:[#allocation100_spill] sm:$0xff]  ;;  %v33117_v47 = vld [vmem:[#allocation109_spill] sm:$0xff] }
 0x2d3   : > { %21783 = vmatprep.mubr.f32.mxu0 %v33092_v36  ;;  %v33115_v36 = vld [vmem:[#allocation67_spill] sm:$0xff] }
 0x2d5   : > { %21481 = vmatmul.mubr.f32.gmra.mrb[86].mxu1 %v27269_v45  ;;  %v33114_v45 = vld [vmem:[#allocation66_spill] sm:$0xff] }
 0x2d6   : > { %21784 = vmatmul.mubr.f32.gmra.mrb[88].mxu0 %v27279_v6  ;;  %21483 = vmatprep.mubr.f32.mxu1 %v33093_v34  ;;  %v33112_v34 = vld [vmem:[#allocation64_spill] sm:$0xff]  ;;  %v33113_v6 = vld [vmem:[#allocation65_spill] sm:$0xff] }
 0x2d7   : > { %21786 = vmatprep.mubr.f32.mxu0 %v33094_v63  ;;  %v33111_v63 = vld [vmem:[#allocation54_spill] sm:$0xff] }
 0x2d9   : > { %21484 = vmatmul.mubr.f32.gmra.mrb[88].mxu1 %v33095_v51  ;;  %v33099_v51 = vld [vmem:[#allocation22_spill] sm:$0xff] }
 0x2da   : > { %21787 = vmatmul.mubr.f32.gmra.mrb[90].mxu0 %v33096_v54  ;;  %21486 = vmatprep.mubr.f32.mxu1 %v33097_v31  ;;  %v33100_v31 = vld [vmem:[#allocation23_spill] sm:$0xff]  ;;  %v33110_v54 = vld [vmem:[#allocation53_spill] sm:$0xff] }
 0x2db   : > { %21789 = vmatprep.mubr.f32.mxu0 %v33098_v50  ;;  %v33101_v50 = vld [vmem:[#allocation35_spill] sm:$0xff] }
 0x2dd   : > { %21487 = vmatmul.mubr.f32.gmra.mrb[90].mxu1 %v27389_v33  ;;  %v33102_v33 = vld [vmem:[#allocation11_spill] sm:$0xff] }
 0x2de   : > { %21790 = vmatmul.mubr.f32.gmra.mrb[92].mxu0 %v27403_v9  ;;  %21489 = vmatprep.mubr.f32.mxu1 %v27409_v60  ;;  %v33103_v60 = vld [vmem:[#allocation4_spill] sm:$0xff] }
 0x2df   : > { %21792 = vmatprep.mubr.f32.mxu0 %v27411_v2  ;;  %v33104_v2 = vld [vmem:[#allocation37_spill] sm:$0xff]  ;;  %v33109_v9 = vld [vmem:[#allocation48_spill] sm:$0xff] }
 0x2e1   : > { %21490 = vmatmul.mubr.f32.gmra.mrb[92].mxu1 %v27440_v1  ;;  %v33105_v1 = vld [vmem:[#allocation41_spill] sm:$0xff] }
 0x2e2   : > { %21793 = vmatmul.mubr.f32.gmra.mrb[94].mxu0 %v27442_v44  ;;  %21492 = vmatprep.mubr.f32.mxu1 %v27450_v20  ;;  %v33106_v20 = vld [vmem:[#allocation18_spill] sm:$0xff]  ;;  %v33107_v44 = vld [vmem:[#allocation47_spill] sm:$0xff] }
 0x2e3   : > { %21797 = vmatprep.mubr.f32.mxu0 %v33099_v51 }
 0x2e5   : > { %21493 = vmatmul.mubr.f32.gmra.mrb[94].mxu1 %v27472_v62  ;;  %v33108_v62 = vld [vmem:[#allocation6_spill] sm:$0xff] }
 0x2e6   : > { %21798 = vmatmul.mubr.f32.vlgmr.msra.gmra.mrb[64].mxu0 %v33100_v31  ;;  %21497 = vmatprep.mubr.f32.mxu1 %v33101_v50 }
 0x2e7   : > { %21800 = vmatprep.mubr.f32.mxu0 %v33102_v33  ;;  %21846 = vmatpush3.msra.mxu0 %v26412_v32 }
 0x2e8   : > { %21895 = vmatprep.subr.mxu0 %v33103_v60 }
 0x2e9   : > { %21498 = vmatmul.mubr.f32.vlgmr.msra.gmra.mrb[64].mxu1 %v33104_v2 }
 0x2ea   : > { %21801 = vmatmul.mubr.f32.gmra.mrb[66].mxu0 %v33105_v1  ;;  %21546 = vmatpush3.msra.mxu1 %v33065_v35 }
 0x2eb   : > { %21500 = vmatprep.mubr.f32.mxu1 %v33106_v20  ;;  %21803 = vmatprep.mubr.f32.mxu0 %v33107_v44 }
 0x2ec   : > { %21595 = vmatprep.subr.mxu1 %v33108_v62 }
 0x2ed   : > { %21501 = vmatmul.mubr.f32.gmra.mrb[66].mxu1 %v33109_v9 }
 0x2ee   : > { %21804 = vmatmul.mubr.f32.gmra.mrb[68].mxu0 %v33110_v54  ;;  %21503 = vmatprep.mubr.f32.mxu1 %v33111_v63 }
 0x2ef   : > { %21806 = vmatprep.mubr.f32.mxu0 %v33112_v34 }
 0x2f1   : > { %21504 = vmatmul.mubr.f32.gmra.mrb[68].mxu1 %v33113_v6 }
 0x2f2   : > { %21807 = vmatmul.mubr.f32.gmra.mrb[70].mxu0 %v33114_v45  ;;  %21506 = vmatprep.mubr.f32.mxu1 %v33115_v36 }
 0x2f3   : > { %21809 = vmatprep.mubr.f32.mxu0 %v33116_v27 }
 0x2f4   : > { %v21349_v17 = vpop.f32.mrb[32].mxu0 }
 0x2f5   : > { %21507 = vmatmul.mubr.f32.gmra.mrb[70].mxu1 %v33117_v47  ;;  %v5847_v16 = vpop.f32.mrb[33].mxu0 }
 0x2f6   : > { %21810 = vmatmul.mubr.f32.gmra.mrb[72].mxu0 %v33118_v13  ;;  %21509 = vmatprep.mubr.f32.mxu1 %v33119_v57 }
 0x2f7   : > { %21812 = vmatprep.mubr.f32.mxu0 %v33120_v28 }
 0x2f8   : > { %v21049_v11 = vpop.f32.mrb[32].mxu1  ;;  %v21352_v4 = vpop.f32.mrb[34].mxu0 }
 0x2f9   : > { %21510 = vmatmul.mubr.f32.gmra.mrb[72].mxu1 %v33121_v37  ;;  %v4062_v46 = vadd.f32 %v21049_v11, %v4030_v10  ;;  %v3839_v61 = vpop.f32.mrb[33].mxu1  ;;  %v5859_v40 = vpop.f32.mrb[35].mxu0 }
 0x2fa   : > { %21813 = vmatmul.mubr.f32.gmra.mrb[74].mxu0 %v33122_v56  ;;  %21512 = vmatprep.mubr.f32.mxu1 %v33123_v23  ;;  %v4061_v21 = vadd.f32 %v4029_v59, %v3839_v61  ;;  %v33130_v59 = vld [vmem:[#allocation31_spill] sm:$0xff] }
 0x2fb   : > { %21815 = vmatprep.mubr.f32.mxu0 %v33124_v14  ;;  %4094 = vst.msk [vmem:[#allocation2 + $0x8] sm:$0xff] %vm2084_vm2, %v4062_v46  ;;  %v4034_v46 = vld [vmem:[#allocation2 + $0x28] sm:$0xff] }
 0x2fc   : > { %4093 = vst.msk [vmem:[#allocation2] sm:$0xff] %vm2084_vm2, %v4061_v21  ;;  %v21052_v39 = vpop.f32.mrb[34].mxu1  ;;  %v27615_v48 = vpop.f32.mrb[36].mxu0 }
 0x2fd   : > { %21513 = vmatmul.mubr.f32.gmra.mrb[74].mxu1 %v33125_v12  ;;  %v4064_v11 = vadd.f32 %v21052_v39, %v4032_v43  ;;  %v3851_v10 = vpop.f32.mrb[35].mxu1  ;;  %v27617_v22 = vpop.f32.mrb[37].mxu0 }
 0x2fe   : > { %21816 = vmatmul.mubr.f32.gmra.mrb[76].mxu0 %v33126_v58  ;;  %21515 = vmatprep.mubr.f32.mxu1 %v33127_v5  ;;  %v4063_v61 = vadd.f32 %v4031_v3, %v3851_v10  ;;  %v33134_v3 = vld [vmem:[#allocation44_spill] sm:$0xff] }
 0x2ff   : > { %21818 = vmatprep.mubr.f32.mxu0 %v33128_v8  ;;  %4096 = vst.msk [vmem:[#allocation2 + $0x18] sm:$0xff] %vm2084_vm2, %v4064_v11 }
 0x300   : > { %4095 = vst.msk [vmem:[#allocation2 + $0x10] sm:$0xff] %vm2084_vm2, %v4063_v61  ;;  %v21055_v21 = vpop.f32.mrb[36].mxu1  ;;  %v27625_v43 = vpop.f32.mrb[38].mxu0 }
 0x301   : > { %21516 = vmatmul.mubr.f32.gmra.mrb[76].mxu1 %v33129_v41  ;;  %v4066_v39 = vadd.f32 %v21055_v21, %v4034_v46  ;;  %v3863_v30 = vpop.f32.mrb[37].mxu1  ;;  %v27627_v8 = vpop.f32.mrb[39].mxu0  ;;  %v33133_v41 = vld [vmem:[#allocation12_spill] sm:$0xff]  ;;  %v4036_v46 = vld [vmem:[#allocation2 + $0x38] sm:$0xff] }
 0x302   : > { %21819 = vmatmul.mubr.f32.gmra.mrb[78].mxu0 %v33130_v59  ;;  %21518 = vmatprep.mubr.f32.mxu1 %v33131_v19  ;;  %v4065_v10 = vadd.f32 %v4033_v52, %v3863_v30  ;;  %v33135_v19 = vld [vmem:[#allocation15_spill] sm:$0xff]  ;;  %v6038_v11 = vld [vmem:[#allocation2 + $0x8] sm:$0xff] }
 0x303   : > { %21821 = vmatprep.mubr.f32.mxu0 %v33132_v29  ;;  %v33136_v29 = vld [vmem:[#allocation16_spill] sm:$0xff]  ;;  %4098 = vst.msk [vmem:[#allocation2 + $0x28] sm:$0xff] %vm2084_vm2, %v4066_v39  ;;  %v6070_v61 = vadd.f32 %v21349_v17, %v6038_v11  ;;  %v6037_v59 = vld [vmem:[#allocation2] sm:$0xff] }
 0x304   : > { %4097 = vst.msk [vmem:[#allocation2 + $0x20] sm:$0xff] %vm2084_vm2, %v4065_v10  ;;  %v21058_v21 = vpop.f32.mrb[38].mxu1  ;;  %v27635_v5 = vpop.f32.mrb[40].mxu0  ;;  %v6069_v58 = vadd.f32 %v6037_v59, %v5847_v16  ;;  %v33137_v30 = vld [vmem:[#allocation52_spill] sm:$0xff]  ;;  %v33139_v39 = vld [vmem:[#allocation59_spill] sm:$0xff] }
 0x305   : > { %21519 = vmatmul.mubr.f32.gmra.mrb[78].mxu1 %v33133_v41  ;;  %v4068_v41 = vadd.f32 %v21058_v21, %v4036_v46  ;;  %v3875_v12 = vpop.f32.mrb[39].mxu1  ;;  %v27637_v52 = vpop.f32.mrb[41].mxu0  ;;  %6102 = vst.msk [vmem:[#allocation2 + $0x8] sm:$0xff] %vm2084_vm2, %v6070_v61  ;;  %v33140_v10 = vld [vmem:[#allocation60_spill] sm:$0xff] }
 0x306   : > { %21822 = vmatmul.mubr.f32.gmra.mrb[80].mxu0 %v33134_v3  ;;  %21521 = vmatprep.mubr.f32.mxu1 %v33135_v19  ;;  %v4035_v3 = vld [vmem:[#allocation2 + $0x30] sm:$0xff]  ;;  %6101 = vst.msk [vmem:[#allocation2] sm:$0xff] %vm2084_vm2, %v6069_v58  ;;  %v6040_v11 = vld [vmem:[#allocation2 + $0x18] sm:$0xff]  ;;  %v4038_v46 = vld [vmem:[#allocation2 + $0x48] sm:$0xff] }
 0x307   : > { %21824 = vmatprep.mubr.f32.mxu0 %v33136_v29  ;;  %v33138_v29 = vld [vmem:[#allocation57_spill] sm:$0xff]  ;;  %v4067_v17 = vadd.f32 %v4035_v3, %v3875_v12  ;;  %4100 = vst.msk [vmem:[#allocation2 + $0x38] sm:$0xff] %vm2084_vm2, %v4068_v41  ;;  %v6072_v16 = vadd.f32 %v21352_v4, %v6040_v11  ;;  %v4037_v3 = vld [vmem:[#allocation2 + $0x40] sm:$0xff]  ;;  %v33142_v58 = vld [vmem:[#allocation62_spill] sm:$0xff] }
 0x308   : > { %v6039_v59 = vld [vmem:[#allocation2 + $0x10] sm:$0xff]  ;;  %v21061_v21 = vpop.f32.mrb[40].mxu1  ;;  %v33143_v4 = vld [vmem:[#allocation78_spill] sm:$0xff] }
 0x309   : > { %21522 = vmatmul.mubr.f32.gmra.mrb[80].mxu1 %v33137_v30  ;;  %4099 = vst.msk [vmem:[#allocation2 + $0x30] sm:$0xff] %vm2084_vm2, %v4067_v17  ;;  %v27647_v30 = vpop.f32.mrb[42].mxu0  ;;  %v4070_v61 = vadd.f32 %v21061_v21, %v4038_v46  ;;  %v3887_v12 = vpop.f32.mrb[41].mxu1  ;;  %6104 = vst.msk [vmem:[#allocation2 + $0x18] sm:$0xff] %vm2084_vm2, %v6072_v16  ;;  %v33144_v17 = vld [vmem:[#allocation79_spill] sm:$0xff]  ;;  %v4040_v46 = vld [vmem:[#allocation2 + $0x58] sm:$0xff] }
 0x30a   : > { %21825 = vmatmul.mubr.f32.gmra.mrb[82].mxu0 %v33138_v29  ;;  %21524 = vmatprep.mubr.f32.mxu1 %v33139_v39  ;;  %v6071_v29 = vadd.f32 %v6039_v59, %v5859_v40  ;;  %v27649_v39 = vpop.f32.mrb[43].mxu0  ;;  %v4069_v41 = vadd.f32 %v4037_v3, %v3887_v12  ;;  %v6042_v11 = vld [vmem:[#allocation2 + $0x28] sm:$0xff] }
 0x30b   : > { %21827 = vmatprep.mubr.f32.mxu0 %v33140_v10  ;;  %v33141_v10 = vld [vmem:[#allocation61_spill] sm:$0xff]  ;;  %4102 = vst.msk [vmem:[#allocation2 + $0x48] sm:$0xff] %vm2084_vm2, %v4070_v61  ;;  %v6074_v40 = vadd.f32 %v27615_v48, %v6042_v11  ;;  %v6041_v59 = vld [vmem:[#allocation2 + $0x20] sm:$0xff] }
 0x30c   : > { %6103 = vst.msk [vmem:[#allocation2 + $0x10] sm:$0xff] %vm2084_vm2, %v6071_v29  ;;  %4101 = vst.msk [vmem:[#allocation2 + $0x40] sm:$0xff] %vm2084_vm2, %v4069_v41  ;;  %v21064_v21 = vpop.f32.mrb[42].mxu1  ;;  %v6073_v16 = vadd.f32 %v6041_v59, %v27617_v22  ;;  %v33145_v29 = vld [vmem:[#allocation80_spill] sm:$0xff]  ;;  %v33147_v61 = vld [vmem:[#allocation83_spill] sm:$0xff] }
 0x30d   : > { %21525 = vmatmul.mubr.f32.gmra.mrb[82].mxu1 %v33141_v10  ;;  %v4072_v12 = vadd.f32 %v21064_v21, %v4040_v46  ;;  %v3899_v3 = vpop.f32.mrb[43].mxu1  ;;  %v33146_v10 = vld [vmem:[#allocation82_spill] sm:$0xff]  ;;  %6106 = vst.msk [vmem:[#allocation2 + $0x28] sm:$0xff] %vm2084_vm2, %v6074_v40  ;;  %v4042_v46 = vld [vmem:[#allocation2 + $0x68] sm:$0xff] }
 0x30e   : > { %21828 = vmatmul.mubr.f32.gmra.mrb[84].mxu0 %v33142_v58  ;;  %21527 = vmatprep.mubr.f32.mxu1 %v33143_v4  ;;  %v27660_v58 = vpop.f32.mrb[44].mxu0  ;;  %v4039_v4 = vld [vmem:[#allocation2 + $0x50] sm:$0xff]  ;;  %v33148_v41 = vld [vmem:[#allocation90_spill] sm:$0xff]  ;;  %6105 = vst.msk [vmem:[#allocation2 + $0x20] sm:$0xff] %vm2084_vm2, %v6073_v16 }
 0x30f   : > { %21830 = vmatprep.mubr.f32.mxu0 %v33144_v17  ;;  %v27663_v17 = vpop.f32.mrb[45].mxu0  ;;  %v4071_v48 = vadd.f32 %v4039_v4, %v3899_v3  ;;  %v6044_v11 = vld [vmem:[#allocation2 + $0x38] sm:$0xff]  ;;  %4104 = vst.msk [vmem:[#allocation2 + $0x58] sm:$0xff] %vm2084_vm2, %v4072_v12  ;;  %v33151_v12 = vld [vmem:[#allocation103_spill] sm:$0xff] }
 0x310   : > { %v6076_v22 = vadd.f32 %v27625_v43, %v6044_v11  ;;  %v6043_v59 = vld [vmem:[#allocation2 + $0x30] sm:$0xff]  ;;  %v21067_v21 = vpop.f32.mrb[44].mxu1  ;;  %v33149_v16 = vld [vmem:[#allocation98_spill] sm:$0xff] }
 0x311   : > { %21528 = vmatmul.mubr.f32.gmra.mrb[84].mxu1 %v33145_v29  ;;  %4103 = vst.msk [vmem:[#allocation2 + $0x50] sm:$0xff] %vm2084_vm2, %v4071_v48  ;;  %v6075_v4 = vadd.f32 %v6043_v59, %v27627_v8  ;;  %v4074_v40 = vadd.f32 %v21067_v21, %v4042_v46  ;;  %v3911_v3 = vpop.f32.mrb[45].mxu1  ;;  %v33150_v29 = vld [vmem:[#allocation102_spill] sm:$0xff] }
 0x312   : > { %21831 = vmatmul.mubr.f32.gmra.mrb[86].mxu0 %v33146_v10  ;;  %21530 = vmatprep.mubr.f32.mxu1 %v33147_v61  ;;  %v27674_v10 = vpop.f32.mrb[46].mxu0  ;;  %v4041_v61 = vld [vmem:[#allocation2 + $0x60] sm:$0xff]  ;;  %6108 = vst.msk [vmem:[#allocation2 + $0x38] sm:$0xff] %vm2084_vm2, %v6076_v22  ;;  %v33152_v48 = vld [vmem:[#allocation114_spill] sm:$0xff]  ;;  %v6046_v11 = vld [vmem:[#allocation2 + $0x48] sm:$0xff] }
 0x313   : > { %21833 = vmatprep.mubr.f32.mxu0 %v33148_v41  ;;  %v27677_v41 = vpop.f32.mrb[47].mxu0  ;;  %v4073_v43 = vadd.f32 %v4041_v61, %v3911_v3  ;;  %6107 = vst.msk [vmem:[#allocation2 + $0x30] sm:$0xff] %vm2084_vm2, %v6075_v4  ;;  %4106 = vst.msk [vmem:[#allocation2 + $0x68] sm:$0xff] %vm2084_vm2, %v4074_v40  ;;  %v6078_v8 = vadd.f32 %v27635_v5, %v6046_v11  ;;  %v6045_v59 = vld [vmem:[#allocation2 + $0x40] sm:$0xff]  ;;  %v4044_v46 = vld [vmem:[#allocation2 + $0x78] sm:$0xff] }
 0x314   : > { %v21070_v21 = vpop.f32.mrb[46].mxu1  ;;  %v6077_v61 = vadd.f32 %v6045_v59, %v27637_v52  ;;  %v4046_v11 = vld [vmem:[#allocation2 + $0x88] sm:$0xff] }
 0x315   : > { %21531 = vmatmul.mubr.f32.gmra.mrb[86].mxu1 %v33149_v16  ;;  %4105 = vst.msk [vmem:[#allocation2 + $0x60] sm:$0xff] %vm2084_vm2, %v4073_v43  ;;  %v4076_v22 = vadd.f32 %v21070_v21, %v4044_v46  ;;  %v3923_v3 = vpop.f32.mrb[47].mxu1  ;;  %6110 = vst.msk [vmem:[#allocation2 + $0x48] sm:$0xff] %vm2084_vm2, %v6078_v8  ;;  %v4045_v46 = vld [vmem:[#allocation2 + $0x80] sm:$0xff] }
 0x316   : > { %21834 = vmatmul.mubr.f32.gmra.mrb[88].mxu0 %v33150_v29  ;;  %21533 = vmatprep.mubr.f32.mxu1 %v33151_v12  ;;  %v27688_v29 = vpop.f32.mrb[48].mxu0  ;;  %v4043_v12 = vld [vmem:[#allocation2 + $0x70] sm:$0xff]  ;;  %6109 = vst.msk [vmem:[#allocation2 + $0x40] sm:$0xff] %vm2084_vm2, %v6077_v61  ;;  %v6048_v4 = vld [vmem:[#allocation2 + $0x58] sm:$0xff] }
 0x317   : > { %21836 = vmatprep.mubr.f32.mxu0 %v33152_v48  ;;  %v27691_v48 = vpop.f32.mrb[49].mxu0  ;;  %v4075_v5 = vadd.f32 %v4043_v12, %v3923_v3  ;;  %4108 = vst.msk [vmem:[#allocation2 + $0x78] sm:$0xff] %vm2084_vm2, %v4076_v22  ;;  %v6080_v52 = vadd.f32 %v27647_v30, %v6048_v4  ;;  %v4048_v4 = vld [vmem:[#allocation2 + $0x98] sm:$0xff] }
 0x318   : > { %v6047_v40 = vld [vmem:[#allocation2 + $0x50] sm:$0xff]  ;;  %v21073_v43 = vpop.f32.mrb[48].mxu1  ;;  %v27702_v59 = vpop.f32.mrb[50].mxu0 }
 0x319   : > { %21534 = vmatmul.mubr.f32.gmra.mrb[88].mxu1 %v27381_v7  ;;  %4107 = vst.msk [vmem:[#allocation2 + $0x70] sm:$0xff] %vm2084_vm2, %v4075_v5  ;;  %v6079_v12 = vadd.f32 %v6047_v40, %v27649_v39  ;;  %v4078_v8 = vadd.f32 %v21073_v43, %v4046_v11  ;;  %v3935_v21 = vpop.f32.mrb[49].mxu1  ;;  %v27705_v3 = vpop.f32.mrb[51].mxu0  ;;  %6112 = vst.msk [vmem:[#allocation2 + $0x58] sm:$0xff] %vm2084_vm2, %v6080_v52 }
 0x31a   : > { %21837 = vmatmul.mubr.f32.gmra.mrb[90].mxu0 %v27384_v55  ;;  %21536 = vmatprep.mubr.f32.mxu1 %v27387_v38  ;;  %v4077_v30 = vadd.f32 %v4045_v46, %v3935_v21  ;;  %v6050_v61 = vld [vmem:[#allocation2 + $0x68] sm:$0xff]  ;;  %v4047_v21 = vld [vmem:[#allocation2 + $0x90] sm:$0xff] }
 0x31b   : > { %21839 = vmatprep.mubr.f32.mxu0 %v27401_v18  ;;  %6111 = vst.msk [vmem:[#allocation2 + $0x50] sm:$0xff] %vm2084_vm2, %v6079_v12  ;;  %4110 = vst.msk [vmem:[#allocation2 + $0x88] sm:$0xff] %vm2084_vm2, %v4078_v8  ;;  %v6082_v39 = vadd.f32 %v27660_v58, %v6050_v61  ;;  %v33153_v12 = vand.u32 4294901760, %v33099_v51  ;;  %v4049_v51 = vld [vmem:[#allocation2 + $0xa0] sm:$0xff] }
 0x31c   : > { %v6049_v22 = vld [vmem:[#allocation2 + $0x60] sm:$0xff]  ;;  %4109 = vst.msk [vmem:[#allocation2 + $0x80] sm:$0xff] %vm2084_vm2, %v4077_v30  ;;  %v21076_v5 = vpop.f32.mrb[50].mxu1  ;;  %v27716_v40 = vpop.f32.mrb[52].mxu0 }
 0x31d   : > { %21537 = vmatmul.mubr.f32.gmra.mrb[90].mxu1 %v27430_v25  ;;  %v6081_v52 = vadd.f32 %v6049_v22, %v27663_v17  ;;  %v4080_v43 = vadd.f32 %v21076_v5, %v4048_v4  ;;  %v3947_v11 = vpop.f32.mrb[51].mxu1  ;;  %v27719_v46 = vpop.f32.mrb[53].mxu0  ;;  %6114 = vst.msk [vmem:[#allocation2 + $0x68] sm:$0xff] %vm2084_vm2, %v6082_v39  ;;  %v4050_v22 = vld [vmem:[#allocation2 + $0xa8] sm:$0xff] }
 0x31e   : > { %21840 = vmatmul.mubr.f32.gmra.mrb[92].mxu0 %v27438_v53  ;;  %21539 = vmatprep.mubr.f32.mxu1 %v27445_v42  ;;  %v4079_v58 = vadd.f32 %v4047_v21, %v3947_v11  ;;  %v6052_v17 = vld [vmem:[#allocation2 + $0x78] sm:$0xff] }
 0x31f   : > { %21842 = vmatprep.mubr.f32.mxu0 %v27448_v24  ;;  %6113 = vst.msk [vmem:[#allocation2 + $0x60] sm:$0xff] %vm2084_vm2, %v6081_v52  ;;  %4112 = vst.msk [vmem:[#allocation2 + $0x98] sm:$0xff] %vm2084_vm2, %v4080_v43  ;;  %v6084_v8 = vadd.f32 %v27674_v10, %v6052_v17  ;;  %v33154_v52 = vand.u32 4294901760, %v33100_v31  ;;  %v33155_v43 = vand.u32 4294901760, %v33101_v50 }
 0x320   : > { %v6051_v30 = vld [vmem:[#allocation2 + $0x70] sm:$0xff]  ;;  %4111 = vst.msk [vmem:[#allocation2 + $0x90] sm:$0xff] %vm2084_vm2, %v4079_v58  ;;  %v21079_v61 = vpop.f32.mrb[52].mxu1  ;;  %v27731_v5 = vpop.f32.mrb[54].mxu0  ;;  %v33156_v58 = vand.u32 4294901760, %v33102_v33 }
 0x321   : > { %21540 = vmatmul.mubr.f32.gmra.mrb[92].mxu1 %v27467_v49  ;;  %v6083_v39 = vadd.f32 %v6051_v30, %v27677_v41  ;;  %v4082_v4 = vadd.f32 %v21079_v61, %v4050_v22  ;;  %v3959_v11 = vpop.f32.mrb[53].mxu1  ;;  %v27734_v21 = vpop.f32.mrb[55].mxu0  ;;  %6116 = vst.msk [vmem:[#allocation2 + $0x78] sm:$0xff] %vm2084_vm2, %v6084_v8  ;;  %v4052_v8 = vld [vmem:[#allocation2 + $0xb8] sm:$0xff]  ;;  %v4051_v22 = vld [vmem:[#allocation2 + $0xb0] sm:$0xff] }
 0x322   : > { %21843 = vmatmul.mubr.f32.gmra.mrb[94].mxu0 %v27470_v26  ;;  %21542 = vmatprep.mubr.f32.mxu1 %v27480_v15  ;;  %v4081_v10 = vadd.f32 %v4049_v51, %v3959_v11  ;;  %v6054_v41 = vld [vmem:[#allocation2 + $0x88] sm:$0xff]  ;;  %v33159_v11 = vand.u32 4294901760, %v33106_v20  ;;  %v33160_v51 = vand.u32 4294901760, %v33107_v44  ;;  %v33161_v44 = vand.u32 4294901760, %v33109_v9 }
 0x323   : > { %21847 = vmatprep.mubr.f32.mxu0 %v33153_v12  ;;  %6115 = vst.msk [vmem:[#allocation2 + $0x70] sm:$0xff] %vm2084_vm2, %v6083_v39  ;;  %4114 = vst.msk [vmem:[#allocation2 + $0xa8] sm:$0xff] %vm2084_vm2, %v4082_v4  ;;  %v6086_v12 = vadd.f32 %v27688_v29, %v6054_v41  ;;  %v6053_v31 = vld [vmem:[#allocation2 + $0x80] sm:$0xff]  ;;  %v33158_v29 = vand.u32 4294901760, %v33105_v1 }
 0x324   : > { %4113 = vst.msk [vmem:[#allocation2 + $0xa0] sm:$0xff] %vm2084_vm2, %v4081_v10  ;;  %v21082_v17 = vpop.f32.mrb[54].mxu1  ;;  %v27749_v30 = vpop.f32.mrb[56].mxu0  ;;  %v6085_v50 = vadd.f32 %v6053_v31, %v27691_v48  ;;  %v4053_v41 = vld [vmem:[#allocation2 + $0xc0] sm:$0xff]  ;;  %v33162_v31 = vand.u32 4294901760, %v33110_v54 }
 0x325   : > { %21543 = vmatmul.mubr.f32.gmra.mrb[94].mxu1 %v27491_v0  ;;  %v4084_v33 = vadd.f32 %v21082_v17, %v4052_v8  ;;  %v3971_v61 = vpop.f32.mrb[55].mxu1  ;;  %v27753_v39 = vpop.f32.mrb[57].mxu0  ;;  %6118 = vst.msk [vmem:[#allocation2 + $0x88] sm:$0xff] %vm2084_vm2, %v6086_v12  ;;  %v33163_v17 = vand.u32 4294901760, %v33111_v63  ;;  %v33164_v8 = vand.u32 4294901760, %v33112_v34  ;;  %v4055_v34 = vld [vmem:[#allocation2 + $0xd0] sm:$0xff] }
 0x326   : > { %21848 = vmatmul.mubr.f32.vlgmr.msra.gmra.mrb[64].mxu0 %v33154_v52  ;;  %21547 = vmatprep.mubr.f32.mxu1 %v33155_v43  ;;  %v4083_v4 = vadd.f32 %v4051_v22, %v3971_v61  ;;  %6117 = vst.msk [vmem:[#allocation2 + $0x80] sm:$0xff] %vm2084_vm2, %v6085_v50  ;;  %v6056_v48 = vld [vmem:[#allocation2 + $0x98] sm:$0xff] }
 0x327   : > { %21850 = vmatprep.mubr.f32.mxu0 %v33156_v58  ;;  %21896 = vmatpush3.msra.mxu0 %v33103_v60  ;;  %v33157_v60 = vand.u32 4294901760, %v33104_v2  ;;  %4116 = vst.msk [vmem:[#allocation2 + $0xb8] sm:$0xff] %vm2084_vm2, %v4084_v33  ;;  %v6088_v1 = vadd.f32 %v27702_v59, %v6056_v48  ;;  %v6055_v2 = vld [vmem:[#allocation2 + $0x90] sm:$0xff]  ;;  %v4056_v33 = vld [vmem:[#allocation2 + $0xd8] sm:$0xff]  ;;  %v33167_v48 = vand.u32 4294901760, %v33115_v36 }
 0x328   : > { %21945 = vmatprep.subr.mxu0 %v26412_v32  ;;  %4115 = vst.msk [vmem:[#allocation2 + $0xb0] sm:$0xff] %vm2084_vm2, %v4083_v4  ;;  %v21085_v52 = vpop.f32.mrb[56].mxu1  ;;  %v27770_v10 = vpop.f32.mrb[58].mxu0  ;;  %v6087_v20 = vadd.f32 %v6055_v2, %v27705_v3  ;;  %v33165_v4 = vand.u32 4294901760, %v33113_v6  ;;  %v4058_v2 = vld [vmem:[#allocation2 + $0xe8] sm:$0xff] }
 0x329   : > { %21548 = vmatmul.mubr.f32.vlgmr.msra.gmra.mrb[64].mxu1 %v33157_v60  ;;  %v3983_v58 = vpop.f32.mrb[57].mxu1  ;;  %v27773_v12 = vpop.f32.mrb[59].mxu0  ;;  %6120 = vst.msk [vmem:[#allocation2 + $0x98] sm:$0xff] %vm2084_vm2, %v6088_v1 }
 0x32a   : > { %21851 = vmatmul.mubr.f32.gmra.mrb[66].mxu0 %v33158_v29  ;;  %21596 = vmatpush3.msra.mxu1 %v33108_v62  ;;  %v4054_v62 = vld [vmem:[#allocation2 + $0xc8] sm:$0xff]  ;;  %v4085_v59 = vadd.f32 %v4053_v41, %v3983_v58  ;;  %6119 = vst.msk [vmem:[#allocation2 + $0x90] sm:$0xff] %vm2084_vm2, %v6087_v20  ;;  %v33169_v58 = vand.u32 4294901760, %v33117_v47  ;;  %v33170_v41 = vand.u32 4294901760, %v33118_v13 }
 0x32b   : > { %21550 = vmatprep.mubr.f32.mxu1 %v33159_v11  ;;  %21853 = vmatprep.mubr.f32.mxu0 %v33160_v51  ;;  %v4086_v43 = vadd.f32 %v21085_v52, %v4054_v62  ;;  %v6058_v3 = vld [vmem:[#allocation2 + $0xa8] sm:$0xff]  ;;  %v6057_v50 = vld [vmem:[#allocation2 + $0xa0] sm:$0xff]  ;;  %v33166_v11 = vand.u32 4294901760, %v33114_v45  ;;  %v33168_v51 = vand.u32 4294901760, %v33116_v27 }
 0x32c   : > { %21645 = vmatprep.subr.mxu1 %v33065_v35  ;;  %v6090_v9 = vadd.f32 %v27716_v40, %v6058_v3  ;;  %4117 = vst.msk [vmem:[#allocation2 + $0xc0] sm:$0xff] %vm2084_vm2, %v4085_v59  ;;  %v21088_v54 = vpop.f32.mrb[58].mxu1  ;;  %v27788_v61 = vpop.f32.mrb[60].mxu0  ;;  %v6089_v63 = vadd.f32 %v6057_v50, %v27719_v46  ;;  %v33174_v50 = vand.u32 4294901760, %v33122_v56 }
 0x32d   : > { %21551 = vmatmul.mubr.f32.gmra.mrb[66].mxu1 %v33161_v44  ;;  %4118 = vst.msk [vmem:[#allocation2 + $0xc8] sm:$0xff] %vm2084_vm2, %v4086_v43  ;;  %v4088_v22 = vadd.f32 %v21088_v54, %v4056_v33  ;;  %v3995_v60 = vpop.f32.mrb[59].mxu1  ;;  %v6015_v29 = vpop.f32.mrb[61].mxu0  ;;  %v4057_v43 = vld [vmem:[#allocation2 + $0xe0] sm:$0xff]  ;;  %v33171_v44 = vand.u32 4294901760, %v33119_v57  ;;  %v33176_v33 = vand.u32 4294901760, %v33124_v14 }
 0x32e   : > { %21854 = vmatmul.mubr.f32.gmra.mrb[68].mxu0 %v33162_v31  ;;  %21553 = vmatprep.mubr.f32.mxu1 %v33163_v17  ;;  %6122 = vst.msk [vmem:[#allocation2 + $0xa8] sm:$0xff] %vm2084_vm2, %v6090_v9  ;;  %v4087_v40 = vadd.f32 %v4055_v34, %v3995_v60  ;;  %6121 = vst.msk [vmem:[#allocation2 + $0xa0] sm:$0xff] %vm2084_vm2, %v6089_v63  ;;  %v6060_v46 = vld [vmem:[#allocation2 + $0xb8] sm:$0xff]  ;;  %v33172_v31 = vand.u32 4294901760, %v33120_v28  ;;  %v4059_v9 = vld [vmem:[#allocation2 + $0xf0] sm:$0xff]  ;;  %v33173_v28 = vand.u32 4294901760, %v33121_v37 }
 0x32f   : > { %21856 = vmatprep.mubr.f32.mxu0 %v33164_v8  ;;  %4120 = vst.msk [vmem:[#allocation2 + $0xd8] sm:$0xff] %vm2084_vm2, %v4088_v22  ;;  %v6092_v6 = vadd.f32 %v27731_v5, %v6060_v46  ;;  %v6059_v1 = vld [vmem:[#allocation2 + $0xb0] sm:$0xff]  ;;  %v4060_v17 = vld [vmem:[#allocation2 + $0xf8] sm:$0xff]  ;;  %v33177_v22 = vld [vmem:[#allocation99_spill] sm:$0xff] }
 0x330   : > { %4119 = vst.msk [vmem:[#allocation2 + $0xd0] sm:$0xff] %vm2084_vm2, %v4087_v40  ;;  %v21091_v45 = vpop.f32.mrb[60].mxu1  ;;  %v21394_v52 = vpop.f32.mrb[62].mxu0  ;;  %v6091_v62 = vadd.f32 %v6059_v1, %v27734_v21  ;;  %v33178_v60 = vand.u32 4294901760, %v33177_v22  ;;  %v33181_v14 = vld [vmem:[#allocation5_spill] sm:$0xff]  ;;  %v33185_v46 = vld [vmem:[#allocation8_spill] sm:$0xff] }
 0x331   : > { %21554 = vmatmul.mubr.f32.gmra.mrb[68].mxu1 %v33165_v4  ;;  %v4090_v36 = vadd.f32 %v21091_v45, %v4058_v2  ;;  %v4007_v20 = vpop.f32.mrb[61].mxu1  ;;  %v6027_v27 = vpop.f32.mrb[63].mxu0  ;;  %6124 = vst.msk [vmem:[#allocation2 + $0xb8] sm:$0xff] %vm2084_vm2, %v6092_v6  ;;  %v33182_v4 = vand.u32 4294901760, %v33181_v14  ;;  %v33186_v6 = vand.u32 4294901760, %v33185_v46  ;;  %v33187_v1 = vld [vmem:[#allocation31_spill] sm:$0xff] }
 0x332   : > { %21857 = vmatmul.mubr.f32.gmra.mrb[70].mxu0 %v33166_v11  ;;  %21556 = vmatprep.mubr.f32.mxu1 %v33167_v48  ;;  %v4089_v5 = vadd.f32 %v4057_v43, %v4007_v20  ;;  %6123 = vst.msk [vmem:[#allocation2 + $0xb0] sm:$0xff] %vm2084_vm2, %v6091_v62  ;;  %v33183_v11 = vld [vmem:[#allocation27_spill] sm:$0xff]  ;;  %v33188_v45 = vand.u32 4294901760, %v33187_v1  ;;  %v33189_v2 = vld [vmem:[#allocation32_spill] sm:$0xff]  ;;  %v33218_v22 = vld [vmem:[#allocation82_spill] sm:$0xff]  ;;  %v33232_v1 = vand.u32 4294901760, %v27384_v55 }
 0x333   : > { %21859 = vmatprep.mubr.f32.mxu0 %v33168_v51  ;;  %4122 = vst.msk [vmem:[#allocation2 + $0xe8] sm:$0xff] %vm2084_vm2, %v4090_v36  ;;  %v6061_v59 = vld [vmem:[#allocation2 + $0xc0] sm:$0xff]  ;;  %v33184_v40 = vand.u32 4294901760, %v33183_v11  ;;  %v33190_v62 = vand.u32 4294901760, %v33189_v2  ;;  %v33191_v36 = vld [vmem:[#allocation36_spill] sm:$0xff]  ;;  %v33222_v14 = vld [vmem:[#allocation90_spill] sm:$0xff] }
 0x334   : > { %v6062_v21 = vld [vmem:[#allocation2 + $0xc8] sm:$0xff]  ;;  %4121 = vst.msk [vmem:[#allocation2 + $0xe0] sm:$0xff] %vm2084_vm2, %v4089_v5  ;;  %v21094_v13 = vpop.f32.mrb[62].mxu1  ;;  %v6093_v8 = vadd.f32 %v6061_v59, %v27753_v39  ;;  %v33192_v20 = vand.u32 4294901760, %v33191_v36  ;;  %v33224_v11 = vand.u32 4294901760, %v33149_v16  ;;  %v33234_v16 = vand.u32 4294901760, %v27401_v18 }
 0x335   : > { %21557 = vmatmul.mubr.f32.gmra.mrb[70].mxu1 %v33169_v58  ;;  %v6094_v47 = vadd.f32 %v27749_v30, %v6062_v21  ;;  %v4092_v3 = vadd.f32 %v21094_v13, %v4060_v17  ;;  %v4019_v57 = vpop.f32.mrb[63].mxu1  ;;  %v33175_v30 = vand.u32 4294901760, %v33123_v23  ;;  %v33179_v23 = vld [vmem:[#allocation121_spill] sm:$0xff]  ;;  %v33197_v21 = vand.u32 4294901760, %v33135_v19  ;;  %v33200_v13 = vld [vmem:[#allocation52_spill] sm:$0xff] }
 0x336   : > { %21860 = vmatmul.mubr.f32.gmra.mrb[72].mxu0 %v33170_v41  ;;  %21559 = vmatprep.mubr.f32.mxu1 %v33171_v44  ;;  %v4091_v54 = vadd.f32 %v4059_v9, %v4019_v57  ;;  %6125 = vst.msk [vmem:[#allocation2 + $0xc0] sm:$0xff] %vm2084_vm2, %v6093_v8  ;;  %v6064_v39 = vld [vmem:[#allocation2 + $0xd8] sm:$0xff]  ;;  %v33180_v34 = vand.u32 4294901760, %v33179_v23  ;;  %v33193_v41 = vld [vmem:[#allocation12_spill] sm:$0xff]  ;;  %v33204_v8 = vld [vmem:[#allocation59_spill] sm:$0xff]  ;;  %v33235_v2 = vand.u32 4294901760, %v27430_v25 }
 0x337   : > { %21862 = vmatprep.mubr.f32.mxu0 %v33172_v31  ;;  %6126 = vst.msk [vmem:[#allocation2 + $0xc8] sm:$0xff] %vm2084_vm2, %v6094_v47  ;;  %4124 = vst.msk [vmem:[#allocation2 + $0xf8] sm:$0xff] %vm2084_vm2, %v4092_v3  ;;  %v6096_v37 = vadd.f32 %v27770_v10, %v6064_v39  ;;  %v6063_v63 = vld [vmem:[#allocation2 + $0xd0] sm:$0xff]  ;;  %v33194_v5 = vand.u32 4294901760, %v33193_v41  ;;  %v33195_v44 = vld [vmem:[#allocation44_spill] sm:$0xff]  ;;  %v33205_v3 = vand.u32 4294901760, %v33204_v8 }
 0x338   : > { %4123 = vst.msk [vmem:[#allocation2 + $0xf0] sm:$0xff] %vm2084_vm2, %v4091_v54  ;;  %v6095_v56 = vadd.f32 %v6063_v63, %v27773_v12  ;;  %v33196_v31 = vand.u32 4294901760, %v33195_v44  ;;  %v33198_v47 = vld [vmem:[#allocation16_spill] sm:$0xff]  ;;  %v33214_v39 = vld [vmem:[#allocation79_spill] sm:$0xff]  ;;  %v33237_v36 = vand.u32 4294901760, %v27445_v42  ;;  %v33240_v18 = vand.u32 4294901760, %v27470_v26 }
 0x339   : > { %21560 = vmatmul.mubr.f32.gmra.mrb[72].mxu1 %v33173_v28  ;;  %6128 = vst.msk [vmem:[#allocation2 + $0xd8] sm:$0xff] %vm2084_vm2, %v6096_v37  ;;  %v33199_v59 = vand.u32 4294901760, %v33198_v47  ;;  %v33206_v57 = vld [vmem:[#allocation60_spill] sm:$0xff]  ;;  %v33208_v28 = vld [vmem:[#allocation61_spill] sm:$0xff]  ;;  %v33215_v37 = vand.u32 4294901760, %v33214_v39  ;;  %v33220_v23 = vld [vmem:[#allocation83_spill] sm:$0xff] }
 0x33a   : > { %21863 = vmatmul.mubr.f32.gmra.mrb[74].mxu0 %v33174_v50  ;;  %21562 = vmatprep.mubr.f32.mxu1 %v33175_v30  ;;  %6127 = vst.msk [vmem:[#allocation2 + $0xd0] sm:$0xff] %vm2084_vm2, %v6095_v56  ;;  %v6066_v10 = vld [vmem:[#allocation2 + $0xe8] sm:$0xff]  ;;  %v33207_v9 = vand.u32 4294901760, %v33206_v57  ;;  %v33209_v19 = vand.u32 4294901760, %v33208_v28  ;;  %v33210_v50 = vld [vmem:[#allocation62_spill] sm:$0xff]  ;;  %v33241_v42 = vand.u32 4294901760, %v27480_v15 }
 0x33b   : > { %21865 = vmatprep.mubr.f32.mxu0 %v33176_v33  ;;  %v6098_v48 = vadd.f32 %v27788_v61, %v6066_v10  ;;  %v6065_v12 = vld [vmem:[#allocation2 + $0xe0] sm:$0xff]  ;;  %v33211_v54 = vand.u32 4294901760, %v33210_v50  ;;  %v33212_v30 = vld [vmem:[#allocation78_spill] sm:$0xff]  ;;  %v33216_v63 = vld [vmem:[#allocation80_spill] sm:$0xff] }
 0x33c   : > { %v6097_v51 = vadd.f32 %v6065_v12, %v6015_v29  ;;  %v33213_v33 = vand.u32 4294901760, %v33212_v30  ;;  %v33217_v56 = vand.u32 4294901760, %v33216_v63  ;;  %v18642_v55 = vld [vmem:[%s31339_s0 + $0x18] sm:$0xf]  ;;  %v18609_v25 = vld [vmem:[%s31339_s0 + $0x14] sm:$0xf] }
 0x33d   : > { %21563 = vmatmul.mubr.f32.gmra.mrb[74].mxu1 %v33178_v60  ;;  %6130 = vst.msk [vmem:[#allocation2 + $0xe8] sm:$0xff] %vm2084_vm2, %v6098_v48  ;;  %v33219_v60 = vand.u32 4294901760, %v33218_v22  ;;  %v33227_v48 = vld [vmem:[#allocation103_spill] sm:$0xff]  ;;  %v33244_v26 = vld [vmem:[#allocation29_spill] sm:$0xff]  ;;  %v33249_v41 = vld [vmem:[#allocation34_spill] sm:$0xff] }
 0x33e   : > { %21866 = vmatmul.mubr.f32.gmra.mrb[76].mxu0 %v33180_v34  ;;  %21565 = vmatprep.mubr.f32.mxu1 %v33182_v4  ;;  %6129 = vst.msk [vmem:[#allocation2 + $0xe0] sm:$0xff] %vm2084_vm2, %v6097_v51  ;;  %v6068_v43 = vld [vmem:[#allocation2 + $0xf8] sm:$0xff]  ;;  %v33221_v34 = vand.u32 4294901760, %v33220_v23  ;;  %v33223_v4 = vand.u32 4294901760, %v33222_v14  ;;  %v33228_v12 = vand.u32 4294901760, %v33227_v48  ;;  %v33256_v47 = vld [vmem:[#allocation55_spill] sm:$0xff] }
 0x33f   : > { %21868 = vmatprep.mubr.f32.mxu0 %v33184_v40  ;;  %v6100_v61 = vadd.f32 %v21394_v52, %v6068_v43  ;;  %v6067_v58 = vld [vmem:[#allocation2 + $0xf0] sm:$0xff]  ;;  %v33201_v52 = vand.u32 4294901760, %v33200_v13  ;;  %v33225_v40 = vld [vmem:[#allocation102_spill] sm:$0xff]  ;;  %v33267_v28 = vld [vmem:[#allocation87_spill] sm:$0xff] }
 0x340   : > { %v6099_v29 = vadd.f32 %v6067_v58, %v6027_v27  ;;  %v33202_v27 = vld [vmem:[#allocation57_spill] sm:$0xff]  ;;  %v33226_v10 = vand.u32 4294901760, %v33225_v40  ;;  %v33229_v51 = vld [vmem:[#allocation114_spill] sm:$0xff]  ;;  %v33271_v30 = vld [vmem:[#allocation24_spill] sm:$0xff] }
 0x341   : > { %21566 = vmatmul.mubr.f32.gmra.mrb[76].mxu1 %v33186_v6  ;;  %6132 = vst.msk [vmem:[#allocation2 + $0xf8] sm:$0xff] %vm2084_vm2, %v6100_v61  ;;  %v33203_v17 = vand.u32 4294901760, %v33202_v27  ;;  %v33230_v46 = vand.u32 4294901760, %v33229_v51  ;;  %v33231_v6 = vand.u32 4294901760, %v27381_v7  ;;  %v33238_v7 = vand.u32 4294901760, %v27448_v24  ;;  %v33242_v24 = vld [vmem:[#allocation28_spill] sm:$0xff] }
 0x342   : > { %21869 = vmatmul.mubr.f32.gmra.mrb[78].mxu0 %v33188_v45  ;;  %21568 = vmatprep.mubr.f32.mxu1 %v33190_v62  ;;  %6131 = vst.msk [vmem:[#allocation2 + $0xf0] sm:$0xff] %vm2084_vm2, %v6099_v29  ;;  %v33233_v45 = vand.u32 4294901760, %v27387_v38  ;;  %v33236_v62 = vand.u32 4294901760, %v27438_v53  ;;  %v33239_v38 = vand.u32 4294901760, %v27467_v49  ;;  %v12290_v53 = vsel %vm301_vm0, %v18642_v55, 0  ;;  %v33245_v61 = vld [vmem:[#allocation7_spill] sm:$0xff] }
 0x343   : > { %21871 = vmatprep.mubr.f32.mxu0 %v33192_v20  ;;  %v27927_v20 = vsel %vm301_vm0, %v18609_v25, 0  ;;  %v27929_v43 = vand.u32 4294901760, %v12290_v53  ;;  %v33243_v49 = vand.u32 4294901760, %v27491_v0  ;;  %v33246_v58 = vld [vmem:[#allocation30_spill] sm:$0xff]  ;;  %v33250_v0 = vld [vmem:[#allocation13_spill] sm:$0xff]  ;;  %v33261_v27 = vld [vmem:[#allocation107_spill] sm:$0xff] }
 0x344   : > { %v27938_v15 = vand.u32 4294901760, %v27927_v20  ;;  %v33248_v29 = vld [vmem:[#allocation10_spill] sm:$0xff]  ;;  %v33265_v57 = vld [vmem:[#allocation85_spill] sm:$0xff]  ;;  %v33279_v23 = vld [vmem:[#allocation40_spill] sm:$0xff] }
 0x345   : > { %21569 = vmatmul.mubr.f32.gmra.mrb[78].mxu1 %v33194_v5  ;;  %v33251_v5 = vld [vmem:[#allocation14_spill] sm:$0xff]  ;;  %v33269_v50 = vld [vmem:[#allocation89_spill] sm:$0xff]  ;;  %v33286_v48 = vld [vmem:[#allocation68_spill] sm:$0xff] }
 0x346   : > { %21872 = vmatmul.mubr.f32.gmra.mrb[80].mxu0 %v33196_v31  ;;  %21571 = vmatprep.mubr.f32.mxu1 %v33197_v21  ;;  %33247 = vst [vmem:[#allocation117_spill] sm:$0xff] %v27938_v15  ;;  %v33252_v44 = vld [vmem:[#allocation42_spill] sm:$0xff]  ;;  %v33254_v31 = vld [vmem:[#allocation45_spill] sm:$0xff]  ;;  %v33255_v21 = vld [vmem:[#allocation19_spill] sm:$0xff]  ;;  %v28000_v25 = vsub.f32 %v27927_v20, %v27938_v15 }
 0x347   : > { %21874 = vmatprep.mubr.f32.mxu0 %v33199_v59  ;;  %v33257_v59 = vld [vmem:[#allocation56_spill] sm:$0xff]  ;;  %v33258_v13 = vld [vmem:[#allocation58_spill] sm:$0xff]  ;;  %v33273_v39 = vld [vmem:[#allocation25_spill] sm:$0xff] }
 0x348   : > { %v33263_v8 = vld [vmem:[#allocation70_spill] sm:$0xff]  ;;  %v33275_v63 = vld [vmem:[#allocation9_spill] sm:$0xff]  ;;  %v33288_v51 = vld [vmem:[#allocation71_spill] sm:$0xff] }
 0x349   : > { %21572 = vmatmul.mubr.f32.gmra.mrb[80].mxu1 %v33201_v52  ;;  %v33260_v52 = vld [vmem:[#allocation106_spill] sm:$0xff]  ;;  %v33281_v14 = vld [vmem:[#allocation17_spill] sm:$0xff]  ;;  %v33297_v55 = vld [vmem:[#allocation119_spill] sm:$0xff] }
 0x34a   : > { %21875 = vmatmul.mubr.f32.gmra.mrb[82].mxu0 %v33203_v17  ;;  %21574 = vmatprep.mubr.f32.mxu1 %v33205_v3  ;;  %v33262_v17 = vld [vmem:[#allocation108_spill] sm:$0xff]  ;;  %v33277_v22 = vld [vmem:[#allocation38_spill] sm:$0xff]  ;;  %v33307_v20 = vld [vmem:[#allocation113_spill] sm:$0xff] }
 0x34b   : > { %21877 = vmatprep.mubr.f32.mxu0 %v33207_v9  ;;  %v33264_v3 = vld [vmem:[#allocation72_spill] sm:$0xff]  ;;  %v33266_v9 = vld [vmem:[#allocation86_spill] sm:$0xff] }
 0x34c   : > { %v33284_v40 = vld [vmem:[#allocation50_spill] sm:$0xff] }
 0x34d   : > { %21575 = vmatmul.mubr.f32.gmra.mrb[82].mxu1 %v33209_v19  ;;  %v33268_v19 = vld [vmem:[#allocation88_spill] sm:$0xff] }
 0x34e   : > { %21878 = vmatmul.mubr.f32.gmra.mrb[84].mxu0 %v33211_v54  ;;  %21577 = vmatprep.mubr.f32.mxu1 %v33213_v33  ;;  %v33270_v54 = vld [vmem:[#allocation101_spill] sm:$0xff]  ;;  %v33272_v33 = vld [vmem:[#allocation3_spill] sm:$0xff] }
 0x34f   : > { %21880 = vmatprep.mubr.f32.mxu0 %v33215_v37  ;;  %v33274_v37 = vld [vmem:[#allocation26_spill] sm:$0xff] }
 0x351   : > { %21578 = vmatmul.mubr.f32.gmra.mrb[84].mxu1 %v33217_v56  ;;  %v33276_v56 = vld [vmem:[#allocation33_spill] sm:$0xff] }
 0x352   : > { %21881 = vmatmul.mubr.f32.gmra.mrb[86].mxu0 %v33219_v60  ;;  %21580 = vmatprep.mubr.f32.mxu1 %v33221_v34  ;;  %v33278_v60 = vld [vmem:[#allocation39_spill] sm:$0xff]  ;;  %v33280_v34 = vld [vmem:[#allocation46_spill] sm:$0xff] }
 0x353   : > { %21883 = vmatprep.mubr.f32.mxu0 %v33223_v4  ;;  %v33282_v4 = vld [vmem:[#allocation49_spill] sm:$0xff] }
 0x355   : > { %21581 = vmatmul.mubr.f32.gmra.mrb[86].mxu1 %v33224_v11  ;;  %v33283_v11 = vld [vmem:[#allocation20_spill] sm:$0xff] }
 0x356   : > { %21884 = vmatmul.mubr.f32.gmra.mrb[88].mxu0 %v33226_v10  ;;  %21583 = vmatprep.mubr.f32.mxu1 %v33228_v12  ;;  %v33285_v10 = vld [vmem:[#allocation51_spill] sm:$0xff]  ;;  %v33287_v12 = vld [vmem:[#allocation69_spill] sm:$0xff] }
 0x357   : > { %21886 = vmatprep.mubr.f32.mxu0 %v33230_v46  ;;  %v33289_v46 = vld [vmem:[#allocation73_spill] sm:$0xff] }
 0x359   : > { %21584 = vmatmul.mubr.f32.gmra.mrb[88].mxu1 %v33231_v6  ;;  %v33290_v6 = vld [vmem:[#allocation74_spill] sm:$0xff] }
 0x35a   : > { %21887 = vmatmul.mubr.f32.gmra.mrb[90].mxu0 %v33232_v1  ;;  %21586 = vmatprep.mubr.f32.mxu1 %v33233_v45  ;;  %v33291_v1 = vld [vmem:[#allocation81_spill] sm:$0xff]  ;;  %v33292_v45 = vld [vmem:[#allocation91_spill] sm:$0xff] }
 0x35b   : > { %21889 = vmatprep.mubr.f32.mxu0 %v33234_v16  ;;  %v33293_v16 = vld [vmem:[#allocation92_spill] sm:$0xff] }
 0x35d   : > { %21587 = vmatmul.mubr.f32.gmra.mrb[90].mxu1 %v33235_v2  ;;  %v33294_v2 = vld [vmem:[#allocation93_spill] sm:$0xff] }
 0x35e   : > { %21890 = vmatmul.mubr.f32.gmra.mrb[92].mxu0 %v33236_v62  ;;  %21589 = vmatprep.mubr.f32.mxu1 %v33237_v36  ;;  %v33295_v62 = vld [vmem:[#allocation94_spill] sm:$0xff]  ;;  %v27992_v36 = vsub.f32 %v12290_v53, %v27929_v43 }
 0x35f   : > { %21892 = vmatprep.mubr.f32.mxu0 %v33238_v7  ;;  %v33296_v7 = vld [vmem:[#allocation118_spill] sm:$0xff] }
 0x360   : > { %v33303_v53 = vld [vmem:[#allocation110_spill] sm:$0xff] }
 0x361   : > { %21590 = vmatmul.mubr.f32.gmra.mrb[92].mxu1 %v33239_v38  ;;  %v33298_v38 = vld [vmem:[#allocation120_spill] sm:$0xff] }
 0x362   : > { %21893 = vmatmul.mubr.f32.gmra.mrb[94].mxu0 %v33240_v18  ;;  %21592 = vmatprep.mubr.f32.mxu1 %v33241_v42  ;;  %v33299_v18 = vld [vmem:[#allocation122_spill] sm:$0xff]  ;;  %v28003_v42 = vand.u32 4294901760, %v27992_v36 }
 0x363   : > { %21897 = vmatprep.mubr.f32.mxu0 %v33242_v24 }
 0x364   : > { %33300 = vst [vmem:[#allocation21_spill] sm:$0xff] %v28003_v42 }
 0x365   : > { %21593 = vmatmul.mubr.f32.gmra.mrb[94].mxu1 %v33243_v49  ;;  %v33301_v49 = vld [vmem:[#allocation104_spill] sm:$0xff] }
 0x366   : > { %21898 = vmatmul.mubr.f32.vlgmr.msra.gmra.mrb[64].mxu0 %v33244_v26  ;;  %21597 = vmatprep.mubr.f32.mxu1 %v33245_v61 }
 0x367   : > { %21900 = vmatprep.mubr.f32.mxu0 %v33246_v58  ;;  %21946 = vmatpush3.msra.mxu0 %v26412_v32  ;;  %v33253_v32 = vld [vmem:[#allocation43_spill] sm:$0xff] }
 0x368   : > { %22295 = vmatprep.subr.mxu0 %v27929_v43 }
 0x369   : > { %21598 = vmatmul.mubr.f32.vlgmr.msra.gmra.mrb[64].mxu1 %v33248_v29 }
 0x36a   : > { %21901 = vmatmul.mubr.f32.gmra.mrb[66].mxu0 %v33249_v41  ;;  %21646 = vmatpush3.msra.mxu1 %v33065_v35  ;;  %v33259_v35 = vld [vmem:[#allocation63_spill] sm:$0xff] }
 0x36b   : > { %21600 = vmatprep.mubr.f32.mxu1 %v33250_v0  ;;  %21903 = vmatprep.mubr.f32.mxu0 %v33251_v5 }
 0x36c   : > { %21995 = vmatprep.subr.mxu1 %v27938_v15 }
 0x36d   : > { %21601 = vmatmul.mubr.f32.gmra.mrb[66].mxu1 %v33252_v44 }
 0x36e   : > { %21904 = vmatmul.mubr.f32.gmra.mrb[68].mxu0 %v33253_v32  ;;  %21603 = vmatprep.mubr.f32.mxu1 %v33254_v31 }
 0x36f   : > { %21906 = vmatprep.mubr.f32.mxu0 %v33255_v21 }
 0x371   : > { %21604 = vmatmul.mubr.f32.gmra.mrb[68].mxu1 %v33256_v47 }
 0x372   : > { %21907 = vmatmul.mubr.f32.gmra.mrb[70].mxu0 %v33257_v59  ;;  %21606 = vmatprep.mubr.f32.mxu1 %v33258_v13 }
 0x373   : > { %21909 = vmatprep.mubr.f32.mxu0 %v33259_v35 }
 0x375   : > { %21607 = vmatmul.mubr.f32.gmra.mrb[70].mxu1 %v33260_v52 }
 0x376   : > { %21910 = vmatmul.mubr.f32.gmra.mrb[72].mxu0 %v33261_v27  ;;  %21609 = vmatprep.mubr.f32.mxu1 %v33262_v17 }
 0x377   : > { %21912 = vmatprep.mubr.f32.mxu0 %v33263_v8 }
 0x379   : > { %21610 = vmatmul.mubr.f32.gmra.mrb[72].mxu1 %v33264_v3 }
 0x37a   : > { %21913 = vmatmul.mubr.f32.gmra.mrb[74].mxu0 %v33265_v57  ;;  %21612 = vmatprep.mubr.f32.mxu1 %v33266_v9 }
 0x37b   : > { %21915 = vmatprep.mubr.f32.mxu0 %v33267_v28 }
 0x37d   : > { %21613 = vmatmul.mubr.f32.gmra.mrb[74].mxu1 %v33268_v19 }
 0x37e   : > { %21916 = vmatmul.mubr.f32.gmra.mrb[76].mxu0 %v33269_v50  ;;  %21615 = vmatprep.mubr.f32.mxu1 %v33270_v54 }
 0x37f   : > { %21918 = vmatprep.mubr.f32.mxu0 %v33271_v30 }
 0x381   : > { %21616 = vmatmul.mubr.f32.gmra.mrb[76].mxu1 %v33272_v33 }
 0x382   : > { %21919 = vmatmul.mubr.f32.gmra.mrb[78].mxu0 %v33273_v39  ;;  %21618 = vmatprep.mubr.f32.mxu1 %v33274_v37 }
 0x383   : > { %21921 = vmatprep.mubr.f32.mxu0 %v33275_v63 }
 0x385   : > { %21619 = vmatmul.mubr.f32.gmra.mrb[78].mxu1 %v33276_v56 }
 0x386   : > { %21922 = vmatmul.mubr.f32.gmra.mrb[80].mxu0 %v33277_v22  ;;  %21621 = vmatprep.mubr.f32.mxu1 %v33278_v60 }
 0x387   : > { %21924 = vmatprep.mubr.f32.mxu0 %v33279_v23 }
 0x389   : > { %21622 = vmatmul.mubr.f32.gmra.mrb[80].mxu1 %v33280_v34 }
 0x38a   : > { %21925 = vmatmul.mubr.f32.gmra.mrb[82].mxu0 %v33281_v14  ;;  %21624 = vmatprep.mubr.f32.mxu1 %v33282_v4 }
 0x38b   : > { %21927 = vmatprep.mubr.f32.mxu0 %v33283_v11 }
 0x38d   : > { %21625 = vmatmul.mubr.f32.gmra.mrb[82].mxu1 %v33284_v40 }
 0x38e   : > { %21928 = vmatmul.mubr.f32.gmra.mrb[84].mxu0 %v33285_v10  ;;  %21627 = vmatprep.mubr.f32.mxu1 %v33286_v48 }
 0x38f   : > { %21930 = vmatprep.mubr.f32.mxu0 %v33287_v12 }
 0x391   : > { %21628 = vmatmul.mubr.f32.gmra.mrb[84].mxu1 %v33288_v51 }
 0x392   : > { %21931 = vmatmul.mubr.f32.gmra.mrb[86].mxu0 %v33289_v46  ;;  %21630 = vmatprep.mubr.f32.mxu1 %v33290_v6 }
 0x393   : > { %21933 = vmatprep.mubr.f32.mxu0 %v33291_v1 }
 0x395   : > { %21631 = vmatmul.mubr.f32.gmra.mrb[86].mxu1 %v33292_v45 }
 0x396   : > { %21934 = vmatmul.mubr.f32.gmra.mrb[88].mxu0 %v33293_v16  ;;  %21633 = vmatprep.mubr.f32.mxu1 %v33294_v2  ;;  %v33308_v2 = vld [vmem:[#allocation115_spill] sm:$0xff] }
 0x397   : > { %21936 = vmatprep.mubr.f32.mxu0 %v33295_v62  ;;  %v33302_v62 = vld [vmem:[#allocation105_spill] sm:$0xff] }
 0x399   : > { %21634 = vmatmul.mubr.f32.gmra.mrb[88].mxu1 %v33296_v7  ;;  %v33304_v7 = vld [vmem:[#allocation111_spill] sm:$0xff] }
 0x39a   : > { %21937 = vmatmul.mubr.f32.gmra.mrb[90].mxu0 %v33297_v55  ;;  %21636 = vmatprep.mubr.f32.mxu1 %v33298_v38  ;;  %v28010_v55 = vand.u32 4294901760, %v28000_v25  ;;  %v33306_v38 = vld [vmem:[#allocation112_spill] sm:$0xff] }
 0x39b   : > { %21939 = vmatprep.mubr.f32.mxu0 %v33299_v18  ;;  %v12682_v18 = vsub.f32 %v27992_v36, %v28003_v42 }
 0x39c   : > { %33305 = vst [vmem:[#allocation22_spill] sm:$0xff] %v28010_v55 }
 0x39d   : > { %21637 = vmatmul.mubr.f32.gmra.mrb[90].mxu1 %v33301_v49 }
 0x39e   : > { %21940 = vmatmul.mubr.f32.gmra.mrb[92].mxu0 %v33302_v62  ;;  %21639 = vmatprep.mubr.f32.mxu1 %v33303_v53  ;;  %v10673_v62 = vsub.f32 %v28000_v25, %v28010_v55  ;;  %v28020_v53 = vand.u32 4294901760, %v12682_v18  ;;  %v18580_v18 = vld [vmem:[%s24699_s19 + $0x3a] sm:$0xff]  ;;  %v18583_v55 = vld [vmem:[%s24699_s19 + $0x62] sm:$0xff] }
 0x39f   : > { %21942 = vmatprep.mubr.f32.mxu0 %v33304_v7  ;;  %v33309_v7 = vld [vmem:[#allocation116_spill] sm:$0xff] }
 0x3a0   : > { %v28027_v42 = vand.u32 4294901760, %v10673_v62  ;;  %v18614_v62 = vld [vmem:[%s24699_s19 + $0x60] sm:$0xff] }
 0x3a1   : > { %21640 = vmatmul.mubr.f32.gmra.mrb[92].mxu1 %v33306_v38 }
 0x3a2   : > { %21943 = vmatmul.mubr.f32.gmra.mrb[94].mxu0 %v33307_v20  ;;  %21642 = vmatprep.mubr.f32.mxu1 %v33308_v2 }
 0x3a3   : > { %21947 = vmatprep.mubr.f32.mxu0 %v33242_v24  ;;  %v18610_v24 = vld [vmem:[%s24699_s19 + $0x30] sm:$0xff] }
 0x3a5   : > { %21643 = vmatmul.mubr.f32.gmra.mrb[94].mxu1 %v33309_v7 }
 0x3a6   : > { %21948 = vmatmul.mubr.f32.vlgmr.msra.gmra.mrb[64].mxu0 %v33244_v26  ;;  %21647 = vmatprep.mubr.f32.mxu1 %v33245_v61  ;;  %v12194_v26 = vsel %vm204_vm1, %v18610_v24, 0  ;;  %v18611_v61 = vld [vmem:[%s24699_s19 + $0x38] sm:$0xff] }
 0x3a7   : > { %21950 = vmatprep.mubr.f32.mxu0 %v33246_v58  ;;  %22296 = vmatpush3.msra.mxu0 %v27929_v43  ;;  %v18577_v58 = vld [vmem:[%s24699_s19 + $0x1a] sm:$0xff] }
 0x3a8   : > { %22345 = vmatprep.subr.mxu0 %v28020_v53 }
 0x3a9   : > { %21648 = vmatmul.mubr.f32.vlgmr.msra.gmra.mrb[64].mxu1 %v33248_v29  ;;  %v18612_v29 = vld [vmem:[%s24699_s19 + $0x48] sm:$0xff] }
 0x3aa   : > { %21951 = vmatmul.mubr.f32.gmra.mrb[66].mxu0 %v33249_v41  ;;  %21996 = vmatpush3.msra.mxu1 %v27938_v15  ;;  %v18578_v41 = vld [vmem:[%s24699_s19 + $0x22] sm:$0xff] }
 0x3ab   : > { %21650 = vmatprep.mubr.f32.mxu1 %v33250_v0  ;;  %21953 = vmatprep.mubr.f32.mxu0 %v33251_v5  ;;  %v18613_v0 = vld [vmem:[%s24699_s19 + $0x50] sm:$0xff]  ;;  %v28051_v5 = vand.u32 4294901760, %v12194_v26 }
 0x3ac   : > { %22045 = vmatprep.subr.mxu1 %v28027_v42 }
 0x3ad   : > { %21651 = vmatmul.mubr.f32.gmra.mrb[66].mxu1 %v33252_v44  ;;  %33310 = vst [vmem:[#allocation23_spill] sm:$0xff] %v28051_v5  ;;  %v12197_v44 = vsel %vm204_vm1, %v18611_v61, 0  ;;  %v12206_v61 = vsel %vm204_vm1, %v18614_v62, 0 }
 0x3ae   : > { %21954 = vmatmul.mubr.f32.gmra.mrb[68].mxu0 %v33253_v32  ;;  %21653 = vmatprep.mubr.f32.mxu1 %v33254_v31  ;;  %v10185_v32 = vsel %vm204_vm1, %v18577_v58, 0  ;;  %v12200_v31 = vsel %vm204_vm1, %v18612_v29, 0  ;;  %v18615_v58 = vld [vmem:[%s24699_s19 + $0x68] sm:$0xff] }
 0x3af   : > { %21956 = vmatprep.mubr.f32.mxu0 %v33255_v21  ;;  %v10188_v21 = vsel %vm204_vm1, %v18578_v41, 0 }
 0x3b1   : > { %21654 = vmatmul.mubr.f32.gmra.mrb[68].mxu1 %v33256_v47  ;;  %v12203_v47 = vsel %vm204_vm1, %v18613_v0, 0 }
 0x3b2   : > { %21957 = vmatmul.mubr.f32.gmra.mrb[70].mxu0 %v33257_v59  ;;  %21656 = vmatprep.mubr.f32.mxu1 %v33258_v13  ;;  %v28062_v59 = vand.u32 4294901760, %v12197_v44  ;;  %v28065_v13 = vsub.f32 %v12194_v26, %v28051_v5 }
 0x3b3   : > { %21959 = vmatprep.mubr.f32.mxu0 %v33259_v35  ;;  %v28067_v35 = vand.u32 4294901760, %v10185_v32 }
 0x3b4   : > { %33311 = vst [vmem:[#allocation35_spill] sm:$0xff] %v28062_v59  ;;  %33312 = vst [vmem:[#allocation11_spill] sm:$0xff] %v28065_v13  ;;  %v28083_v24 = vsub.f32 %v12197_v44, %v28062_v59 }
 0x3b5   : > { %21657 = vmatmul.mubr.f32.gmra.mrb[70].mxu1 %v33260_v52  ;;  %33313 = vst [vmem:[#allocation4_spill] sm:$0xff] %v28067_v35  ;;  %v28069_v52 = vand.u32 4294901760, %v12200_v31  ;;  %v28091_v29 = vsub.f32 %v10185_v32, %v28067_v35  ;;  %v28109_v32 = vand.u32 4294901760, %v12206_v61 }
 0x3b6   : > { %21960 = vmatmul.mubr.f32.gmra.mrb[72].mxu0 %v33261_v27  ;;  %21659 = vmatprep.mubr.f32.mxu1 %v33262_v17  ;;  %v18579_v27 = vld [vmem:[%s24699_s19 + $0x32] sm:$0xff]  ;;  %v28075_v17 = vand.u32 4294901760, %v10188_v21  ;;  %33317 = vst [vmem:[#allocation47_spill] sm:$0xff] %v28083_v24 }
 0x3b7   : > { %21962 = vmatprep.mubr.f32.mxu0 %v33263_v8  ;;  %33314 = vst [vmem:[#allocation37_spill] sm:$0xff] %v28069_v52  ;;  %v28077_v8 = vand.u32 4294901760, %v12203_v47  ;;  %v10191_v26 = vsel %vm204_vm1, %v18579_v27, 0  ;;  %33318 = vst [vmem:[#allocation6_spill] sm:$0xff] %v28091_v29  ;;  %v18582_v27 = vld [vmem:[%s24699_s19 + $0x52] sm:$0xff] }
 0x3b8   : > { %33315 = vst [vmem:[#allocation41_spill] sm:$0xff] %v28075_v17  ;;  %v28100_v41 = vsub.f32 %v10188_v21, %v28075_v17  ;;  %v28107_v44 = vand.u32 4294901760, %v10191_v26  ;;  %33323 = vst [vmem:[#allocation65_spill] sm:$0xff] %v28109_v32 }
 0x3b9   : > { %21660 = vmatmul.mubr.f32.gmra.mrb[72].mxu1 %v33264_v3  ;;  %33316 = vst [vmem:[#allocation18_spill] sm:$0xff] %v28077_v8  ;;  %v18581_v3 = vld [vmem:[%s24699_s19 + $0x4a] sm:$0xff]  ;;  %v28103_v0 = vsub.f32 %v12203_v47, %v28077_v8 }
 0x3ba   : > { %21963 = vmatmul.mubr.f32.gmra.mrb[74].mxu0 %v33265_v57  ;;  %21662 = vmatprep.mubr.f32.mxu1 %v33266_v9  ;;  %v31863_v57 = vand.u32 4294901760, %v28065_v13  ;;  %v28094_v9 = vsub.f32 %v12200_v31, %v28069_v52  ;;  %33320 = vst [vmem:[#allocation53_spill] sm:$0xff] %v28100_v41  ;;  %33322 = vst [vmem:[#allocation64_spill] sm:$0xff] %v28107_v44  ;;  %v18616_v31 = vld [vmem:[%s24699_s19 + $0x78] sm:$0xff] }
 0x3bb   : > { %21965 = vmatprep.mubr.f32.mxu0 %v33267_v28  ;;  %v10194_v28 = vsel %vm204_vm1, %v18580_v18, 0  ;;  %33321 = vst [vmem:[#allocation54_spill] sm:$0xff] %v28103_v0  ;;  %v18617_v18 = vld [vmem:[%s24699_s19 + $0x80] sm:$0xff] }
 0x3bc   : > { %33319 = vst [vmem:[#allocation48_spill] sm:$0xff] %v28094_v9  ;;  %v28114_v21 = vand.u32 4294901760, %v10194_v28  ;;  %v28120_v47 = vsub.f32 %v28065_v13, %v31863_v57  ;;  %v12212_v57 = vsel %vm204_vm1, %v18616_v31, 0  ;;  %v10203_v31 = vsel %vm204_vm1, %v18583_v55, 0  ;;  %v18585_v13 = vld [vmem:[%s24699_s19 + $0x7a] sm:$0xff] }
 0x3bd   : > { %21663 = vmatmul.mubr.f32.gmra.mrb[74].mxu1 %v33268_v19  ;;  %v12209_v19 = vsel %vm204_vm1, %v18615_v58, 0  ;;  %v18618_v58 = vld [vmem:[%s24699_s19 + $0x90] sm:$0xff]  ;;  %v28189_v55 = vand.u32 4294901760, %v10203_v31 }
 0x3be   : > { %21966 = vmatmul.mubr.f32.gmra.mrb[76].mxu0 %v33269_v50  ;;  %21665 = vmatprep.mubr.f32.mxu1 %v33270_v54  ;;  %v10197_v50 = vsel %vm204_vm1, %v18581_v3, 0  ;;  %33324 = vst [vmem:[#allocation66_spill] sm:$0xff] %v28114_v21  ;;  %v28131_v15 = vand.u32 4294901760, %v12209_v19  ;;  %v28147_v3 = vsub.f32 %v10194_v28, %v28114_v21  ;;  %v12215_v54 = vsel %vm204_vm1, %v18617_v18, 0 }
 0x3bf   : > { %21968 = vmatprep.mubr.f32.mxu0 %v33271_v30  ;;  %v28133_v8 = vand.u32 4294901760, %v10197_v50  ;;  %v28140_v30 = vsub.f32 %v10191_v26, %v28107_v44  ;;  %v33331_v26 = vand.u32 4294901760, %v28091_v29  ;;  %v33332_v28 = vand.u32 4294901760, %v28094_v9  ;;  %33339 = vst [vmem:[#allocation15_spill] sm:$0xff] %v28189_v55 }
 0x3c0   : > { %33325 = vst [vmem:[#allocation67_spill] sm:$0xff] %v28131_v15  ;;  %33329 = vst [vmem:[#allocation76_spill] sm:$0xff] %v28147_v3  ;;  %v28167_v18 = vand.u32 4294901760, %v12212_v57 }
 0x3c1   : > { %21666 = vmatmul.mubr.f32.gmra.mrb[76].mxu1 %v33272_v33  ;;  %33326 = vst [vmem:[#allocation100_spill] sm:$0xff] %v28133_v8  ;;  %33327 = vst [vmem:[#allocation109_spill] sm:$0xff] %v28140_v30  ;;  %v28143_v33 = vsub.f32 %v12206_v61, %v28109_v32  ;;  %v28160_v61 = vsub.f32 %v28091_v29, %v33331_v26 }
 0x3c2   : > { %21969 = vmatmul.mubr.f32.gmra.mrb[78].mxu0 %v33273_v39  ;;  %21668 = vmatprep.mubr.f32.mxu1 %v33274_v37  ;;  %v10200_v39 = vsel %vm204_vm1, %v18582_v27, 0  ;;  %v12218_v37 = vsel %vm204_vm1, %v18618_v58, 0  ;;  %v28165_v27 = vsub.f32 %v28094_v9, %v33332_v28  ;;  %33333 = vst [vmem:[#allocation77_spill] sm:$0xff] %v28167_v18  ;;  %v28173_v58 = vsub.f32 %v12209_v19, %v28131_v15 }
 0x3c3   : > { %21971 = vmatprep.mubr.f32.mxu0 %v33275_v63  ;;  %33328 = vst [vmem:[#allocation75_spill] sm:$0xff] %v28143_v33  ;;  %v33330_v63 = vand.u32 4294901760, %v28083_v24  ;;  %v28178_v26 = vand.u32 4294901760, %v10200_v39  ;;  %v33337_v28 = vand.u32 4294901760, %v28100_v41  ;;  %v28191_v19 = vand.u32 4294901760, %v12218_v37 }
 0x3c4   : > { %33334 = vst [vmem:[#allocation84_spill] sm:$0xff] %v28173_v58  ;;  %v33341_v9 = vand.u32 4294901760, %v28103_v0 }
 0x3c5   : > { %v28155_v62 = vsub.f32 %v28083_v24, %v33330_v63  ;;  %21669 = vmatmul.mubr.f32.gmra.mrb[78].mxu1 %v33276_v56  ;;  %v28176_v63 = vsub.f32 %v10197_v50, %v28133_v8  ;;  %33336 = vst [vmem:[#allocation96_spill] sm:$0xff] %v28178_v26  ;;  %v28185_v56 = vsub.f32 %v28100_v41, %v33337_v28  ;;  %33340 = vst [vmem:[#allocation98_spill] sm:$0xff] %v28191_v19  ;;  %v18584_v50 = vld [vmem:[%s24699_s19 + $0x6a] sm:$0xff]  ;;  %v18619_v41 = vld [vmem:[%s24699_s19 + $0x98] sm:$0xff] }
 0x3c6   : > { %21972 = vmatmul.mubr.f32.gmra.mrb[80].mxu0 %v33277_v22  ;;  %21671 = vmatprep.mubr.f32.mxu1 %v33278_v60  ;;  %v28187_v22 = vand.u32 4294901760, %v12215_v54  ;;  %v28197_v60 = vsub.f32 %v28103_v0, %v33341_v9  ;;  %v28206_v8 = vsub.f32 %v12212_v57, %v28167_v18  ;;  %v28213_v28 = vsub.f32 %v10200_v39, %v28178_v26  ;;  %v18620_v39 = vld [vmem:[%s24699_s19 + $0xa8] sm:$0xff] }
 0x3c7   : > { %33335 = vst [vmem:[#allocation95_spill] sm:$0xff] %v28176_v63  ;;  %21974 = vmatprep.mubr.f32.mxu0 %v33279_v23  ;;  %v31878_v23 = vand.u32 4294901760, %v28140_v30  ;;  %v10206_v24 = vsel %vm204_vm1, %v18584_v50, 0  ;;  %v28225_v57 = vsub.f32 %v10203_v31, %v28189_v55  ;;  %v28228_v29 = vsub.f32 %v12218_v37, %v28191_v19  ;;  %v18586_v37 = vld [vmem:[%s24699_s19 + $0x82] sm:$0xff]  ;;  %v33368_v19 = vld [vmem:[#allocation94_spill] sm:$0xff] }
 0x3c8   : > { %33338 = vst [vmem:[#allocation97_spill] sm:$0xff] %v28187_v22  ;;  %33342 = vst [vmem:[#allocation99_spill] sm:$0xff] %v28206_v8  ;;  %v28249_v0 = vand.u32 4294901760, %v10206_v24  ;;  %v12221_v50 = vsel %vm204_vm1, %v18619_v41, 0  ;;  %v12224_v41 = vsel %vm204_vm1, %v18620_v39, 0 }
 0x3c9   : > { %21672 = vmatmul.mubr.f32.gmra.mrb[80].mxu1 %v33280_v34  ;;  %33343 = vst [vmem:[#allocation121_spill] sm:$0xff] %v28213_v28  ;;  %33345 = vst [vmem:[#allocation27_spill] sm:$0xff] %v28225_v57  ;;  %v28275_v39 = vand.u32 4294901760, %v12221_v50 }
 0x3ca   : > { %21975 = vmatmul.mubr.f32.gmra.mrb[82].mxu0 %v33281_v14  ;;  %21674 = vmatprep.mubr.f32.mxu1 %v33282_v4  ;;  %v28222_v14 = vsub.f32 %v12215_v54, %v28187_v22  ;;  %33346 = vst [vmem:[#allocation8_spill] sm:$0xff] %v28228_v29  ;;  %v28235_v4 = vsub.f32 %v28140_v30, %v31878_v23  ;;  %v33348_v54 = vand.u32 4294901760, %v28147_v3  ;;  %33349 = vst [vmem:[#allocation31_spill] sm:$0xff] %v28249_v0 }
 0x3cb   : > { %21977 = vmatprep.mubr.f32.mxu0 %v33283_v11  ;;  %v33347_v11 = vand.u32 4294901760, %v28143_v33  ;;  %v10209_v23 = vsel %vm204_vm1, %v18585_v13, 0  ;;  %33352 = vst [vmem:[#allocation32_spill] sm:$0xff] %v28275_v39  ;;  %v28287_v13 = vsub.f32 %v10206_v24, %v28249_v0  ;;  %v33357_v30 = vand.u32 4294901760, %v28213_v28 }
 0x3cc   : > { %33344 = vst [vmem:[#allocation5_spill] sm:$0xff] %v28222_v14  ;;  %v28245_v31 = vsub.f32 %v28147_v3, %v33348_v54  ;;  %v33351_v54 = vand.u32 4294901760, %v28176_v63  ;;  %v18587_v3 = vld [vmem:[%s24699_s19 + $0x92] sm:$0xff] }
 0x3cd   : > { %v28240_v34 = vsub.f32 %v28143_v33, %v33347_v11  ;;  %21675 = vmatmul.mubr.f32.gmra.mrb[82].mxu1 %v33284_v40  ;;  %v33350_v11 = vand.u32 4294901760, %v28173_v58  ;;  %v33354_v40 = vand.u32 4294901760, %v28206_v8  ;;  %33355 = vst [vmem:[#allocation12_spill] sm:$0xff] %v28287_v13 }
 0x3ce   : > { %21978 = vmatmul.mubr.f32.gmra.mrb[84].mxu0 %v33285_v10  ;;  %v28263_v9 = vsub.f32 %v28176_v63, %v33351_v54  ;;  %21677 = vmatprep.mubr.f32.mxu1 %v33286_v48  ;;  %v28277_v63 = vand.u32 4294901760, %v10209_v23  ;;  %v18621_v48 = vld [vmem:[%s24699_s19 + $0xb0] sm:$0xff]  ;;  %v18622_v54 = vld [vmem:[%s24699_s19 + $0xc0] sm:$0xff] }
 0x3cf   : > { %v28258_v33 = vsub.f32 %v28173_v58, %v33350_v11  ;;  %21980 = vmatprep.mubr.f32.mxu0 %v33287_v12  ;;  %v10212_v11 = vsel %vm204_vm1, %v18586_v37, 0  ;;  %v28284_v10 = vsub.f32 %v28206_v8, %v33354_v40  ;;  %v28289_v37 = vand.u32 4294901760, %v12224_v41  ;;  %v18588_v8 = vld [vmem:[%s24699_s19 + $0x9a] sm:$0xff] }
 0x3d0   : > { %33353 = vst [vmem:[#allocation36_spill] sm:$0xff] %v28277_v63  ;;  %v28300_v40 = vsub.f32 %v28213_v28, %v33357_v30  ;;  %v28302_v24 = vand.u32 4294901760, %v10212_v11  ;;  %v33360_v58 = vand.u32 4294901760, %v28225_v57  ;;  %v33361_v30 = vand.u32 4294901760, %v28228_v29 }
 0x3d1   : > { %33356 = vst [vmem:[#allocation44_spill] sm:$0xff] %v28289_v37  ;;  %21678 = vmatmul.mubr.f32.gmra.mrb[84].mxu1 %v33288_v51  ;;  %v33359_v51 = vand.u32 4294901760, %v28222_v14  ;;  %v12227_v0 = vsel %vm204_vm1, %v18621_v48, 0  ;;  %v10218_v48 = vsel %vm204_vm1, %v18588_v8, 0 }
 0x3d2   : > { %21981 = vmatmul.mubr.f32.gmra.mrb[86].mxu0 %v33289_v46  ;;  %33358 = vst [vmem:[#allocation16_spill] sm:$0xff] %v28302_v24  ;;  %21680 = vmatprep.mubr.f32.mxu1 %v33290_v6  ;;  %v28315_v12 = vsub.f32 %v28225_v57, %v33360_v58  ;;  %v28320_v28 = vsub.f32 %v28228_v29, %v33361_v30  ;;  %v18623_v6 = vld [vmem:[%s24699_s19 + $0xc8] sm:$0xff]  ;;  %v12230_v58 = vsel %vm204_vm1, %v18622_v54, 0  ;;  %v33367_v57 = vld [vmem:[#allocation93_spill] sm:$0xff] }
 0x3d3   : > { %21983 = vmatprep.mubr.f32.mxu0 %v33291_v1  ;;  %v28310_v46 = vsub.f32 %v28222_v14, %v33359_v51  ;;  %v28325_v1 = vsub.f32 %v12221_v50, %v28275_v39  ;;  %v28328_v51 = vsub.f32 %v10209_v23, %v28277_v63  ;;  %v10215_v14 = vsel %vm204_vm1, %v18587_v3, 0  ;;  %v18590_v29 = vld [vmem:[%s24699_s19 + $0xb2] sm:$0xff] }
 0x3d4   : > { %v28335_v30 = vsub.f32 %v12224_v41, %v28289_v37  ;;  %v28342_v3 = vsub.f32 %v10212_v11, %v28302_v24  ;;  %v28344_v50 = vand.u32 4294901760, %v12227_v0  ;;  %v12233_v54 = vsel %vm204_vm1, %v18623_v6, 0  ;;  %v18589_v41 = vld [vmem:[%s24699_s19 + $0xaa] sm:$0xff]  ;;  %v18624_v11 = vld [vmem:[%s24699_s19 + $0xd8] sm:$0xff]  ;;  %v33375_v37 = vld [vmem:[#allocation119_spill] sm:$0xff] }
 0x3d5   : > { %33362 = vst [vmem:[#allocation52_spill] sm:$0xff] %v28325_v1  ;;  %33363 = vst [vmem:[#allocation57_spill] sm:$0xff] %v28328_v51  ;;  %21681 = vmatmul.mubr.f32.gmra.mrb[86].mxu1 %v33292_v45  ;;  %v28352_v8 = vand.u32 4294901760, %v10215_v14  ;;  %v28354_v23 = vand.u32 4294901760, %v12230_v58  ;;  %v28361_v63 = vand.u32 4294901760, %v10218_v48  ;;  %v33372_v45 = vand.u32 4294901760, %v28287_v13 }
 0x3d6   : > { %33364 = vst [vmem:[#allocation59_spill] sm:$0xff] %v28335_v30  ;;  %21984 = vmatmul.mubr.f32.gmra.mrb[88].mxu0 %v33293_v16  ;;  %33365 = vst [vmem:[#allocation60_spill] sm:$0xff] %v28342_v3  ;;  %21683 = vmatprep.mubr.f32.mxu1 %v33367_v57  ;;  %v18625_v57 = vld [vmem:[%s24699_s19 + $0xe0] sm:$0xff]  ;;  %v28371_v55 = vand.u32 4294901760, %v12233_v54  ;;  %v10221_v22 = vsel %vm204_vm1, %v18589_v41, 0  ;;  %v33374_v24 = vld [vmem:[#allocation118_spill] sm:$0xff]  ;;  %v28378_v26 = vsub.f32 %v12227_v0, %v28344_v50 }
 0x3d7   : > { %33366 = vst [vmem:[#allocation61_spill] sm:$0xff] %v28344_v50  ;;  %21986 = vmatprep.mubr.f32.mxu0 %v33368_v19  ;;  %33369 = vst [vmem:[#allocation62_spill] sm:$0xff] %v28352_v8  ;;  %v18591_v19 = vld [vmem:[%s24699_s19 + $0xc2] sm:$0xff]  ;;  %v28368_v16 = vsub.f32 %v28287_v13, %v33372_v45  ;;  %v12236_v18 = vsel %vm204_vm1, %v18624_v11, 0  ;;  %v10224_v45 = vsel %vm204_vm1, %v18590_v29, 0  ;;  %v33378_v39 = vld [vmem:[#allocation122_spill] sm:$0xff]  ;;  %v28385_v41 = vsub.f32 %v10215_v14, %v28352_v8 }
 0x3d8   : > { %33370 = vst [vmem:[#allocation78_spill] sm:$0xff] %v28354_v23  ;;  %33371 = vst [vmem:[#allocation79_spill] sm:$0xff] %v28361_v63  ;;  %v33377_v13 = vld [vmem:[#allocation120_spill] sm:$0xff]  ;;  %v10227_v6 = vsel %vm204_vm1, %v18591_v19, 0  ;;  %v33381_v0 = vand.u32 4294901760, %v28325_v1  ;;  %v33382_v29 = vand.u32 4294901760, %v28328_v51  ;;  %v28403_v14 = vsub.f32 %v10218_v48, %v28361_v63 }
 0x3d9   : > { %33373 = vst [vmem:[#allocation80_spill] sm:$0xff] %v28371_v55  ;;  %21684 = vmatmul.mubr.f32.gmra.mrb[88].mxu1 %v33374_v24  ;;  %33376 = vst [vmem:[#allocation82_spill] sm:$0xff] %v28378_v26  ;;  %v28388_v24 = vsub.f32 %v12230_v58, %v28354_v23  ;;  %v18626_v58 = vld [vmem:[%s24699_s19 + $0xf0] sm:$0xff]  ;;  %v28410_v19 = vsub.f32 %v12233_v54, %v28371_v55  ;;  %v28412_v23 = vand.u32 4294901760, %v12236_v18  ;;  %v33392_v55 = vld [vmem:[#allocation110_spill] sm:$0xff] }
 0x3da   : > { %21987 = vmatmul.mubr.f32.gmra.mrb[90].mxu0 %v33375_v37  ;;  %21686 = vmatprep.mubr.f32.mxu1 %v33377_v13  ;;  %33379 = vst [vmem:[#allocation83_spill] sm:$0xff] %v28385_v41  ;;  %v12239_v37 = vsel %vm204_vm1, %v18625_v57, 0  ;;  %v28395_v11 = vsub.f32 %v28325_v1, %v33381_v0  ;;  %v28400_v13 = vsub.f32 %v28328_v51, %v33382_v29  ;;  %33383 = vst [vmem:[#allocation102_spill] sm:$0xff] %v28403_v14  ;;  %v33388_v1 = vld [vmem:[#allocation105_spill] sm:$0xff]  ;;  %v33393_v8 = vld [vmem:[#allocation111_spill] sm:$0xff] }
 0x3db   : > { %21989 = vmatprep.mubr.f32.mxu0 %v33378_v39  ;;  %33380 = vst [vmem:[#allocation90_spill] sm:$0xff] %v28388_v24  ;;  %v28405_v39 = vand.u32 4294901760, %v10221_v22  ;;  %33385 = vst [vmem:[#allocation114_spill] sm:$0xff] %v28410_v19  ;;  %v28414_v0 = vand.u32 4294901760, %v10224_v45  ;;  %v33389_v29 = vand.u32 4294901760, %v28335_v30  ;;  %v28424_v63 = vand.u32 4294901760, %v12239_v37 }
 0x3dc   : > { %33386 = vst [vmem:[#allocation28_spill] sm:$0xff] %v28412_v23  ;;  %v28426_v57 = vand.u32 4294901760, %v10227_v6  ;;  %v18592_v54 = vld [vmem:[%s24699_s19 + $0xca] sm:$0xff]  ;;  %v12242_v51 = vsel %vm204_vm1, %v18626_v58, 0  ;;  %v33404_v21 = vand.u32 4294901760, %v28388_v24 }
 0x3dd   : > { %33384 = vst [vmem:[#allocation103_spill] sm:$0xff] %v28405_v39  ;;  %33387 = vst [vmem:[#allocation29_spill] sm:$0xff] %v28414_v0  ;;  %21687 = vmatmul.mubr.f32.gmra.mrb[90].mxu1 %v33301_v49  ;;  %v28421_v48 = vsub.f32 %v28335_v30, %v33389_v29  ;;  %v33394_v49 = vand.u32 4294901760, %v28342_v3  ;;  %v28450_v29 = vsub.f32 %v10224_v45, %v28414_v0  ;;  %v10230_v58 = vsel %vm204_vm1, %v18592_v54, 0  ;;  %v18627_v30 = vld [vmem:[%s24699_s19 + $0xf8] sm:$0xff] }
 0x3de   : > { %21990 = vmatmul.mubr.f32.gmra.mrb[92].mxu0 %v33388_v1  ;;  %33390 = vst [vmem:[#allocation7_spill] sm:$0xff] %v28424_v63  ;;  %33391 = vst [vmem:[#allocation30_spill] sm:$0xff] %v28426_v57  ;;  %21689 = vmatprep.mubr.f32.mxu1 %v33392_v55  ;;  %v28461_v50 = vsub.f32 %v10227_v6, %v28426_v57  ;;  %v18593_v45 = vld [vmem:[%s24699_s19 + $0xda] sm:$0xff]  ;;  %v33401_v54 = vand.u32 4294901760, %v28120_v47  ;;  %v28483_v55 = vsub.f32 %v28388_v24, %v33404_v21 }
 0x3df   : > { %21992 = vmatprep.mubr.f32.mxu0 %v33393_v8  ;;  %v28434_v1 = vsub.f32 %v28342_v3, %v33394_v49  ;;  %v28443_v8 = vsub.f32 %v10221_v22, %v28405_v39  ;;  %v28447_v49 = vsub.f32 %v12236_v18, %v28412_v23  ;;  %33397 = vst [vmem:[#allocation13_spill] sm:$0xff] %v28450_v29  ;;  %v28463_v18 = vand.u32 4294901760, %v12242_v51 }
 0x3e0   : > { %v28458_v22 = vsub.f32 %v12239_v37, %v28424_v63  ;;  %33399 = vst [vmem:[#allocation42_spill] sm:$0xff] %v28461_v50  ;;  %v33403_v37 = vand.u32 4294901760, %v28385_v41  ;;  %v33405_v47 = vand.u32 4294901760, %v28403_v14  ;;  %v10233_v3 = vsel %vm204_vm1, %v18593_v45, 0  ;;  %v18629_v45 = vld [vmem:[%s24699_s19 + $0x110] sm:$0xff] }
 0x3e1   : > { %33395 = vst [vmem:[#allocation10_spill] sm:$0xff] %v28443_v8  ;;  %33396 = vst [vmem:[#allocation34_spill] sm:$0xff] %v28447_v49  ;;  %21690 = vmatmul.mubr.f32.gmra.mrb[92].mxu1 %v33306_v38  ;;  %v33410_v24 = vand.u32 4294901760, %v28160_v61  ;;  %v33413_v61 = vand.u32 4294901760, %v28443_v8  ;;  %v33420_v38 = vand.u32 4294901760, %v28197_v60 }
 0x3e2   : > { %21993 = vmatmul.mubr.f32.gmra.mrb[94].mxu0 %v33307_v20  ;;  %33398 = vst [vmem:[#allocation14_spill] sm:$0xff] %v28458_v22  ;;  %33400 = vst [vmem:[#allocation43_spill] sm:$0xff] %v28463_v18  ;;  %21692 = vmatprep.mubr.f32.mxu1 %v33308_v2  ;;  %v33402_v20 = vand.u32 4294901760, %v28378_v26  ;;  %v28478_v6 = vsub.f32 %v28385_v41, %v33403_v37  ;;  %v18628_v2 = vld [vmem:[%s24699_s19 + $0x108] sm:$0xff]  ;;  %v33407_v37 = vand.u32 4294901760, %v28410_v19 }
 0x3e3   : > { %22297 = vmatprep.mubr.f32.mxu0 %v33401_v54  ;;  %v28489_v54 = vsub.f32 %v28403_v14, %v33405_v47  ;;  %v33408_v47 = vand.u32 4294901760, %v28155_v62  ;;  %v12248_v21 = vsel %vm204_vm1, %v18628_v2, 0  ;;  %v18630_v62 = vld [vmem:[%s24699_s19 + $0x120] sm:$0xff]  ;;  %v33417_v2 = vand.u32 4294901760, %v28450_v29  ;;  %v18631_v14 = vld [vmem:[%s24699_s19 + $0x128] sm:$0xff] }
 0x3e4   : > { %v28473_v15 = vsub.f32 %v28378_v26, %v33402_v20  ;;  %v28492_v20 = vand.u32 4294901760, %v10230_v58  ;;  %v12245_v26 = vsel %vm204_vm1, %v18627_v30, 0  ;;  %v28498_v41 = vsub.f32 %v28410_v19, %v33407_v37 }
 0x3e5   : > { %21693 = vmatmul.mubr.f32.gmra.mrb[94].mxu1 %v33309_v7  ;;  %v28509_v37 = vsub.f32 %v12242_v51, %v28463_v18  ;;  %v33411_v7 = vand.u32 4294901760, %v28165_v27  ;;  %v28519_v30 = vand.u32 4294901760, %v12245_v26  ;;  %v18594_v51 = vld [vmem:[%s24699_s19 + $0xe2] sm:$0xff]  ;;  %v28527_v27 = vsub.f32 %v28443_v8, %v33413_v61 }
 0x3e6   : > { %33406 = vst [vmem:[#allocation45_spill] sm:$0xff] %v28492_v20  ;;  %22298 = vmatmul.mubr.f32.vlgmr.msra.gmra.mrb[96].mxu0 %v33408_v47  ;;  %21997 = vmatprep.mubr.f32.mxu1 %v33410_v24  ;;  %v28530_v24 = vsub.f32 %v10230_v58, %v28492_v20  ;;  %v18595_v47 = vld [vmem:[%s24699_s19 + $0xf2] sm:$0xff]  ;;  %v33416_v19 = vand.u32 4294901760, %v28447_v49  ;;  %v28546_v61 = vsub.f32 %v28450_v29, %v33417_v2  ;;  %v28548_v8 = vand.u32 4294901760, %v12248_v21  ;;  %v18596_v58 = vld [vmem:[%s24699_s19 + $0xfa] sm:$0xff] }
 0x3e7   : > { %33409 = vst [vmem:[#allocation19_spill] sm:$0xff] %v28509_v37  ;;  %22300 = vmatprep.mubr.f32.mxu0 %v33411_v7  ;;  %33412 = vst [vmem:[#allocation55_spill] sm:$0xff] %v28519_v30  ;;  %22346 = vmatpush3.msra.mxu0 %v28020_v53  ;;  %v28532_v7 = vand.u32 4294901760, %v10233_v3  ;;  %v33419_v20 = vand.u32 4294901760, %v28185_v56  ;;  %v33422_v2 = vand.u32 4294901760, %v28461_v50  ;;  %v31969_v18 = vand.u32 4294901760, %v28509_v37 }
 0x3e8   : > { %33414 = vst [vmem:[#allocation56_spill] sm:$0xff] %v28530_v24  ;;  %v28541_v53 = vsub.f32 %v28447_v49, %v33416_v19  ;;  %33418 = vst [vmem:[#allocation63_spill] sm:$0xff] %v28548_v8  ;;  %22395 = vmatprep.subr.mxu0 %v27992_v36  ;;  %v33421_v19 = vand.u32 4294901760, %v28458_v22  ;;  %v10236_v57 = vsel %vm204_vm1, %v18594_v51, 0  ;;  %v33423_v56 = vand.u32 4294901760, %v28235_v4 }
 0x3e9   : > { %33415 = vst [vmem:[#allocation58_spill] sm:$0xff] %v28532_v7  ;;  %21998 = vmatmul.mubr.f32.vlgmr.msra.gmra.mrb[96].mxu1 %v33419_v20  ;;  %v28565_v29 = vsub.f32 %v28461_v50, %v33422_v2  ;;  %v28573_v60 = vsub.f32 %v12245_v26, %v28519_v30  ;;  %v10239_v20 = vsel %vm204_vm1, %v18595_v47, 0  ;;  %v33425_v2 = vand.u32 4294901760, %v28240_v34  ;;  %v18598_v50 = vld [vmem:[%s24699_s19 + $0x112] sm:$0xff] }
 0x3ea   : > { %22301 = vmatmul.mubr.f32.gmra.mrb[98].mxu0 %v33420_v38  ;;  %v28560_v49 = vsub.f32 %v28458_v22, %v33421_v19  ;;  %22046 = vmatpush3.msra.mxu1 %v28027_v42  ;;  %v12251_v38 = vsel %vm204_vm1, %v18629_v45, 0  ;;  %v12254_v19 = vsel %vm204_vm1, %v18630_v62, 0  ;;  %v28582_v42 = vsub.f32 %v10233_v3, %v28532_v7  ;;  %v18597_v62 = vld [vmem:[%s24699_s19 + $0x10a] sm:$0xff]  ;;  %v18599_v7 = vld [vmem:[%s24699_s19 + $0x122] sm:$0xff] }
 0x3eb   : > { %22000 = vmatprep.mubr.f32.mxu1 %v33423_v56  ;;  %33424 = vst [vmem:[#allocation106_spill] sm:$0xff] %v28573_v60  ;;  %22303 = vmatprep.mubr.f32.mxu0 %v33425_v2  ;;  %v10242_v4 = vsel %vm204_vm1, %v18596_v58, 0  ;;  %v12257_v26 = vsel %vm204_vm1, %v18631_v14, 0  ;;  %v28590_v34 = vsub.f32 %v12248_v21, %v28548_v8  ;;  %v28592_v47 = vand.u32 4294901760, %v10236_v57  ;;  %v18632_v21 = vld [vmem:[%s24699_s19 + $0x138] sm:$0xff] }
 0x3ec   : > { %33426 = vst [vmem:[#allocation107_spill] sm:$0xff] %v28582_v42  ;;  %22095 = vmatprep.subr.mxu1 %v28000_v25  ;;  %v33429_v56 = vand.u32 4294901760, %v28245_v31  ;;  %v33430_v3 = vand.u32 4294901760, %v28258_v33  ;;  %v28599_v58 = vand.u32 4294901760, %v12251_v38  ;;  %v28601_v2 = vand.u32 4294901760, %v10239_v20 }
 0x3ed   : > { %33427 = vst [vmem:[#allocation108_spill] sm:$0xff] %v28590_v34  ;;  %33428 = vst [vmem:[#allocation70_spill] sm:$0xff] %v28592_v47  ;;  %v28603_v45 = vand.u32 4294901760, %v12254_v19  ;;  %v33434_v51 = vand.u32 4294901760, %v28263_v9  ;;  %v33435_v31 = vand.u32 4294901760, %v28284_v10  ;;  %v28614_v33 = vsub.f32 %v28509_v37, %v31969_v18  ;;  %v18633_v9 = vld [vmem:[%s24699_s19 + $0x140] sm:$0xff] }
 0x3ee   : > { %22001 = vmatmul.mubr.f32.gmra.mrb[98].mxu1 %v33429_v56  ;;  %22304 = vmatmul.mubr.f32.gmra.mrb[100].mxu0 %v33430_v3  ;;  %33431 = vst [vmem:[#allocation72_spill] sm:$0xff] %v28599_v58  ;;  %33432 = vst [vmem:[#allocation85_spill] sm:$0xff] %v28601_v2  ;;  %v28617_v3 = vand.u32 4294901760, %v10242_v4  ;;  %v28619_v14 = vand.u32 4294901760, %v12257_v26  ;;  %v33438_v10 = vand.u32 4294901760, %v28530_v24  ;;  %v28632_v56 = vsub.f32 %v10236_v57, %v28592_v47 }
 0x3ef   : > { %33433 = vst [vmem:[#allocation86_spill] sm:$0xff] %v28603_v45  ;;  %22003 = vmatprep.mubr.f32.mxu1 %v33434_v51  ;;  %22306 = vmatprep.mubr.f32.mxu0 %v33435_v31  ;;  %v10245_v37 = vsel %vm204_vm1, %v18597_v62, 0  ;;  %v12260_v8 = vsel %vm204_vm1, %v18632_v21, 0  ;;  %v33440_v51 = vand.u32 4294901760, %v28300_v40  ;;  %v28643_v22 = vsub.f32 %v12251_v38, %v28599_v58 }
 0x3f0   : > { %33436 = vst [vmem:[#allocation87_spill] sm:$0xff] %v28617_v3  ;;  %33437 = vst [vmem:[#allocation88_spill] sm:$0xff] %v28619_v14  ;;  %v28627_v31 = vsub.f32 %v28530_v24, %v33438_v10  ;;  %v33441_v10 = vand.u32 4294901760, %v28310_v46  ;;  %v28646_v18 = vsub.f32 %v10239_v20, %v28601_v2  ;;  %v28649_v57 = vsub.f32 %v12254_v19, %v28603_v45 }
 0x3f1   : > { %33439 = vst [vmem:[#allocation89_spill] sm:$0xff] %v28632_v56  ;;  %33442 = vst [vmem:[#allocation101_spill] sm:$0xff] %v28643_v22  ;;  %v10248_v62 = vsel %vm204_vm1, %v18598_v50, 0  ;;  %v33445_v21 = vand.u32 4294901760, %v28315_v12  ;;  %v33446_v40 = vand.u32 4294901760, %v28320_v28  ;;  %v28663_v20 = vsub.f32 %v10242_v4, %v28617_v3  ;;  %v18634_v50 = vld [vmem:[%s24699_s19 + $0x150] sm:$0xff] }
 0x3f2   : > { %22004 = vmatmul.mubr.f32.gmra.mrb[100].mxu1 %v33440_v51  ;;  %22307 = vmatmul.mubr.f32.gmra.mrb[102].mxu0 %v33441_v10  ;;  %33443 = vst [vmem:[#allocation24_spill] sm:$0xff] %v28646_v18  ;;  %33444 = vst [vmem:[#allocation3_spill] sm:$0xff] %v28649_v57  ;;  %v33447_v51 = vand.u32 4294901760, %v28573_v60  ;;  %v28666_v19 = vsub.f32 %v12257_v26, %v28619_v14  ;;  %v28669_v10 = vand.u32 4294901760, %v10245_v37  ;;  %v28671_v12 = vand.u32 4294901760, %v12260_v8 }
 0x3f3   : > { %22006 = vmatprep.mubr.f32.mxu1 %v33445_v21  ;;  %22309 = vmatprep.mubr.f32.mxu0 %v33446_v40  ;;  %33448 = vst [vmem:[#allocation25_spill] sm:$0xff] %v28663_v20  ;;  %v12263_v28 = vsel %vm204_vm1, %v18633_v9, 0  ;;  %v10251_v21 = vsel %vm204_vm1, %v18599_v7, 0  ;;  %v33452_v40 = vand.u32 4294901760, %v28582_v42  ;;  %v33453_v4 = vand.u32 4294901760, %v28590_v34 }
 0x3f4   : > { %v28660_v38 = vsub.f32 %v28573_v60, %v33447_v51  ;;  %33449 = vst [vmem:[#allocation26_spill] sm:$0xff] %v28666_v19  ;;  %33450 = vst [vmem:[#allocation9_spill] sm:$0xff] %v28669_v10  ;;  %v28686_v60 = vand.u32 4294901760, %v10248_v62  ;;  %v33455_v24 = vand.u32 4294901760, %v28368_v16  ;;  %v33456_v9 = vand.u32 4294901760, %v28395_v11 }
 0x3f5   : > { %33451 = vst [vmem:[#allocation33_spill] sm:$0xff] %v28671_v12  ;;  %v28678_v51 = vsub.f32 %v28582_v42, %v33452_v40  ;;  %v28683_v46 = vsub.f32 %v28590_v34, %v33453_v4  ;;  %v12266_v4 = vsel %vm204_vm1, %v18634_v50, 0  ;;  %v33457_v34 = vand.u32 4294901760, %v28400_v13  ;;  %v18635_v50 = vld [vmem:[%s24699_s19 + $0x158] sm:$0xff] }
 0x3f6   : > { %33454 = vst [vmem:[#allocation38_spill] sm:$0xff] %v28686_v60  ;;  %22007 = vmatmul.mubr.f32.gmra.mrb[102].mxu1 %v33455_v24  ;;  %22310 = vmatmul.mubr.f32.gmra.mrb[104].mxu0 %v33456_v9  ;;  %v33458_v26 = vand.u32 4294901760, %v28421_v48  ;;  %v28702_v24 = vand.u32 4294901760, %v12263_v28  ;;  %v28704_v9 = vand.u32 4294901760, %v10251_v21  ;;  %v28709_v13 = vsub.f32 %v10245_v37, %v28669_v10 }
 0x3f7   : > { %22009 = vmatprep.mubr.f32.mxu1 %v33457_v34  ;;  %v28712_v48 = vsub.f32 %v12260_v8, %v28671_v12  ;;  %v18600_v34 = vld [vmem:[%s24699_s19 + $0x12a] sm:$0xff]  ;;  %v33463_v16 = vand.u32 4294901760, %v28632_v56  ;;  %v28722_v40 = vsub.f32 %v10248_v62, %v28686_v60  ;;  %v28724_v42 = vand.u32 4294901760, %v12266_v4 }
 0x3f8   : > { %22312 = vmatprep.mubr.f32.mxu0 %v33458_v26  ;;  %33459 = vst [vmem:[#allocation39_spill] sm:$0xff] %v28702_v24  ;;  %33460 = vst [vmem:[#allocation40_spill] sm:$0xff] %v28704_v9  ;;  %v33466_v37 = vand.u32 4294901760, %v28434_v1  ;;  %v33467_v8 = vand.u32 4294901760, %v28473_v15  ;;  %v33468_v26 = vand.u32 4294901760, %v28643_v22  ;;  %v18636_v15 = vld [vmem:[%s24699_s19 + $0x168] sm:$0xff] }
 0x3f9   : > { %33461 = vst [vmem:[#allocation46_spill] sm:$0xff] %v28709_v13  ;;  %33462 = vst [vmem:[#allocation17_spill] sm:$0xff] %v28712_v48  ;;  %v28719_v11 = vsub.f32 %v28632_v56, %v33463_v16  ;;  %v33469_v16 = vand.u32 4294901760, %v28646_v18  ;;  %v33470_v56 = vand.u32 4294901760, %v28649_v57  ;;  %v33472_v7 = vand.u32 4294901760, %v28483_v55 }
 0x3fa   : > { %33464 = vst [vmem:[#allocation49_spill] sm:$0xff] %v28722_v40  ;;  %33465 = vst [vmem:[#allocation20_spill] sm:$0xff] %v28724_v42  ;;  %22010 = vmatmul.mubr.f32.gmra.mrb[104].mxu1 %v33466_v37  ;;  %22313 = vmatmul.mubr.f32.gmra.mrb[106].mxu0 %v33467_v8  ;;  %v28735_v12 = vsub.f32 %v28643_v22, %v33468_v26  ;;  %v18601_v37 = vld [vmem:[%s24699_s19 + $0x13a] sm:$0xff]  ;;  %v33471_v8 = vand.u32 4294901760, %v28478_v6  ;;  %v33473_v26 = vand.u32 4294901760, %v28663_v20  ;;  %v33476_v6 = vand.u32 4294901760, %v28666_v19 }
 0x3fb   : > { %v28740_v62 = vsub.f32 %v28646_v18, %v33469_v16  ;;  %v28745_v1 = vsub.f32 %v28649_v57, %v33470_v56  ;;  %22315 = vmatprep.mubr.f32.mxu0 %v33472_v7  ;;  %v28759_v16 = vsub.f32 %v12263_v28, %v28702_v24  ;;  %v28762_v18 = vsub.f32 %v10251_v21, %v28704_v9  ;;  %v18603_v7 = vld [vmem:[%s24699_s19 + $0x152] sm:$0xff] }
 0x3fc   : > { %22012 = vmatprep.mubr.f32.mxu1 %v33471_v8  ;;  %v28756_v22 = vsub.f32 %v28663_v20, %v33473_v26  ;;  %v10254_v56 = vsel %vm204_vm1, %v18600_v34, 0  ;;  %v28768_v8 = vsub.f32 %v28666_v19, %v33476_v6  ;;  %v12269_v26 = vsel %vm204_vm1, %v18635_v50, 0  ;;  %v18602_v19 = vld [vmem:[%s24699_s19 + $0x142] sm:$0xff]  ;;  %v18637_v50 = vld [vmem:[%s24699_s19 + $0x170] sm:$0xff] }
 0x3fd   : > { %33474 = vst [vmem:[#allocation50_spill] sm:$0xff] %v28759_v16  ;;  %33475 = vst [vmem:[#allocation51_spill] sm:$0xff] %v28762_v18  ;;  %v28775_v20 = vsub.f32 %v12266_v4, %v28724_v42  ;;  %v10257_v21 = vsel %vm204_vm1, %v18601_v37, 0  ;;  %v12272_v34 = vsel %vm204_vm1, %v18636_v15, 0  ;;  %v33478_v6 = vand.u32 4294901760, %v28489_v54  ;;  %v18638_v54 = vld [vmem:[%s24699_s19 + $0x180] sm:$0xff] }
 0x3fe   : > { %v33479_v55 = vand.u32 4294901760, %v28498_v41  ;;  %v28786_v28 = vand.u32 4294901760, %v10254_v56  ;;  %v33481_v37 = vand.u32 4294901760, %v28527_v27  ;;  %v33482_v15 = vand.u32 4294901760, %v28541_v53 }
 0x3ff   : > { %33477 = vst [vmem:[#allocation68_spill] sm:$0xff] %v28775_v20  ;;  %22013 = vmatmul.mubr.f32.gmra.mrb[106].mxu1 %v33478_v6  ;;  %v28796_v6 = vand.u32 4294901760, %v12269_v26  ;;  %v33484_v4 = vand.u32 4294901760, %v28709_v13  ;;  %v33485_v27 = vand.u32 4294901760, %v28712_v48  ;;  %v33488_v42 = vand.u32 4294901760, %v28722_v40 }
 0x400   : > { %22316 = vmatmul.mubr.f32.gmra.mrb[108].mxu0 %v33479_v55  ;;  %33480 = vst [vmem:[#allocation69_spill] sm:$0xff] %v28786_v28  ;;  %22015 = vmatprep.mubr.f32.mxu1 %v33481_v37  ;;  %v28810_v37 = vand.u32 4294901760, %v10257_v21  ;;  %v28828_v9 = vsub.f32 %v10254_v56, %v28786_v28  ;;  %v10260_v55 = vsel %vm204_vm1, %v18602_v19, 0  ;;  %v12275_v41 = vsel %vm204_vm1, %v18637_v50, 0 }
 0x401   : > { %22318 = vmatprep.mubr.f32.mxu0 %v33482_v15  ;;  %33483 = vst [vmem:[#allocation71_spill] sm:$0xff] %v28796_v6  ;;  %v28803_v57 = vsub.f32 %v28709_v13, %v33484_v4  ;;  %v28808_v53 = vsub.f32 %v28712_v48, %v33485_v27  ;;  %v28812_v15 = vand.u32 4294901760, %v12272_v34  ;;  %v28820_v4 = vsub.f32 %v28722_v40, %v33488_v42 }
 0x402   : > { %33486 = vst [vmem:[#allocation73_spill] sm:$0xff] %v28810_v37  ;;  %v33489_v27 = vand.u32 4294901760, %v28546_v61  ;;  %v33490_v48 = vand.u32 4294901760, %v28560_v49  ;;  %33491 = vst [vmem:[#allocation81_spill] sm:$0xff] %v28828_v9  ;;  %v10263_v24 = vsel %vm204_vm1, %v18603_v7, 0  ;;  %v33492_v42 = vand.u32 4294901760, %v28565_v29 }
 0x403   : > { %33487 = vst [vmem:[#allocation74_spill] sm:$0xff] %v28812_v15  ;;  %v33493_v13 = vand.u32 4294901760, %v28614_v33  ;;  %v33494_v49 = vand.u32 4294901760, %v28759_v16  ;;  %v28848_v56 = vsub.f32 %v12269_v26, %v28796_v6  ;;  %v12278_v29 = vsel %vm204_vm1, %v18638_v54, 0  ;;  %v18604_v7 = vld [vmem:[%s24699_s19 + $0x15a] sm:$0xff]  ;;  %v18605_v54 = vld [vmem:[%s24699_s19 + $0x16a] sm:$0xff] }
 0x404   : > { %22016 = vmatmul.mubr.f32.gmra.mrb[108].mxu1 %v33489_v27  ;;  %22319 = vmatmul.mubr.f32.gmra.mrb[110].mxu0 %v33490_v48  ;;  %v33495_v48 = vand.u32 4294901760, %v28762_v18  ;;  %v10553_v33 = vand.u32 4294901760, %v28803_v57  ;;  %v28855_v50 = vsub.f32 %v10257_v21, %v28810_v37  ;;  %v28858_v27 = vsub.f32 %v12272_v34, %v28812_v15 }
 0x405   : > { %22018 = vmatprep.mubr.f32.mxu1 %v33492_v42  ;;  %22321 = vmatprep.mubr.f32.mxu0 %v33493_v13  ;;  %v28840_v61 = vsub.f32 %v28759_v16, %v33494_v49  ;;  %33496 = vst [vmem:[#allocation91_spill] sm:$0xff] %v28848_v56  ;;  %v12582_v13 = vand.u32 4294901760, %v28808_v53  ;;  %v18639_v42 = vld [vmem:[%s24699_s19 + $0x188] sm:$0xff]  ;;  %v28864_v26 = vand.u32 4294901760, %v12275_v41  ;;  %v18640_v16 = vld [vmem:[%s24699_s19 + $0x198] sm:$0xff]  ;;  %v33502_v57 = vand.u32 4294901760, %v28627_v31 }
 0x406   : > { %v28845_v19 = vsub.f32 %v28762_v18, %v33495_v48  ;;  %33497 = vst [vmem:[#allocation92_spill] sm:$0xff] %v28855_v50  ;;  %33498 = vst [vmem:[#allocation104_spill] sm:$0xff] %v28858_v27  ;;  %v28862_v48 = vand.u32 4294901760, %v10260_v55  ;;  %v28866_v18 = vand.u32 4294901760, %v10263_v24  ;;  %v33503_v21 = vand.u32 4294901760, %v28660_v38  ;;  %v18607_v49 = vld [vmem:[%s24699_s19 + $0x182] sm:$0xff] }
 0x407   : > { %33500 = vst [vmem:[#allocation113_spill] sm:$0xff] %v28864_v26  ;;  %v33504_v34 = vand.u32 4294901760, %v28775_v20  ;;  %v28880_v40 = vand.u32 4294901760, %v12278_v29  ;;  %v10266_v15 = vsel %vm204_vm1, %v18604_v7, 0  ;;  %v33506_v37 = vand.u32 4294901760, %v28678_v51 }
 0x408   : > { %33499 = vst [vmem:[#allocation112_spill] sm:$0xff] %v28862_v48  ;;  %33501 = vst [vmem:[#allocation115_spill] sm:$0xff] %v28866_v18  ;;  %22019 = vmatmul.mubr.f32.gmra.mrb[110].mxu1 %v33502_v57  ;;  %22322 = vmatmul.mubr.f32.gmra.mrb[112].mxu0 %v33503_v21  ;;  %v33507_v31 = vand.u32 4294901760, %v28683_v46  ;;  %v12592_v38 = vand.u32 4294901760, %v28840_v61  ;;  %v10573_v57 = vand.u32 4294901760, %v28845_v19  ;;  %v10269_v7 = vsel %vm204_vm1, %v18605_v54, 0 }
 0x409   : > { %v28877_v53 = vsub.f32 %v28775_v20, %v33504_v34  ;;  %33505 = vst [vmem:[#allocation116_spill] sm:$0xff] %v28880_v40  ;;  %22021 = vmatprep.mubr.f32.mxu1 %v33506_v37  ;;  %v12281_v34 = vsel %vm204_vm1, %v18639_v42, 0  ;;  %v12284_v51 = vsel %vm204_vm1, %v18640_v16, 0  ;;  %v18606_v37 = vld [vmem:[%s24699_s19 + $0x172] sm:$0xff]  ;;  %v18641_v46 = vld [vmem:[%s24699_s19 + $0x1a0] sm:$0xff]  ;;  %v28901_v61 = vsub.f32 %v12275_v41, %v28864_v26 }
 0x40a   : > { %22324 = vmatprep.mubr.f32.mxu0 %v33507_v31  ;;  %v28898_v31 = vsub.f32 %v10260_v55, %v28862_v48  ;;  %v28904_v19 = vsub.f32 %v10263_v24, %v28866_v18  ;;  %v28906_v42 = vand.u32 4294901760, %v10266_v15  ;;  %v33509_v20 = vand.u32 4294901760, %v28719_v11 }
 0x40b   : > { %v33510_v54 = vand.u32 4294901760, %v28735_v12  ;;  %v12602_v16 = vand.u32 4294901760, %v28877_v53  ;;  %v33511_v55 = vand.u32 4294901760, %v28828_v9  ;;  %v28918_v21 = vsub.f32 %v12278_v29, %v28880_v40  ;;  %v18608_v40 = vld [vmem:[%s24699_s19 + $0x18a] sm:$0xff] }
 0x40c   : > { %33508 = vst [vmem:[#allocation93_spill] sm:$0xff] %v28906_v42  ;;  %22022 = vmatmul.mubr.f32.gmra.mrb[112].mxu1 %v33509_v20  ;;  %v28920_v24 = vand.u32 4294901760, %v12281_v34  ;;  %v33513_v18 = vand.u32 4294901760, %v28740_v62  ;;  %v33514_v20 = vand.u32 4294901760, %v28745_v1  ;;  %v28926_v12 = vand.u32 4294901760, %v10269_v7 }
 0x40d   : > { %22325 = vmatmul.mubr.f32.gmra.mrb[114].mxu0 %v33510_v54  ;;  %v10582_v41 = vsub.f32 %v28828_v9, %v33511_v55  ;;  %v28928_v11 = vand.u32 4294901760, %v12284_v51  ;;  %v10272_v53 = vsel %vm204_vm1, %v18606_v37, 0  ;;  %v12287_v54 = vsel %vm204_vm1, %v18641_v46, 0 }
 0x40e   : > { %33512 = vst [vmem:[#allocation94_spill] sm:$0xff] %v28920_v24  ;;  %22024 = vmatprep.mubr.f32.mxu1 %v33513_v18  ;;  %22327 = vmatprep.mubr.f32.mxu0 %v33514_v20  ;;  %33515 = vst [vmem:[#allocation118_spill] sm:$0xff] %v28926_v12  ;;  %v33517_v55 = vand.u32 4294901760, %v28848_v56  ;;  %v33518_v9 = vand.u32 4294901760, %v28855_v50  ;;  %v33519_v18 = vand.u32 4294901760, %v28858_v27  ;;  %v10275_v20 = vsel %vm204_vm1, %v18607_v49, 0 }
 0x40f   : > { %33516 = vst [vmem:[#allocation119_spill] sm:$0xff] %v28928_v11  ;;  %v28947_v48 = vsub.f32 %v10266_v15, %v28906_v42  ;;  %v28955_v49 = vsub.f32 %v12281_v34, %v28920_v24  ;;  %v28959_v26 = vand.u32 4294901760, %v12287_v54  ;;  %v28962_v15 = vsub.f32 %v10269_v7, %v28926_v12 }
 0x410   : > { %v12611_v29 = vsub.f32 %v28848_v56, %v33517_v55  ;;  %v10592_v62 = vsub.f32 %v28855_v50, %v33518_v9  ;;  %v12621_v1 = vsub.f32 %v28858_v27, %v33519_v18  ;;  %v33520_v55 = vand.u32 4294901760, %v28756_v22 }
 0x411   : > { %v33521_v9 = vand.u32 4294901760, %v28768_v8  ;;  %v28957_v27 = vand.u32 4294901760, %v10272_v53  ;;  %33523 = vst [vmem:[#allocation122_spill] sm:$0xff] %v28959_v26  ;;  %v28965_v22 = vsub.f32 %v12284_v51, %v28928_v11  ;;  %v10278_v8 = vsel %vm204_vm1, %v18608_v40, 0 }
 0x412   : > { %22025 = vmatmul.mubr.f32.gmra.mrb[114].mxu1 %v33520_v55  ;;  %v28967_v55 = vand.u32 4294901760, %v10275_v20  ;;  %v12612_v18 = vand.u32 4294901760, %v12611_v29  ;;  %v10593_v34 = vand.u32 4294901760, %v10592_v62  ;;  %v12622_v46 = vand.u32 4294901760, %v12621_v1 }
 0x413   : > { %22328 = vmatmul.mubr.f32.gmra.mrb[116].mxu0 %v33521_v9  ;;  %33522 = vst [vmem:[#allocation120_spill] sm:$0xff] %v28957_v27  ;;  %22027 = vmatprep.mubr.f32.mxu1 %v10553_v33  ;;  %v10583_v9 = vand.u32 4294901760, %v10582_v41  ;;  %v33525_v37 = vand.u32 4294901760, %v28898_v31  ;;  %v33526_v33 = vand.u32 4294901760, %v28901_v61  ;;  %v33527_v7 = vand.u32 4294901760, %v28904_v19 }
 0x414   : > { %22330 = vmatprep.mubr.f32.mxu0 %v12582_v13  ;;  %33524 = vst [vmem:[#allocation105_spill] sm:$0xff] %v28967_v55  ;;  %v32036_v56 = vand.u32 4294901760, %v28947_v48  ;;  %v33528_v40 = vand.u32 4294901760, %v28820_v4  ;;  %v28984_v29 = vsub.f32 %v10272_v53, %v28957_v27  ;;  %v28987_v62 = vsub.f32 %v12287_v54, %v28959_v26 }
 0x415   : > { %v10602_v50 = vsub.f32 %v28898_v31, %v33525_v37  ;;  %v12631_v13 = vsub.f32 %v28901_v61, %v33526_v33  ;;  %v10612_v51 = vsub.f32 %v28904_v19, %v33527_v7  ;;  %v28989_v1 = vand.u32 4294901760, %v10278_v8 }
 0x416   : > { %22028 = vmatmul.mubr.f32.gmra.mrb[116].mxu1 %v33528_v40  ;;  %v33530_v37 = vand.u32 4294901760, %v28918_v21  ;;  %v32041_v4 = vand.u32 4294901760, %v28962_v15  ;;  %v28997_v7 = vsub.f32 %v10275_v20, %v28967_v55  ;;  %v10622_v54 = vsub.f32 %v28947_v48, %v32036_v56 }
 0x417   : > { %22331 = vmatmul.mubr.f32.gmra.mrb[118].mxu0 %v12592_v38  ;;  %33529 = vst [vmem:[#allocation110_spill] sm:$0xff] %v28989_v1  ;;  %22030 = vmatprep.mubr.f32.mxu1 %v10573_v57  ;;  %v10603_v53 = vand.u32 4294901760, %v10602_v50  ;;  %v12632_v40 = vand.u32 4294901760, %v12631_v13  ;;  %v10613_v41 = vand.u32 4294901760, %v10612_v51  ;;  %v33531_v57 = vand.u32 4294901760, %v28955_v49 }
 0x418   : > { %22333 = vmatprep.mubr.f32.mxu0 %v12602_v16  ;;  %v12641_v33 = vsub.f32 %v28918_v21, %v33530_v37  ;;  %v32040_v37 = vand.u32 4294901760, %v28984_v29  ;;  %v32037_v38 = vand.u32 4294901760, %v28987_v62  ;;  %v29008_v20 = vsub.f32 %v10278_v8, %v28989_v1 }
 0x419   : > { %v12651_v16 = vsub.f32 %v28955_v49, %v33531_v57  ;;  %v10632_v13 = vsub.f32 %v28962_v15, %v32041_v4  ;;  %v32039_v51 = vand.u32 4294901760, %v28997_v7  ;;  %v10623_v57 = vand.u32 4294901760, %v10622_v54  ;;  %v33553_v4 = vld [vmem:[#allocation30_spill] sm:$0xff] }
 0x41a   : > { %22031 = vmatmul.mubr.f32.gmra.mrb[118].mxu1 %v10583_v9  ;;  %v12642_v50 = vand.u32 4294901760, %v12641_v33  ;;  %v10642_v8 = vsub.f32 %v28984_v29, %v32040_v37  ;;  %v33552_v37 = vld [vmem:[#allocation80_spill] sm:$0xff] }
 0x41b   : > { %22334 = vmatmul.mubr.f32.gmra.mrb[120].mxu0 %v12612_v18  ;;  %22033 = vmatprep.mubr.f32.mxu1 %v10593_v34  ;;  %v33532_v18 = vand.u32 4294901760, %v28965_v22  ;;  %v12652_v56 = vand.u32 4294901760, %v12651_v16  ;;  %v32038_v34 = vand.u32 4294901760, %v29008_v20  ;;  %v10633_v33 = vand.u32 4294901760, %v10632_v13  ;;  %v33536_v13 = vld [vmem:[#allocation67_spill] sm:$0xff] }
 0x41c   : > { %22336 = vmatprep.mubr.f32.mxu0 %v12622_v46  ;;  %v12671_v46 = vsub.f32 %v28987_v62, %v32037_v38 }
 0x41d   : > { %v12661_v9 = vsub.f32 %v28965_v22, %v33532_v18  ;;  %v10662_v16 = vsub.f32 %v29008_v20, %v32038_v34  ;;  %v33550_v34 = vld [vmem:[#allocation78_spill] sm:$0xff] }
 0x41e   : > { %22034 = vmatmul.mubr.f32.gmra.mrb[120].mxu1 %v10603_v53  ;;  %v10652_v53 = vsub.f32 %v28997_v7, %v32039_v51  ;;  %v12672_v54 = vand.u32 4294901760, %v12671_v46  ;;  %v33541_v46 = vld [vmem:[#allocation15_spill] sm:$0xff] }
 0x41f   : > { %22337 = vmatmul.mubr.f32.gmra.mrb[122].mxu0 %v12632_v40  ;;  %22036 = vmatprep.mubr.f32.mxu1 %v10613_v41  ;;  %v12662_v18 = vand.u32 4294901760, %v12661_v9  ;;  %v10643_v40 = vand.u32 4294901760, %v10642_v8  ;;  %v10663_v41 = vand.u32 4294901760, %v10662_v16  ;;  %v33537_v9 = vld [vmem:[#allocation100_spill] sm:$0xff]  ;;  %v33540_v8 = vld [vmem:[#allocation97_spill] sm:$0xff]  ;;  %v33551_v51 = vld [vmem:[#allocation79_spill] sm:$0xff] }
 0x420   : > { %22339 = vmatprep.mubr.f32.mxu0 %v12642_v50  ;;  %v10653_v38 = vand.u32 4294901760, %v10652_v53  ;;  %v33535_v50 = vld [vmem:[#allocation66_spill] sm:$0xff]  ;;  %v33545_v53 = vld [vmem:[#allocation36_spill] sm:$0xff]  ;;  %v33548_v16 = vld [vmem:[#allocation61_spill] sm:$0xff] }
 0x422   : > { %22037 = vmatmul.mubr.f32.gmra.mrb[122].mxu1 %v10623_v57  ;;  %v33539_v57 = vld [vmem:[#allocation96_spill] sm:$0xff] }
 0x423   : > { %22340 = vmatmul.mubr.f32.gmra.mrb[124].mxu0 %v12652_v56  ;;  %22039 = vmatprep.mubr.f32.mxu1 %v10633_v33  ;;  %v33533_v56 = vld [vmem:[#allocation18_spill] sm:$0xff]  ;;  %v33543_v33 = vld [vmem:[#allocation31_spill] sm:$0xff] }
 0x424   : > { %22342 = vmatprep.mubr.f32.mxu0 %v12662_v18  ;;  %v33544_v18 = vld [vmem:[#allocation32_spill] sm:$0xff] }
 0x426   : > { %22040 = vmatmul.mubr.f32.gmra.mrb[124].mxu1 %v10643_v40  ;;  %v33546_v40 = vld [vmem:[#allocation44_spill] sm:$0xff] }
 0x427   : > { %22343 = vmatmul.mubr.f32.gmra.mrb[126].mxu0 %v12672_v54  ;;  %22042 = vmatprep.mubr.f32.mxu1 %v10653_v38  ;;  %v33534_v38 = vld [vmem:[#allocation117_spill] sm:$0xff]  ;;  %v33547_v54 = vld [vmem:[#allocation16_spill] sm:$0xff] }
 0x428   : > { %22347 = vmatprep.mubr.f32.mxu0 %v28051_v5  ;;  %v8050_v5 = vld [vmem:[#allocation2 + $0x20] sm:$0xff] }
 0x42a   : > { %22043 = vmatmul.mubr.f32.gmra.mrb[126].mxu1 %v10663_v41  ;;  %v33549_v41 = vld [vmem:[#allocation62_spill] sm:$0xff] }
 0x42b   : > { %22348 = vmatmul.mubr.f32.vlgmr.msra.gmra.mrb[96].mxu0 %v28062_v59  ;;  %22047 = vmatprep.mubr.f32.mxu1 %v28067_v35  ;;  %v33601_v35 = vld [vmem:[#allocation19_spill] sm:$0xff] }
 0x42c   : > { %22350 = vmatprep.mubr.f32.mxu0 %v28069_v52  ;;  %22396 = vmatpush3.msra.mxu0 %v27992_v36  ;;  %v33538_v36 = vld [vmem:[#allocation77_spill] sm:$0xff]  ;;  %v33600_v52 = vld [vmem:[#allocation42_spill] sm:$0xff] }
 0x42d   : > { %22445 = vmatprep.subr.mxu0 %v27929_v43 }
 0x42e   : > { %22048 = vmatmul.mubr.f32.vlgmr.msra.gmra.mrb[96].mxu1 %v28075_v17  ;;  %v33598_v17 = vld [vmem:[#allocation13_spill] sm:$0xff] }
 0x42f   : > { %22351 = vmatmul.mubr.f32.gmra.mrb[98].mxu0 %v33533_v56  ;;  %22096 = vmatpush3.msra.mxu1 %v28000_v25  ;;  %v33542_v25 = vld [vmem:[#allocation98_spill] sm:$0xff] }
 0x430   : > { %22050 = vmatprep.mubr.f32.mxu1 %v28107_v44  ;;  %22353 = vmatprep.mubr.f32.mxu0 %v28109_v32  ;;  %v8048_v44 = vld [vmem:[#allocation2 + $0x10] sm:$0xff] }
 0x431   : > { %22145 = vmatprep.subr.mxu1 %v33534_v38 }
 0x432   : > { %22051 = vmatmul.mubr.f32.gmra.mrb[98].mxu1 %v33535_v50  ;;  %v8049_v50 = vld [vmem:[#allocation2 + $0x18] sm:$0xff] }
 0x433   : > { %22354 = vmatmul.mubr.f32.gmra.mrb[100].mxu0 %v33536_v13  ;;  %22053 = vmatprep.mubr.f32.mxu1 %v33537_v9  ;;  %v33597_v9 = vld [vmem:[#allocation34_spill] sm:$0xff] }
 0x434   : > { %22356 = vmatprep.mubr.f32.mxu0 %v33538_v36  ;;  %v33596_v36 = vld [vmem:[#allocation10_spill] sm:$0xff] }
 0x436   : > { %22054 = vmatmul.mubr.f32.gmra.mrb[100].mxu1 %v33539_v57 }
 0x437   : > { %22357 = vmatmul.mubr.f32.gmra.mrb[102].mxu0 %v33540_v8  ;;  %22056 = vmatprep.mubr.f32.mxu1 %v33541_v46  ;;  %v33594_v46 = vld [vmem:[#allocation102_spill] sm:$0xff] }
 0x438   : > { %22359 = vmatprep.mubr.f32.mxu0 %v33542_v25  ;;  %v33595_v8 = vld [vmem:[#allocation114_spill] sm:$0xff] }
 0x43a   : > { %22057 = vmatmul.mubr.f32.gmra.mrb[102].mxu1 %v33543_v33  ;;  %v8046_v33 = vld [vmem:[#allocation2] sm:$0xff] }
 0x43b   : > { %22360 = vmatmul.mubr.f32.gmra.mrb[104].mxu0 %v33544_v18  ;;  %22059 = vmatprep.mubr.f32.mxu1 %v33545_v53 }
 0x43c   : > { %22362 = vmatprep.mubr.f32.mxu0 %v33546_v40 }
 0x43e   : > { %22060 = vmatmul.mubr.f32.gmra.mrb[104].mxu1 %v33547_v54  ;;  %v33554_v54 = vld [vmem:[#allocation43_spill] sm:$0xff] }
 0x43f   : > { %22363 = vmatmul.mubr.f32.gmra.mrb[106].mxu0 %v33548_v16  ;;  %22062 = vmatprep.mubr.f32.mxu1 %v33549_v41  ;;  %v33555_v16 = vld [vmem:[#allocation45_spill] sm:$0xff]  ;;  %v8047_v41 = vld [vmem:[#allocation2 + $0x8] sm:$0xff] }
 0x440   : > { %22365 = vmatprep.mubr.f32.mxu0 %v33550_v34  ;;  %v33556_v34 = vld [vmem:[#allocation58_spill] sm:$0xff] }
 0x442   : > { %22063 = vmatmul.mubr.f32.gmra.mrb[106].mxu1 %v33551_v51  ;;  %v33557_v51 = vld [vmem:[#allocation63_spill] sm:$0xff] }
 0x443   : > { %22366 = vmatmul.mubr.f32.gmra.mrb[108].mxu0 %v33552_v37  ;;  %22065 = vmatprep.mubr.f32.mxu1 %v28405_v39  ;;  %v33593_v39 = vld [vmem:[#allocation90_spill] sm:$0xff] }
 0x444   : > { %22368 = vmatprep.mubr.f32.mxu0 %v28412_v23  ;;  %v33592_v23 = vld [vmem:[#allocation83_spill] sm:$0xff] }
 0x446   : > { %22066 = vmatmul.mubr.f32.gmra.mrb[108].mxu1 %v28414_v0  ;;  %v33591_v0 = vld [vmem:[#allocation82_spill] sm:$0xff] }
 0x447   : > { %22369 = vmatmul.mubr.f32.gmra.mrb[110].mxu0 %v28424_v63  ;;  %22068 = vmatprep.mubr.f32.mxu1 %v33553_v4  ;;  %v33590_v63 = vld [vmem:[#allocation60_spill] sm:$0xff] }
 0x448   : > { %22371 = vmatprep.mubr.f32.mxu0 %v33554_v54 }
 0x44a   : > { %22069 = vmatmul.mubr.f32.gmra.mrb[110].mxu1 %v33555_v16  ;;  %v33558_v16 = vld [vmem:[#allocation33_spill] sm:$0xff] }
 0x44b   : > { %22372 = vmatmul.mubr.f32.gmra.mrb[112].mxu0 %v28519_v30  ;;  %22071 = vmatprep.mubr.f32.mxu1 %v33556_v34  ;;  %v33559_v34 = vld [vmem:[#allocation39_spill] sm:$0xff] }
 0x44c   : > { %22374 = vmatprep.mubr.f32.mxu0 %v33557_v51  ;;  %v33560_v51 = vld [vmem:[#allocation40_spill] sm:$0xff]  ;;  %v33589_v30 = vld [vmem:[#allocation59_spill] sm:$0xff] }
 0x44e   : > { %22072 = vmatmul.mubr.f32.gmra.mrb[112].mxu1 %v28592_v47  ;;  %v33561_v47 = vld [vmem:[#allocation20_spill] sm:$0xff] }
 0x44f   : > { %22375 = vmatmul.mubr.f32.gmra.mrb[114].mxu0 %v28599_v58  ;;  %22074 = vmatprep.mubr.f32.mxu1 %v28601_v2  ;;  %v33587_v2 = vld [vmem:[#allocation52_spill] sm:$0xff]  ;;  %v33588_v58 = vld [vmem:[#allocation57_spill] sm:$0xff] }
 0x450   : > { %22377 = vmatprep.mubr.f32.mxu0 %v28603_v45  ;;  %v33562_v45 = vld [vmem:[#allocation73_spill] sm:$0xff] }
 0x452   : > { %22075 = vmatmul.mubr.f32.gmra.mrb[114].mxu1 %v28617_v3  ;;  %v33563_v3 = vld [vmem:[#allocation74_spill] sm:$0xff] }
 0x453   : > { %22378 = vmatmul.mubr.f32.gmra.mrb[116].mxu0 %v28619_v14  ;;  %22077 = vmatprep.mubr.f32.mxu1 %v28669_v10  ;;  %v33564_v14 = vld [vmem:[#allocation112_spill] sm:$0xff]  ;;  %v33565_v10 = vld [vmem:[#allocation113_spill] sm:$0xff] }
 0x454   : > { %22380 = vmatprep.mubr.f32.mxu0 %v33558_v16  ;;  %v33566_v16 = vld [vmem:[#allocation115_spill] sm:$0xff] }
 0x456   : > { %22078 = vmatmul.mubr.f32.gmra.mrb[116].mxu1 %v28686_v60  ;;  %v33567_v60 = vld [vmem:[#allocation116_spill] sm:$0xff] }
 0x457   : > { %22381 = vmatmul.mubr.f32.gmra.mrb[118].mxu0 %v33559_v34  ;;  %22080 = vmatprep.mubr.f32.mxu1 %v33560_v51  ;;  %v33585_v51 = vld [vmem:[#allocation8_spill] sm:$0xff] }
 0x458   : > { %22383 = vmatprep.mubr.f32.mxu0 %v33561_v47  ;;  %v33584_v47 = vld [vmem:[#allocation27_spill] sm:$0xff]  ;;  %v33586_v34 = vld [vmem:[#allocation12_spill] sm:$0xff] }
 0x45a   : > { %22081 = vmatmul.mubr.f32.gmra.mrb[118].mxu1 %v28786_v28  ;;  %v33583_v28 = vld [vmem:[#allocation5_spill] sm:$0xff] }
 0x45b   : > { %22384 = vmatmul.mubr.f32.gmra.mrb[120].mxu0 %v28796_v6  ;;  %22083 = vmatprep.mubr.f32.mxu1 %v33562_v45  ;;  %v33581_v45 = vld [vmem:[#allocation99_spill] sm:$0xff]  ;;  %v33582_v6 = vld [vmem:[#allocation121_spill] sm:$0xff] }
 0x45c   : > { %22386 = vmatprep.mubr.f32.mxu0 %v33563_v3  ;;  %v33580_v3 = vld [vmem:[#allocation95_spill] sm:$0xff] }
 0x45e   : > { %22084 = vmatmul.mubr.f32.gmra.mrb[120].mxu1 %v33564_v14  ;;  %v33568_v14 = vld [vmem:[#allocation11_spill] sm:$0xff] }
 0x45f   : > { %22387 = vmatmul.mubr.f32.gmra.mrb[122].mxu0 %v33565_v10  ;;  %22086 = vmatprep.mubr.f32.mxu1 %v33566_v16  ;;  %v33569_v16 = vld [vmem:[#allocation47_spill] sm:$0xff]  ;;  %v33579_v10 = vld [vmem:[#allocation84_spill] sm:$0xff] }
 0x460   : > { %22389 = vmatprep.mubr.f32.mxu0 %v33567_v60  ;;  %v33570_v60 = vld [vmem:[#allocation6_spill] sm:$0xff] }
 0x462   : > { %22087 = vmatmul.mubr.f32.gmra.mrb[122].mxu1 %v28906_v42  ;;  %v33571_v42 = vld [vmem:[#allocation48_spill] sm:$0xff] }
 0x463   : > { %22390 = vmatmul.mubr.f32.gmra.mrb[124].mxu0 %v28920_v24  ;;  %22089 = vmatprep.mubr.f32.mxu1 %v28926_v12  ;;  %v33572_v12 = vld [vmem:[#allocation21_spill] sm:$0xff]  ;;  %v33578_v24 = vld [vmem:[#allocation76_spill] sm:$0xff] }
 0x464   : > { %22392 = vmatprep.mubr.f32.mxu0 %v28928_v11  ;;  %v33573_v11 = vld [vmem:[#allocation53_spill] sm:$0xff] }
 0x466   : > { %22090 = vmatmul.mubr.f32.gmra.mrb[124].mxu1 %v28957_v27  ;;  %v33574_v27 = vld [vmem:[#allocation54_spill] sm:$0xff] }
 0x467   : > { %22393 = vmatmul.mubr.f32.gmra.mrb[126].mxu0 %v28959_v26  ;;  %22092 = vmatprep.mubr.f32.mxu1 %v28967_v55  ;;  %v33575_v55 = vld [vmem:[#allocation109_spill] sm:$0xff]  ;;  %v33576_v26 = vld [vmem:[#allocation75_spill] sm:$0xff] }
 0x468   : > { %22397 = vmatprep.mubr.f32.mxu0 %v33568_v14 }
 0x46a   : > { %22093 = vmatmul.mubr.f32.gmra.mrb[126].mxu1 %v28989_v1  ;;  %v33577_v1 = vld [vmem:[#allocation22_spill] sm:$0xff] }
 0x46b   : > { %22398 = vmatmul.mubr.f32.vlgmr.msra.gmra.mrb[96].mxu0 %v33569_v16  ;;  %22097 = vmatprep.mubr.f32.mxu1 %v33570_v60 }
 0x46c   : > { %22400 = vmatprep.mubr.f32.mxu0 %v33571_v42  ;;  %22446 = vmatpush3.msra.mxu0 %v27929_v43 }
 0x46d   : > { %22495 = vmatprep.subr.mxu0 %v33572_v12 }
 0x46e   : > { %22098 = vmatmul.mubr.f32.vlgmr.msra.gmra.mrb[96].mxu1 %v33573_v11 }
 0x46f   : > { %22401 = vmatmul.mubr.f32.gmra.mrb[98].mxu0 %v33574_v27  ;;  %22146 = vmatpush3.msra.mxu1 %v33534_v38 }
 0x470   : > { %22100 = vmatprep.mubr.f32.mxu1 %v33575_v55  ;;  %22403 = vmatprep.mubr.f32.mxu0 %v33576_v26 }
 0x471   : > { %22195 = vmatprep.subr.mxu1 %v33577_v1 }
 0x472   : > { %22101 = vmatmul.mubr.f32.gmra.mrb[98].mxu1 %v33578_v24 }
 0x473   : > { %22404 = vmatmul.mubr.f32.gmra.mrb[100].mxu0 %v33579_v10  ;;  %22103 = vmatprep.mubr.f32.mxu1 %v33580_v3 }
 0x474   : > { %22406 = vmatprep.mubr.f32.mxu0 %v33581_v45 }
 0x476   : > { %22104 = vmatmul.mubr.f32.gmra.mrb[100].mxu1 %v33582_v6 }
 0x477   : > { %22407 = vmatmul.mubr.f32.gmra.mrb[102].mxu0 %v33583_v28  ;;  %22106 = vmatprep.mubr.f32.mxu1 %v33584_v47 }
 0x478   : > { %22409 = vmatprep.mubr.f32.mxu0 %v33585_v51 }
 0x479   : > { %v21949_v54 = vpop.f32.mrb[64].mxu0 }
 0x47a   : > { %22107 = vmatmul.mubr.f32.gmra.mrb[102].mxu1 %v33586_v34  ;;  %v9864_v4 = vpop.f32.mrb[65].mxu0 }
 0x47b   : > { %22410 = vmatmul.mubr.f32.gmra.mrb[104].mxu0 %v33587_v2  ;;  %22109 = vmatprep.mubr.f32.mxu1 %v33588_v58 }
 0x47c   : > { %22412 = vmatprep.mubr.f32.mxu0 %v33589_v30  ;;  %v21649_v37 = vpop.f32.mrb[64].mxu1 }
 0x47d   : > { %v21952_v40 = vpop.f32.mrb[66].mxu0  ;;  %v8079_v53 = vadd.f32 %v21649_v37, %v8047_v41  ;;  %v7856_v18 = vpop.f32.mrb[65].mxu1 }
 0x47e   : > { %22110 = vmatmul.mubr.f32.gmra.mrb[104].mxu1 %v33590_v63  ;;  %v9876_v25 = vpop.f32.mrb[67].mxu0  ;;  %v8078_v57 = vadd.f32 %v8046_v33, %v7856_v18  ;;  %v33599_v33 = vld [vmem:[#allocation14_spill] sm:$0xff] }
 0x47f   : > { %22413 = vmatmul.mubr.f32.gmra.mrb[106].mxu0 %v33591_v0  ;;  %22112 = vmatprep.mubr.f32.mxu1 %v33592_v23  ;;  %8111 = vst.msk [vmem:[#allocation2 + $0x8] sm:$0xff] %vm2084_vm2, %v8079_v53  ;;  %v8051_v53 = vld [vmem:[#allocation2 + $0x28] sm:$0xff] }
 0x480   : > { %22415 = vmatprep.mubr.f32.mxu0 %v33593_v39  ;;  %8110 = vst.msk [vmem:[#allocation2] sm:$0xff] %vm2084_vm2, %v8078_v57  ;;  %v21652_v13 = vpop.f32.mrb[66].mxu1 }
 0x481   : > { %v29132_v32 = vpop.f32.mrb[68].mxu0  ;;  %v8081_v37 = vadd.f32 %v21652_v13, %v8049_v50  ;;  %v7868_v41 = vpop.f32.mrb[67].mxu1 }
 0x482   : > { %22113 = vmatmul.mubr.f32.gmra.mrb[106].mxu1 %v33594_v46  ;;  %v29134_v56 = vpop.f32.mrb[69].mxu0  ;;  %v8080_v18 = vadd.f32 %v8048_v44, %v7868_v41  ;;  %v33603_v44 = vld [vmem:[#allocation106_spill] sm:$0xff] }
 0x483   : > { %22416 = vmatmul.mubr.f32.gmra.mrb[108].mxu0 %v33595_v8  ;;  %22115 = vmatprep.mubr.f32.mxu1 %v33596_v36  ;;  %8113 = vst.msk [vmem:[#allocation2 + $0x18] sm:$0xff] %vm2084_vm2, %v8081_v37 }
 0x484   : > { %22418 = vmatprep.mubr.f32.mxu0 %v33597_v9  ;;  %8112 = vst.msk [vmem:[#allocation2 + $0x10] sm:$0xff] %vm2084_vm2, %v8080_v18  ;;  %v21655_v57 = vpop.f32.mrb[68].mxu1 }
 0x485   : > { %v29142_v50 = vpop.f32.mrb[70].mxu0  ;;  %v8083_v13 = vadd.f32 %v21655_v57, %v8051_v53  ;;  %v7880_v59 = vpop.f32.mrb[69].mxu1  ;;  %v8053_v53 = vld [vmem:[#allocation2 + $0x38] sm:$0xff] }
 0x486   : > { %22116 = vmatmul.mubr.f32.gmra.mrb[108].mxu1 %v33598_v17  ;;  %v29144_v9 = vpop.f32.mrb[71].mxu0  ;;  %v33602_v17 = vld [vmem:[#allocation56_spill] sm:$0xff]  ;;  %v8082_v41 = vadd.f32 %v8050_v5, %v7880_v59  ;;  %v33606_v59 = vld [vmem:[#allocation89_spill] sm:$0xff] }
 0x487   : > { %22419 = vmatmul.mubr.f32.gmra.mrb[110].mxu0 %v33599_v33  ;;  %22118 = vmatprep.mubr.f32.mxu1 %v33600_v52  ;;  %v33604_v52 = vld [vmem:[#allocation107_spill] sm:$0xff]  ;;  %v10055_v37 = vld [vmem:[#allocation2 + $0x8] sm:$0xff]  ;;  %8115 = vst.msk [vmem:[#allocation2 + $0x28] sm:$0xff] %vm2084_vm2, %v8083_v13 }
 0x488   : > { %22421 = vmatprep.mubr.f32.mxu0 %v33601_v35  ;;  %v33605_v35 = vld [vmem:[#allocation108_spill] sm:$0xff]  ;;  %v10087_v18 = vadd.f32 %v21949_v54, %v10055_v37  ;;  %v10054_v33 = vld [vmem:[#allocation2] sm:$0xff]  ;;  %8114 = vst.msk [vmem:[#allocation2 + $0x20] sm:$0xff] %vm2084_vm2, %v8082_v41  ;;  %v21658_v57 = vpop.f32.mrb[70].mxu1 }
 0x489   : > { %v29152_v36 = vpop.f32.mrb[72].mxu0  ;;  %v10086_v8 = vadd.f32 %v10054_v33, %v9864_v4  ;;  %v7892_v46 = vpop.f32.mrb[71].mxu1  ;;  %v33608_v13 = vld [vmem:[#allocation24_spill] sm:$0xff]  ;;  %v33609_v41 = vld [vmem:[#allocation3_spill] sm:$0xff] }
 0x48a   : > { %22119 = vmatmul.mubr.f32.gmra.mrb[110].mxu1 %v33602_v17  ;;  %v8085_v17 = vadd.f32 %v21658_v57, %v8053_v53  ;;  %v29154_v5 = vpop.f32.mrb[73].mxu0  ;;  %10119 = vst.msk [vmem:[#allocation2 + $0x8] sm:$0xff] %vm2084_vm2, %v10087_v18  ;;  %v10057_v37 = vld [vmem:[#allocation2 + $0x18] sm:$0xff]  ;;  %v8055_v53 = vld [vmem:[#allocation2 + $0x48] sm:$0xff] }
 0x48b   : > { %22422 = vmatmul.mubr.f32.gmra.mrb[112].mxu0 %v33603_v44  ;;  %22121 = vmatprep.mubr.f32.mxu1 %v33604_v52  ;;  %v8052_v44 = vld [vmem:[#allocation2 + $0x30] sm:$0xff]  ;;  %10118 = vst.msk [vmem:[#allocation2] sm:$0xff] %vm2084_vm2, %v10086_v8  ;;  %v10089_v4 = vadd.f32 %v21952_v40, %v10057_v37  ;;  %v33611_v8 = vld [vmem:[#allocation26_spill] sm:$0xff] }
 0x48c   : > { %22424 = vmatprep.mubr.f32.mxu0 %v33605_v35  ;;  %v33607_v35 = vld [vmem:[#allocation101_spill] sm:$0xff]  ;;  %v8084_v54 = vadd.f32 %v8052_v44, %v7892_v46  ;;  %8117 = vst.msk [vmem:[#allocation2 + $0x38] sm:$0xff] %vm2084_vm2, %v8085_v17  ;;  %v21661_v57 = vpop.f32.mrb[72].mxu1  ;;  %v8054_v44 = vld [vmem:[#allocation2 + $0x40] sm:$0xff]  ;;  %v33612_v40 = vld [vmem:[#allocation46_spill] sm:$0xff] }
 0x48d   : > { %v10056_v33 = vld [vmem:[#allocation2 + $0x10] sm:$0xff]  ;;  %v8087_v18 = vadd.f32 %v21661_v57, %v8055_v53  ;;  %v7904_v46 = vpop.f32.mrb[73].mxu1  ;;  %10121 = vst.msk [vmem:[#allocation2 + $0x18] sm:$0xff] %vm2084_vm2, %v10089_v4  ;;  %v8057_v53 = vld [vmem:[#allocation2 + $0x58] sm:$0xff] }
 0x48e   : > { %22122 = vmatmul.mubr.f32.gmra.mrb[112].mxu1 %v33606_v59  ;;  %8116 = vst.msk [vmem:[#allocation2 + $0x30] sm:$0xff] %vm2084_vm2, %v8084_v54  ;;  %v29164_v59 = vpop.f32.mrb[74].mxu0  ;;  %v8086_v17 = vadd.f32 %v8054_v44, %v7904_v46  ;;  %v33613_v54 = vld [vmem:[#allocation17_spill] sm:$0xff]  ;;  %v10059_v37 = vld [vmem:[#allocation2 + $0x28] sm:$0xff] }
 0x48f   : > { %22425 = vmatmul.mubr.f32.gmra.mrb[114].mxu0 %v33607_v35  ;;  %22124 = vmatprep.mubr.f32.mxu1 %v33608_v13  ;;  %v10088_v35 = vadd.f32 %v10056_v33, %v9876_v25  ;;  %v29166_v13 = vpop.f32.mrb[75].mxu0  ;;  %8119 = vst.msk [vmem:[#allocation2 + $0x48] sm:$0xff] %vm2084_vm2, %v8087_v18  ;;  %v10091_v25 = vadd.f32 %v29132_v32, %v10059_v37  ;;  %v10058_v33 = vld [vmem:[#allocation2 + $0x20] sm:$0xff] }
 0x490   : > { %22427 = vmatprep.mubr.f32.mxu0 %v33609_v41  ;;  %v33610_v41 = vld [vmem:[#allocation25_spill] sm:$0xff]  ;;  %8118 = vst.msk [vmem:[#allocation2 + $0x40] sm:$0xff] %vm2084_vm2, %v8086_v17  ;;  %v21664_v57 = vpop.f32.mrb[74].mxu1  ;;  %v10090_v4 = vadd.f32 %v10058_v33, %v29134_v56  ;;  %v33616_v18 = vld [vmem:[#allocation51_spill] sm:$0xff]  ;;  %v33617_v17 = vld [vmem:[#allocation68_spill] sm:$0xff] }
 0x491   : > { %10120 = vst.msk [vmem:[#allocation2 + $0x10] sm:$0xff] %vm2084_vm2, %v10088_v35  ;;  %v8089_v46 = vadd.f32 %v21664_v57, %v8057_v53  ;;  %v7916_v44 = vpop.f32.mrb[75].mxu1  ;;  %v33614_v35 = vld [vmem:[#allocation49_spill] sm:$0xff]  ;;  %10123 = vst.msk [vmem:[#allocation2 + $0x28] sm:$0xff] %vm2084_vm2, %v10091_v25  ;;  %v8059_v53 = vld [vmem:[#allocation2 + $0x68] sm:$0xff] }
 0x492   : > { %22125 = vmatmul.mubr.f32.gmra.mrb[114].mxu1 %v33610_v41  ;;  %v33615_v41 = vld [vmem:[#allocation50_spill] sm:$0xff]  ;;  %10122 = vst.msk [vmem:[#allocation2 + $0x20] sm:$0xff] %vm2084_vm2, %v10090_v4  ;;  %v33618_v4 = vld [vmem:[#allocation81_spill] sm:$0xff] }
 0x493   : > { %22428 = vmatmul.mubr.f32.gmra.mrb[116].mxu0 %v33611_v8  ;;  %22127 = vmatprep.mubr.f32.mxu1 %v33612_v40  ;;  %v29177_v8 = vpop.f32.mrb[76].mxu0  ;;  %v8056_v40 = vld [vmem:[#allocation2 + $0x50] sm:$0xff]  ;;  %v10061_v37 = vld [vmem:[#allocation2 + $0x38] sm:$0xff]  ;;  %8121 = vst.msk [vmem:[#allocation2 + $0x58] sm:$0xff] %vm2084_vm2, %v8089_v46  ;;  %v33620_v46 = vld [vmem:[#allocation92_spill] sm:$0xff] }
 0x494   : > { %22430 = vmatprep.mubr.f32.mxu0 %v33613_v54  ;;  %v29180_v54 = vpop.f32.mrb[77].mxu0  ;;  %v8088_v32 = vadd.f32 %v8056_v40, %v7916_v44  ;;  %v10093_v56 = vadd.f32 %v29142_v50, %v10061_v37  ;;  %v21667_v57 = vpop.f32.mrb[76].mxu1 }
 0x495   : > { %v10060_v33 = vld [vmem:[#allocation2 + $0x30] sm:$0xff]  ;;  %v8091_v25 = vadd.f32 %v21667_v57, %v8059_v53  ;;  %v7928_v44 = vpop.f32.mrb[77].mxu1  ;;  %v8061_v53 = vld [vmem:[#allocation2 + $0x78] sm:$0xff] }
 0x496   : > { %22128 = vmatmul.mubr.f32.gmra.mrb[116].mxu1 %v33614_v35  ;;  %8120 = vst.msk [vmem:[#allocation2 + $0x50] sm:$0xff] %vm2084_vm2, %v8088_v32  ;;  %v10092_v40 = vadd.f32 %v10060_v33, %v29144_v9  ;;  %v33619_v35 = vld [vmem:[#allocation91_spill] sm:$0xff]  ;;  %10125 = vst.msk [vmem:[#allocation2 + $0x38] sm:$0xff] %vm2084_vm2, %v10093_v56  ;;  %v33621_v32 = vld [vmem:[#allocation104_spill] sm:$0xff] }
 0x497   : > { %22431 = vmatmul.mubr.f32.gmra.mrb[118].mxu0 %v33615_v41  ;;  %22130 = vmatprep.mubr.f32.mxu1 %v33616_v18  ;;  %v29191_v41 = vpop.f32.mrb[78].mxu0  ;;  %v8058_v18 = vld [vmem:[#allocation2 + $0x60] sm:$0xff]  ;;  %v10063_v37 = vld [vmem:[#allocation2 + $0x48] sm:$0xff]  ;;  %8123 = vst.msk [vmem:[#allocation2 + $0x68] sm:$0xff] %vm2084_vm2, %v8091_v25 }
 0x498   : > { %22433 = vmatprep.mubr.f32.mxu0 %v33617_v17  ;;  %v29194_v17 = vpop.f32.mrb[79].mxu0  ;;  %v8090_v50 = vadd.f32 %v8058_v18, %v7928_v44  ;;  %10124 = vst.msk [vmem:[#allocation2 + $0x30] sm:$0xff] %vm2084_vm2, %v10092_v40  ;;  %v10095_v9 = vadd.f32 %v29152_v36, %v10063_v37  ;;  %v10062_v33 = vld [vmem:[#allocation2 + $0x40] sm:$0xff]  ;;  %v21670_v57 = vpop.f32.mrb[78].mxu1  ;;  %v8063_v37 = vld [vmem:[#allocation2 + $0x88] sm:$0xff] }
 0x499   : > { %v10094_v18 = vadd.f32 %v10062_v33, %v29154_v5  ;;  %v8093_v56 = vadd.f32 %v21670_v57, %v8061_v53  ;;  %v7940_v44 = vpop.f32.mrb[79].mxu1  ;;  %v8062_v53 = vld [vmem:[#allocation2 + $0x80] sm:$0xff] }
 0x49a   : > { %22131 = vmatmul.mubr.f32.gmra.mrb[118].mxu1 %v33618_v4  ;;  %8122 = vst.msk [vmem:[#allocation2 + $0x60] sm:$0xff] %vm2084_vm2, %v8090_v50  ;;  %10127 = vst.msk [vmem:[#allocation2 + $0x48] sm:$0xff] %vm2084_vm2, %v10095_v9  ;;  %v10065_v40 = vld [vmem:[#allocation2 + $0x58] sm:$0xff] }
 0x49b   : > { %22434 = vmatmul.mubr.f32.gmra.mrb[120].mxu0 %v33619_v35  ;;  %22133 = vmatprep.mubr.f32.mxu1 %v33620_v46  ;;  %v29205_v35 = vpop.f32.mrb[80].mxu0  ;;  %v8060_v46 = vld [vmem:[#allocation2 + $0x70] sm:$0xff]  ;;  %10126 = vst.msk [vmem:[#allocation2 + $0x40] sm:$0xff] %vm2084_vm2, %v10094_v18  ;;  %8125 = vst.msk [vmem:[#allocation2 + $0x78] sm:$0xff] %vm2084_vm2, %v8093_v56  ;;  %v10097_v5 = vadd.f32 %v29164_v59, %v10065_v40  ;;  %v8065_v40 = vld [vmem:[#allocation2 + $0x98] sm:$0xff] }
 0x49c   : > { %22436 = vmatprep.mubr.f32.mxu0 %v33621_v32  ;;  %v29208_v32 = vpop.f32.mrb[81].mxu0  ;;  %v8092_v36 = vadd.f32 %v8060_v46, %v7940_v44  ;;  %v21673_v50 = vpop.f32.mrb[80].mxu1 }
 0x49d   : > { %v10064_v25 = vld [vmem:[#allocation2 + $0x50] sm:$0xff]  ;;  %v29219_v33 = vpop.f32.mrb[82].mxu0  ;;  %v8095_v9 = vadd.f32 %v21673_v50, %v8063_v37  ;;  %v7952_v57 = vpop.f32.mrb[81].mxu1  ;;  %10129 = vst.msk [vmem:[#allocation2 + $0x58] sm:$0xff] %vm2084_vm2, %v10097_v5 }
 0x49e   : > { %22134 = vmatmul.mubr.f32.gmra.mrb[120].mxu1 %v28898_v31  ;;  %8124 = vst.msk [vmem:[#allocation2 + $0x70] sm:$0xff] %vm2084_vm2, %v8092_v36  ;;  %v10096_v46 = vadd.f32 %v10064_v25, %v29166_v13  ;;  %v29222_v44 = vpop.f32.mrb[83].mxu0  ;;  %v8094_v59 = vadd.f32 %v8062_v53, %v7952_v57  ;;  %v10067_v18 = vld [vmem:[#allocation2 + $0x68] sm:$0xff]  ;;  %v8064_v57 = vld [vmem:[#allocation2 + $0x90] sm:$0xff] }
 0x49f   : > { %22437 = vmatmul.mubr.f32.gmra.mrb[122].mxu0 %v28901_v61  ;;  %22136 = vmatprep.mubr.f32.mxu1 %v28904_v19  ;;  %8127 = vst.msk [vmem:[#allocation2 + $0x88] sm:$0xff] %vm2084_vm2, %v8095_v9  ;;  %v10099_v13 = vadd.f32 %v29177_v8, %v10067_v18 }
 0x4a0   : > { %22439 = vmatprep.mubr.f32.mxu0 %v28918_v21  ;;  %10128 = vst.msk [vmem:[#allocation2 + $0x50] sm:$0xff] %vm2084_vm2, %v10096_v46  ;;  %8126 = vst.msk [vmem:[#allocation2 + $0x80] sm:$0xff] %vm2084_vm2, %v8094_v59  ;;  %v21676_v36 = vpop.f32.mrb[82].mxu1  ;;  %v33622_v46 = vand.u32 4294901760, %v33568_v14  ;;  %v8066_v14 = vld [vmem:[#allocation2 + $0xa0] sm:$0xff] }
 0x4a1   : > { %v10066_v56 = vld [vmem:[#allocation2 + $0x60] sm:$0xff]  ;;  %v29233_v25 = vpop.f32.mrb[84].mxu0  ;;  %v8097_v50 = vadd.f32 %v21676_v36, %v8065_v40  ;;  %v7964_v37 = vpop.f32.mrb[83].mxu1  ;;  %10131 = vst.msk [vmem:[#allocation2 + $0x68] sm:$0xff] %vm2084_vm2, %v10099_v13 }
 0x4a2   : > { %22137 = vmatmul.mubr.f32.gmra.mrb[122].mxu1 %v28947_v48  ;;  %v10098_v5 = vadd.f32 %v10066_v56, %v29180_v54  ;;  %v29236_v53 = vpop.f32.mrb[85].mxu0  ;;  %v8096_v8 = vadd.f32 %v8064_v57, %v7964_v37  ;;  %v10069_v54 = vld [vmem:[#allocation2 + $0x78] sm:$0xff]  ;;  %v8067_v56 = vld [vmem:[#allocation2 + $0xa8] sm:$0xff] }
 0x4a3   : > { %22440 = vmatmul.mubr.f32.gmra.mrb[124].mxu0 %v28955_v49  ;;  %22139 = vmatprep.mubr.f32.mxu1 %v28962_v15  ;;  %8129 = vst.msk [vmem:[#allocation2 + $0x98] sm:$0xff] %vm2084_vm2, %v8097_v50  ;;  %v10101_v9 = vadd.f32 %v29191_v41, %v10069_v54  ;;  %v33624_v50 = vand.u32 4294901760, %v33570_v60 }
 0x4a4   : > { %22442 = vmatprep.mubr.f32.mxu0 %v28965_v22  ;;  %10130 = vst.msk [vmem:[#allocation2 + $0x60] sm:$0xff] %vm2084_vm2, %v10098_v5  ;;  %8128 = vst.msk [vmem:[#allocation2 + $0x90] sm:$0xff] %vm2084_vm2, %v8096_v8  ;;  %v21679_v18 = vpop.f32.mrb[84].mxu1  ;;  %v33623_v5 = vand.u32 4294901760, %v33569_v16  ;;  %v33625_v8 = vand.u32 4294901760, %v33571_v42 }
 0x4a5   : > { %v10068_v59 = vld [vmem:[#allocation2 + $0x70] sm:$0xff]  ;;  %v29248_v36 = vpop.f32.mrb[86].mxu0  ;;  %v8099_v40 = vadd.f32 %v21679_v18, %v8067_v56  ;;  %v7976_v37 = vpop.f32.mrb[85].mxu1  ;;  %10133 = vst.msk [vmem:[#allocation2 + $0x78] sm:$0xff] %vm2084_vm2, %v10101_v9  ;;  %v8069_v9 = vld [vmem:[#allocation2 + $0xb8] sm:$0xff] }
 0x4a6   : > { %22140 = vmatmul.mubr.f32.gmra.mrb[124].mxu1 %v28984_v29  ;;  %v10100_v13 = vadd.f32 %v10068_v59, %v29194_v17  ;;  %v29251_v57 = vpop.f32.mrb[87].mxu0  ;;  %v8098_v41 = vadd.f32 %v8066_v14, %v7976_v37  ;;  %v10071_v17 = vld [vmem:[#allocation2 + $0x88] sm:$0xff]  ;;  %v8068_v56 = vld [vmem:[#allocation2 + $0xb0] sm:$0xff]  ;;  %v33628_v37 = vand.u32 4294901760, %v33575_v55  ;;  %v33629_v14 = vand.u32 4294901760, %v33576_v26 }
 0x4a7   : > { %22443 = vmatmul.mubr.f32.gmra.mrb[126].mxu0 %v28987_v62  ;;  %22142 = vmatprep.mubr.f32.mxu1 %v28997_v7  ;;  %8131 = vst.msk [vmem:[#allocation2 + $0xa8] sm:$0xff] %vm2084_vm2, %v8099_v40  ;;  %v10070_v16 = vld [vmem:[#allocation2 + $0x80] sm:$0xff]  ;;  %v33630_v26 = vand.u32 4294901760, %v33578_v24 }
 0x4a8   : > { %22447 = vmatprep.mubr.f32.mxu0 %v33622_v46  ;;  %10132 = vst.msk [vmem:[#allocation2 + $0x70] sm:$0xff] %vm2084_vm2, %v10100_v13  ;;  %v10103_v46 = vadd.f32 %v29205_v35, %v10071_v17  ;;  %8130 = vst.msk [vmem:[#allocation2 + $0xa0] sm:$0xff] %vm2084_vm2, %v8098_v41  ;;  %v21682_v54 = vpop.f32.mrb[86].mxu1  ;;  %v10102_v60 = vadd.f32 %v10070_v16, %v29208_v32  ;;  %v33627_v35 = vand.u32 4294901760, %v33574_v27  ;;  %v8070_v17 = vld [vmem:[#allocation2 + $0xc0] sm:$0xff]  ;;  %v33631_v16 = vand.u32 4294901760, %v33579_v10 }
 0x4a9   : > { %v29266_v59 = vpop.f32.mrb[88].mxu0  ;;  %v8101_v42 = vadd.f32 %v21682_v54, %v8069_v9  ;;  %v7988_v18 = vpop.f32.mrb[87].mxu1  ;;  %v33632_v54 = vand.u32 4294901760, %v33580_v3  ;;  %v33633_v9 = vand.u32 4294901760, %v33581_v45  ;;  %v8072_v45 = vld [vmem:[#allocation2 + $0xd0] sm:$0xff] }
 0x4aa   : > { %22143 = vmatmul.mubr.f32.gmra.mrb[126].mxu1 %v29008_v20  ;;  %v29270_v13 = vpop.f32.mrb[89].mxu0  ;;  %10135 = vst.msk [vmem:[#allocation2 + $0x88] sm:$0xff] %vm2084_vm2, %v10103_v46  ;;  %v8100_v40 = vadd.f32 %v8068_v56, %v7988_v18  ;;  %10134 = vst.msk [vmem:[#allocation2 + $0x80] sm:$0xff] %vm2084_vm2, %v10102_v60  ;;  %v10073_v32 = vld [vmem:[#allocation2 + $0x98] sm:$0xff] }
 0x4ab   : > { %22448 = vmatmul.mubr.f32.vlgmr.msra.gmra.mrb[96].mxu0 %v33623_v5  ;;  %22147 = vmatprep.mubr.f32.mxu1 %v33624_v50  ;;  %8133 = vst.msk [vmem:[#allocation2 + $0xb8] sm:$0xff] %vm2084_vm2, %v8101_v42  ;;  %v10105_v27 = vadd.f32 %v29219_v33, %v10073_v32  ;;  %v8073_v42 = vld [vmem:[#allocation2 + $0xd8] sm:$0xff]  ;;  %v33636_v32 = vand.u32 4294901760, %v33584_v47 }
 0x4ac   : > { %22450 = vmatprep.mubr.f32.mxu0 %v33625_v8  ;;  %22496 = vmatpush3.msra.mxu0 %v33572_v12  ;;  %v33626_v12 = vand.u32 4294901760, %v33573_v11  ;;  %v10072_v11 = vld [vmem:[#allocation2 + $0x90] sm:$0xff]  ;;  %8132 = vst.msk [vmem:[#allocation2 + $0xb0] sm:$0xff] %vm2084_vm2, %v8100_v40  ;;  %v21685_v5 = vpop.f32.mrb[88].mxu1  ;;  %v33634_v40 = vand.u32 4294901760, %v33582_v6 }
 0x4ad   : > { %22545 = vmatprep.subr.mxu0 %v27929_v43  ;;  %v29287_v41 = vpop.f32.mrb[90].mxu0  ;;  %v10104_v55 = vadd.f32 %v10072_v11, %v29222_v44  ;;  %v8000_v8 = vpop.f32.mrb[89].mxu1  ;;  %10137 = vst.msk [vmem:[#allocation2 + $0x98] sm:$0xff] %vm2084_vm2, %v10105_v27  ;;  %v8075_v11 = vld [vmem:[#allocation2 + $0xe8] sm:$0xff] }
 0x4ae   : > { %22148 = vmatmul.mubr.f32.vlgmr.msra.gmra.mrb[96].mxu1 %v33626_v12  ;;  %v29290_v46 = vpop.f32.mrb[91].mxu0  ;;  %v8102_v33 = vadd.f32 %v8070_v17, %v8000_v8  ;;  %v10075_v44 = vld [vmem:[#allocation2 + $0xa8] sm:$0xff]  ;;  %v33638_v8 = vand.u32 4294901760, %v33586_v34  ;;  %v33639_v17 = vand.u32 4294901760, %v33587_v2 }
 0x4af   : > { %22451 = vmatmul.mubr.f32.gmra.mrb[98].mxu0 %v33627_v35  ;;  %22196 = vmatpush3.msra.mxu1 %v33577_v1  ;;  %v8071_v1 = vld [vmem:[#allocation2 + $0xc8] sm:$0xff]  ;;  %10136 = vst.msk [vmem:[#allocation2 + $0x90] sm:$0xff] %vm2084_vm2, %v10104_v55  ;;  %v10107_v24 = vadd.f32 %v29233_v25, %v10075_v44  ;;  %v10074_v60 = vld [vmem:[#allocation2 + $0xa0] sm:$0xff] }
 0x4b0   : > { %22150 = vmatprep.mubr.f32.mxu1 %v33628_v37  ;;  %22453 = vmatprep.mubr.f32.mxu0 %v33629_v14  ;;  %v8103_v50 = vadd.f32 %v21685_v5, %v8071_v1  ;;  %8134 = vst.msk [vmem:[#allocation2 + $0xc0] sm:$0xff] %vm2084_vm2, %v8102_v33  ;;  %v21688_v10 = vpop.f32.mrb[90].mxu1  ;;  %v10106_v3 = vadd.f32 %v10074_v60, %v29236_v53  ;;  %v33635_v37 = vand.u32 4294901760, %v33583_v28  ;;  %v33637_v14 = vand.u32 4294901760, %v33585_v51 }
 0x4b1   : > { %22245 = vmatprep.subr.mxu1 %v33534_v38  ;;  %v29305_v18 = vpop.f32.mrb[92].mxu0  ;;  %v8105_v56 = vadd.f32 %v21688_v10, %v8073_v42  ;;  %v8012_v12 = vpop.f32.mrb[91].mxu1  ;;  %10139 = vst.msk [vmem:[#allocation2 + $0xa8] sm:$0xff] %vm2084_vm2, %v10107_v24  ;;  %v8076_v24 = vld [vmem:[#allocation2 + $0xf0] sm:$0xff]  ;;  %v33643_v60 = vand.u32 4294901760, %v33591_v0  ;;  %v33645_v42 = vand.u32 4294901760, %v33593_v39 }
 0x4b2   : > { %22151 = vmatmul.mubr.f32.gmra.mrb[98].mxu1 %v33630_v26  ;;  %8135 = vst.msk [vmem:[#allocation2 + $0xc8] sm:$0xff] %vm2084_vm2, %v8103_v50  ;;  %v10032_v35 = vpop.f32.mrb[93].mxu0  ;;  %v8104_v25 = vadd.f32 %v8072_v45, %v8012_v12  ;;  %10138 = vst.msk [vmem:[#allocation2 + $0xa0] sm:$0xff] %vm2084_vm2, %v10106_v3  ;;  %v10077_v53 = vld [vmem:[#allocation2 + $0xb8] sm:$0xff]  ;;  %v8074_v50 = vld [vmem:[#allocation2 + $0xe0] sm:$0xff]  ;;  %v33640_v26 = vand.u32 4294901760, %v33588_v58 }
 0x4b3   : > { %22454 = vmatmul.mubr.f32.gmra.mrb[100].mxu0 %v33631_v16  ;;  %22153 = vmatprep.mubr.f32.mxu1 %v33632_v54  ;;  %8137 = vst.msk [vmem:[#allocation2 + $0xd8] sm:$0xff] %vm2084_vm2, %v8105_v56  ;;  %v10109_v6 = vadd.f32 %v29248_v36, %v10077_v53  ;;  %v10076_v27 = vld [vmem:[#allocation2 + $0xb0] sm:$0xff]  ;;  %v33641_v16 = vand.u32 4294901760, %v33589_v30  ;;  %v8077_v54 = vld [vmem:[#allocation2 + $0xf8] sm:$0xff]  ;;  %v33642_v30 = vand.u32 4294901760, %v33590_v63 }
 0x4b4   : > { %22456 = vmatprep.mubr.f32.mxu0 %v33633_v9  ;;  %8136 = vst.msk [vmem:[#allocation2 + $0xd0] sm:$0xff] %vm2084_vm2, %v8104_v25  ;;  %v21691_v28 = vpop.f32.mrb[92].mxu1  ;;  %v10108_v1 = vadd.f32 %v10076_v27, %v29251_v57  ;;  %v33646_v56 = vld [vmem:[#allocation102_spill] sm:$0xff]  ;;  %v33654_v53 = vld [vmem:[#allocation13_spill] sm:$0xff] }
 0x4b5   : > { %v21994_v5 = vpop.f32.mrb[94].mxu0  ;;  %v8107_v47 = vadd.f32 %v21691_v28, %v8075_v11  ;;  %v8024_v55 = vpop.f32.mrb[93].mxu1  ;;  %10141 = vst.msk [vmem:[#allocation2 + $0xb8] sm:$0xff] %vm2084_vm2, %v10109_v6  ;;  %v33647_v12 = vand.u32 4294901760, %v33646_v56  ;;  %v33650_v39 = vld [vmem:[#allocation10_spill] sm:$0xff]  ;;  %v33655_v6 = vand.u32 4294901760, %v33654_v53 }
 0x4b6   : > { %22154 = vmatmul.mubr.f32.gmra.mrb[100].mxu1 %v33634_v40  ;;  %v10044_v51 = vpop.f32.mrb[95].mxu0  ;;  %v8106_v36 = vadd.f32 %v8074_v50, %v8024_v55  ;;  %10140 = vst.msk [vmem:[#allocation2 + $0xb0] sm:$0xff] %vm2084_vm2, %v10108_v1  ;;  %v33651_v40 = vand.u32 4294901760, %v33650_v39  ;;  %v33656_v27 = vld [vmem:[#allocation14_spill] sm:$0xff]  ;;  %v33691_v39 = vld [vmem:[#allocation68_spill] sm:$0xff] }
 0x4b7   : > { %22457 = vmatmul.mubr.f32.gmra.mrb[102].mxu0 %v33635_v37  ;;  %22156 = vmatprep.mubr.f32.mxu1 %v33636_v32  ;;  %8139 = vst.msk [vmem:[#allocation2 + $0xe8] sm:$0xff] %vm2084_vm2, %v8107_v47  ;;  %v10078_v33 = vld [vmem:[#allocation2 + $0xc0] sm:$0xff]  ;;  %v33652_v37 = vld [vmem:[#allocation34_spill] sm:$0xff]  ;;  %v33657_v28 = vand.u32 4294901760, %v33656_v27  ;;  %v33701_v27 = vand.u32 4294901760, %v28901_v61 }
 0x4b8   : > { %22459 = vmatprep.mubr.f32.mxu0 %v33637_v14  ;;  %8138 = vst.msk [vmem:[#allocation2 + $0xe0] sm:$0xff] %vm2084_vm2, %v8106_v36  ;;  %v21694_v2 = vpop.f32.mrb[94].mxu1  ;;  %v10110_v9 = vadd.f32 %v10078_v33, %v29270_v13  ;;  %v33653_v25 = vand.u32 4294901760, %v33652_v37  ;;  %v33658_v11 = vld [vmem:[#allocation42_spill] sm:$0xff]  ;;  %v33660_v47 = vld [vmem:[#allocation19_spill] sm:$0xff]  ;;  %v33693_v37 = vand.u32 4294901760, %v33618_v4 }
 0x4b9   : > { %v10079_v57 = vld [vmem:[#allocation2 + $0xc8] sm:$0xff]  ;;  %v8109_v44 = vadd.f32 %v21694_v2, %v8077_v54  ;;  %v8036_v58 = vpop.f32.mrb[95].mxu1  ;;  %v33659_v1 = vand.u32 4294901760, %v33658_v11  ;;  %v33661_v55 = vand.u32 4294901760, %v33660_v47  ;;  %v33669_v2 = vld [vmem:[#allocation89_spill] sm:$0xff]  ;;  %v33687_v56 = vld [vmem:[#allocation50_spill] sm:$0xff] }
 0x4ba   : > { %22157 = vmatmul.mubr.f32.gmra.mrb[102].mxu1 %v33638_v8  ;;  %v10111_v34 = vadd.f32 %v29266_v59, %v10079_v57  ;;  %v8108_v10 = vadd.f32 %v8076_v24, %v8036_v58  ;;  %v33644_v59 = vand.u32 4294901760, %v33592_v23  ;;  %10142 = vst.msk [vmem:[#allocation2 + $0xc0] sm:$0xff] %vm2084_vm2, %v10110_v9  ;;  %v10081_v13 = vld [vmem:[#allocation2 + $0xd8] sm:$0xff]  ;;  %v33666_v57 = vand.u32 4294901760, %v33604_v52  ;;  %v33673_v9 = vld [vmem:[#allocation24_spill] sm:$0xff]  ;;  %v33675_v58 = vld [vmem:[#allocation3_spill] sm:$0xff] }
 0x4bb   : > { %22460 = vmatmul.mubr.f32.gmra.mrb[104].mxu0 %v33639_v17  ;;  %22159 = vmatprep.mubr.f32.mxu1 %v33640_v26  ;;  %8141 = vst.msk [vmem:[#allocation2 + $0xf8] sm:$0xff] %vm2084_vm2, %v8109_v44  ;;  %v10113_v63 = vadd.f32 %v29287_v41, %v10081_v13  ;;  %v10080_v3 = vld [vmem:[#allocation2 + $0xd0] sm:$0xff]  ;;  %v33648_v23 = vld [vmem:[#allocation114_spill] sm:$0xff]  ;;  %v33662_v17 = vld [vmem:[#allocation56_spill] sm:$0xff]  ;;  %v33674_v44 = vand.u32 4294901760, %v33673_v9  ;;  %v33676_v24 = vand.u32 4294901760, %v33675_v58 }
 0x4bc   : > { %22462 = vmatprep.mubr.f32.mxu0 %v33641_v16  ;;  %10143 = vst.msk [vmem:[#allocation2 + $0xc8] sm:$0xff] %vm2084_vm2, %v10111_v34  ;;  %8140 = vst.msk [vmem:[#allocation2 + $0xf0] sm:$0xff] %vm2084_vm2, %v8108_v10  ;;  %v10112_v0 = vadd.f32 %v10080_v3, %v29290_v46  ;;  %v33649_v45 = vand.u32 4294901760, %v33648_v23  ;;  %v33663_v36 = vand.u32 4294901760, %v33662_v17  ;;  %v33664_v26 = vld [vmem:[#allocation106_spill] sm:$0xff]  ;;  %v33667_v34 = vld [vmem:[#allocation108_spill] sm:$0xff] }
 0x4bd   : > { %10145 = vst.msk [vmem:[#allocation2 + $0xd8] sm:$0xff] %vm2084_vm2, %v10113_v63  ;;  %v33665_v16 = vand.u32 4294901760, %v33664_v26  ;;  %v33668_v33 = vand.u32 4294901760, %v33667_v34  ;;  %v33683_v13 = vld [vmem:[#allocation17_spill] sm:$0xff]  ;;  %v33689_v23 = vld [vmem:[#allocation51_spill] sm:$0xff]  ;;  %v33703_v4 = vand.u32 4294901760, %v28918_v21 }
 0x4be   : > { %22160 = vmatmul.mubr.f32.gmra.mrb[104].mxu1 %v33642_v30  ;;  %10144 = vst.msk [vmem:[#allocation2 + $0xd0] sm:$0xff] %vm2084_vm2, %v10112_v0  ;;  %v10083_v41 = vld [vmem:[#allocation2 + $0xe8] sm:$0xff]  ;;  %v33677_v30 = vld [vmem:[#allocation25_spill] sm:$0xff]  ;;  %v33684_v63 = vand.u32 4294901760, %v33683_v13  ;;  %v33704_v11 = vand.u32 4294901760, %v28947_v48  ;;  %v33706_v47 = vand.u32 4294901760, %v28962_v15 }
 0x4bf   : > { %22463 = vmatmul.mubr.f32.gmra.mrb[106].mxu0 %v33643_v60  ;;  %22162 = vmatprep.mubr.f32.mxu1 %v33644_v59  ;;  %v10115_v32 = vadd.f32 %v29305_v18, %v10083_v41  ;;  %v10082_v46 = vld [vmem:[#allocation2 + $0xe0] sm:$0xff]  ;;  %v33678_v52 = vand.u32 4294901760, %v33677_v30  ;;  %v33679_v60 = vld [vmem:[#allocation26_spill] sm:$0xff]  ;;  %v33685_v3 = vld [vmem:[#allocation49_spill] sm:$0xff]  ;;  %v33709_v21 = vand.u32 4294901760, %v28987_v62  ;;  %v33710_v15 = vand.u32 4294901760, %v28997_v7 }
 0x4c0   : > { %22465 = vmatprep.mubr.f32.mxu0 %v33645_v42  ;;  %v10114_v14 = vadd.f32 %v10082_v46, %v10032_v35  ;;  %v33680_v10 = vand.u32 4294901760, %v33679_v60  ;;  %v33681_v59 = vld [vmem:[#allocation46_spill] sm:$0xff]  ;;  %v33686_v0 = vand.u32 4294901760, %v33685_v3  ;;  %v18708_v61 = vld [vmem:[%s31339_s0 + $0x20] sm:$0xf]  ;;  %v33725_v34 = vld [vmem:[#allocation96_spill] sm:$0xff] }
 0x4c1   : > { %10147 = vst.msk [vmem:[#allocation2 + $0xe8] sm:$0xff] %vm2084_vm2, %v10115_v32  ;;  %v33682_v42 = vand.u32 4294901760, %v33681_v59  ;;  %v33696_v32 = vld [vmem:[#allocation92_spill] sm:$0xff]  ;;  %v18675_v48 = vld [vmem:[%s31339_s0 + $0x1c] sm:$0xf]  ;;  %v33713_v62 = vld [vmem:[#allocation35_spill] sm:$0xff] }
 0x4c2   : > { %22163 = vmatmul.mubr.f32.gmra.mrb[106].mxu1 %v33647_v12  ;;  %10146 = vst.msk [vmem:[#allocation2 + $0xe0] sm:$0xff] %vm2084_vm2, %v10114_v14  ;;  %v10085_v50 = vld [vmem:[#allocation2 + $0xf8] sm:$0xff]  ;;  %v33688_v12 = vand.u32 4294901760, %v33687_v56  ;;  %v33697_v46 = vand.u32 4294901760, %v33696_v32  ;;  %v33698_v14 = vld [vmem:[#allocation104_spill] sm:$0xff]  ;;  %v33734_v58 = vld [vmem:[#allocation61_spill] sm:$0xff] }
 0x4c3   : > { %22466 = vmatmul.mubr.f32.gmra.mrb[108].mxu0 %v33649_v45  ;;  %22165 = vmatprep.mubr.f32.mxu1 %v33651_v40  ;;  %v10117_v18 = vadd.f32 %v21994_v5, %v10085_v50  ;;  %v10084_v8 = vld [vmem:[#allocation2 + $0xf0] sm:$0xff]  ;;  %v33670_v5 = vand.u32 4294901760, %v33669_v2  ;;  %v33690_v45 = vand.u32 4294901760, %v33689_v23  ;;  %v33692_v40 = vand.u32 4294901760, %v33691_v39  ;;  %v33718_v17 = vld [vmem:[#allocation18_spill] sm:$0xff]  ;;  %v33727_v2 = vld [vmem:[#allocation15_spill] sm:$0xff] }
 0x4c4   : > { %22468 = vmatprep.mubr.f32.mxu0 %v33653_v25  ;;  %v10116_v35 = vadd.f32 %v10084_v8, %v10044_v51  ;;  %v33671_v51 = vld [vmem:[#allocation101_spill] sm:$0xff]  ;;  %v33694_v25 = vld [vmem:[#allocation91_spill] sm:$0xff]  ;;  %v33699_v53 = vand.u32 4294901760, %v33698_v14  ;;  %v33721_v26 = vld [vmem:[#allocation66_spill] sm:$0xff] }
 0x4c5   : > { %10149 = vst.msk [vmem:[#allocation2 + $0xf8] sm:$0xff] %vm2084_vm2, %v10117_v18  ;;  %v33672_v54 = vand.u32 4294901760, %v33671_v51  ;;  %v33695_v41 = vand.u32 4294901760, %v33694_v25  ;;  %v33714_v18 = vld [vmem:[#allocation4_spill] sm:$0xff]  ;;  %v33715_v8 = vld [vmem:[#allocation37_spill] sm:$0xff]  ;;  %v33736_v30 = vld [vmem:[#allocation78_spill] sm:$0xff] }
 0x4c6   : > { %22166 = vmatmul.mubr.f32.gmra.mrb[108].mxu1 %v33655_v6  ;;  %10148 = vst.msk [vmem:[#allocation2 + $0xf0] sm:$0xff] %vm2084_vm2, %v10116_v35  ;;  %v33700_v6 = vand.u32 4294901760, %v28898_v31  ;;  %v33707_v31 = vand.u32 4294901760, %v28965_v22  ;;  %v33711_v22 = vld [vmem:[#allocation23_spill] sm:$0xff]  ;;  %v33717_v35 = vld [vmem:[#allocation41_spill] sm:$0xff]  ;;  %v33730_v51 = vld [vmem:[#allocation32_spill] sm:$0xff] }
 0x4c7   : > { %22469 = vmatmul.mubr.f32.gmra.mrb[110].mxu0 %v33657_v28  ;;  %22168 = vmatprep.mubr.f32.mxu1 %v33659_v1  ;;  %v33702_v28 = vand.u32 4294901760, %v28904_v19  ;;  %v33705_v1 = vand.u32 4294901760, %v28955_v49  ;;  %v33708_v19 = vand.u32 4294901760, %v28984_v29  ;;  %v16306_v49 = vsel %vm301_vm0, %v18708_v61, 0  ;;  %v33732_v9 = vld [vmem:[#allocation44_spill] sm:$0xff]  ;;  %v33742_v13 = vld [vmem:[#allocation7_spill] sm:$0xff] }
 0x4c8   : > { %22471 = vmatprep.mubr.f32.mxu0 %v33661_v55  ;;  %v29444_v55 = vsel %vm301_vm0, %v18675_v48, 0  ;;  %v29446_v50 = vand.u32 4294901760, %v16306_v49  ;;  %v33712_v29 = vand.u32 4294901760, %v29008_v20  ;;  %v33719_v20 = vld [vmem:[#allocation64_spill] sm:$0xff]  ;;  %v33744_v3 = vld [vmem:[#allocation43_spill] sm:$0xff]  ;;  %v33755_v32 = vld [vmem:[#allocation9_spill] sm:$0xff] }
 0x4c9   : > { %v29455_v7 = vand.u32 4294901760, %v29444_v55  ;;  %v33738_v60 = vld [vmem:[#allocation80_spill] sm:$0xff]  ;;  %v33746_v56 = vld [vmem:[#allocation55_spill] sm:$0xff]  ;;  %v33757_v14 = vld [vmem:[#allocation38_spill] sm:$0xff] }
 0x4ca   : > { %22169 = vmatmul.mubr.f32.gmra.mrb[110].mxu1 %v33663_v36  ;;  %v33720_v36 = vld [vmem:[#allocation65_spill] sm:$0xff]  ;;  %v33740_v59 = vld [vmem:[#allocation28_spill] sm:$0xff]  ;;  %v33748_v23 = vld [vmem:[#allocation63_spill] sm:$0xff] }
 0x4cb   : > { %22472 = vmatmul.mubr.f32.gmra.mrb[112].mxu0 %v33665_v16  ;;  %22171 = vmatprep.mubr.f32.mxu1 %v33666_v57  ;;  %33716 = vst [vmem:[#allocation111_spill] sm:$0xff] %v29455_v7  ;;  %v33723_v16 = vld [vmem:[#allocation100_spill] sm:$0xff]  ;;  %v33724_v57 = vld [vmem:[#allocation77_spill] sm:$0xff]  ;;  %v33753_v25 = vld [vmem:[#allocation87_spill] sm:$0xff]  ;;  %v29517_v48 = vsub.f32 %v29444_v55, %v29455_v7 }
 0x4cc   : > { %22474 = vmatprep.mubr.f32.mxu0 %v33668_v33  ;;  %v33726_v33 = vld [vmem:[#allocation97_spill] sm:$0xff]  ;;  %v33750_v39 = vld [vmem:[#allocation72_spill] sm:$0xff]  ;;  %v33776_v55 = vld [vmem:[#allocation122_spill] sm:$0xff] }
 0x4cd   : > { %v33766_v61 = vld [vmem:[#allocation113_spill] sm:$0xff] }
 0x4ce   : > { %22172 = vmatmul.mubr.f32.gmra.mrb[112].mxu1 %v33670_v5  ;;  %v33729_v5 = vld [vmem:[#allocation31_spill] sm:$0xff] }
 0x4cf   : > { %22475 = vmatmul.mubr.f32.gmra.mrb[114].mxu0 %v33672_v54  ;;  %22174 = vmatprep.mubr.f32.mxu1 %v33674_v44  ;;  %v33731_v54 = vld [vmem:[#allocation36_spill] sm:$0xff] }
 0x4d0   : > { %22477 = vmatprep.mubr.f32.mxu0 %v33676_v24  ;;  %v33733_v44 = vld [vmem:[#allocation16_spill] sm:$0xff]  ;;  %v33735_v24 = vld [vmem:[#allocation62_spill] sm:$0xff] }
 0x4d2   : > { %22175 = vmatmul.mubr.f32.gmra.mrb[114].mxu1 %v33678_v52  ;;  %v33737_v52 = vld [vmem:[#allocation79_spill] sm:$0xff] }
 0x4d3   : > { %22478 = vmatmul.mubr.f32.gmra.mrb[116].mxu0 %v33680_v10  ;;  %22177 = vmatprep.mubr.f32.mxu1 %v33682_v42  ;;  %v33739_v10 = vld [vmem:[#allocation103_spill] sm:$0xff]  ;;  %v33741_v42 = vld [vmem:[#allocation29_spill] sm:$0xff] }
 0x4d4   : > { %22480 = vmatprep.mubr.f32.mxu0 %v33684_v63  ;;  %v33743_v63 = vld [vmem:[#allocation30_spill] sm:$0xff] }
 0x4d6   : > { %22178 = vmatmul.mubr.f32.gmra.mrb[116].mxu1 %v33686_v0  ;;  %v33745_v0 = vld [vmem:[#allocation45_spill] sm:$0xff] }
 0x4d7   : > { %22481 = vmatmul.mubr.f32.gmra.mrb[118].mxu0 %v33688_v12  ;;  %22180 = vmatprep.mubr.f32.mxu1 %v33690_v45  ;;  %v33747_v12 = vld [vmem:[#allocation58_spill] sm:$0xff] }
 0x4d8   : > { %22483 = vmatprep.mubr.f32.mxu0 %v33692_v40  ;;  %v33749_v45 = vld [vmem:[#allocation70_spill] sm:$0xff]  ;;  %v33751_v40 = vld [vmem:[#allocation85_spill] sm:$0xff] }
 0x4da   : > { %22181 = vmatmul.mubr.f32.gmra.mrb[118].mxu1 %v33693_v37  ;;  %v33752_v37 = vld [vmem:[#allocation86_spill] sm:$0xff] }
 0x4db   : > { %22484 = vmatmul.mubr.f32.gmra.mrb[120].mxu0 %v33695_v41  ;;  %22183 = vmatprep.mubr.f32.mxu1 %v33697_v46  ;;  %v33754_v41 = vld [vmem:[#allocation88_spill] sm:$0xff]  ;;  %v33756_v46 = vld [vmem:[#allocation33_spill] sm:$0xff] }
 0x4dc   : > { %22486 = vmatprep.mubr.f32.mxu0 %v33699_v53  ;;  %v33758_v53 = vld [vmem:[#allocation39_spill] sm:$0xff] }
 0x4de   : > { %22184 = vmatmul.mubr.f32.gmra.mrb[120].mxu1 %v33700_v6  ;;  %v33759_v6 = vld [vmem:[#allocation40_spill] sm:$0xff] }
 0x4df   : > { %22487 = vmatmul.mubr.f32.gmra.mrb[122].mxu0 %v33701_v27  ;;  %22186 = vmatprep.mubr.f32.mxu1 %v33702_v28  ;;  %v33760_v27 = vld [vmem:[#allocation20_spill] sm:$0xff]  ;;  %v33761_v28 = vld [vmem:[#allocation69_spill] sm:$0xff] }
 0x4e0   : > { %22489 = vmatprep.mubr.f32.mxu0 %v33703_v4  ;;  %v33762_v4 = vld [vmem:[#allocation71_spill] sm:$0xff] }
 0x4e2   : > { %22187 = vmatmul.mubr.f32.gmra.mrb[122].mxu1 %v33704_v11  ;;  %v33763_v11 = vld [vmem:[#allocation73_spill] sm:$0xff] }
 0x4e3   : > { %22490 = vmatmul.mubr.f32.gmra.mrb[124].mxu0 %v33705_v1  ;;  %22189 = vmatprep.mubr.f32.mxu1 %v33706_v47  ;;  %v33764_v1 = vld [vmem:[#allocation74_spill] sm:$0xff]  ;;  %v29509_v47 = vsub.f32 %v16306_v49, %v29446_v50 }
 0x4e4   : > { %22492 = vmatprep.mubr.f32.mxu0 %v33707_v31  ;;  %v33765_v31 = vld [vmem:[#allocation112_spill] sm:$0xff]  ;;  %v33772_v49 = vld [vmem:[#allocation118_spill] sm:$0xff] }
 0x4e6   : > { %22190 = vmatmul.mubr.f32.gmra.mrb[124].mxu1 %v33708_v19  ;;  %v33767_v19 = vld [vmem:[#allocation115_spill] sm:$0xff] }
 0x4e7   : > { %22493 = vmatmul.mubr.f32.gmra.mrb[126].mxu0 %v33709_v21  ;;  %22192 = vmatprep.mubr.f32.mxu1 %v33710_v15  ;;  %v33768_v21 = vld [vmem:[#allocation116_spill] sm:$0xff]  ;;  %v29520_v15 = vand.u32 4294901760, %v29509_v47 }
 0x4e8   : > { %22497 = vmatprep.mubr.f32.mxu0 %v33711_v22 }
 0x4e9   : > { %33769 = vst [vmem:[#allocation117_spill] sm:$0xff] %v29520_v15 }
 0x4ea   : > { %22193 = vmatmul.mubr.f32.gmra.mrb[126].mxu1 %v33712_v29  ;;  %v33770_v29 = vld [vmem:[#allocation93_spill] sm:$0xff] }
 0x4eb   : > { %22498 = vmatmul.mubr.f32.vlgmr.msra.gmra.mrb[96].mxu0 %v33713_v62  ;;  %22197 = vmatprep.mubr.f32.mxu1 %v33714_v18 }
 0x4ec   : > { %22500 = vmatprep.mubr.f32.mxu0 %v33715_v8  ;;  %22546 = vmatpush3.msra.mxu0 %v27929_v43  ;;  %v33722_v43 = vld [vmem:[#allocation67_spill] sm:$0xff] }
 0x4ed   : > { %22895 = vmatprep.subr.mxu0 %v29446_v50 }
 0x4ee   : > { %22198 = vmatmul.mubr.f32.vlgmr.msra.gmra.mrb[96].mxu1 %v33717_v35 }
 0x4ef   : > { %22501 = vmatmul.mubr.f32.gmra.mrb[98].mxu0 %v33718_v17  ;;  %22246 = vmatpush3.msra.mxu1 %v33534_v38  ;;  %v33728_v38 = vld [vmem:[#allocation98_spill] sm:$0xff] }
 0x4f0   : > { %22200 = vmatprep.mubr.f32.mxu1 %v33719_v20  ;;  %22503 = vmatprep.mubr.f32.mxu0 %v33720_v36 }
 0x4f1   : > { %22595 = vmatprep.subr.mxu1 %v29455_v7 }
 0x4f2   : > { %22201 = vmatmul.mubr.f32.gmra.mrb[98].mxu1 %v33721_v26 }
 0x4f3   : > { %22504 = vmatmul.mubr.f32.gmra.mrb[100].mxu0 %v33722_v43  ;;  %22203 = vmatprep.mubr.f32.mxu1 %v33723_v16 }
 0x4f4   : > { %22506 = vmatprep.mubr.f32.mxu0 %v33724_v57 }
 0x4f6   : > { %22204 = vmatmul.mubr.f32.gmra.mrb[100].mxu1 %v33725_v34 }
 0x4f7   : > { %22507 = vmatmul.mubr.f32.gmra.mrb[102].mxu0 %v33726_v33  ;;  %22206 = vmatprep.mubr.f32.mxu1 %v33727_v2 }
 0x4f8   : > { %22509 = vmatprep.mubr.f32.mxu0 %v33728_v38 }
 0x4fa   : > { %22207 = vmatmul.mubr.f32.gmra.mrb[102].mxu1 %v33729_v5 }
 0x4fb   : > { %22510 = vmatmul.mubr.f32.gmra.mrb[104].mxu0 %v33730_v51  ;;  %22209 = vmatprep.mubr.f32.mxu1 %v33731_v54 }
 0x4fc   : > { %22512 = vmatprep.mubr.f32.mxu0 %v33732_v9 }
 0x4fe   : > { %22210 = vmatmul.mubr.f32.gmra.mrb[104].mxu1 %v33733_v44 }
 0x4ff   : > { %22513 = vmatmul.mubr.f32.gmra.mrb[106].mxu0 %v33734_v58  ;;  %22212 = vmatprep.mubr.f32.mxu1 %v33735_v24 }
 0x500   : > { %22515 = vmatprep.mubr.f32.mxu0 %v33736_v30 }
 0x502   : > { %22213 = vmatmul.mubr.f32.gmra.mrb[106].mxu1 %v33737_v52 }
 0x503   : > { %22516 = vmatmul.mubr.f32.gmra.mrb[108].mxu0 %v33738_v60  ;;  %22215 = vmatprep.mubr.f32.mxu1 %v33739_v10 }
 0x504   : > { %22518 = vmatprep.mubr.f32.mxu0 %v33740_v59 }
 0x506   : > { %22216 = vmatmul.mubr.f32.gmra.mrb[108].mxu1 %v33741_v42 }
 0x507   : > { %22519 = vmatmul.mubr.f32.gmra.mrb[110].mxu0 %v33742_v13  ;;  %22218 = vmatprep.mubr.f32.mxu1 %v33743_v63 }
 0x508   : > { %22521 = vmatprep.mubr.f32.mxu0 %v33744_v3 }
 0x50a   : > { %22219 = vmatmul.mubr.f32.gmra.mrb[110].mxu1 %v33745_v0 }
 0x50b   : > { %22522 = vmatmul.mubr.f32.gmra.mrb[112].mxu0 %v33746_v56  ;;  %22221 = vmatprep.mubr.f32.mxu1 %v33747_v12 }
 0x50c   : > { %22524 = vmatprep.mubr.f32.mxu0 %v33748_v23 }
 0x50e   : > { %22222 = vmatmul.mubr.f32.gmra.mrb[112].mxu1 %v33749_v45 }
 0x50f   : > { %22525 = vmatmul.mubr.f32.gmra.mrb[114].mxu0 %v33750_v39  ;;  %22224 = vmatprep.mubr.f32.mxu1 %v33751_v40 }
 0x510   : > { %22527 = vmatprep.mubr.f32.mxu0 %v33752_v37 }
 0x512   : > { %22225 = vmatmul.mubr.f32.gmra.mrb[114].mxu1 %v33753_v25 }
 0x513   : > { %22528 = vmatmul.mubr.f32.gmra.mrb[116].mxu0 %v33754_v41  ;;  %22227 = vmatprep.mubr.f32.mxu1 %v33755_v32 }
 0x514   : > { %22530 = vmatprep.mubr.f32.mxu0 %v33756_v46 }
 0x516   : > { %22228 = vmatmul.mubr.f32.gmra.mrb[116].mxu1 %v33757_v14 }
 0x517   : > { %22531 = vmatmul.mubr.f32.gmra.mrb[118].mxu0 %v33758_v53  ;;  %22230 = vmatprep.mubr.f32.mxu1 %v33759_v6 }
 0x518   : > { %22533 = vmatprep.mubr.f32.mxu0 %v33760_v27 }
 0x51a   : > { %22231 = vmatmul.mubr.f32.gmra.mrb[118].mxu1 %v33761_v28 }
 0x51b   : > { %22534 = vmatmul.mubr.f32.gmra.mrb[120].mxu0 %v33762_v4  ;;  %22233 = vmatprep.mubr.f32.mxu1 %v33763_v11  ;;  %v33777_v11 = vld [vmem:[#allocation105_spill] sm:$0xff] }
 0x51c   : > { %22536 = vmatprep.mubr.f32.mxu0 %v33764_v1  ;;  %v33771_v1 = vld [vmem:[#allocation94_spill] sm:$0xff] }
 0x51e   : > { %22234 = vmatmul.mubr.f32.gmra.mrb[120].mxu1 %v33765_v31  ;;  %v33773_v31 = vld [vmem:[#allocation119_spill] sm:$0xff] }
 0x51f   : > { %22537 = vmatmul.mubr.f32.gmra.mrb[122].mxu0 %v33766_v61  ;;  %22236 = vmatprep.mubr.f32.mxu1 %v33767_v19  ;;  %v29527_v61 = vand.u32 4294901760, %v29517_v48  ;;  %v33775_v19 = vld [vmem:[#allocation120_spill] sm:$0xff] }
 0x520   : > { %22539 = vmatprep.mubr.f32.mxu0 %v33768_v21  ;;  %v16698_v21 = vsub.f32 %v29509_v47, %v29520_v15 }
 0x521   : > { %33774 = vst [vmem:[#allocation11_spill] sm:$0xff] %v29527_v61 }
 0x522   : > { %22237 = vmatmul.mubr.f32.gmra.mrb[122].mxu1 %v33770_v29 }
 0x523   : > { %22540 = vmatmul.mubr.f32.gmra.mrb[124].mxu0 %v33771_v1  ;;  %22239 = vmatprep.mubr.f32.mxu1 %v33772_v49  ;;  %v14690_v1 = vsub.f32 %v29517_v48, %v29527_v61  ;;  %v29537_v49 = vand.u32 4294901760, %v16698_v21  ;;  %v18646_v21 = vld [vmem:[%s24699_s19 + $0x51] sm:$0xff]  ;;  %v18649_v61 = vld [vmem:[%s24699_s19 + $0x79] sm:$0xff] }
 0x524   : > { %22542 = vmatprep.mubr.f32.mxu0 %v33773_v31  ;;  %v33778_v31 = vld [vmem:[#allocation110_spill] sm:$0xff] }
 0x525   : > { %v29544_v15 = vand.u32 4294901760, %v14690_v1  ;;  %v18680_v1 = vld [vmem:[%s24699_s19 + $0x62] sm:$0xff] }
 0x526   : > { %22240 = vmatmul.mubr.f32.gmra.mrb[124].mxu1 %v33775_v19 }
 0x527   : > { %22543 = vmatmul.mubr.f32.gmra.mrb[126].mxu0 %v33776_v55  ;;  %22242 = vmatprep.mubr.f32.mxu1 %v33777_v11 }
 0x528   : > { %22547 = vmatprep.mubr.f32.mxu0 %v33711_v22  ;;  %v18676_v22 = vld [vmem:[%s24699_s19 + $0x32] sm:$0xff] }
 0x52a   : > { %22243 = vmatmul.mubr.f32.gmra.mrb[126].mxu1 %v33778_v31 }
 0x52b   : > { %22548 = vmatmul.mubr.f32.vlgmr.msra.gmra.mrb[96].mxu0 %v33713_v62  ;;  %22247 = vmatprep.mubr.f32.mxu1 %v33714_v18  ;;  %v16210_v62 = vsel %vm204_vm1, %v18676_v22, 0  ;;  %v18677_v18 = vld [vmem:[%s24699_s19 + $0x3a] sm:$0xff] }
 0x52c   : > { %22550 = vmatprep.mubr.f32.mxu0 %v33715_v8  ;;  %22896 = vmatpush3.msra.mxu0 %v29446_v50  ;;  %v18643_v8 = vld [vmem:[%s24699_s19 + $0x31] sm:$0xff] }
 0x52d   : > { %22945 = vmatprep.subr.mxu0 %v29537_v49 }
 0x52e   : > { %22248 = vmatmul.mubr.f32.vlgmr.msra.gmra.mrb[96].mxu1 %v33717_v35  ;;  %v18678_v35 = vld [vmem:[%s24699_s19 + $0x4a] sm:$0xff] }
 0x52f   : > { %22551 = vmatmul.mubr.f32.gmra.mrb[98].mxu0 %v33718_v17  ;;  %22596 = vmatpush3.msra.mxu1 %v29455_v7  ;;  %v18644_v17 = vld [vmem:[%s24699_s19 + $0x39] sm:$0xff] }
 0x530   : > { %22250 = vmatprep.mubr.f32.mxu1 %v33719_v20  ;;  %22553 = vmatprep.mubr.f32.mxu0 %v33720_v36  ;;  %v18679_v20 = vld [vmem:[%s24699_s19 + $0x52] sm:$0xff]  ;;  %v29568_v36 = vand.u32 4294901760, %v16210_v62 }
 0x531   : > { %22645 = vmatprep.subr.mxu1 %v29544_v15 }
 0x532   : > { %22251 = vmatmul.mubr.f32.gmra.mrb[98].mxu1 %v33721_v26  ;;  %33779 = vst [vmem:[#allocation47_spill] sm:$0xff] %v29568_v36  ;;  %v16213_v26 = vsel %vm204_vm1, %v18677_v18, 0  ;;  %v16222_v18 = vsel %vm204_vm1, %v18680_v1, 0 }
 0x533   : > { %22554 = vmatmul.mubr.f32.gmra.mrb[100].mxu0 %v33722_v43  ;;  %22253 = vmatprep.mubr.f32.mxu1 %v33723_v16  ;;  %v14202_v43 = vsel %vm204_vm1, %v18643_v8, 0  ;;  %v16216_v16 = vsel %vm204_vm1, %v18678_v35, 0  ;;  %v18681_v8 = vld [vmem:[%s24699_s19 + $0x6a] sm:$0xff] }
 0x534   : > { %22556 = vmatprep.mubr.f32.mxu0 %v33724_v57  ;;  %v14205_v57 = vsel %vm204_vm1, %v18644_v17, 0 }
 0x536   : > { %22254 = vmatmul.mubr.f32.gmra.mrb[100].mxu1 %v33725_v34  ;;  %v16219_v34 = vsel %vm204_vm1, %v18679_v20, 0 }
 0x537   : > { %22557 = vmatmul.mubr.f32.gmra.mrb[102].mxu0 %v33726_v33  ;;  %22256 = vmatprep.mubr.f32.mxu1 %v33727_v2  ;;  %v29579_v33 = vand.u32 4294901760, %v16213_v26  ;;  %v29582_v2 = vsub.f32 %v16210_v62, %v29568_v36 }
 0x538   : > { %22559 = vmatprep.mubr.f32.mxu0 %v33728_v38  ;;  %v29584_v38 = vand.u32 4294901760, %v14202_v43 }
 0x539   : > { %33780 = vst [vmem:[#allocation6_spill] sm:$0xff] %v29579_v33  ;;  %33781 = vst [vmem:[#allocation48_spill] sm:$0xff] %v29582_v2  ;;  %v29600_v22 = vsub.f32 %v16213_v26, %v29579_v33 }
 0x53a   : > { %22257 = vmatmul.mubr.f32.gmra.mrb[102].mxu1 %v33729_v5  ;;  %33782 = vst [vmem:[#allocation21_spill] sm:$0xff] %v29584_v38  ;;  %v29586_v5 = vand.u32 4294901760, %v16216_v16  ;;  %v29608_v35 = vsub.f32 %v14202_v43, %v29584_v38  ;;  %v29626_v43 = vand.u32 4294901760, %v16222_v18 }
 0x53b   : > { %22560 = vmatmul.mubr.f32.gmra.mrb[104].mxu0 %v33730_v51  ;;  %22259 = vmatprep.mubr.f32.mxu1 %v33731_v54  ;;  %v18645_v51 = vld [vmem:[%s24699_s19 + $0x49] sm:$0xff]  ;;  %v29592_v54 = vand.u32 4294901760, %v14205_v57  ;;  %33786 = vst [vmem:[#allocation75_spill] sm:$0xff] %v29600_v22 }
 0x53c   : > { %22562 = vmatprep.mubr.f32.mxu0 %v33732_v9  ;;  %33783 = vst [vmem:[#allocation53_spill] sm:$0xff] %v29586_v5  ;;  %v29594_v9 = vand.u32 4294901760, %v16219_v34  ;;  %v14208_v62 = vsel %vm204_vm1, %v18645_v51, 0  ;;  %33787 = vst [vmem:[#allocation22_spill] sm:$0xff] %v29608_v35  ;;  %v18648_v51 = vld [vmem:[%s24699_s19 + $0x69] sm:$0xff] }
 0x53d   : > { %33784 = vst [vmem:[#allocation54_spill] sm:$0xff] %v29592_v54  ;;  %v29617_v17 = vsub.f32 %v14205_v57, %v29592_v54  ;;  %v29624_v26 = vand.u32 4294901760, %v14208_v62  ;;  %33792 = vst [vmem:[#allocation121_spill] sm:$0xff] %v29626_v43 }
 0x53e   : > { %22260 = vmatmul.mubr.f32.gmra.mrb[104].mxu1 %v33733_v44  ;;  %33785 = vst [vmem:[#allocation109_spill] sm:$0xff] %v29594_v9  ;;  %v18647_v44 = vld [vmem:[%s24699_s19 + $0x61] sm:$0xff]  ;;  %v29620_v20 = vsub.f32 %v16219_v34, %v29594_v9 }
 0x53f   : > { %22563 = vmatmul.mubr.f32.gmra.mrb[106].mxu0 %v33734_v58  ;;  %22262 = vmatprep.mubr.f32.mxu1 %v33735_v24  ;;  %v32110_v58 = vand.u32 4294901760, %v29582_v2  ;;  %v29611_v24 = vsub.f32 %v16216_v16, %v29586_v5  ;;  %33789 = vst [vmem:[#allocation84_spill] sm:$0xff] %v29617_v17  ;;  %33791 = vst [vmem:[#allocation99_spill] sm:$0xff] %v29624_v26  ;;  %v18682_v16 = vld [vmem:[%s24699_s19 + $0x7a] sm:$0xff] }
 0x540   : > { %22565 = vmatprep.mubr.f32.mxu0 %v33736_v30  ;;  %v14211_v30 = vsel %vm204_vm1, %v18646_v21, 0  ;;  %33790 = vst [vmem:[#allocation95_spill] sm:$0xff] %v29620_v20  ;;  %v18683_v21 = vld [vmem:[%s24699_s19 + $0x82] sm:$0xff] }
 0x541   : > { %33788 = vst [vmem:[#allocation76_spill] sm:$0xff] %v29611_v24  ;;  %v29631_v57 = vand.u32 4294901760, %v14211_v30  ;;  %v29637_v34 = vsub.f32 %v29582_v2, %v32110_v58  ;;  %v16228_v58 = vsel %vm204_vm1, %v18682_v16, 0  ;;  %v14220_v16 = vsel %vm204_vm1, %v18649_v61, 0  ;;  %v18651_v2 = vld [vmem:[%s24699_s19 + $0x91] sm:$0xff] }
 0x542   : > { %22263 = vmatmul.mubr.f32.gmra.mrb[106].mxu1 %v33737_v52  ;;  %v16225_v52 = vsel %vm204_vm1, %v18681_v8, 0  ;;  %v18684_v8 = vld [vmem:[%s24699_s19 + $0x92] sm:$0xff]  ;;  %v29706_v61 = vand.u32 4294901760, %v14220_v16 }
 0x543   : > { %22566 = vmatmul.mubr.f32.gmra.mrb[108].mxu0 %v33738_v60  ;;  %22265 = vmatprep.mubr.f32.mxu1 %v33739_v10  ;;  %v14214_v60 = vsel %vm204_vm1, %v18647_v44, 0  ;;  %33793 = vst [vmem:[#allocation5_spill] sm:$0xff] %v29631_v57  ;;  %v29648_v7 = vand.u32 4294901760, %v16225_v52  ;;  %v29664_v44 = vsub.f32 %v14211_v30, %v29631_v57  ;;  %v16231_v10 = vsel %vm204_vm1, %v18683_v21, 0 }
 0x544   : > { %22568 = vmatprep.mubr.f32.mxu0 %v33740_v59  ;;  %v29650_v9 = vand.u32 4294901760, %v14214_v60  ;;  %v29657_v59 = vsub.f32 %v14208_v62, %v29624_v26  ;;  %v33800_v62 = vand.u32 4294901760, %v29608_v35  ;;  %v33801_v30 = vand.u32 4294901760, %v29611_v24  ;;  %33808 = vst [vmem:[#allocation107_spill] sm:$0xff] %v29706_v61 }
 0x545   : > { %33794 = vst [vmem:[#allocation27_spill] sm:$0xff] %v29648_v7  ;;  %33798 = vst [vmem:[#allocation57_spill] sm:$0xff] %v29664_v44  ;;  %v29684_v21 = vand.u32 4294901760, %v16228_v58 }
 0x546   : > { %22266 = vmatmul.mubr.f32.gmra.mrb[108].mxu1 %v33741_v42  ;;  %33795 = vst [vmem:[#allocation8_spill] sm:$0xff] %v29650_v9  ;;  %33796 = vst [vmem:[#allocation12_spill] sm:$0xff] %v29657_v59  ;;  %v29660_v42 = vsub.f32 %v16222_v18, %v29626_v43  ;;  %v29677_v18 = vsub.f32 %v29608_v35, %v33800_v62 }
 0x547   : > { %22569 = vmatmul.mubr.f32.gmra.mrb[110].mxu0 %v33742_v13  ;;  %22268 = vmatprep.mubr.f32.mxu1 %v33743_v63  ;;  %v14217_v13 = vsel %vm204_vm1, %v18648_v51, 0  ;;  %v16234_v63 = vsel %vm204_vm1, %v18684_v8, 0  ;;  %v29682_v51 = vsub.f32 %v29611_v24, %v33801_v30  ;;  %33802 = vst [vmem:[#allocation59_spill] sm:$0xff] %v29684_v21  ;;  %v29690_v8 = vsub.f32 %v16225_v52, %v29648_v7 }
 0x548   : > { %22571 = vmatprep.mubr.f32.mxu0 %v33744_v3  ;;  %33797 = vst [vmem:[#allocation52_spill] sm:$0xff] %v29660_v42  ;;  %v33799_v3 = vand.u32 4294901760, %v29600_v22  ;;  %v29695_v62 = vand.u32 4294901760, %v14217_v13  ;;  %v33806_v30 = vand.u32 4294901760, %v29617_v17  ;;  %v29708_v52 = vand.u32 4294901760, %v16234_v63 }
 0x549   : > { %33803 = vst [vmem:[#allocation60_spill] sm:$0xff] %v29690_v8  ;;  %v33810_v24 = vand.u32 4294901760, %v29620_v20 }
 0x54a   : > { %v29672_v1 = vsub.f32 %v29600_v22, %v33799_v3  ;;  %22269 = vmatmul.mubr.f32.gmra.mrb[110].mxu1 %v33745_v0  ;;  %v29693_v3 = vsub.f32 %v14214_v60, %v29650_v9  ;;  %33805 = vst [vmem:[#allocation83_spill] sm:$0xff] %v29695_v62  ;;  %v29702_v0 = vsub.f32 %v29617_v17, %v33806_v30  ;;  %33809 = vst [vmem:[#allocation81_spill] sm:$0xff] %v29708_v52  ;;  %v18650_v60 = vld [vmem:[%s24699_s19 + $0x81] sm:$0xff] }
 0x54b   : > { %22572 = vmatmul.mubr.f32.gmra.mrb[112].mxu0 %v33746_v56  ;;  %22271 = vmatprep.mubr.f32.mxu1 %v33747_v12  ;;  %v29704_v56 = vand.u32 4294901760, %v16231_v10  ;;  %v29714_v12 = vsub.f32 %v29620_v20, %v33810_v24  ;;  %v29723_v9 = vsub.f32 %v16228_v58, %v29684_v21  ;;  %v29730_v30 = vsub.f32 %v14217_v13, %v29695_v62  ;;  %v18685_v17 = vld [vmem:[%s24699_s19 + $0x9a] sm:$0xff]  ;;  %v18686_v13 = vld [vmem:[%s24699_s19 + $0xaa] sm:$0xff] }
 0x54c   : > { %33804 = vst [vmem:[#allocation82_spill] sm:$0xff] %v29693_v3  ;;  %22574 = vmatprep.mubr.f32.mxu0 %v33748_v23  ;;  %v32125_v23 = vand.u32 4294901760, %v29657_v59  ;;  %v14223_v22 = vsel %vm204_vm1, %v18650_v60, 0  ;;  %v29742_v58 = vsub.f32 %v14220_v16, %v29706_v61  ;;  %v29745_v35 = vsub.f32 %v16234_v63, %v29708_v52  ;;  %v18652_v63 = vld [vmem:[%s24699_s19 + $0x99] sm:$0xff] }
 0x54d   : > { %33807 = vst [vmem:[#allocation90_spill] sm:$0xff] %v29704_v56  ;;  %33811 = vst [vmem:[#allocation102_spill] sm:$0xff] %v29723_v9  ;;  %v29766_v20 = vand.u32 4294901760, %v14223_v22  ;;  %v16237_v60 = vsel %vm204_vm1, %v18685_v17, 0  ;;  %v16240_v17 = vsel %vm204_vm1, %v18686_v13, 0  ;;  %v33837_v52 = vld [vmem:[#allocation74_spill] sm:$0xff] }
 0x54e   : > { %22272 = vmatmul.mubr.f32.gmra.mrb[112].mxu1 %v33749_v45  ;;  %33812 = vst [vmem:[#allocation114_spill] sm:$0xff] %v29730_v30  ;;  %33814 = vst [vmem:[#allocation34_spill] sm:$0xff] %v29742_v58  ;;  %v29792_v13 = vand.u32 4294901760, %v16237_v60 }
 0x54f   : > { %22575 = vmatmul.mubr.f32.gmra.mrb[114].mxu0 %v33750_v39  ;;  %22274 = vmatprep.mubr.f32.mxu1 %v33751_v40  ;;  %v29739_v39 = vsub.f32 %v16231_v10, %v29704_v56  ;;  %33815 = vst [vmem:[#allocation13_spill] sm:$0xff] %v29745_v35  ;;  %v29752_v40 = vsub.f32 %v29657_v59, %v32125_v23  ;;  %v33817_v10 = vand.u32 4294901760, %v29664_v44  ;;  %33818 = vst [vmem:[#allocation14_spill] sm:$0xff] %v29766_v20 }
 0x550   : > { %22577 = vmatprep.mubr.f32.mxu0 %v33752_v37  ;;  %v33816_v37 = vand.u32 4294901760, %v29660_v42  ;;  %v14226_v23 = vsel %vm204_vm1, %v18651_v2, 0  ;;  %33821 = vst [vmem:[#allocation42_spill] sm:$0xff] %v29792_v13  ;;  %v29804_v2 = vsub.f32 %v14223_v22, %v29766_v20  ;;  %v33826_v59 = vand.u32 4294901760, %v29730_v30 }
 0x551   : > { %33813 = vst [vmem:[#allocation10_spill] sm:$0xff] %v29739_v39  ;;  %v29762_v16 = vsub.f32 %v29664_v44, %v33817_v10  ;;  %v33820_v10 = vand.u32 4294901760, %v29693_v3  ;;  %v18653_v44 = vld [vmem:[%s24699_s19 + $0xa9] sm:$0xff] }
 0x552   : > { %v29757_v45 = vsub.f32 %v29660_v42, %v33816_v37  ;;  %22275 = vmatmul.mubr.f32.gmra.mrb[114].mxu1 %v33753_v25  ;;  %v33819_v37 = vand.u32 4294901760, %v29690_v8  ;;  %v33823_v25 = vand.u32 4294901760, %v29723_v9  ;;  %33824 = vst [vmem:[#allocation56_spill] sm:$0xff] %v29804_v2 }
 0x553   : > { %22578 = vmatmul.mubr.f32.gmra.mrb[116].mxu0 %v33754_v41  ;;  %v29780_v24 = vsub.f32 %v29693_v3, %v33820_v10  ;;  %22277 = vmatprep.mubr.f32.mxu1 %v33755_v32  ;;  %v29794_v3 = vand.u32 4294901760, %v14226_v23  ;;  %v18687_v32 = vld [vmem:[%s24699_s19 + $0xb2] sm:$0xff]  ;;  %v18688_v10 = vld [vmem:[%s24699_s19 + $0xc2] sm:$0xff] }
 0x554   : > { %v29775_v42 = vsub.f32 %v29690_v8, %v33819_v37  ;;  %22580 = vmatprep.mubr.f32.mxu0 %v33756_v46  ;;  %v14229_v37 = vsel %vm204_vm1, %v18652_v63, 0  ;;  %v29801_v41 = vsub.f32 %v29723_v9, %v33823_v25  ;;  %v29806_v63 = vand.u32 4294901760, %v16240_v17  ;;  %v18654_v9 = vld [vmem:[%s24699_s19 + $0xb1] sm:$0xff] }
 0x555   : > { %33822 = vst [vmem:[#allocation19_spill] sm:$0xff] %v29794_v3  ;;  %v29817_v25 = vsub.f32 %v29730_v30, %v33826_v59  ;;  %v29819_v22 = vand.u32 4294901760, %v14229_v37  ;;  %v33829_v8 = vand.u32 4294901760, %v29742_v58  ;;  %v33830_v59 = vand.u32 4294901760, %v29745_v35 }
 0x556   : > { %33825 = vst [vmem:[#allocation106_spill] sm:$0xff] %v29806_v63  ;;  %22278 = vmatmul.mubr.f32.gmra.mrb[116].mxu1 %v33757_v14  ;;  %v33828_v14 = vand.u32 4294901760, %v29739_v39  ;;  %v16243_v20 = vsel %vm204_vm1, %v18687_v32, 0  ;;  %v14235_v32 = vsel %vm204_vm1, %v18654_v9, 0 }
 0x557   : > { %22581 = vmatmul.mubr.f32.gmra.mrb[118].mxu0 %v33758_v53  ;;  %33827 = vst [vmem:[#allocation108_spill] sm:$0xff] %v29819_v22  ;;  %22280 = vmatprep.mubr.f32.mxu1 %v33759_v6  ;;  %v29832_v46 = vsub.f32 %v29742_v58, %v33829_v8  ;;  %v29837_v30 = vsub.f32 %v29745_v35, %v33830_v59  ;;  %v18689_v6 = vld [vmem:[%s24699_s19 + $0xca] sm:$0xff]  ;;  %v16246_v8 = vsel %vm204_vm1, %v18688_v10, 0 }
 0x558   : > { %22583 = vmatprep.mubr.f32.mxu0 %v33760_v27  ;;  %v29827_v53 = vsub.f32 %v29739_v39, %v33828_v14  ;;  %v29842_v27 = vsub.f32 %v16237_v60, %v29792_v13  ;;  %v29845_v14 = vsub.f32 %v14226_v23, %v29794_v3  ;;  %v14232_v39 = vsel %vm204_vm1, %v18653_v44, 0  ;;  %v33836_v58 = vld [vmem:[#allocation73_spill] sm:$0xff]  ;;  %v33847_v13 = vld [vmem:[#allocation116_spill] sm:$0xff] }
 0x559   : > { %v29852_v59 = vsub.f32 %v16240_v17, %v29806_v63  ;;  %v29859_v44 = vsub.f32 %v14229_v37, %v29819_v22  ;;  %v29861_v60 = vand.u32 4294901760, %v16243_v20  ;;  %v16249_v10 = vsel %vm204_vm1, %v18689_v6, 0  ;;  %v18655_v17 = vld [vmem:[%s24699_s19 + $0xc1] sm:$0xff]  ;;  %v18656_v35 = vld [vmem:[%s24699_s19 + $0xc9] sm:$0xff] }
 0x55a   : > { %33831 = vst [vmem:[#allocation89_spill] sm:$0xff] %v29842_v27  ;;  %33832 = vst [vmem:[#allocation101_spill] sm:$0xff] %v29845_v14  ;;  %22281 = vmatmul.mubr.f32.gmra.mrb[118].mxu1 %v33761_v28  ;;  %v29869_v9 = vand.u32 4294901760, %v14232_v39  ;;  %v29871_v23 = vand.u32 4294901760, %v16246_v8  ;;  %v18690_v37 = vld [vmem:[%s24699_s19 + $0xda] sm:$0xff]  ;;  %v29878_v3 = vand.u32 4294901760, %v14235_v32 }
 0x55b   : > { %33833 = vst [vmem:[#allocation24_spill] sm:$0xff] %v29852_v59  ;;  %22584 = vmatmul.mubr.f32.gmra.mrb[120].mxu0 %v33762_v4  ;;  %33834 = vst [vmem:[#allocation3_spill] sm:$0xff] %v29859_v44  ;;  %22283 = vmatprep.mubr.f32.mxu1 %v33836_v58  ;;  %v18691_v58 = vld [vmem:[%s24699_s19 + $0xe2] sm:$0xff]  ;;  %v33841_v28 = vand.u32 4294901760, %v29804_v2  ;;  %v29888_v61 = vand.u32 4294901760, %v16249_v10  ;;  %v14238_v56 = vsel %vm204_vm1, %v18655_v17, 0  ;;  %v29895_v62 = vsub.f32 %v16243_v20, %v29861_v60 }
 0x55c   : > { %33835 = vst [vmem:[#allocation25_spill] sm:$0xff] %v29861_v60  ;;  %22586 = vmatprep.mubr.f32.mxu0 %v33837_v52  ;;  %33838 = vst [vmem:[#allocation26_spill] sm:$0xff] %v29869_v9  ;;  %v18657_v52 = vld [vmem:[%s24699_s19 + $0xd9] sm:$0xff]  ;;  %v33843_v22 = vld [vmem:[#allocation112_spill] sm:$0xff]  ;;  %v16252_v21 = vsel %vm204_vm1, %v18690_v37, 0  ;;  %v29902_v17 = vsub.f32 %v14232_v39, %v29869_v9  ;;  %v33850_v20 = vand.u32 4294901760, %v29842_v27  ;;  %v29920_v39 = vsub.f32 %v14235_v32, %v29878_v3 }
 0x55d   : > { %33839 = vst [vmem:[#allocation46_spill] sm:$0xff] %v29871_v23  ;;  %33840 = vst [vmem:[#allocation17_spill] sm:$0xff] %v29878_v3  ;;  %v29885_v4 = vsub.f32 %v29804_v2, %v33841_v28  ;;  %v33844_v63 = vld [vmem:[#allocation113_spill] sm:$0xff]  ;;  %v14241_v28 = vsel %vm204_vm1, %v18656_v35, 0  ;;  %v33846_v2 = vld [vmem:[#allocation115_spill] sm:$0xff]  ;;  %v14244_v6 = vsel %vm204_vm1, %v18657_v52, 0  ;;  %v29927_v52 = vsub.f32 %v16249_v10, %v29888_v61 }
 0x55e   : > { %33842 = vst [vmem:[#allocation49_spill] sm:$0xff] %v29888_v61  ;;  %22284 = vmatmul.mubr.f32.gmra.mrb[120].mxu1 %v33843_v22  ;;  %33845 = vst [vmem:[#allocation50_spill] sm:$0xff] %v29895_v62  ;;  %v29905_v22 = vsub.f32 %v16246_v8, %v29871_v23  ;;  %v29912_v37 = vsub.f32 %v29842_v27, %v33850_v20  ;;  %v33851_v35 = vand.u32 4294901760, %v29845_v14  ;;  %v18692_v8 = vld [vmem:[%s24699_s19 + $0xf2] sm:$0xff]  ;;  %v29929_v23 = vand.u32 4294901760, %v16252_v21  ;;  %v18658_v10 = vld [vmem:[%s24699_s19 + $0xe1] sm:$0xff] }
 0x55f   : > { %22587 = vmatmul.mubr.f32.gmra.mrb[122].mxu0 %v33844_v63  ;;  %22286 = vmatprep.mubr.f32.mxu1 %v33846_v2  ;;  %33848 = vst [vmem:[#allocation51_spill] sm:$0xff] %v29902_v17  ;;  %v16255_v63 = vsel %vm204_vm1, %v18691_v58, 0  ;;  %33852 = vst [vmem:[#allocation91_spill] sm:$0xff] %v29920_v39  ;;  %v29931_v20 = vand.u32 4294901760, %v14241_v28  ;;  %v33857_v27 = vld [vmem:[#allocation94_spill] sm:$0xff]  ;;  %v29943_v58 = vand.u32 4294901760, %v14244_v6 }
 0x560   : > { %22589 = vmatprep.mubr.f32.mxu0 %v33847_v13  ;;  %33849 = vst [vmem:[#allocation68_spill] sm:$0xff] %v29905_v22  ;;  %v29917_v2 = vsub.f32 %v29845_v14, %v33851_v35  ;;  %v29922_v13 = vand.u32 4294901760, %v14238_v56  ;;  %33854 = vst [vmem:[#allocation104_spill] sm:$0xff] %v29927_v52  ;;  %v33858_v35 = vand.u32 4294901760, %v29852_v59  ;;  %v29941_v3 = vand.u32 4294901760, %v16255_v63  ;;  %v33861_v61 = vld [vmem:[#allocation118_spill] sm:$0xff] }
 0x561   : > { %33855 = vst [vmem:[#allocation23_spill] sm:$0xff] %v29929_v23  ;;  %33856 = vst [vmem:[#allocation35_spill] sm:$0xff] %v29931_v20  ;;  %v33862_v9 = vld [vmem:[#allocation119_spill] sm:$0xff]  ;;  %v16258_v14 = vsel %vm204_vm1, %v18692_v8, 0  ;;  %v14247_v8 = vsel %vm204_vm1, %v18658_v10, 0  ;;  %v29978_v60 = vsub.f32 %v14244_v6, %v29943_v58  ;;  %v33870_v10 = vand.u32 4294901760, %v29637_v34 }
 0x562   : > { %33853 = vst [vmem:[#allocation92_spill] sm:$0xff] %v29922_v13  ;;  %22287 = vmatmul.mubr.f32.gmra.mrb[122].mxu1 %v33770_v29  ;;  %v29938_v32 = vsub.f32 %v29852_v59, %v33858_v35  ;;  %33859 = vst [vmem:[#allocation4_spill] sm:$0xff] %v29941_v3  ;;  %v33863_v29 = vand.u32 4294901760, %v29859_v44  ;;  %v29967_v35 = vsub.f32 %v14241_v28, %v29931_v20  ;;  %v18693_v59 = vld [vmem:[%s24699_s19 + $0xfa] sm:$0xff]  ;;  %v18659_v28 = vld [vmem:[%s24699_s19 + $0xf1] sm:$0xff]  ;;  %v33873_v57 = vand.u32 4294901760, %v29905_v22 }
 0x563   : > { %22590 = vmatmul.mubr.f32.gmra.mrb[124].mxu0 %v33857_v27  ;;  %33860 = vst [vmem:[#allocation37_spill] sm:$0xff] %v29943_v58  ;;  %22289 = vmatprep.mubr.f32.mxu1 %v33861_v61  ;;  %33868 = vst [vmem:[#allocation66_spill] sm:$0xff] %v29978_v60  ;;  %v33874_v34 = vand.u32 4294901760, %v29920_v39 }
 0x564   : > { %22592 = vmatprep.mubr.f32.mxu0 %v33862_v9  ;;  %v29951_v27 = vsub.f32 %v29859_v44, %v33863_v29  ;;  %v29960_v9 = vsub.f32 %v14238_v56, %v29922_v13  ;;  %v29964_v29 = vsub.f32 %v16252_v21, %v29929_v23  ;;  %33866 = vst [vmem:[#allocation64_spill] sm:$0xff] %v29967_v35  ;;  %v29980_v21 = vand.u32 4294901760, %v16258_v14 }
 0x565   : > { %v29975_v56 = vsub.f32 %v16255_v63, %v29941_v3  ;;  %v33872_v63 = vand.u32 4294901760, %v29902_v17  ;;  %v30000_v61 = vsub.f32 %v29905_v22, %v33873_v57  ;;  %v14250_v44 = vsel %vm204_vm1, %v18659_v28, 0  ;;  %v18695_v28 = vld [vmem:[%s24699_s19 + $0x112] sm:$0xff] }
 0x566   : > { %33864 = vst [vmem:[#allocation41_spill] sm:$0xff] %v29960_v9  ;;  %33865 = vst [vmem:[#allocation18_spill] sm:$0xff] %v29964_v29  ;;  %22290 = vmatmul.mubr.f32.gmra.mrb[124].mxu1 %v33775_v19  ;;  %v33879_v22 = vand.u32 4294901760, %v29677_v18  ;;  %v33882_v18 = vand.u32 4294901760, %v29960_v9  ;;  %v33889_v19 = vand.u32 4294901760, %v29714_v12 }
 0x567   : > { %22593 = vmatmul.mubr.f32.gmra.mrb[126].mxu0 %v33776_v55  ;;  %33867 = vst [vmem:[#allocation65_spill] sm:$0xff] %v29975_v56  ;;  %33869 = vst [vmem:[#allocation67_spill] sm:$0xff] %v29980_v21  ;;  %22292 = vmatprep.mubr.f32.mxu1 %v33777_v11  ;;  %v33871_v55 = vand.u32 4294901760, %v29895_v62  ;;  %v29995_v6 = vsub.f32 %v29902_v17, %v33872_v63  ;;  %v18694_v11 = vld [vmem:[%s24699_s19 + $0x10a] sm:$0xff]  ;;  %v33876_v63 = vand.u32 4294901760, %v29927_v52 }
 0x568   : > { %22897 = vmatprep.mubr.f32.mxu0 %v33870_v10  ;;  %v30006_v10 = vsub.f32 %v29920_v39, %v33874_v34  ;;  %v33877_v34 = vand.u32 4294901760, %v29672_v1  ;;  %v16264_v57 = vsel %vm204_vm1, %v18694_v11, 0  ;;  %v18696_v1 = vld [vmem:[%s24699_s19 + $0x122] sm:$0xff]  ;;  %v33886_v11 = vand.u32 4294901760, %v29967_v35  ;;  %v18697_v39 = vld [vmem:[%s24699_s19 + $0x12a] sm:$0xff] }
 0x569   : > { %v29990_v7 = vsub.f32 %v29895_v62, %v33871_v55  ;;  %v30009_v55 = vand.u32 4294901760, %v14247_v8  ;;  %v16261_v62 = vsel %vm204_vm1, %v18693_v59, 0  ;;  %v30015_v17 = vsub.f32 %v29927_v52, %v33876_v63 }
 0x56a   : > { %22293 = vmatmul.mubr.f32.gmra.mrb[126].mxu1 %v33778_v31  ;;  %v30026_v63 = vsub.f32 %v16258_v14, %v29980_v21  ;;  %v33880_v31 = vand.u32 4294901760, %v29682_v51  ;;  %v30036_v59 = vand.u32 4294901760, %v16261_v62  ;;  %v18660_v14 = vld [vmem:[%s24699_s19 + $0xf9] sm:$0xff]  ;;  %v30044_v51 = vsub.f32 %v29960_v9, %v33882_v18 }
 0x56b   : > { %33875 = vst [vmem:[#allocation100_spill] sm:$0xff] %v30009_v55  ;;  %22898 = vmatmul.mubr.f32.vlgmr.msra.gmra.mrb[128].mxu0 %v33877_v34  ;;  %22597 = vmatprep.mubr.f32.mxu1 %v33879_v22  ;;  %v30047_v22 = vsub.f32 %v14247_v8, %v30009_v55  ;;  %v18661_v34 = vld [vmem:[%s24699_s19 + $0x109] sm:$0xff]  ;;  %v33885_v52 = vand.u32 4294901760, %v29964_v29  ;;  %v30063_v18 = vsub.f32 %v29967_v35, %v33886_v11  ;;  %v30065_v9 = vand.u32 4294901760, %v16264_v57  ;;  %v18662_v8 = vld [vmem:[%s24699_s19 + $0x111] sm:$0xff] }
 0x56c   : > { %33878 = vst [vmem:[#allocation77_spill] sm:$0xff] %v30026_v63  ;;  %22900 = vmatprep.mubr.f32.mxu0 %v33880_v31  ;;  %33881 = vst [vmem:[#allocation96_spill] sm:$0xff] %v30036_v59  ;;  %22946 = vmatpush3.msra.mxu0 %v29537_v49  ;;  %v30049_v31 = vand.u32 4294901760, %v14250_v44  ;;  %v33888_v55 = vand.u32 4294901760, %v29702_v0  ;;  %v33891_v11 = vand.u32 4294901760, %v29978_v60  ;;  %v32216_v21 = vand.u32 4294901760, %v30026_v63 }
 0x56d   : > { %33883 = vst [vmem:[#allocation97_spill] sm:$0xff] %v30047_v22  ;;  %v30058_v49 = vsub.f32 %v29964_v29, %v33885_v52  ;;  %33887 = vst [vmem:[#allocation98_spill] sm:$0xff] %v30065_v9  ;;  %22995 = vmatprep.subr.mxu0 %v29509_v47  ;;  %v33890_v52 = vand.u32 4294901760, %v29975_v56  ;;  %v14253_v58 = vsel %vm204_vm1, %v18660_v14, 0  ;;  %v33892_v0 = vand.u32 4294901760, %v29752_v40 }
 0x56e   : > { %33884 = vst [vmem:[#allocation15_spill] sm:$0xff] %v30049_v31  ;;  %22598 = vmatmul.mubr.f32.vlgmr.msra.gmra.mrb[128].mxu1 %v33888_v55  ;;  %v30082_v35 = vsub.f32 %v29978_v60, %v33891_v11  ;;  %v30090_v12 = vsub.f32 %v16261_v62, %v30036_v59  ;;  %v14256_v55 = vsel %vm204_vm1, %v18661_v34, 0  ;;  %v33894_v11 = vand.u32 4294901760, %v29757_v45  ;;  %v18664_v60 = vld [vmem:[%s24699_s19 + $0x129] sm:$0xff] }
 0x56f   : > { %22901 = vmatmul.mubr.f32.gmra.mrb[130].mxu0 %v33889_v19  ;;  %v30077_v29 = vsub.f32 %v29975_v56, %v33890_v52  ;;  %22646 = vmatpush3.msra.mxu1 %v29544_v15  ;;  %v16267_v19 = vsel %vm204_vm1, %v18695_v28, 0  ;;  %v16270_v52 = vsel %vm204_vm1, %v18696_v1, 0  ;;  %v30099_v15 = vsub.f32 %v14250_v44, %v30049_v31  ;;  %v18663_v1 = vld [vmem:[%s24699_s19 + $0x121] sm:$0xff]  ;;  %v18665_v31 = vld [vmem:[%s24699_s19 + $0x139] sm:$0xff] }
 0x570   : > { %22600 = vmatprep.mubr.f32.mxu1 %v33892_v0  ;;  %33893 = vst [vmem:[#allocation31_spill] sm:$0xff] %v30090_v12  ;;  %22903 = vmatprep.mubr.f32.mxu0 %v33894_v11  ;;  %v14259_v40 = vsel %vm204_vm1, %v18662_v8, 0  ;;  %v16273_v62 = vsel %vm204_vm1, %v18697_v39, 0  ;;  %v30107_v45 = vsub.f32 %v16264_v57, %v30065_v9  ;;  %v30109_v34 = vand.u32 4294901760, %v14253_v58  ;;  %v18698_v57 = vld [vmem:[%s24699_s19 + $0x13a] sm:$0xff] }
 0x571   : > { %33895 = vst [vmem:[#allocation32_spill] sm:$0xff] %v30099_v15  ;;  %22695 = vmatprep.subr.mxu1 %v29517_v48  ;;  %v33898_v0 = vand.u32 4294901760, %v29762_v16  ;;  %v33899_v44 = vand.u32 4294901760, %v29775_v42  ;;  %v30116_v8 = vand.u32 4294901760, %v16267_v19  ;;  %v30118_v11 = vand.u32 4294901760, %v14256_v55 }
 0x572   : > { %33896 = vst [vmem:[#allocation36_spill] sm:$0xff] %v30107_v45  ;;  %33897 = vst [vmem:[#allocation44_spill] sm:$0xff] %v30109_v34  ;;  %v30120_v28 = vand.u32 4294901760, %v16270_v52  ;;  %v33903_v14 = vand.u32 4294901760, %v29780_v24  ;;  %v33904_v16 = vand.u32 4294901760, %v29801_v41  ;;  %v30131_v42 = vsub.f32 %v30026_v63, %v32216_v21  ;;  %v18699_v24 = vld [vmem:[%s24699_s19 + $0x142] sm:$0xff] }
 0x573   : > { %22601 = vmatmul.mubr.f32.gmra.mrb[130].mxu1 %v33898_v0  ;;  %22904 = vmatmul.mubr.f32.gmra.mrb[132].mxu0 %v33899_v44  ;;  %33900 = vst [vmem:[#allocation16_spill] sm:$0xff] %v30116_v8  ;;  %33901 = vst [vmem:[#allocation61_spill] sm:$0xff] %v30118_v11  ;;  %v30134_v44 = vand.u32 4294901760, %v14259_v40  ;;  %v30136_v39 = vand.u32 4294901760, %v16273_v62  ;;  %v33907_v41 = vand.u32 4294901760, %v30047_v22  ;;  %v30149_v0 = vsub.f32 %v14253_v58, %v30109_v34 }
 0x574   : > { %33902 = vst [vmem:[#allocation62_spill] sm:$0xff] %v30120_v28  ;;  %22603 = vmatprep.mubr.f32.mxu1 %v33903_v14  ;;  %22906 = vmatprep.mubr.f32.mxu0 %v33904_v16  ;;  %v14262_v63 = vsel %vm204_vm1, %v18663_v1, 0  ;;  %v16276_v9 = vsel %vm204_vm1, %v18698_v57, 0  ;;  %v33909_v14 = vand.u32 4294901760, %v29817_v25  ;;  %v30160_v56 = vsub.f32 %v16267_v19, %v30116_v8 }
 0x575   : > { %33905 = vst [vmem:[#allocation78_spill] sm:$0xff] %v30134_v44  ;;  %33906 = vst [vmem:[#allocation79_spill] sm:$0xff] %v30136_v39  ;;  %v30144_v16 = vsub.f32 %v30047_v22, %v33907_v41  ;;  %v33910_v41 = vand.u32 4294901760, %v29827_v53  ;;  %v30163_v21 = vsub.f32 %v14256_v55, %v30118_v11  ;;  %v30166_v58 = vsub.f32 %v16270_v52, %v30120_v28 }
 0x576   : > { %33908 = vst [vmem:[#allocation80_spill] sm:$0xff] %v30149_v0  ;;  %33911 = vst [vmem:[#allocation103_spill] sm:$0xff] %v30160_v56  ;;  %v14265_v1 = vsel %vm204_vm1, %v18664_v60, 0  ;;  %v33914_v57 = vand.u32 4294901760, %v29832_v46  ;;  %v33915_v25 = vand.u32 4294901760, %v29837_v30  ;;  %v30180_v55 = vsub.f32 %v14259_v40, %v30134_v44  ;;  %v18700_v60 = vld [vmem:[%s24699_s19 + $0x152] sm:$0xff] }
 0x577   : > { %22604 = vmatmul.mubr.f32.gmra.mrb[132].mxu1 %v33909_v14  ;;  %22907 = vmatmul.mubr.f32.gmra.mrb[134].mxu0 %v33910_v41  ;;  %33912 = vst [vmem:[#allocation28_spill] sm:$0xff] %v30163_v21  ;;  %33913 = vst [vmem:[#allocation29_spill] sm:$0xff] %v30166_v58  ;;  %v33916_v14 = vand.u32 4294901760, %v30090_v12  ;;  %v30183_v52 = vsub.f32 %v16273_v62, %v30136_v39  ;;  %v30186_v41 = vand.u32 4294901760, %v14262_v63  ;;  %v30188_v46 = vand.u32 4294901760, %v16276_v9 }
 0x578   : > { %22606 = vmatprep.mubr.f32.mxu1 %v33914_v57  ;;  %22909 = vmatprep.mubr.f32.mxu0 %v33915_v25  ;;  %33917 = vst [vmem:[#allocation7_spill] sm:$0xff] %v30180_v55  ;;  %v16279_v30 = vsel %vm204_vm1, %v18699_v24, 0  ;;  %v14268_v57 = vsel %vm204_vm1, %v18665_v31, 0  ;;  %v33921_v25 = vand.u32 4294901760, %v30099_v15  ;;  %v33922_v40 = vand.u32 4294901760, %v30107_v45 }
 0x579   : > { %v30177_v19 = vsub.f32 %v30090_v12, %v33916_v14  ;;  %33918 = vst [vmem:[#allocation30_spill] sm:$0xff] %v30183_v52  ;;  %33919 = vst [vmem:[#allocation43_spill] sm:$0xff] %v30186_v41  ;;  %v30203_v12 = vand.u32 4294901760, %v14265_v1  ;;  %v33924_v22 = vand.u32 4294901760, %v29885_v4  ;;  %v33925_v24 = vand.u32 4294901760, %v29912_v37 }
 0x57a   : > { %33920 = vst [vmem:[#allocation45_spill] sm:$0xff] %v30188_v46  ;;  %v30195_v14 = vsub.f32 %v30099_v15, %v33921_v25  ;;  %v30200_v53 = vsub.f32 %v30107_v45, %v33922_v40  ;;  %v16282_v40 = vsel %vm204_vm1, %v18700_v60, 0  ;;  %v33926_v45 = vand.u32 4294901760, %v29917_v2  ;;  %v18701_v60 = vld [vmem:[%s24699_s19 + $0x15a] sm:$0xff] }
 0x57b   : > { %33923 = vst [vmem:[#allocation55_spill] sm:$0xff] %v30203_v12  ;;  %22607 = vmatmul.mubr.f32.gmra.mrb[134].mxu1 %v33924_v22  ;;  %22910 = vmatmul.mubr.f32.gmra.mrb[136].mxu0 %v33925_v24  ;;  %v33927_v62 = vand.u32 4294901760, %v29938_v32  ;;  %v30219_v22 = vand.u32 4294901760, %v16279_v30  ;;  %v30221_v24 = vand.u32 4294901760, %v14268_v57  ;;  %v30226_v2 = vsub.f32 %v14262_v63, %v30186_v41 }
 0x57c   : > { %22609 = vmatprep.mubr.f32.mxu1 %v33926_v45  ;;  %v30229_v32 = vsub.f32 %v16276_v9, %v30188_v46  ;;  %v18666_v45 = vld [vmem:[%s24699_s19 + $0x141] sm:$0xff]  ;;  %v33932_v4 = vand.u32 4294901760, %v30149_v0  ;;  %v30239_v25 = vsub.f32 %v14265_v1, %v30203_v12  ;;  %v30241_v15 = vand.u32 4294901760, %v16282_v40 }
 0x57d   : > { %22912 = vmatprep.mubr.f32.mxu0 %v33927_v62  ;;  %33928 = vst [vmem:[#allocation58_spill] sm:$0xff] %v30219_v22  ;;  %33929 = vst [vmem:[#allocation63_spill] sm:$0xff] %v30221_v24  ;;  %v33935_v63 = vand.u32 4294901760, %v29951_v27  ;;  %v33936_v9 = vand.u32 4294901760, %v29990_v7  ;;  %v33937_v62 = vand.u32 4294901760, %v30160_v56  ;;  %v18702_v7 = vld [vmem:[%s24699_s19 + $0x16a] sm:$0xff] }
 0x57e   : > { %33930 = vst [vmem:[#allocation70_spill] sm:$0xff] %v30226_v2  ;;  %33931 = vst [vmem:[#allocation72_spill] sm:$0xff] %v30229_v32  ;;  %v30236_v37 = vsub.f32 %v30149_v0, %v33932_v4  ;;  %v33938_v4 = vand.u32 4294901760, %v30163_v21  ;;  %v33939_v0 = vand.u32 4294901760, %v30166_v58  ;;  %v33941_v31 = vand.u32 4294901760, %v30000_v61 }
 0x57f   : > { %33933 = vst [vmem:[#allocation85_spill] sm:$0xff] %v30239_v25  ;;  %33934 = vst [vmem:[#allocation86_spill] sm:$0xff] %v30241_v15  ;;  %22610 = vmatmul.mubr.f32.gmra.mrb[136].mxu1 %v33935_v63  ;;  %22913 = vmatmul.mubr.f32.gmra.mrb[138].mxu0 %v33936_v9  ;;  %v30252_v46 = vsub.f32 %v30160_v56, %v33937_v62  ;;  %v18667_v63 = vld [vmem:[%s24699_s19 + $0x151] sm:$0xff]  ;;  %v33940_v9 = vand.u32 4294901760, %v29995_v6  ;;  %v33942_v62 = vand.u32 4294901760, %v30180_v55  ;;  %v33945_v6 = vand.u32 4294901760, %v30183_v52 }
 0x580   : > { %v30257_v1 = vsub.f32 %v30163_v21, %v33938_v4  ;;  %v30262_v27 = vsub.f32 %v30166_v58, %v33939_v0  ;;  %22915 = vmatprep.mubr.f32.mxu0 %v33941_v31  ;;  %v30276_v4 = vsub.f32 %v16279_v30, %v30219_v22  ;;  %v30279_v21 = vsub.f32 %v14268_v57, %v30221_v24  ;;  %v18669_v31 = vld [vmem:[%s24699_s19 + $0x169] sm:$0xff] }
 0x581   : > { %22612 = vmatprep.mubr.f32.mxu1 %v33940_v9  ;;  %v30273_v56 = vsub.f32 %v30180_v55, %v33942_v62  ;;  %v14271_v0 = vsel %vm204_vm1, %v18666_v45, 0  ;;  %v30285_v9 = vsub.f32 %v30183_v52, %v33945_v6  ;;  %v16285_v62 = vsel %vm204_vm1, %v18701_v60, 0  ;;  %v18668_v52 = vld [vmem:[%s24699_s19 + $0x159] sm:$0xff] }
 0x582   : > { %33943 = vst [vmem:[#allocation87_spill] sm:$0xff] %v30276_v4  ;;  %33944 = vst [vmem:[#allocation88_spill] sm:$0xff] %v30279_v21  ;;  %v30292_v55 = vsub.f32 %v16282_v40, %v30241_v15  ;;  %v14274_v57 = vsel %vm204_vm1, %v18667_v63, 0  ;;  %v16288_v45 = vsel %vm204_vm1, %v18702_v7, 0  ;;  %v33947_v6 = vand.u32 4294901760, %v30006_v10  ;;  %v18703_v60 = vld [vmem:[%s24699_s19 + $0x172] sm:$0xff] }
 0x583   : > { %v33948_v61 = vand.u32 4294901760, %v30015_v17  ;;  %v30303_v30 = vand.u32 4294901760, %v14271_v0  ;;  %v33950_v63 = vand.u32 4294901760, %v30044_v51  ;;  %v33951_v7 = vand.u32 4294901760, %v30058_v49  ;;  %v18704_v10 = vld [vmem:[%s24699_s19 + $0x182] sm:$0xff] }
 0x584   : > { %33946 = vst [vmem:[#allocation9_spill] sm:$0xff] %v30292_v55  ;;  %22613 = vmatmul.mubr.f32.gmra.mrb[138].mxu1 %v33947_v6  ;;  %v30313_v6 = vand.u32 4294901760, %v16285_v62  ;;  %v33953_v40 = vand.u32 4294901760, %v30226_v2  ;;  %v33954_v51 = vand.u32 4294901760, %v30229_v32  ;;  %v33957_v15 = vand.u32 4294901760, %v30239_v25 }
 0x585   : > { %22916 = vmatmul.mubr.f32.gmra.mrb[140].mxu0 %v33948_v61  ;;  %33949 = vst [vmem:[#allocation33_spill] sm:$0xff] %v30303_v30  ;;  %22615 = vmatprep.mubr.f32.mxu1 %v33950_v63  ;;  %v30327_v63 = vand.u32 4294901760, %v14274_v57  ;;  %v30345_v24 = vsub.f32 %v14271_v0, %v30303_v30  ;;  %v14277_v61 = vsel %vm204_vm1, %v18668_v52, 0  ;;  %v16291_v17 = vsel %vm204_vm1, %v18703_v60, 0 }
 0x586   : > { %22918 = vmatprep.mubr.f32.mxu0 %v33951_v7  ;;  %33952 = vst [vmem:[#allocation38_spill] sm:$0xff] %v30313_v6  ;;  %v30320_v58 = vsub.f32 %v30226_v2, %v33953_v40  ;;  %v30325_v49 = vsub.f32 %v30229_v32, %v33954_v51  ;;  %v30329_v7 = vand.u32 4294901760, %v16288_v45  ;;  %v30337_v40 = vsub.f32 %v30239_v25, %v33957_v15 }
 0x587   : > { %33955 = vst [vmem:[#allocation39_spill] sm:$0xff] %v30327_v63  ;;  %v33958_v51 = vand.u32 4294901760, %v30063_v18  ;;  %v33959_v32 = vand.u32 4294901760, %v30077_v29  ;;  %33960 = vst [vmem:[#allocation20_spill] sm:$0xff] %v30345_v24  ;;  %v14280_v22 = vsel %vm204_vm1, %v18669_v31, 0  ;;  %v33961_v15 = vand.u32 4294901760, %v30082_v35 }
 0x588   : > { %33956 = vst [vmem:[#allocation40_spill] sm:$0xff] %v30329_v7  ;;  %v33962_v2 = vand.u32 4294901760, %v30131_v42  ;;  %v33963_v29 = vand.u32 4294901760, %v30276_v4  ;;  %v30365_v0 = vsub.f32 %v16285_v62, %v30313_v6  ;;  %v16294_v35 = vsel %vm204_vm1, %v18704_v10, 0  ;;  %v18670_v31 = vld [vmem:[%s24699_s19 + $0x171] sm:$0xff]  ;;  %v18671_v10 = vld [vmem:[%s24699_s19 + $0x181] sm:$0xff] }
 0x589   : > { %22616 = vmatmul.mubr.f32.gmra.mrb[140].mxu1 %v33958_v51  ;;  %22919 = vmatmul.mubr.f32.gmra.mrb[142].mxu0 %v33959_v32  ;;  %v33964_v32 = vand.u32 4294901760, %v30279_v21  ;;  %v14570_v42 = vand.u32 4294901760, %v30320_v58  ;;  %v30372_v60 = vsub.f32 %v14274_v57, %v30327_v63  ;;  %v30375_v51 = vsub.f32 %v16288_v45, %v30329_v7 }
 0x58a   : > { %22618 = vmatprep.mubr.f32.mxu1 %v33961_v15  ;;  %22921 = vmatprep.mubr.f32.mxu0 %v33962_v2  ;;  %v30357_v18 = vsub.f32 %v30276_v4, %v33963_v29  ;;  %33965 = vst [vmem:[#allocation69_spill] sm:$0xff] %v30365_v0  ;;  %v16598_v2 = vand.u32 4294901760, %v30325_v49  ;;  %v18705_v15 = vld [vmem:[%s24699_s19 + $0x18a] sm:$0xff]  ;;  %v30381_v62 = vand.u32 4294901760, %v16291_v17  ;;  %v18706_v4 = vld [vmem:[%s24699_s19 + $0x19a] sm:$0xff]  ;;  %v33971_v58 = vand.u32 4294901760, %v30144_v16 }
 0x58b   : > { %v30362_v52 = vsub.f32 %v30279_v21, %v33964_v32  ;;  %33966 = vst [vmem:[#allocation71_spill] sm:$0xff] %v30372_v60  ;;  %33967 = vst [vmem:[#allocation93_spill] sm:$0xff] %v30375_v51  ;;  %v30379_v32 = vand.u32 4294901760, %v14277_v61  ;;  %v30383_v21 = vand.u32 4294901760, %v14280_v22  ;;  %v33972_v57 = vand.u32 4294901760, %v30177_v19  ;;  %v18673_v29 = vld [vmem:[%s24699_s19 + $0x199] sm:$0xff] }
 0x58c   : > { %33969 = vst [vmem:[#allocation122_spill] sm:$0xff] %v30381_v62  ;;  %v33973_v45 = vand.u32 4294901760, %v30292_v55  ;;  %v30397_v25 = vand.u32 4294901760, %v16294_v35  ;;  %v14283_v7 = vsel %vm204_vm1, %v18670_v31, 0  ;;  %v33975_v63 = vand.u32 4294901760, %v30195_v14 }
 0x58d   : > { %33968 = vst [vmem:[#allocation120_spill] sm:$0xff] %v30379_v32  ;;  %33970 = vst [vmem:[#allocation105_spill] sm:$0xff] %v30383_v21  ;;  %22619 = vmatmul.mubr.f32.gmra.mrb[142].mxu1 %v33971_v58  ;;  %22922 = vmatmul.mubr.f32.gmra.mrb[144].mxu0 %v33972_v57  ;;  %v33976_v16 = vand.u32 4294901760, %v30200_v53  ;;  %v16608_v19 = vand.u32 4294901760, %v30357_v18  ;;  %v14590_v58 = vand.u32 4294901760, %v30362_v52  ;;  %v14286_v31 = vsel %vm204_vm1, %v18671_v10, 0 }
 0x58e   : > { %v30394_v49 = vsub.f32 %v30292_v55, %v33973_v45  ;;  %33974 = vst [vmem:[#allocation110_spill] sm:$0xff] %v30397_v25  ;;  %22621 = vmatprep.mubr.f32.mxu1 %v33975_v63  ;;  %v16297_v45 = vsel %vm204_vm1, %v18705_v15, 0  ;;  %v16300_v14 = vsel %vm204_vm1, %v18706_v4, 0  ;;  %v18672_v63 = vld [vmem:[%s24699_s19 + $0x189] sm:$0xff]  ;;  %v30418_v18 = vsub.f32 %v16291_v17, %v30381_v62 }
 0x58f   : > { %22924 = vmatprep.mubr.f32.mxu0 %v33976_v16  ;;  %v18707_v53 = vld [vmem:[%s24699_s19 + $0x1a2] sm:$0xff]  ;;  %v30415_v16 = vsub.f32 %v14277_v61, %v30379_v32  ;;  %v30421_v52 = vsub.f32 %v14280_v22, %v30383_v21  ;;  %v30423_v15 = vand.u32 4294901760, %v14283_v7  ;;  %v33978_v55 = vand.u32 4294901760, %v30236_v37 }
 0x590   : > { %v33979_v10 = vand.u32 4294901760, %v30252_v46  ;;  %v16618_v4 = vand.u32 4294901760, %v30394_v49  ;;  %v33980_v61 = vand.u32 4294901760, %v30345_v24  ;;  %v30435_v57 = vsub.f32 %v16294_v35, %v30397_v25  ;;  %v18674_v25 = vld [vmem:[%s24699_s19 + $0x1a1] sm:$0xff] }
 0x591   : > { %33977 = vst [vmem:[#allocation73_spill] sm:$0xff] %v30423_v15  ;;  %22622 = vmatmul.mubr.f32.gmra.mrb[144].mxu1 %v33978_v55  ;;  %v30437_v22 = vand.u32 4294901760, %v16297_v45  ;;  %v33982_v21 = vand.u32 4294901760, %v30257_v1  ;;  %v33983_v55 = vand.u32 4294901760, %v30262_v27  ;;  %v30443_v46 = vand.u32 4294901760, %v14286_v31 }
 0x592   : > { %22925 = vmatmul.mubr.f32.gmra.mrb[146].mxu0 %v33979_v10  ;;  %v14599_v17 = vsub.f32 %v30345_v24, %v33980_v61  ;;  %v30445_v37 = vand.u32 4294901760, %v16300_v14  ;;  %v14289_v49 = vsel %vm204_vm1, %v18672_v63, 0  ;;  %v16303_v10 = vsel %vm204_vm1, %v18707_v53, 0 }
 0x593   : > { %33981 = vst [vmem:[#allocation74_spill] sm:$0xff] %v30437_v22  ;;  %22624 = vmatprep.mubr.f32.mxu1 %v33982_v21  ;;  %22927 = vmatprep.mubr.f32.mxu0 %v33983_v55  ;;  %33984 = vst [vmem:[#allocation112_spill] sm:$0xff] %v30443_v46  ;;  %v33986_v61 = vand.u32 4294901760, %v30365_v0  ;;  %v33987_v24 = vand.u32 4294901760, %v30372_v60  ;;  %v33988_v21 = vand.u32 4294901760, %v30375_v51  ;;  %v14292_v55 = vsel %vm204_vm1, %v18673_v29, 0 }
 0x594   : > { %33985 = vst [vmem:[#allocation113_spill] sm:$0xff] %v30445_v37  ;;  %v30464_v32 = vsub.f32 %v14283_v7, %v30423_v15  ;;  %v30472_v29 = vsub.f32 %v16297_v45, %v30437_v22  ;;  %v30476_v62 = vand.u32 4294901760, %v16303_v10  ;;  %v30479_v7 = vsub.f32 %v14286_v31, %v30443_v46 }
 0x595   : > { %v16627_v35 = vsub.f32 %v30365_v0, %v33986_v61  ;;  %v14609_v1 = vsub.f32 %v30372_v60, %v33987_v24  ;;  %v16637_v27 = vsub.f32 %v30375_v51, %v33988_v21  ;;  %v33989_v61 = vand.u32 4294901760, %v30273_v56 }
 0x596   : > { %v33990_v24 = vand.u32 4294901760, %v30285_v9  ;;  %v30474_v51 = vand.u32 4294901760, %v14289_v49  ;;  %33992 = vst [vmem:[#allocation116_spill] sm:$0xff] %v30476_v62  ;;  %v30482_v56 = vsub.f32 %v16300_v14, %v30445_v37  ;;  %v14295_v9 = vsel %vm204_vm1, %v18674_v25, 0 }
 0x597   : > { %22625 = vmatmul.mubr.f32.gmra.mrb[146].mxu1 %v33989_v61  ;;  %v30484_v61 = vand.u32 4294901760, %v14292_v55  ;;  %v16628_v21 = vand.u32 4294901760, %v16627_v35  ;;  %v14610_v45 = vand.u32 4294901760, %v14609_v1  ;;  %v16638_v53 = vand.u32 4294901760, %v16637_v27 }
 0x598   : > { %22928 = vmatmul.mubr.f32.gmra.mrb[148].mxu0 %v33990_v24  ;;  %33991 = vst [vmem:[#allocation115_spill] sm:$0xff] %v30474_v51  ;;  %22627 = vmatprep.mubr.f32.mxu1 %v14570_v42  ;;  %v14600_v24 = vand.u32 4294901760, %v14599_v17  ;;  %v33994_v63 = vand.u32 4294901760, %v30415_v16  ;;  %v33995_v42 = vand.u32 4294901760, %v30418_v18  ;;  %v33996_v31 = vand.u32 4294901760, %v30421_v52 }
 0x599   : > { %22930 = vmatprep.mubr.f32.mxu0 %v16598_v2  ;;  %33993 = vst [vmem:[#allocation94_spill] sm:$0xff] %v30484_v61  ;;  %v32283_v0 = vand.u32 4294901760, %v30464_v32  ;;  %v33997_v25 = vand.u32 4294901760, %v30337_v40  ;;  %v30501_v35 = vsub.f32 %v14289_v49, %v30474_v51  ;;  %v30504_v1 = vsub.f32 %v16303_v10, %v30476_v62 }
 0x59a   : > { %v14619_v60 = vsub.f32 %v30415_v16, %v33994_v63  ;;  %v16647_v2 = vsub.f32 %v30418_v18, %v33995_v42  ;;  %v14629_v14 = vsub.f32 %v30421_v52, %v33996_v31  ;;  %v30506_v27 = vand.u32 4294901760, %v14295_v9 }
 0x59b   : > { %22628 = vmatmul.mubr.f32.gmra.mrb[148].mxu1 %v33997_v25  ;;  %v33999_v63 = vand.u32 4294901760, %v30435_v57  ;;  %v32288_v40 = vand.u32 4294901760, %v30479_v7  ;;  %v30514_v31 = vsub.f32 %v14292_v55, %v30484_v61  ;;  %v14639_v10 = vsub.f32 %v30464_v32, %v32283_v0 }
 0x59c   : > { %22931 = vmatmul.mubr.f32.gmra.mrb[150].mxu0 %v16608_v19  ;;  %33998 = vst [vmem:[#allocation118_spill] sm:$0xff] %v30506_v27  ;;  %22630 = vmatprep.mubr.f32.mxu1 %v14590_v58  ;;  %v14620_v49 = vand.u32 4294901760, %v14619_v60  ;;  %v16648_v25 = vand.u32 4294901760, %v16647_v2  ;;  %v14630_v17 = vand.u32 4294901760, %v14629_v14  ;;  %v34000_v58 = vand.u32 4294901760, %v30472_v29 }
 0x59d   : > { %22933 = vmatprep.mubr.f32.mxu0 %v16618_v4  ;;  %v16657_v42 = vsub.f32 %v30435_v57, %v33999_v63  ;;  %v32287_v63 = vand.u32 4294901760, %v30501_v35  ;;  %v32284_v19 = vand.u32 4294901760, %v30504_v1  ;;  %v30525_v55 = vsub.f32 %v14295_v9, %v30506_v27 }
 0x59e   : > { %v16667_v4 = vsub.f32 %v30472_v29, %v34000_v58  ;;  %v14649_v2 = vsub.f32 %v30479_v7, %v32288_v40  ;;  %v32286_v14 = vand.u32 4294901760, %v30514_v31  ;;  %v14640_v58 = vand.u32 4294901760, %v14639_v10  ;;  %v34022_v40 = vld [vmem:[#allocation37_spill] sm:$0xff] }
 0x59f   : > { %22631 = vmatmul.mubr.f32.gmra.mrb[150].mxu1 %v14600_v24  ;;  %v16658_v60 = vand.u32 4294901760, %v16657_v42  ;;  %v14659_v9 = vsub.f32 %v30501_v35, %v32287_v63  ;;  %v34021_v63 = vld [vmem:[#allocation49_spill] sm:$0xff] }
 0x5a0   : > { %22934 = vmatmul.mubr.f32.gmra.mrb[152].mxu0 %v16628_v21  ;;  %22633 = vmatprep.mubr.f32.mxu1 %v14610_v45  ;;  %v34001_v21 = vand.u32 4294901760, %v30482_v56  ;;  %v16668_v0 = vand.u32 4294901760, %v16667_v4  ;;  %v32285_v45 = vand.u32 4294901760, %v30525_v55  ;;  %v14650_v42 = vand.u32 4294901760, %v14649_v2  ;;  %v34005_v2 = vld [vmem:[#allocation27_spill] sm:$0xff] }
 0x5a1   : > { %22936 = vmatprep.mubr.f32.mxu0 %v16638_v53  ;;  %v16687_v53 = vsub.f32 %v30504_v1, %v32284_v19 }
 0x5a2   : > { %v16677_v24 = vsub.f32 %v30482_v56, %v34001_v21  ;;  %v14679_v4 = vsub.f32 %v30525_v55, %v32285_v45  ;;  %v34019_v45 = vld [vmem:[#allocation46_spill] sm:$0xff] }
 0x5a3   : > { %22634 = vmatmul.mubr.f32.gmra.mrb[152].mxu1 %v14620_v49  ;;  %v14669_v49 = vsub.f32 %v30514_v31, %v32286_v14  ;;  %v16688_v10 = vand.u32 4294901760, %v16687_v53  ;;  %v34010_v53 = vld [vmem:[#allocation107_spill] sm:$0xff]  ;;  %v34020_v14 = vld [vmem:[#allocation17_spill] sm:$0xff] }
 0x5a4   : > { %22937 = vmatmul.mubr.f32.gmra.mrb[154].mxu0 %v16648_v25  ;;  %22636 = vmatprep.mubr.f32.mxu1 %v14630_v17  ;;  %v16678_v21 = vand.u32 4294901760, %v16677_v24  ;;  %v14660_v25 = vand.u32 4294901760, %v14659_v9  ;;  %v14680_v17 = vand.u32 4294901760, %v14679_v4  ;;  %v34006_v24 = vld [vmem:[#allocation8_spill] sm:$0xff]  ;;  %v34009_v9 = vld [vmem:[#allocation90_spill] sm:$0xff]  ;;  %v34017_v4 = vld [vmem:[#allocation25_spill] sm:$0xff] }
 0x5a5   : > { %22939 = vmatprep.mubr.f32.mxu0 %v16658_v60  ;;  %v14670_v19 = vand.u32 4294901760, %v14669_v49  ;;  %v34004_v60 = vld [vmem:[#allocation5_spill] sm:$0xff]  ;;  %v34014_v49 = vld [vmem:[#allocation19_spill] sm:$0xff] }
 0x5a7   : > { %22637 = vmatmul.mubr.f32.gmra.mrb[154].mxu1 %v14640_v58  ;;  %v34008_v58 = vld [vmem:[#allocation83_spill] sm:$0xff] }
 0x5a8   : > { %22940 = vmatmul.mubr.f32.gmra.mrb[156].mxu0 %v16668_v0  ;;  %22639 = vmatprep.mubr.f32.mxu1 %v14650_v42  ;;  %v34002_v0 = vld [vmem:[#allocation109_spill] sm:$0xff]  ;;  %v34012_v42 = vld [vmem:[#allocation14_spill] sm:$0xff] }
 0x5a9   : > { %22942 = vmatprep.mubr.f32.mxu0 %v16678_v21  ;;  %v34013_v21 = vld [vmem:[#allocation42_spill] sm:$0xff] }
 0x5ab   : > { %22640 = vmatmul.mubr.f32.gmra.mrb[156].mxu1 %v14660_v25  ;;  %v34015_v25 = vld [vmem:[#allocation106_spill] sm:$0xff] }
 0x5ac   : > { %22943 = vmatmul.mubr.f32.gmra.mrb[158].mxu0 %v16688_v10  ;;  %22642 = vmatprep.mubr.f32.mxu1 %v14670_v19  ;;  %v34003_v19 = vld [vmem:[#allocation111_spill] sm:$0xff]  ;;  %v34016_v10 = vld [vmem:[#allocation108_spill] sm:$0xff] }
 0x5ad   : > { %22947 = vmatprep.mubr.f32.mxu0 %v29568_v36  ;;  %v12066_v36 = vld [vmem:[#allocation2 + $0x20] sm:$0xff] }
 0x5af   : > { %22643 = vmatmul.mubr.f32.gmra.mrb[158].mxu1 %v14680_v17  ;;  %v34018_v17 = vld [vmem:[#allocation26_spill] sm:$0xff] }
 0x5b0   : > { %22948 = vmatmul.mubr.f32.vlgmr.msra.gmra.mrb[128].mxu0 %v29579_v33  ;;  %22647 = vmatprep.mubr.f32.mxu1 %v29584_v38  ;;  %v34070_v38 = vld [vmem:[#allocation77_spill] sm:$0xff] }
 0x5b1   : > { %22950 = vmatprep.mubr.f32.mxu0 %v29586_v5  ;;  %22996 = vmatpush3.msra.mxu0 %v29509_v47  ;;  %v34007_v47 = vld [vmem:[#allocation59_spill] sm:$0xff]  ;;  %v34069_v5 = vld [vmem:[#allocation66_spill] sm:$0xff] }
 0x5b2   : > { %23045 = vmatprep.subr.mxu0 %v29446_v50 }
 0x5b3   : > { %22648 = vmatmul.mubr.f32.vlgmr.msra.gmra.mrb[128].mxu1 %v29592_v54  ;;  %v34067_v54 = vld [vmem:[#allocation64_spill] sm:$0xff] }
 0x5b4   : > { %22951 = vmatmul.mubr.f32.gmra.mrb[130].mxu0 %v34002_v0  ;;  %22696 = vmatpush3.msra.mxu1 %v29517_v48  ;;  %v34011_v48 = vld [vmem:[#allocation81_spill] sm:$0xff] }
 0x5b5   : > { %22650 = vmatprep.mubr.f32.mxu1 %v29624_v26  ;;  %22953 = vmatprep.mubr.f32.mxu0 %v29626_v43  ;;  %v12064_v26 = vld [vmem:[#allocation2 + $0x10] sm:$0xff] }
 0x5b6   : > { %22745 = vmatprep.subr.mxu1 %v34003_v19 }
 0x5b7   : > { %22651 = vmatmul.mubr.f32.gmra.mrb[130].mxu1 %v34004_v60  ;;  %v12065_v60 = vld [vmem:[#allocation2 + $0x18] sm:$0xff] }
 0x5b8   : > { %22954 = vmatmul.mubr.f32.gmra.mrb[132].mxu0 %v34005_v2  ;;  %22653 = vmatprep.mubr.f32.mxu1 %v34006_v24  ;;  %v34066_v24 = vld [vmem:[#allocation18_spill] sm:$0xff] }
 0x5b9   : > { %22956 = vmatprep.mubr.f32.mxu0 %v34007_v47  ;;  %v34065_v47 = vld [vmem:[#allocation41_spill] sm:$0xff] }
 0x5bb   : > { %22654 = vmatmul.mubr.f32.gmra.mrb[132].mxu1 %v34008_v58 }
 0x5bc   : > { %22957 = vmatmul.mubr.f32.gmra.mrb[134].mxu0 %v34009_v9  ;;  %22656 = vmatprep.mubr.f32.mxu1 %v34010_v53  ;;  %v34063_v53 = vld [vmem:[#allocation91_spill] sm:$0xff]  ;;  %v34064_v9 = vld [vmem:[#allocation104_spill] sm:$0xff] }
 0x5bd   : > { %22959 = vmatprep.mubr.f32.mxu0 %v34011_v48 }
 0x5bf   : > { %22657 = vmatmul.mubr.f32.gmra.mrb[134].mxu1 %v34012_v42  ;;  %v12062_v42 = vld [vmem:[#allocation2] sm:$0xff] }
 0x5c0   : > { %22960 = vmatmul.mubr.f32.gmra.mrb[136].mxu0 %v34013_v21  ;;  %22659 = vmatprep.mubr.f32.mxu1 %v34014_v49 }
 0x5c1   : > { %22962 = vmatprep.mubr.f32.mxu0 %v34015_v25 }
 0x5c3   : > { %22660 = vmatmul.mubr.f32.gmra.mrb[136].mxu1 %v34016_v10  ;;  %v34023_v10 = vld [vmem:[#allocation67_spill] sm:$0xff] }
 0x5c4   : > { %22963 = vmatmul.mubr.f32.gmra.mrb[138].mxu0 %v34017_v4  ;;  %22662 = vmatprep.mubr.f32.mxu1 %v34018_v17  ;;  %v34024_v4 = vld [vmem:[#allocation100_spill] sm:$0xff] }
 0x5c5   : > { %22965 = vmatprep.mubr.f32.mxu0 %v34019_v45  ;;  %v34025_v45 = vld [vmem:[#allocation15_spill] sm:$0xff]  ;;  %v12063_v17 = vld [vmem:[#allocation2 + $0x8] sm:$0xff] }
 0x5c7   : > { %22663 = vmatmul.mubr.f32.gmra.mrb[138].mxu1 %v34020_v14  ;;  %v34026_v14 = vld [vmem:[#allocation98_spill] sm:$0xff] }
 0x5c8   : > { %22966 = vmatmul.mubr.f32.gmra.mrb[140].mxu0 %v34021_v63  ;;  %22665 = vmatprep.mubr.f32.mxu1 %v29922_v13  ;;  %v34062_v13 = vld [vmem:[#allocation68_spill] sm:$0xff] }
 0x5c9   : > { %22968 = vmatprep.mubr.f32.mxu0 %v29929_v23  ;;  %v34061_v23 = vld [vmem:[#allocation51_spill] sm:$0xff] }
 0x5cb   : > { %22666 = vmatmul.mubr.f32.gmra.mrb[140].mxu1 %v29931_v20  ;;  %v34060_v20 = vld [vmem:[#allocation50_spill] sm:$0xff] }
 0x5cc   : > { %22969 = vmatmul.mubr.f32.gmra.mrb[142].mxu0 %v29941_v3  ;;  %22668 = vmatprep.mubr.f32.mxu1 %v34022_v40  ;;  %v34059_v3 = vld [vmem:[#allocation3_spill] sm:$0xff] }
 0x5cd   : > { %22971 = vmatprep.mubr.f32.mxu0 %v34023_v10 }
 0x5cf   : > { %22669 = vmatmul.mubr.f32.gmra.mrb[142].mxu1 %v34024_v4  ;;  %v34027_v4 = vld [vmem:[#allocation45_spill] sm:$0xff] }
 0x5d0   : > { %22972 = vmatmul.mubr.f32.gmra.mrb[144].mxu0 %v30036_v59  ;;  %22671 = vmatprep.mubr.f32.mxu1 %v34025_v45  ;;  %v34028_v45 = vld [vmem:[#allocation58_spill] sm:$0xff]  ;;  %v34058_v59 = vld [vmem:[#allocation24_spill] sm:$0xff] }
 0x5d1   : > { %22974 = vmatprep.mubr.f32.mxu0 %v34026_v14  ;;  %v34029_v14 = vld [vmem:[#allocation63_spill] sm:$0xff] }
 0x5d3   : > { %22672 = vmatmul.mubr.f32.gmra.mrb[144].mxu1 %v30109_v34  ;;  %v34030_v34 = vld [vmem:[#allocation86_spill] sm:$0xff] }
 0x5d4   : > { %22975 = vmatmul.mubr.f32.gmra.mrb[146].mxu0 %v30116_v8  ;;  %22674 = vmatprep.mubr.f32.mxu1 %v30118_v11  ;;  %v34056_v11 = vld [vmem:[#allocation89_spill] sm:$0xff] }
 0x5d5   : > { %22977 = vmatprep.mubr.f32.mxu0 %v30120_v28  ;;  %v34031_v28 = vld [vmem:[#allocation39_spill] sm:$0xff]  ;;  %v34057_v8 = vld [vmem:[#allocation101_spill] sm:$0xff] }
 0x5d7   : > { %22675 = vmatmul.mubr.f32.gmra.mrb[146].mxu1 %v30134_v44  ;;  %v34032_v44 = vld [vmem:[#allocation40_spill] sm:$0xff] }
 0x5d8   : > { %22978 = vmatmul.mubr.f32.gmra.mrb[148].mxu0 %v30136_v39  ;;  %22677 = vmatprep.mubr.f32.mxu1 %v30186_v41  ;;  %v34033_v39 = vld [vmem:[#allocation120_spill] sm:$0xff]  ;;  %v34034_v41 = vld [vmem:[#allocation122_spill] sm:$0xff] }
 0x5d9   : > { %22980 = vmatprep.mubr.f32.mxu0 %v34027_v4  ;;  %v34035_v4 = vld [vmem:[#allocation105_spill] sm:$0xff] }
 0x5db   : > { %22678 = vmatmul.mubr.f32.gmra.mrb[148].mxu1 %v30203_v12  ;;  %v34036_v12 = vld [vmem:[#allocation110_spill] sm:$0xff] }
 0x5dc   : > { %22981 = vmatmul.mubr.f32.gmra.mrb[150].mxu0 %v34028_v45  ;;  %22680 = vmatprep.mubr.f32.mxu1 %v34029_v14  ;;  %v34054_v14 = vld [vmem:[#allocation13_spill] sm:$0xff]  ;;  %v34055_v45 = vld [vmem:[#allocation56_spill] sm:$0xff] }
 0x5dd   : > { %22983 = vmatprep.mubr.f32.mxu0 %v34030_v34  ;;  %v34053_v34 = vld [vmem:[#allocation34_spill] sm:$0xff] }
 0x5df   : > { %22681 = vmatmul.mubr.f32.gmra.mrb[150].mxu1 %v30303_v30  ;;  %v34052_v30 = vld [vmem:[#allocation10_spill] sm:$0xff] }
 0x5e0   : > { %22984 = vmatmul.mubr.f32.gmra.mrb[152].mxu0 %v30313_v6  ;;  %22683 = vmatprep.mubr.f32.mxu1 %v34031_v28  ;;  %v34050_v28 = vld [vmem:[#allocation102_spill] sm:$0xff] }
 0x5e1   : > { %22986 = vmatprep.mubr.f32.mxu0 %v34032_v44  ;;  %v34049_v44 = vld [vmem:[#allocation82_spill] sm:$0xff] }
 0x5e2   : > { %v34051_v6 = vld [vmem:[#allocation114_spill] sm:$0xff] }
 0x5e3   : > { %22684 = vmatmul.mubr.f32.gmra.mrb[152].mxu1 %v34033_v39  ;;  %v34037_v39 = vld [vmem:[#allocation48_spill] sm:$0xff] }
 0x5e4   : > { %22987 = vmatmul.mubr.f32.gmra.mrb[154].mxu0 %v34034_v41  ;;  %22686 = vmatprep.mubr.f32.mxu1 %v34035_v4  ;;  %v34038_v4 = vld [vmem:[#allocation75_spill] sm:$0xff]  ;;  %v34048_v41 = vld [vmem:[#allocation60_spill] sm:$0xff] }
 0x5e5   : > { %22989 = vmatprep.mubr.f32.mxu0 %v34036_v12  ;;  %v34039_v12 = vld [vmem:[#allocation22_spill] sm:$0xff] }
 0x5e7   : > { %22687 = vmatmul.mubr.f32.gmra.mrb[154].mxu1 %v30423_v15  ;;  %v34040_v15 = vld [vmem:[#allocation76_spill] sm:$0xff] }
 0x5e8   : > { %22990 = vmatmul.mubr.f32.gmra.mrb[156].mxu0 %v30437_v22  ;;  %22689 = vmatprep.mubr.f32.mxu1 %v30443_v46  ;;  %v34041_v46 = vld [vmem:[#allocation117_spill] sm:$0xff] }
 0x5e9   : > { %22992 = vmatprep.mubr.f32.mxu0 %v30445_v37  ;;  %v34042_v37 = vld [vmem:[#allocation84_spill] sm:$0xff]  ;;  %v34047_v22 = vld [vmem:[#allocation57_spill] sm:$0xff] }
 0x5eb   : > { %22690 = vmatmul.mubr.f32.gmra.mrb[156].mxu1 %v30474_v51  ;;  %v34043_v51 = vld [vmem:[#allocation95_spill] sm:$0xff] }
 0x5ec   : > { %22993 = vmatmul.mubr.f32.gmra.mrb[158].mxu0 %v30476_v62  ;;  %22692 = vmatprep.mubr.f32.mxu1 %v30484_v61  ;;  %v34044_v61 = vld [vmem:[#allocation12_spill] sm:$0xff] }
 0x5ed   : > { %22997 = vmatprep.mubr.f32.mxu0 %v34037_v39  ;;  %v34045_v62 = vld [vmem:[#allocation52_spill] sm:$0xff] }
 0x5ef   : > { %22693 = vmatmul.mubr.f32.gmra.mrb[158].mxu1 %v30506_v27  ;;  %v34046_v27 = vld [vmem:[#allocation11_spill] sm:$0xff] }
 0x5f0   : > { %22998 = vmatmul.mubr.f32.vlgmr.msra.gmra.mrb[128].mxu0 %v34038_v4  ;;  %22697 = vmatprep.mubr.f32.mxu1 %v34039_v12 }
 0x5f1   : > { %23000 = vmatprep.mubr.f32.mxu0 %v34040_v15  ;;  %23046 = vmatpush3.msra.mxu0 %v29446_v50 }
 0x5f2   : > { %23095 = vmatprep.subr.mxu0 %v34041_v46 }
 0x5f3   : > { %22698 = vmatmul.mubr.f32.vlgmr.msra.gmra.mrb[128].mxu1 %v34042_v37 }
 0x5f4   : > { %23001 = vmatmul.mubr.f32.gmra.mrb[130].mxu0 %v34043_v51  ;;  %22746 = vmatpush3.msra.mxu1 %v34003_v19 }
 0x5f5   : > { %22700 = vmatprep.mubr.f32.mxu1 %v34044_v61  ;;  %23003 = vmatprep.mubr.f32.mxu0 %v34045_v62 }
 0x5f6   : > { %22795 = vmatprep.subr.mxu1 %v34046_v27 }
 0x5f7   : > { %22701 = vmatmul.mubr.f32.gmra.mrb[130].mxu1 %v34047_v22 }
 0x5f8   : > { %23004 = vmatmul.mubr.f32.gmra.mrb[132].mxu0 %v34048_v41  ;;  %22703 = vmatprep.mubr.f32.mxu1 %v34049_v44 }
 0x5f9   : > { %23006 = vmatprep.mubr.f32.mxu0 %v34050_v28 }
 0x5fb   : > { %22704 = vmatmul.mubr.f32.gmra.mrb[132].mxu1 %v34051_v6 }
 0x5fc   : > { %23007 = vmatmul.mubr.f32.gmra.mrb[134].mxu0 %v34052_v30  ;;  %22706 = vmatprep.mubr.f32.mxu1 %v34053_v34 }
 0x5fd   : > { %23009 = vmatprep.mubr.f32.mxu0 %v34054_v14 }
 0x5fe   : > { %v22549_v10 = vpop.f32.mrb[96].mxu0 }
 0x5ff   : > { %22707 = vmatmul.mubr.f32.gmra.mrb[134].mxu1 %v34055_v45  ;;  %v13881_v40 = vpop.f32.mrb[97].mxu0 }
 0x600   : > { %23010 = vmatmul.mubr.f32.gmra.mrb[136].mxu0 %v34056_v11  ;;  %22709 = vmatprep.mubr.f32.mxu1 %v34057_v8 }
 0x601   : > { %23012 = vmatprep.mubr.f32.mxu0 %v34058_v59  ;;  %v22249_v63 = vpop.f32.mrb[96].mxu1 }
 0x602   : > { %v22552_v25 = vpop.f32.mrb[98].mxu0  ;;  %v12095_v49 = vadd.f32 %v22249_v63, %v12063_v17  ;;  %v11872_v21 = vpop.f32.mrb[97].mxu1 }
 0x603   : > { %22710 = vmatmul.mubr.f32.gmra.mrb[136].mxu1 %v34059_v3  ;;  %v13893_v48 = vpop.f32.mrb[99].mxu0  ;;  %v12094_v58 = vadd.f32 %v12062_v42, %v11872_v21  ;;  %v34068_v42 = vld [vmem:[#allocation65_spill] sm:$0xff] }
 0x604   : > { %23013 = vmatmul.mubr.f32.gmra.mrb[138].mxu0 %v34060_v20  ;;  %22712 = vmatprep.mubr.f32.mxu1 %v34061_v23  ;;  %12127 = vst.msk [vmem:[#allocation2 + $0x8] sm:$0xff] %vm2084_vm2, %v12095_v49  ;;  %v12067_v49 = vld [vmem:[#allocation2 + $0x28] sm:$0xff] }
 0x605   : > { %23015 = vmatprep.mubr.f32.mxu0 %v34062_v13  ;;  %12126 = vst.msk [vmem:[#allocation2] sm:$0xff] %vm2084_vm2, %v12094_v58  ;;  %v22252_v2 = vpop.f32.mrb[98].mxu1 }
 0x606   : > { %v30649_v43 = vpop.f32.mrb[100].mxu0  ;;  %v12097_v63 = vadd.f32 %v22252_v2, %v12065_v60  ;;  %v11884_v17 = vpop.f32.mrb[99].mxu1 }
 0x607   : > { %22713 = vmatmul.mubr.f32.gmra.mrb[138].mxu1 %v34063_v53  ;;  %v30651_v0 = vpop.f32.mrb[101].mxu0  ;;  %v12096_v21 = vadd.f32 %v12064_v26, %v11884_v17  ;;  %v34072_v26 = vld [vmem:[#allocation31_spill] sm:$0xff] }
 0x608   : > { %23016 = vmatmul.mubr.f32.gmra.mrb[140].mxu0 %v34064_v9  ;;  %22715 = vmatprep.mubr.f32.mxu1 %v34065_v47  ;;  %12129 = vst.msk [vmem:[#allocation2 + $0x18] sm:$0xff] %vm2084_vm2, %v12097_v63 }
 0x609   : > { %23018 = vmatprep.mubr.f32.mxu0 %v34066_v24  ;;  %12128 = vst.msk [vmem:[#allocation2 + $0x10] sm:$0xff] %vm2084_vm2, %v12096_v21  ;;  %v22255_v58 = vpop.f32.mrb[100].mxu1 }
 0x60a   : > { %v30659_v60 = vpop.f32.mrb[102].mxu0  ;;  %v12099_v2 = vadd.f32 %v22255_v58, %v12067_v49  ;;  %v11896_v33 = vpop.f32.mrb[101].mxu1  ;;  %v12069_v49 = vld [vmem:[#allocation2 + $0x38] sm:$0xff] }
 0x60b   : > { %22716 = vmatmul.mubr.f32.gmra.mrb[140].mxu1 %v34067_v54  ;;  %v30661_v24 = vpop.f32.mrb[103].mxu0  ;;  %v34071_v54 = vld [vmem:[#allocation97_spill] sm:$0xff]  ;;  %v12098_v17 = vadd.f32 %v12066_v36, %v11896_v33  ;;  %v14072_v63 = vld [vmem:[#allocation2 + $0x8] sm:$0xff] }
 0x60c   : > { %23019 = vmatmul.mubr.f32.gmra.mrb[142].mxu0 %v34068_v42  ;;  %22718 = vmatprep.mubr.f32.mxu1 %v34069_v5  ;;  %v34073_v5 = vld [vmem:[#allocation32_spill] sm:$0xff]  ;;  %12131 = vst.msk [vmem:[#allocation2 + $0x28] sm:$0xff] %vm2084_vm2, %v12099_v2  ;;  %v14104_v21 = vadd.f32 %v22549_v10, %v14072_v63  ;;  %v14071_v42 = vld [vmem:[#allocation2] sm:$0xff] }
 0x60d   : > { %23021 = vmatprep.mubr.f32.mxu0 %v34070_v38  ;;  %v34074_v38 = vld [vmem:[#allocation36_spill] sm:$0xff]  ;;  %12130 = vst.msk [vmem:[#allocation2 + $0x20] sm:$0xff] %vm2084_vm2, %v12098_v17  ;;  %v22258_v58 = vpop.f32.mrb[102].mxu1  ;;  %v14103_v9 = vadd.f32 %v14071_v42, %v13881_v40  ;;  %v34078_v17 = vld [vmem:[#allocation29_spill] sm:$0xff] }
 0x60e   : > { %v30669_v47 = vpop.f32.mrb[104].mxu0  ;;  %v11908_v53 = vpop.f32.mrb[103].mxu1  ;;  %v34075_v33 = vld [vmem:[#allocation80_spill] sm:$0xff]  ;;  %14136 = vst.msk [vmem:[#allocation2 + $0x8] sm:$0xff] %vm2084_vm2, %v14104_v21 }
 0x60f   : > { %22719 = vmatmul.mubr.f32.gmra.mrb[142].mxu1 %v34071_v54  ;;  %v12101_v54 = vadd.f32 %v22258_v58, %v12069_v49  ;;  %v30671_v36 = vpop.f32.mrb[105].mxu0  ;;  %v34077_v2 = vld [vmem:[#allocation28_spill] sm:$0xff]  ;;  %14135 = vst.msk [vmem:[#allocation2] sm:$0xff] %vm2084_vm2, %v14103_v9  ;;  %v14074_v63 = vld [vmem:[#allocation2 + $0x18] sm:$0xff] }
 0x610   : > { %23022 = vmatmul.mubr.f32.gmra.mrb[144].mxu0 %v34072_v26  ;;  %22721 = vmatprep.mubr.f32.mxu1 %v34073_v5  ;;  %v12068_v26 = vld [vmem:[#allocation2 + $0x30] sm:$0xff]  ;;  %v14106_v40 = vadd.f32 %v22552_v25, %v14074_v63  ;;  %v12071_v49 = vld [vmem:[#allocation2 + $0x48] sm:$0xff]  ;;  %v34080_v9 = vld [vmem:[#allocation30_spill] sm:$0xff] }
 0x611   : > { %23024 = vmatprep.mubr.f32.mxu0 %v34074_v38  ;;  %v34076_v38 = vld [vmem:[#allocation103_spill] sm:$0xff]  ;;  %v12100_v10 = vadd.f32 %v12068_v26, %v11908_v53  ;;  %12133 = vst.msk [vmem:[#allocation2 + $0x38] sm:$0xff] %vm2084_vm2, %v12101_v54  ;;  %v14073_v42 = vld [vmem:[#allocation2 + $0x10] sm:$0xff]  ;;  %v22261_v58 = vpop.f32.mrb[104].mxu1  ;;  %v34081_v25 = vld [vmem:[#allocation70_spill] sm:$0xff] }
 0x612   : > { %v12103_v21 = vadd.f32 %v22261_v58, %v12071_v49  ;;  %v11920_v53 = vpop.f32.mrb[105].mxu1  ;;  %v12070_v26 = vld [vmem:[#allocation2 + $0x40] sm:$0xff]  ;;  %14138 = vst.msk [vmem:[#allocation2 + $0x18] sm:$0xff] %vm2084_vm2, %v14106_v40  ;;  %v12073_v49 = vld [vmem:[#allocation2 + $0x58] sm:$0xff] }
 0x613   : > { %22722 = vmatmul.mubr.f32.gmra.mrb[144].mxu1 %v34075_v33  ;;  %12132 = vst.msk [vmem:[#allocation2 + $0x30] sm:$0xff] %vm2084_vm2, %v12100_v10  ;;  %v30681_v33 = vpop.f32.mrb[106].mxu0  ;;  %v12102_v54 = vadd.f32 %v12070_v26, %v11920_v53  ;;  %v34082_v10 = vld [vmem:[#allocation72_spill] sm:$0xff] }
 0x614   : > { %23025 = vmatmul.mubr.f32.gmra.mrb[146].mxu0 %v34076_v38  ;;  %22724 = vmatprep.mubr.f32.mxu1 %v34077_v2  ;;  %v14105_v38 = vadd.f32 %v14073_v42, %v13893_v48  ;;  %v30683_v2 = vpop.f32.mrb[107].mxu0  ;;  %v14076_v63 = vld [vmem:[#allocation2 + $0x28] sm:$0xff]  ;;  %12135 = vst.msk [vmem:[#allocation2 + $0x48] sm:$0xff] %vm2084_vm2, %v12103_v21  ;;  %v14075_v42 = vld [vmem:[#allocation2 + $0x20] sm:$0xff] }
 0x615   : > { %23027 = vmatprep.mubr.f32.mxu0 %v34078_v17  ;;  %v34079_v17 = vld [vmem:[#allocation7_spill] sm:$0xff]  ;;  %v14108_v48 = vadd.f32 %v30649_v43, %v14076_v63  ;;  %12134 = vst.msk [vmem:[#allocation2 + $0x40] sm:$0xff] %vm2084_vm2, %v12102_v54  ;;  %v22264_v58 = vpop.f32.mrb[106].mxu1  ;;  %v14107_v40 = vadd.f32 %v14075_v42, %v30651_v0  ;;  %v34085_v21 = vld [vmem:[#allocation88_spill] sm:$0xff]  ;;  %v34086_v54 = vld [vmem:[#allocation9_spill] sm:$0xff] }
 0x616   : > { %14137 = vst.msk [vmem:[#allocation2 + $0x10] sm:$0xff] %vm2084_vm2, %v14105_v38  ;;  %v12105_v53 = vadd.f32 %v22264_v58, %v12073_v49  ;;  %v11932_v26 = vpop.f32.mrb[107].mxu1  ;;  %v34083_v38 = vld [vmem:[#allocation85_spill] sm:$0xff]  ;;  %v12075_v49 = vld [vmem:[#allocation2 + $0x68] sm:$0xff] }
 0x617   : > { %22725 = vmatmul.mubr.f32.gmra.mrb[146].mxu1 %v34079_v17  ;;  %v34084_v17 = vld [vmem:[#allocation87_spill] sm:$0xff]  ;;  %14140 = vst.msk [vmem:[#allocation2 + $0x28] sm:$0xff] %vm2084_vm2, %v14108_v48  ;;  %14139 = vst.msk [vmem:[#allocation2 + $0x20] sm:$0xff] %vm2084_vm2, %v14107_v40  ;;  %v34087_v40 = vld [vmem:[#allocation20_spill] sm:$0xff] }
 0x618   : > { %23028 = vmatmul.mubr.f32.gmra.mrb[148].mxu0 %v34080_v9  ;;  %22727 = vmatprep.mubr.f32.mxu1 %v34081_v25  ;;  %v30694_v9 = vpop.f32.mrb[108].mxu0  ;;  %v12072_v25 = vld [vmem:[#allocation2 + $0x50] sm:$0xff]  ;;  %v14078_v63 = vld [vmem:[#allocation2 + $0x38] sm:$0xff]  ;;  %12137 = vst.msk [vmem:[#allocation2 + $0x58] sm:$0xff] %vm2084_vm2, %v12105_v53  ;;  %v34089_v53 = vld [vmem:[#allocation71_spill] sm:$0xff] }
 0x619   : > { %23030 = vmatprep.mubr.f32.mxu0 %v34082_v10  ;;  %v30697_v10 = vpop.f32.mrb[109].mxu0  ;;  %v12104_v43 = vadd.f32 %v12072_v25, %v11932_v26  ;;  %v14110_v0 = vadd.f32 %v30659_v60, %v14078_v63  ;;  %v22267_v58 = vpop.f32.mrb[108].mxu1 }
 0x61a   : > { %v14077_v42 = vld [vmem:[#allocation2 + $0x30] sm:$0xff]  ;;  %v12107_v48 = vadd.f32 %v22267_v58, %v12075_v49  ;;  %v11944_v26 = vpop.f32.mrb[109].mxu1  ;;  %v12077_v49 = vld [vmem:[#allocation2 + $0x78] sm:$0xff] }
 0x61b   : > { %22728 = vmatmul.mubr.f32.gmra.mrb[148].mxu1 %v34083_v38  ;;  %12136 = vst.msk [vmem:[#allocation2 + $0x50] sm:$0xff] %vm2084_vm2, %v12104_v43  ;;  %v14109_v25 = vadd.f32 %v14077_v42, %v30661_v24  ;;  %v34088_v38 = vld [vmem:[#allocation69_spill] sm:$0xff]  ;;  %14142 = vst.msk [vmem:[#allocation2 + $0x38] sm:$0xff] %vm2084_vm2, %v14110_v0  ;;  %v14080_v63 = vld [vmem:[#allocation2 + $0x48] sm:$0xff] }
 0x61c   : > { %23031 = vmatmul.mubr.f32.gmra.mrb[150].mxu0 %v34084_v17  ;;  %22730 = vmatprep.mubr.f32.mxu1 %v34085_v21  ;;  %v30708_v17 = vpop.f32.mrb[110].mxu0  ;;  %v12074_v21 = vld [vmem:[#allocation2 + $0x60] sm:$0xff]  ;;  %v34090_v43 = vld [vmem:[#allocation93_spill] sm:$0xff]  ;;  %12139 = vst.msk [vmem:[#allocation2 + $0x68] sm:$0xff] %vm2084_vm2, %v12107_v48  ;;  %v14112_v24 = vadd.f32 %v30669_v47, %v14080_v63  ;;  %v12079_v63 = vld [vmem:[#allocation2 + $0x88] sm:$0xff] }
 0x61d   : > { %23033 = vmatprep.mubr.f32.mxu0 %v34086_v54  ;;  %v30711_v54 = vpop.f32.mrb[111].mxu0  ;;  %v12106_v60 = vadd.f32 %v12074_v21, %v11944_v26  ;;  %14141 = vst.msk [vmem:[#allocation2 + $0x30] sm:$0xff] %vm2084_vm2, %v14109_v25  ;;  %v14079_v42 = vld [vmem:[#allocation2 + $0x40] sm:$0xff]  ;;  %v22270_v58 = vpop.f32.mrb[110].mxu1 }
 0x61e   : > { %v14111_v21 = vadd.f32 %v14079_v42, %v30671_v36  ;;  %v12109_v0 = vadd.f32 %v22270_v58, %v12077_v49  ;;  %v11956_v26 = vpop.f32.mrb[111].mxu1  ;;  %14144 = vst.msk [vmem:[#allocation2 + $0x48] sm:$0xff] %vm2084_vm2, %v14112_v24  ;;  %v12078_v49 = vld [vmem:[#allocation2 + $0x80] sm:$0xff] }
 0x61f   : > { %22731 = vmatmul.mubr.f32.gmra.mrb[150].mxu1 %v34087_v40  ;;  %12138 = vst.msk [vmem:[#allocation2 + $0x60] sm:$0xff] %vm2084_vm2, %v12106_v60  ;;  %v14082_v25 = vld [vmem:[#allocation2 + $0x58] sm:$0xff] }
 0x620   : > { %23034 = vmatmul.mubr.f32.gmra.mrb[152].mxu0 %v34088_v38  ;;  %22733 = vmatprep.mubr.f32.mxu1 %v34089_v53  ;;  %v30722_v38 = vpop.f32.mrb[112].mxu0  ;;  %v12076_v53 = vld [vmem:[#allocation2 + $0x70] sm:$0xff]  ;;  %14143 = vst.msk [vmem:[#allocation2 + $0x40] sm:$0xff] %vm2084_vm2, %v14111_v21  ;;  %12141 = vst.msk [vmem:[#allocation2 + $0x78] sm:$0xff] %vm2084_vm2, %v12109_v0  ;;  %v14114_v36 = vadd.f32 %v30681_v33, %v14082_v25  ;;  %v12081_v25 = vld [vmem:[#allocation2 + $0x98] sm:$0xff] }
 0x621   : > { %23036 = vmatprep.mubr.f32.mxu0 %v34090_v43  ;;  %v30725_v43 = vpop.f32.mrb[113].mxu0  ;;  %v12108_v47 = vadd.f32 %v12076_v53, %v11956_v26  ;;  %v22273_v60 = vpop.f32.mrb[112].mxu1 }
 0x622   : > { %v14081_v48 = vld [vmem:[#allocation2 + $0x50] sm:$0xff]  ;;  %v30736_v42 = vpop.f32.mrb[114].mxu0  ;;  %v12111_v24 = vadd.f32 %v22273_v60, %v12079_v63  ;;  %v11968_v58 = vpop.f32.mrb[113].mxu1  ;;  %14146 = vst.msk [vmem:[#allocation2 + $0x58] sm:$0xff] %vm2084_vm2, %v14114_v36 }
 0x623   : > { %22734 = vmatmul.mubr.f32.gmra.mrb[152].mxu1 %v30415_v16  ;;  %12140 = vst.msk [vmem:[#allocation2 + $0x70] sm:$0xff] %vm2084_vm2, %v12108_v47  ;;  %v14113_v53 = vadd.f32 %v14081_v48, %v30683_v2  ;;  %v30739_v26 = vpop.f32.mrb[115].mxu0  ;;  %v12110_v33 = vadd.f32 %v12078_v49, %v11968_v58  ;;  %v14084_v21 = vld [vmem:[#allocation2 + $0x68] sm:$0xff]  ;;  %v12080_v58 = vld [vmem:[#allocation2 + $0x90] sm:$0xff] }
 0x624   : > { %23037 = vmatmul.mubr.f32.gmra.mrb[154].mxu0 %v30418_v18  ;;  %22736 = vmatprep.mubr.f32.mxu1 %v30421_v52  ;;  %12143 = vst.msk [vmem:[#allocation2 + $0x88] sm:$0xff] %vm2084_vm2, %v12111_v24  ;;  %v14116_v2 = vadd.f32 %v30694_v9, %v14084_v21 }
 0x625   : > { %23039 = vmatprep.mubr.f32.mxu0 %v30435_v57  ;;  %14145 = vst.msk [vmem:[#allocation2 + $0x50] sm:$0xff] %vm2084_vm2, %v14113_v53  ;;  %12142 = vst.msk [vmem:[#allocation2 + $0x80] sm:$0xff] %vm2084_vm2, %v12110_v33  ;;  %v22276_v47 = vpop.f32.mrb[114].mxu1  ;;  %v34091_v53 = vand.u32 4294901760, %v34037_v39  ;;  %v12082_v39 = vld [vmem:[#allocation2 + $0xa0] sm:$0xff] }
 0x626   : > { %v14083_v0 = vld [vmem:[#allocation2 + $0x60] sm:$0xff]  ;;  %v30750_v48 = vpop.f32.mrb[116].mxu0  ;;  %v12113_v60 = vadd.f32 %v22276_v47, %v12081_v25  ;;  %v11980_v63 = vpop.f32.mrb[115].mxu1  ;;  %14148 = vst.msk [vmem:[#allocation2 + $0x68] sm:$0xff] %vm2084_vm2, %v14116_v2 }
 0x627   : > { %22737 = vmatmul.mubr.f32.gmra.mrb[154].mxu1 %v30464_v32  ;;  %v14115_v36 = vadd.f32 %v14083_v0, %v30697_v10  ;;  %v30753_v49 = vpop.f32.mrb[117].mxu0  ;;  %v12112_v9 = vadd.f32 %v12080_v58, %v11980_v63  ;;  %v14086_v10 = vld [vmem:[#allocation2 + $0x78] sm:$0xff]  ;;  %v12083_v0 = vld [vmem:[#allocation2 + $0xa8] sm:$0xff] }
 0x628   : > { %23040 = vmatmul.mubr.f32.gmra.mrb[156].mxu0 %v30472_v29  ;;  %22739 = vmatprep.mubr.f32.mxu1 %v30479_v7  ;;  %12145 = vst.msk [vmem:[#allocation2 + $0x98] sm:$0xff] %vm2084_vm2, %v12113_v60  ;;  %v14118_v24 = vadd.f32 %v30708_v17, %v14086_v10  ;;  %v34093_v60 = vand.u32 4294901760, %v34039_v12 }
 0x629   : > { %23042 = vmatprep.mubr.f32.mxu0 %v30482_v56  ;;  %14147 = vst.msk [vmem:[#allocation2 + $0x60] sm:$0xff] %vm2084_vm2, %v14115_v36  ;;  %12144 = vst.msk [vmem:[#allocation2 + $0x90] sm:$0xff] %vm2084_vm2, %v12112_v9  ;;  %v22279_v21 = vpop.f32.mrb[116].mxu1  ;;  %v34092_v36 = vand.u32 4294901760, %v34038_v4  ;;  %v34094_v9 = vand.u32 4294901760, %v34040_v15 }
 0x62a   : > { %v14085_v33 = vld [vmem:[#allocation2 + $0x70] sm:$0xff]  ;;  %v30765_v47 = vpop.f32.mrb[118].mxu0  ;;  %v12115_v25 = vadd.f32 %v22279_v21, %v12083_v0  ;;  %v11992_v63 = vpop.f32.mrb[117].mxu1  ;;  %14150 = vst.msk [vmem:[#allocation2 + $0x78] sm:$0xff] %vm2084_vm2, %v14118_v24  ;;  %v12085_v24 = vld [vmem:[#allocation2 + $0xb8] sm:$0xff] }
 0x62b   : > { %22740 = vmatmul.mubr.f32.gmra.mrb[156].mxu1 %v30501_v35  ;;  %v14117_v2 = vadd.f32 %v14085_v33, %v30711_v54  ;;  %v30768_v58 = vpop.f32.mrb[119].mxu0  ;;  %v12114_v17 = vadd.f32 %v12082_v39, %v11992_v63  ;;  %v14088_v54 = vld [vmem:[#allocation2 + $0x88] sm:$0xff]  ;;  %v12084_v0 = vld [vmem:[#allocation2 + $0xb0] sm:$0xff]  ;;  %v34097_v63 = vand.u32 4294901760, %v34044_v61  ;;  %v34098_v39 = vand.u32 4294901760, %v34045_v62 }
 0x62c   : > { %23043 = vmatmul.mubr.f32.gmra.mrb[158].mxu0 %v30504_v1  ;;  %22742 = vmatprep.mubr.f32.mxu1 %v30514_v31  ;;  %12147 = vst.msk [vmem:[#allocation2 + $0xa8] sm:$0xff] %vm2084_vm2, %v12115_v25  ;;  %v14087_v4 = vld [vmem:[#allocation2 + $0x80] sm:$0xff]  ;;  %v34099_v62 = vand.u32 4294901760, %v34047_v22 }
 0x62d   : > { %23047 = vmatprep.mubr.f32.mxu0 %v34091_v53  ;;  %14149 = vst.msk [vmem:[#allocation2 + $0x70] sm:$0xff] %vm2084_vm2, %v14117_v2  ;;  %v14120_v53 = vadd.f32 %v30722_v38, %v14088_v54  ;;  %12146 = vst.msk [vmem:[#allocation2 + $0xa0] sm:$0xff] %vm2084_vm2, %v12114_v17  ;;  %v22282_v10 = vpop.f32.mrb[118].mxu1  ;;  %v14119_v12 = vadd.f32 %v14087_v4, %v30725_v43  ;;  %v34096_v38 = vand.u32 4294901760, %v34043_v51  ;;  %v12086_v54 = vld [vmem:[#allocation2 + $0xc0] sm:$0xff]  ;;  %v34100_v4 = vand.u32 4294901760, %v34048_v41 }
 0x62e   : > { %v30783_v33 = vpop.f32.mrb[120].mxu0  ;;  %v12117_v15 = vadd.f32 %v22282_v10, %v12085_v24  ;;  %v12004_v21 = vpop.f32.mrb[119].mxu1  ;;  %v34101_v10 = vand.u32 4294901760, %v34049_v44  ;;  %v34102_v24 = vand.u32 4294901760, %v34050_v28  ;;  %v12088_v28 = vld [vmem:[#allocation2 + $0xd0] sm:$0xff] }
 0x62f   : > { %22743 = vmatmul.mubr.f32.gmra.mrb[158].mxu1 %v30525_v55  ;;  %v30787_v2 = vpop.f32.mrb[121].mxu0  ;;  %14152 = vst.msk [vmem:[#allocation2 + $0x88] sm:$0xff] %vm2084_vm2, %v14120_v53  ;;  %v12116_v25 = vadd.f32 %v12084_v0, %v12004_v21  ;;  %14151 = vst.msk [vmem:[#allocation2 + $0x80] sm:$0xff] %vm2084_vm2, %v14119_v12  ;;  %v14090_v43 = vld [vmem:[#allocation2 + $0x98] sm:$0xff] }
 0x630   : > { %23048 = vmatmul.mubr.f32.vlgmr.msra.gmra.mrb[128].mxu0 %v34092_v36  ;;  %22747 = vmatprep.mubr.f32.mxu1 %v34093_v60  ;;  %12149 = vst.msk [vmem:[#allocation2 + $0xb8] sm:$0xff] %vm2084_vm2, %v12117_v15  ;;  %v14122_v51 = vadd.f32 %v30736_v42, %v14090_v43  ;;  %v12089_v15 = vld [vmem:[#allocation2 + $0xd8] sm:$0xff]  ;;  %v34105_v43 = vand.u32 4294901760, %v34053_v34 }
 0x631   : > { %23050 = vmatprep.mubr.f32.mxu0 %v34094_v9  ;;  %23096 = vmatpush3.msra.mxu0 %v34041_v46  ;;  %v34095_v46 = vand.u32 4294901760, %v34042_v37  ;;  %v14089_v37 = vld [vmem:[#allocation2 + $0x90] sm:$0xff]  ;;  %12148 = vst.msk [vmem:[#allocation2 + $0xb0] sm:$0xff] %vm2084_vm2, %v12116_v25  ;;  %v22285_v36 = vpop.f32.mrb[120].mxu1  ;;  %v34103_v25 = vand.u32 4294901760, %v34051_v6 }
 0x632   : > { %23145 = vmatprep.subr.mxu0 %v29446_v50  ;;  %v30804_v17 = vpop.f32.mrb[122].mxu0  ;;  %v14121_v61 = vadd.f32 %v14089_v37, %v30739_v26  ;;  %v12016_v9 = vpop.f32.mrb[121].mxu1  ;;  %14154 = vst.msk [vmem:[#allocation2 + $0x98] sm:$0xff] %vm2084_vm2, %v14122_v51  ;;  %v12091_v37 = vld [vmem:[#allocation2 + $0xe8] sm:$0xff] }
 0x633   : > { %22748 = vmatmul.mubr.f32.vlgmr.msra.gmra.mrb[128].mxu1 %v34095_v46  ;;  %v30807_v53 = vpop.f32.mrb[123].mxu0  ;;  %v12118_v42 = vadd.f32 %v12086_v54, %v12016_v9  ;;  %v14092_v26 = vld [vmem:[#allocation2 + $0xa8] sm:$0xff]  ;;  %v34107_v9 = vand.u32 4294901760, %v34055_v45  ;;  %v34108_v54 = vand.u32 4294901760, %v34056_v11 }
 0x634   : > { %23051 = vmatmul.mubr.f32.gmra.mrb[130].mxu0 %v34096_v38  ;;  %22796 = vmatpush3.msra.mxu1 %v34046_v27  ;;  %v12087_v27 = vld [vmem:[#allocation2 + $0xc8] sm:$0xff]  ;;  %14153 = vst.msk [vmem:[#allocation2 + $0x90] sm:$0xff] %vm2084_vm2, %v14121_v61  ;;  %v14124_v22 = vadd.f32 %v30750_v48, %v14092_v26  ;;  %v14091_v12 = vld [vmem:[#allocation2 + $0xa0] sm:$0xff] }
 0x635   : > { %22750 = vmatprep.mubr.f32.mxu1 %v34097_v63  ;;  %23053 = vmatprep.mubr.f32.mxu0 %v34098_v39  ;;  %v12119_v60 = vadd.f32 %v22285_v36, %v12087_v27  ;;  %12150 = vst.msk [vmem:[#allocation2 + $0xc0] sm:$0xff] %vm2084_vm2, %v12118_v42  ;;  %v22288_v41 = vpop.f32.mrb[122].mxu1  ;;  %v14123_v44 = vadd.f32 %v14091_v12, %v30753_v49  ;;  %v34104_v63 = vand.u32 4294901760, %v34052_v30  ;;  %v34106_v39 = vand.u32 4294901760, %v34054_v14 }
 0x636   : > { %22845 = vmatprep.subr.mxu1 %v34003_v19  ;;  %v30822_v21 = vpop.f32.mrb[124].mxu0  ;;  %v12121_v0 = vadd.f32 %v22288_v41, %v12089_v15  ;;  %v12028_v46 = vpop.f32.mrb[123].mxu1  ;;  %14156 = vst.msk [vmem:[#allocation2 + $0xa8] sm:$0xff] %vm2084_vm2, %v14124_v22  ;;  %v12092_v22 = vld [vmem:[#allocation2 + $0xf0] sm:$0xff]  ;;  %v34112_v12 = vand.u32 4294901760, %v34060_v20  ;;  %v34114_v15 = vand.u32 4294901760, %v34062_v13 }
 0x637   : > { %22751 = vmatmul.mubr.f32.gmra.mrb[130].mxu1 %v34099_v62  ;;  %12151 = vst.msk [vmem:[#allocation2 + $0xc8] sm:$0xff] %vm2084_vm2, %v12119_v60  ;;  %v14049_v38 = vpop.f32.mrb[125].mxu0  ;;  %v12120_v48 = vadd.f32 %v12088_v28, %v12028_v46  ;;  %14155 = vst.msk [vmem:[#allocation2 + $0xa0] sm:$0xff] %vm2084_vm2, %v14123_v44  ;;  %v14094_v49 = vld [vmem:[#allocation2 + $0xb8] sm:$0xff]  ;;  %v12090_v60 = vld [vmem:[#allocation2 + $0xe0] sm:$0xff]  ;;  %v34109_v62 = vand.u32 4294901760, %v34057_v8 }
 0x638   : > { %23054 = vmatmul.mubr.f32.gmra.mrb[132].mxu0 %v34100_v4  ;;  %22753 = vmatprep.mubr.f32.mxu1 %v34101_v10  ;;  %12153 = vst.msk [vmem:[#allocation2 + $0xd8] sm:$0xff] %vm2084_vm2, %v12121_v0  ;;  %v14126_v6 = vadd.f32 %v30765_v47, %v14094_v49  ;;  %v14093_v51 = vld [vmem:[#allocation2 + $0xb0] sm:$0xff]  ;;  %v34110_v4 = vand.u32 4294901760, %v34058_v59  ;;  %v12093_v10 = vld [vmem:[#allocation2 + $0xf8] sm:$0xff]  ;;  %v34111_v59 = vand.u32 4294901760, %v34059_v3  ;;  %v34115_v0 = vld [vmem:[#allocation91_spill] sm:$0xff] }
 0x639   : > { %23056 = vmatprep.mubr.f32.mxu0 %v34102_v24  ;;  %12152 = vst.msk [vmem:[#allocation2 + $0xd0] sm:$0xff] %vm2084_vm2, %v12120_v48  ;;  %v22291_v30 = vpop.f32.mrb[124].mxu1  ;;  %v14125_v27 = vadd.f32 %v14093_v51, %v30768_v58  ;;  %v34116_v46 = vand.u32 4294901760, %v34115_v0  ;;  %v34119_v13 = vld [vmem:[#allocation41_spill] sm:$0xff]  ;;  %v34123_v49 = vld [vmem:[#allocation64_spill] sm:$0xff]  ;;  %v34156_v0 = vld [vmem:[#allocation87_spill] sm:$0xff] }
 0x63a   : > { %v22594_v36 = vpop.f32.mrb[126].mxu0  ;;  %v12123_v34 = vadd.f32 %v22291_v30, %v12091_v37  ;;  %v12040_v61 = vpop.f32.mrb[125].mxu1  ;;  %14158 = vst.msk [vmem:[#allocation2 + $0xb8] sm:$0xff] %vm2084_vm2, %v14126_v6  ;;  %v34124_v6 = vand.u32 4294901760, %v34123_v49  ;;  %v34125_v51 = vld [vmem:[#allocation65_spill] sm:$0xff]  ;;  %v34127_v37 = vld [vmem:[#allocation66_spill] sm:$0xff] }
 0x63b   : > { %22754 = vmatmul.mubr.f32.gmra.mrb[132].mxu1 %v34103_v25  ;;  %v14061_v14 = vpop.f32.mrb[127].mxu0  ;;  %v12122_v47 = vadd.f32 %v12090_v60, %v12040_v61  ;;  %14157 = vst.msk [vmem:[#allocation2 + $0xb0] sm:$0xff] %vm2084_vm2, %v14125_v27  ;;  %v34120_v25 = vand.u32 4294901760, %v34119_v13  ;;  %v34126_v30 = vand.u32 4294901760, %v34125_v51  ;;  %v34128_v27 = vand.u32 4294901760, %v34127_v37  ;;  %v34160_v13 = vld [vmem:[#allocation9_spill] sm:$0xff] }
 0x63c   : > { %23057 = vmatmul.mubr.f32.gmra.mrb[134].mxu0 %v34104_v63  ;;  %22756 = vmatprep.mubr.f32.mxu1 %v34105_v43  ;;  %12155 = vst.msk [vmem:[#allocation2 + $0xe8] sm:$0xff] %vm2084_vm2, %v12123_v34  ;;  %v14095_v42 = vld [vmem:[#allocation2 + $0xc0] sm:$0xff]  ;;  %v34121_v63 = vld [vmem:[#allocation18_spill] sm:$0xff]  ;;  %v34129_v34 = vld [vmem:[#allocation77_spill] sm:$0xff]  ;;  %v34170_v51 = vand.u32 4294901760, %v30418_v18  ;;  %v34173_v37 = vand.u32 4294901760, %v30464_v32 }
 0x63d   : > { %23059 = vmatprep.mubr.f32.mxu0 %v34106_v39  ;;  %12154 = vst.msk [vmem:[#allocation2 + $0xe0] sm:$0xff] %vm2084_vm2, %v12122_v47  ;;  %v22294_v11 = vpop.f32.mrb[126].mxu1  ;;  %v14127_v24 = vadd.f32 %v14095_v42, %v30787_v2  ;;  %v34122_v48 = vand.u32 4294901760, %v34121_v63  ;;  %v34130_v61 = vand.u32 4294901760, %v34129_v34  ;;  %v34162_v63 = vand.u32 4294901760, %v34087_v40  ;;  %v34180_v32 = vld [vmem:[#allocation47_spill] sm:$0xff] }
 0x63e   : > { %v14096_v58 = vld [vmem:[#allocation2 + $0xc8] sm:$0xff]  ;;  %v12125_v26 = vadd.f32 %v22294_v11, %v12093_v10  ;;  %v12052_v8 = vpop.f32.mrb[127].mxu1  ;;  %v34172_v40 = vand.u32 4294901760, %v30435_v57  ;;  %v34175_v34 = vand.u32 4294901760, %v30479_v7  ;;  %v34177_v18 = vand.u32 4294901760, %v30501_v35  ;;  %v34183_v7 = vld [vmem:[#allocation21_spill] sm:$0xff] }
 0x63f   : > { %22757 = vmatmul.mubr.f32.gmra.mrb[134].mxu1 %v34107_v9  ;;  %v14128_v45 = vadd.f32 %v30783_v33, %v14096_v58  ;;  %v12124_v41 = vadd.f32 %v12092_v22, %v12052_v8  ;;  %v34113_v33 = vand.u32 4294901760, %v34061_v23  ;;  %14159 = vst.msk [vmem:[#allocation2 + $0xc0] sm:$0xff] %vm2084_vm2, %v14127_v24  ;;  %v14098_v2 = vld [vmem:[#allocation2 + $0xd8] sm:$0xff]  ;;  %v34117_v23 = vld [vmem:[#allocation104_spill] sm:$0xff]  ;;  %v34135_v58 = vand.u32 4294901760, %v34073_v5  ;;  %v34144_v8 = vld [vmem:[#allocation29_spill] sm:$0xff] }
 0x640   : > { %23060 = vmatmul.mubr.f32.gmra.mrb[136].mxu0 %v34108_v54  ;;  %22759 = vmatprep.mubr.f32.mxu1 %v34109_v62  ;;  %12157 = vst.msk [vmem:[#allocation2 + $0xf8] sm:$0xff] %vm2084_vm2, %v12125_v26  ;;  %v14130_v3 = vadd.f32 %v30804_v17, %v14098_v2  ;;  %v14097_v44 = vld [vmem:[#allocation2 + $0xd0] sm:$0xff]  ;;  %v34118_v28 = vand.u32 4294901760, %v34117_v23  ;;  %v34133_v62 = vld [vmem:[#allocation31_spill] sm:$0xff]  ;;  %v34138_v11 = vld [vmem:[#allocation80_spill] sm:$0xff]  ;;  %v34145_v22 = vand.u32 4294901760, %v34144_v8 }
 0x641   : > { %23062 = vmatprep.mubr.f32.mxu0 %v34110_v4  ;;  %14160 = vst.msk [vmem:[#allocation2 + $0xc8] sm:$0xff] %vm2084_vm2, %v14128_v45  ;;  %12156 = vst.msk [vmem:[#allocation2 + $0xf0] sm:$0xff] %vm2084_vm2, %v12124_v41  ;;  %v14129_v20 = vadd.f32 %v14097_v44, %v30807_v53  ;;  %v34131_v54 = vld [vmem:[#allocation97_spill] sm:$0xff]  ;;  %v34134_v4 = vand.u32 4294901760, %v34133_v62  ;;  %v34136_v45 = vld [vmem:[#allocation36_spill] sm:$0xff]  ;;  %v34179_v57 = vand.u32 4294901760, %v30514_v31 }
 0x642   : > { %14162 = vst.msk [vmem:[#allocation2 + $0xd8] sm:$0xff] %vm2084_vm2, %v14130_v3  ;;  %v34132_v47 = vand.u32 4294901760, %v34131_v54  ;;  %v34137_v42 = vand.u32 4294901760, %v34136_v45  ;;  %v34142_v24 = vld [vmem:[#allocation28_spill] sm:$0xff]  ;;  %v34154_v44 = vld [vmem:[#allocation85_spill] sm:$0xff]  ;;  %v34185_v35 = vld [vmem:[#allocation54_spill] sm:$0xff] }
 0x643   : > { %22760 = vmatmul.mubr.f32.gmra.mrb[136].mxu1 %v34111_v59  ;;  %14161 = vst.msk [vmem:[#allocation2 + $0xd0] sm:$0xff] %vm2084_vm2, %v14129_v20  ;;  %v14100_v17 = vld [vmem:[#allocation2 + $0xe8] sm:$0xff]  ;;  %v34143_v26 = vand.u32 4294901760, %v34142_v24  ;;  %v34146_v59 = vld [vmem:[#allocation7_spill] sm:$0xff]  ;;  %v34155_v20 = vand.u32 4294901760, %v34154_v44  ;;  %v34196_v62 = vld [vmem:[#allocation81_spill] sm:$0xff] }
 0x644   : > { %23063 = vmatmul.mubr.f32.gmra.mrb[138].mxu0 %v34112_v12  ;;  %22762 = vmatprep.mubr.f32.mxu1 %v34113_v33  ;;  %v14132_v43 = vadd.f32 %v30822_v21, %v14100_v17  ;;  %v14099_v53 = vld [vmem:[#allocation2 + $0xe0] sm:$0xff]  ;;  %v34147_v5 = vand.u32 4294901760, %v34146_v59  ;;  %v34148_v12 = vld [vmem:[#allocation30_spill] sm:$0xff]  ;;  %v34152_v2 = vld [vmem:[#allocation72_spill] sm:$0xff] }
 0x645   : > { %23065 = vmatprep.mubr.f32.mxu0 %v34114_v15  ;;  %v14131_v39 = vadd.f32 %v14099_v53, %v14049_v38  ;;  %v34149_v41 = vand.u32 4294901760, %v34148_v12  ;;  %v34150_v33 = vld [vmem:[#allocation70_spill] sm:$0xff]  ;;  %v34153_v3 = vand.u32 4294901760, %v34152_v2  ;;  %v34158_v23 = vld [vmem:[#allocation88_spill] sm:$0xff]  ;;  %v34187_v31 = vld [vmem:[#allocation99_spill] sm:$0xff] }
 0x646   : > { %14164 = vst.msk [vmem:[#allocation2 + $0xe8] sm:$0xff] %vm2084_vm2, %v14132_v43  ;;  %v34151_v15 = vand.u32 4294901760, %v34150_v33  ;;  %v34165_v43 = vld [vmem:[#allocation71_spill] sm:$0xff]  ;;  %v34200_v45 = vld [vmem:[#allocation106_spill] sm:$0xff]  ;;  %v34206_v24 = vld [vmem:[#allocation49_spill] sm:$0xff] }
 0x647   : > { %22763 = vmatmul.mubr.f32.gmra.mrb[138].mxu1 %v34116_v46  ;;  %14163 = vst.msk [vmem:[#allocation2 + $0xe0] sm:$0xff] %vm2084_vm2, %v14131_v39  ;;  %v14102_v60 = vld [vmem:[#allocation2 + $0xf8] sm:$0xff]  ;;  %v34157_v46 = vand.u32 4294901760, %v34156_v0  ;;  %v34166_v53 = vand.u32 4294901760, %v34165_v43  ;;  %v34167_v39 = vld [vmem:[#allocation93_spill] sm:$0xff]  ;;  %v34193_v54 = vld [vmem:[#allocation83_spill] sm:$0xff] }
 0x648   : > { %23066 = vmatmul.mubr.f32.gmra.mrb[140].mxu0 %v34118_v28  ;;  %22765 = vmatprep.mubr.f32.mxu1 %v34120_v25  ;;  %v14134_v21 = vadd.f32 %v22594_v36, %v14102_v60  ;;  %v14101_v9 = vld [vmem:[#allocation2 + $0xf0] sm:$0xff]  ;;  %v34139_v36 = vand.u32 4294901760, %v34138_v11  ;;  %v34159_v28 = vand.u32 4294901760, %v34158_v23  ;;  %v34161_v25 = vand.u32 4294901760, %v34160_v13  ;;  %v34208_v8 = vld [vmem:[#allocation23_spill] sm:$0xff]  ;;  %v34210_v59 = vld [vmem:[#allocation4_spill] sm:$0xff] }
 0x649   : > { %23068 = vmatprep.mubr.f32.mxu0 %v34122_v48  ;;  %v14133_v38 = vadd.f32 %v14101_v9, %v14061_v14  ;;  %v34140_v14 = vld [vmem:[#allocation103_spill] sm:$0xff]  ;;  %v34163_v48 = vld [vmem:[#allocation69_spill] sm:$0xff]  ;;  %v34168_v49 = vand.u32 4294901760, %v34167_v39  ;;  %v34191_v9 = vld [vmem:[#allocation8_spill] sm:$0xff] }
 0x64a   : > { %14166 = vst.msk [vmem:[#allocation2 + $0xf8] sm:$0xff] %vm2084_vm2, %v14134_v21  ;;  %v34141_v10 = vand.u32 4294901760, %v34140_v14  ;;  %v34164_v17 = vand.u32 4294901760, %v34163_v48  ;;  %v34188_v60 = vld [vmem:[#allocation121_spill] sm:$0xff]  ;;  %v34190_v21 = vld [vmem:[#allocation27_spill] sm:$0xff]  ;;  %v34204_v14 = vld [vmem:[#allocation46_spill] sm:$0xff] }
 0x64b   : > { %22766 = vmatmul.mubr.f32.gmra.mrb[140].mxu1 %v34124_v6  ;;  %14165 = vst.msk [vmem:[#allocation2 + $0xf0] sm:$0xff] %vm2084_vm2, %v14133_v38  ;;  %v34169_v6 = vand.u32 4294901760, %v30415_v16  ;;  %v34176_v16 = vand.u32 4294901760, %v30482_v56  ;;  %v34184_v56 = vld [vmem:[#allocation53_spill] sm:$0xff]  ;;  %v34192_v38 = vld [vmem:[#allocation59_spill] sm:$0xff]  ;;  %v34214_v33 = vld [vmem:[#allocation96_spill] sm:$0xff] }
 0x64c   : > { %23069 = vmatmul.mubr.f32.gmra.mrb[142].mxu0 %v34126_v30  ;;  %22768 = vmatprep.mubr.f32.mxu1 %v34128_v27  ;;  %v34171_v30 = vand.u32 4294901760, %v30421_v52  ;;  %v34174_v27 = vand.u32 4294901760, %v30472_v29  ;;  %v34178_v52 = vand.u32 4294901760, %v30504_v1  ;;  %v34181_v29 = vand.u32 4294901760, %v30525_v55  ;;  %v34186_v1 = vld [vmem:[#allocation109_spill] sm:$0xff]  ;;  %v34212_v12 = vld [vmem:[#allocation67_spill] sm:$0xff] }
 0x64d   : > { %23071 = vmatprep.mubr.f32.mxu0 %v34130_v61  ;;  %v34182_v61 = vld [vmem:[#allocation6_spill] sm:$0xff]  ;;  %v34189_v55 = vld [vmem:[#allocation5_spill] sm:$0xff]  ;;  %v34218_v44 = vld [vmem:[#allocation16_spill] sm:$0xff] }
 0x64e   : > { %v34202_v11 = vld [vmem:[#allocation25_spill] sm:$0xff]  ;;  %v34216_v2 = vld [vmem:[#allocation98_spill] sm:$0xff]  ;;  %v34222_v23 = vld [vmem:[#allocation79_spill] sm:$0xff] }
 0x64f   : > { %22769 = vmatmul.mubr.f32.gmra.mrb[142].mxu1 %v34132_v47  ;;  %v34195_v47 = vld [vmem:[#allocation107_spill] sm:$0xff]  ;;  %v34220_v0 = vld [vmem:[#allocation62_spill] sm:$0xff]  ;;  %v34224_v13 = vld [vmem:[#allocation45_spill] sm:$0xff] }
 0x650   : > { %23072 = vmatmul.mubr.f32.gmra.mrb[144].mxu0 %v34134_v4  ;;  %22771 = vmatprep.mubr.f32.mxu1 %v34135_v58  ;;  %v34198_v4 = vld [vmem:[#allocation42_spill] sm:$0xff]  ;;  %v34199_v58 = vld [vmem:[#allocation19_spill] sm:$0xff]  ;;  %v34229_v43 = vld [vmem:[#allocation33_spill] sm:$0xff] }
 0x651   : > { %23074 = vmatprep.mubr.f32.mxu0 %v34137_v42  ;;  %v34201_v42 = vld [vmem:[#allocation108_spill] sm:$0xff]  ;;  %v34227_v48 = vld [vmem:[#allocation63_spill] sm:$0xff] }
 0x652   : > { %v34231_v39 = vld [vmem:[#allocation39_spill] sm:$0xff] }
 0x653   : > { %22772 = vmatmul.mubr.f32.gmra.mrb[144].mxu1 %v34139_v36  ;;  %v34203_v36 = vld [vmem:[#allocation26_spill] sm:$0xff] }
 0x654   : > { %23075 = vmatmul.mubr.f32.gmra.mrb[146].mxu0 %v34141_v10  ;;  %22774 = vmatprep.mubr.f32.mxu1 %v34143_v26  ;;  %v34205_v10 = vld [vmem:[#allocation17_spill] sm:$0xff]  ;;  %v34207_v26 = vld [vmem:[#allocation92_spill] sm:$0xff] }
 0x655   : > { %23077 = vmatprep.mubr.f32.mxu0 %v34145_v22  ;;  %v34209_v22 = vld [vmem:[#allocation35_spill] sm:$0xff] }
 0x657   : > { %22775 = vmatmul.mubr.f32.gmra.mrb[146].mxu1 %v34147_v5  ;;  %v34211_v5 = vld [vmem:[#allocation37_spill] sm:$0xff] }
 0x658   : > { %23078 = vmatmul.mubr.f32.gmra.mrb[148].mxu0 %v34149_v41  ;;  %22777 = vmatprep.mubr.f32.mxu1 %v34151_v15  ;;  %v34213_v41 = vld [vmem:[#allocation100_spill] sm:$0xff]  ;;  %v34215_v15 = vld [vmem:[#allocation15_spill] sm:$0xff] }
 0x659   : > { %23080 = vmatprep.mubr.f32.mxu0 %v34153_v3  ;;  %v34217_v3 = vld [vmem:[#allocation44_spill] sm:$0xff] }
 0x65b   : > { %22778 = vmatmul.mubr.f32.gmra.mrb[148].mxu1 %v34155_v20  ;;  %v34219_v20 = vld [vmem:[#allocation61_spill] sm:$0xff] }
 0x65c   : > { %23081 = vmatmul.mubr.f32.gmra.mrb[150].mxu0 %v34157_v46  ;;  %22780 = vmatprep.mubr.f32.mxu1 %v34159_v28  ;;  %v34221_v46 = vld [vmem:[#allocation78_spill] sm:$0xff]  ;;  %v34223_v28 = vld [vmem:[#allocation43_spill] sm:$0xff] }
 0x65d   : > { %23083 = vmatprep.mubr.f32.mxu0 %v34161_v25  ;;  %v34225_v25 = vld [vmem:[#allocation55_spill] sm:$0xff] }
 0x65f   : > { %22781 = vmatmul.mubr.f32.gmra.mrb[150].mxu1 %v34162_v63  ;;  %v34226_v63 = vld [vmem:[#allocation58_spill] sm:$0xff] }
 0x660   : > { %23084 = vmatmul.mubr.f32.gmra.mrb[152].mxu0 %v34164_v17  ;;  %22783 = vmatprep.mubr.f32.mxu1 %v34166_v53  ;;  %v34228_v17 = vld [vmem:[#allocation86_spill] sm:$0xff] }
 0x661   : > { %23086 = vmatprep.mubr.f32.mxu0 %v34168_v49  ;;  %v34230_v53 = vld [vmem:[#allocation38_spill] sm:$0xff]  ;;  %v34232_v49 = vld [vmem:[#allocation40_spill] sm:$0xff] }
 0x663   : > { %22784 = vmatmul.mubr.f32.gmra.mrb[152].mxu1 %v34169_v6  ;;  %v34233_v6 = vld [vmem:[#allocation120_spill] sm:$0xff] }
 0x664   : > { %23087 = vmatmul.mubr.f32.gmra.mrb[154].mxu0 %v34170_v51  ;;  %22786 = vmatprep.mubr.f32.mxu1 %v34171_v30  ;;  %v34234_v51 = vld [vmem:[#allocation122_spill] sm:$0xff]  ;;  %v34235_v30 = vld [vmem:[#allocation105_spill] sm:$0xff] }
 0x665   : > { %23089 = vmatprep.mubr.f32.mxu0 %v34172_v40  ;;  %v34236_v40 = vld [vmem:[#allocation110_spill] sm:$0xff] }
 0x667   : > { %22787 = vmatmul.mubr.f32.gmra.mrb[154].mxu1 %v34173_v37  ;;  %v34237_v37 = vld [vmem:[#allocation73_spill] sm:$0xff] }
 0x668   : > { %23090 = vmatmul.mubr.f32.gmra.mrb[156].mxu0 %v34174_v27  ;;  %22789 = vmatprep.mubr.f32.mxu1 %v34175_v34  ;;  %v34238_v27 = vld [vmem:[#allocation74_spill] sm:$0xff]  ;;  %v34239_v34 = vld [vmem:[#allocation112_spill] sm:$0xff] }
 0x669   : > { %23092 = vmatprep.mubr.f32.mxu0 %v34176_v16  ;;  %v34240_v16 = vld [vmem:[#allocation113_spill] sm:$0xff] }
 0x66b   : > { %22790 = vmatmul.mubr.f32.gmra.mrb[156].mxu1 %v34177_v18  ;;  %v34241_v18 = vld [vmem:[#allocation115_spill] sm:$0xff] }
 0x66c   : > { %23093 = vmatmul.mubr.f32.gmra.mrb[158].mxu0 %v34178_v52  ;;  %22792 = vmatprep.mubr.f32.mxu1 %v34179_v57  ;;  %v34242_v52 = vld [vmem:[#allocation116_spill] sm:$0xff]  ;;  %v34243_v57 = vld [vmem:[#allocation94_spill] sm:$0xff] }
 0x66d   : > { %23097 = vmatprep.mubr.f32.mxu0 %v34180_v32 }
 0x66f   : > { %22793 = vmatmul.mubr.f32.gmra.mrb[158].mxu1 %v34181_v29  ;;  %v34244_v29 = vld [vmem:[#allocation118_spill] sm:$0xff] }
 0x670   : > { %23098 = vmatmul.mubr.f32.vlgmr.msra.gmra.mrb[128].mxu0 %v34182_v61  ;;  %22797 = vmatprep.mubr.f32.mxu1 %v34183_v7 }
 0x671   : > { %23100 = vmatprep.mubr.f32.mxu0 %v34184_v56  ;;  %23146 = vmatpush3.msra.mxu0 %v29446_v50  ;;  %v34194_v50 = vld [vmem:[#allocation90_spill] sm:$0xff] }
 0x673   : > { %22798 = vmatmul.mubr.f32.vlgmr.msra.gmra.mrb[128].mxu1 %v34185_v35 }
 0x674   : > { %23101 = vmatmul.mubr.f32.gmra.mrb[130].mxu0 %v34186_v1  ;;  %22846 = vmatpush3.msra.mxu1 %v34003_v19  ;;  %v34197_v19 = vld [vmem:[#allocation14_spill] sm:$0xff] }
 0x675   : > { %22800 = vmatprep.mubr.f32.mxu1 %v34187_v31  ;;  %23103 = vmatprep.mubr.f32.mxu0 %v34188_v60 }
 0x677   : > { %22801 = vmatmul.mubr.f32.gmra.mrb[130].mxu1 %v34189_v55 }
 0x678   : > { %23104 = vmatmul.mubr.f32.gmra.mrb[132].mxu0 %v34190_v21  ;;  %22803 = vmatprep.mubr.f32.mxu1 %v34191_v9 }
 0x679   : > { %23106 = vmatprep.mubr.f32.mxu0 %v34192_v38 }
 0x67b   : > { %22804 = vmatmul.mubr.f32.gmra.mrb[132].mxu1 %v34193_v54 }
 0x67c   : > { %23107 = vmatmul.mubr.f32.gmra.mrb[134].mxu0 %v34194_v50  ;;  %22806 = vmatprep.mubr.f32.mxu1 %v34195_v47 }
 0x67d   : > { %23109 = vmatprep.mubr.f32.mxu0 %v34196_v62 }
 0x67f   : > { %22807 = vmatmul.mubr.f32.gmra.mrb[134].mxu1 %v34197_v19 }
 0x680   : > { %23110 = vmatmul.mubr.f32.gmra.mrb[136].mxu0 %v34198_v4  ;;  %22809 = vmatprep.mubr.f32.mxu1 %v34199_v58 }
 0x681   : > { %23112 = vmatprep.mubr.f32.mxu0 %v34200_v45 }
 0x683   : > { %22810 = vmatmul.mubr.f32.gmra.mrb[136].mxu1 %v34201_v42 }
 0x684   : > { %23113 = vmatmul.mubr.f32.gmra.mrb[138].mxu0 %v34202_v11  ;;  %22812 = vmatprep.mubr.f32.mxu1 %v34203_v36 }
 0x685   : > { %23115 = vmatprep.mubr.f32.mxu0 %v34204_v14 }
 0x687   : > { %22813 = vmatmul.mubr.f32.gmra.mrb[138].mxu1 %v34205_v10 }
 0x688   : > { %23116 = vmatmul.mubr.f32.gmra.mrb[140].mxu0 %v34206_v24  ;;  %22815 = vmatprep.mubr.f32.mxu1 %v34207_v26 }
 0x689   : > { %23118 = vmatprep.mubr.f32.mxu0 %v34208_v8 }
 0x68b   : > { %22816 = vmatmul.mubr.f32.gmra.mrb[140].mxu1 %v34209_v22 }
 0x68c   : > { %23119 = vmatmul.mubr.f32.gmra.mrb[142].mxu0 %v34210_v59  ;;  %22818 = vmatprep.mubr.f32.mxu1 %v34211_v5 }
 0x68d   : > { %23121 = vmatprep.mubr.f32.mxu0 %v34212_v12 }
 0x68f   : > { %22819 = vmatmul.mubr.f32.gmra.mrb[142].mxu1 %v34213_v41 }
 0x690   : > { %23122 = vmatmul.mubr.f32.gmra.mrb[144].mxu0 %v34214_v33  ;;  %22821 = vmatprep.mubr.f32.mxu1 %v34215_v15 }
 0x691   : > { %23124 = vmatprep.mubr.f32.mxu0 %v34216_v2 }
 0x693   : > { %22822 = vmatmul.mubr.f32.gmra.mrb[144].mxu1 %v34217_v3 }
 0x694   : > { %23125 = vmatmul.mubr.f32.gmra.mrb[146].mxu0 %v34218_v44  ;;  %22824 = vmatprep.mubr.f32.mxu1 %v34219_v20 }
 0x695   : > { %23127 = vmatprep.mubr.f32.mxu0 %v34220_v0 }
 0x697   : > { %22825 = vmatmul.mubr.f32.gmra.mrb[146].mxu1 %v34221_v46 }
 0x698   : > { %23128 = vmatmul.mubr.f32.gmra.mrb[148].mxu0 %v34222_v23  ;;  %22827 = vmatprep.mubr.f32.mxu1 %v34223_v28 }
 0x699   : > { %23130 = vmatprep.mubr.f32.mxu0 %v34224_v13 }
 0x69b   : > { %22828 = vmatmul.mubr.f32.gmra.mrb[148].mxu1 %v34225_v25 }
 0x69c   : > { %23131 = vmatmul.mubr.f32.gmra.mrb[150].mxu0 %v34226_v63  ;;  %22830 = vmatprep.mubr.f32.mxu1 %v34227_v48 }
 0x69d   : > { %23133 = vmatprep.mubr.f32.mxu0 %v34228_v17 }
 0x69f   : > { %22831 = vmatmul.mubr.f32.gmra.mrb[150].mxu1 %v34229_v43 }
 0x6a0   : > { %23134 = vmatmul.mubr.f32.gmra.mrb[152].mxu0 %v34230_v53  ;;  %22833 = vmatprep.mubr.f32.mxu1 %v34231_v39 }
 0x6a1   : > { %23136 = vmatprep.mubr.f32.mxu0 %v34232_v49 }
 0x6a3   : > { %22834 = vmatmul.mubr.f32.gmra.mrb[152].mxu1 %v34233_v6 }
 0x6a4   : > { %23137 = vmatmul.mubr.f32.gmra.mrb[154].mxu0 %v34234_v51  ;;  %22836 = vmatprep.mubr.f32.mxu1 %v34235_v30 }
 0x6a5   : > { %23139 = vmatprep.mubr.f32.mxu0 %v34236_v40 }
 0x6a7   : > { %22837 = vmatmul.mubr.f32.gmra.mrb[154].mxu1 %v34237_v37 }
 0x6a8   : > { %23140 = vmatmul.mubr.f32.gmra.mrb[156].mxu0 %v34238_v27  ;;  %22839 = vmatprep.mubr.f32.mxu1 %v34239_v34 }
 0x6a9   : > { %23142 = vmatprep.mubr.f32.mxu0 %v34240_v16 }
 0x6ab   : > { %22840 = vmatmul.mubr.f32.gmra.mrb[156].mxu1 %v34241_v18 }
 0x6ac   : > { %23143 = vmatmul.mubr.f32.gmra.mrb[158].mxu0 %v34242_v52  ;;  %22842 = vmatprep.mubr.f32.mxu1 %v34243_v57 }
 0x6ad   : > { %23147 = vmatprep.mubr.f32.mxu0 %v34180_v32 }
 0x6af   : > { %22843 = vmatmul.mubr.f32.gmra.mrb[158].mxu1 %v34244_v29 }
 0x6b0   : > { %23148 = vmatmul.mubr.f32.vlgmr.msra.gmra.mrb[128].mxu0 %v34182_v61  ;;  %22847 = vmatprep.mubr.f32.mxu1 %v34183_v7 }
 0x6b1   : > { %23150 = vmatprep.mubr.f32.mxu0 %v34184_v56  ;;  %v16080_v56 = vld [vmem:[#allocation2 + $0x8] sm:$0xff] }
 0x6b3   : > { %22848 = vmatmul.mubr.f32.vlgmr.msra.gmra.mrb[128].mxu1 %v34185_v35 }
 0x6b4   : > { %23151 = vmatmul.mubr.f32.gmra.mrb[130].mxu0 %v34186_v1  ;;  %22850 = vmatprep.mubr.f32.mxu1 %v34187_v31 }
 0x6b5   : > { %23153 = vmatprep.mubr.f32.mxu0 %v34188_v60  ;;  %v16079_v60 = vld [vmem:[#allocation2] sm:$0xff] }
 0x6b7   : > { %22851 = vmatmul.mubr.f32.gmra.mrb[130].mxu1 %v34189_v55 }
 0x6b8   : > { %23154 = vmatmul.mubr.f32.gmra.mrb[132].mxu0 %v34190_v21  ;;  %22853 = vmatprep.mubr.f32.mxu1 %v34191_v9 }
 0x6b9   : > { %23156 = vmatprep.mubr.f32.mxu0 %v34192_v38  ;;  %v16082_v38 = vld [vmem:[#allocation2 + $0x18] sm:$0xff] }
 0x6bb   : > { %22854 = vmatmul.mubr.f32.gmra.mrb[132].mxu1 %v34193_v54 }
 0x6bc   : > { %23157 = vmatmul.mubr.f32.gmra.mrb[134].mxu0 %v34194_v50  ;;  %22856 = vmatprep.mubr.f32.mxu1 %v34195_v47 }
 0x6bd   : > { %23159 = vmatprep.mubr.f32.mxu0 %v34196_v62  ;;  %v16081_v62 = vld [vmem:[#allocation2 + $0x10] sm:$0xff] }
 0x6bf   : > { %22857 = vmatmul.mubr.f32.gmra.mrb[134].mxu1 %v34197_v19 }
 0x6c0   : > { %23160 = vmatmul.mubr.f32.gmra.mrb[136].mxu0 %v34198_v4  ;;  %22859 = vmatprep.mubr.f32.mxu1 %v34199_v58 }
 0x6c1   : > { %23162 = vmatprep.mubr.f32.mxu0 %v34200_v45  ;;  %v16084_v45 = vld [vmem:[#allocation2 + $0x28] sm:$0xff] }
 0x6c3   : > { %22860 = vmatmul.mubr.f32.gmra.mrb[136].mxu1 %v34201_v42 }
 0x6c4   : > { %23163 = vmatmul.mubr.f32.gmra.mrb[138].mxu0 %v34202_v11  ;;  %22862 = vmatprep.mubr.f32.mxu1 %v34203_v36 }
 0x6c5   : > { %23165 = vmatprep.mubr.f32.mxu0 %v34204_v14  ;;  %v16083_v14 = vld [vmem:[#allocation2 + $0x20] sm:$0xff] }
 0x6c7   : > { %22863 = vmatmul.mubr.f32.gmra.mrb[138].mxu1 %v34205_v10 }
 0x6c8   : > { %23166 = vmatmul.mubr.f32.gmra.mrb[140].mxu0 %v34206_v24  ;;  %22865 = vmatprep.mubr.f32.mxu1 %v34207_v26 }
 0x6c9   : > { %23168 = vmatprep.mubr.f32.mxu0 %v34208_v8 }
 0x6cb   : > { %22866 = vmatmul.mubr.f32.gmra.mrb[140].mxu1 %v34209_v22 }
 0x6cc   : > { %23169 = vmatmul.mubr.f32.gmra.mrb[142].mxu0 %v34210_v59  ;;  %22868 = vmatprep.mubr.f32.mxu1 %v34211_v5 }
 0x6cd   : > { %23171 = vmatprep.mubr.f32.mxu0 %v34212_v12  ;;  %v16086_v12 = vld [vmem:[#allocation2 + $0x38] sm:$0xff] }
 0x6cf   : > { %22869 = vmatmul.mubr.f32.gmra.mrb[142].mxu1 %v34213_v41 }
 0x6d0   : > { %23172 = vmatmul.mubr.f32.gmra.mrb[144].mxu0 %v34214_v33  ;;  %22871 = vmatprep.mubr.f32.mxu1 %v34215_v15 }
 0x6d1   : > { %23174 = vmatprep.mubr.f32.mxu0 %v34216_v2  ;;  %v16085_v2 = vld [vmem:[#allocation2 + $0x30] sm:$0xff] }
 0x6d3   : > { %22872 = vmatmul.mubr.f32.gmra.mrb[144].mxu1 %v34217_v3 }
 0x6d4   : > { %23175 = vmatmul.mubr.f32.gmra.mrb[146].mxu0 %v34218_v44  ;;  %22874 = vmatprep.mubr.f32.mxu1 %v34219_v20 }
 0x6d5   : > { %23177 = vmatprep.mubr.f32.mxu0 %v34220_v0 }
 0x6d7   : > { %22875 = vmatmul.mubr.f32.gmra.mrb[146].mxu1 %v34221_v46 }
 0x6d8   : > { %23178 = vmatmul.mubr.f32.gmra.mrb[148].mxu0 %v34222_v23  ;;  %22877 = vmatprep.mubr.f32.mxu1 %v34223_v28 }
 0x6d9   : > { %23180 = vmatprep.mubr.f32.mxu0 %v34224_v13  ;;  %v16088_v13 = vld [vmem:[#allocation2 + $0x48] sm:$0xff] }
 0x6db   : > { %22878 = vmatmul.mubr.f32.gmra.mrb[148].mxu1 %v34225_v25 }
 0x6dc   : > { %23181 = vmatmul.mubr.f32.gmra.mrb[150].mxu0 %v34226_v63  ;;  %22880 = vmatprep.mubr.f32.mxu1 %v34227_v48 }
 0x6dd   : > { %23183 = vmatprep.mubr.f32.mxu0 %v34228_v17  ;;  %v16087_v17 = vld [vmem:[#allocation2 + $0x40] sm:$0xff] }
 0x6df   : > { %22881 = vmatmul.mubr.f32.gmra.mrb[150].mxu1 %v34229_v43 }
 0x6e0   : > { %23184 = vmatmul.mubr.f32.gmra.mrb[152].mxu0 %v34230_v53  ;;  %22883 = vmatprep.mubr.f32.mxu1 %v34231_v39 }
 0x6e1   : > { %23186 = vmatprep.mubr.f32.mxu0 %v34232_v49 }
 0x6e3   : > { %22884 = vmatmul.mubr.f32.gmra.mrb[152].mxu1 %v34233_v6 }
 0x6e4   : > { %23187 = vmatmul.mubr.f32.gmra.mrb[154].mxu0 %v34234_v51  ;;  %22886 = vmatprep.mubr.f32.mxu1 %v34235_v30  ;;  %v31110_v30 = vld [vmem:[%s31340_s1] ss:$0 sm:$0xff] }
 0x6e5   : > { %23189 = vmatprep.mubr.f32.mxu0 %v34236_v40 }
 0x6e7   : > { %22887 = vmatmul.mubr.f32.gmra.mrb[154].mxu1 %v34237_v37 }
 0x6e8   : > { %23190 = vmatmul.mubr.f32.gmra.mrb[156].mxu0 %v34238_v27  ;;  %22889 = vmatprep.mubr.f32.mxu1 %v34239_v34  ;;  %v16090_v27 = vld [vmem:[#allocation2 + $0x58] sm:$0xff] }
 0x6e9   : > { %23192 = vmatprep.mubr.f32.mxu0 %v34240_v16 }
 0x6eb   : > { %22890 = vmatmul.mubr.f32.gmra.mrb[156].mxu1 %v34241_v18 }
 0x6ec   : > { %23193 = vmatmul.mubr.f32.gmra.mrb[158].mxu0 %v34242_v52  ;;  %22892 = vmatprep.mubr.f32.mxu1 %v34243_v57 }
 0x6ef   : > { %22893 = vmatmul.mubr.f32.gmra.mrb[158].mxu1 %v34244_v29  ;;  %v16089_v29 = vld [vmem:[#allocation2 + $0x50] sm:$0xff] }
 0x783   : > { %v23149_v32 = vpop.f32.mrb[128].mxu0 }
 0x784   : > { %v17897_v61 = vpop.f32.mrb[129].mxu0 }
 0x786   : > { %v22849_v7 = vpop.f32.mrb[128].mxu1 }
 0x787   : > { %v23152_v35 = vpop.f32.mrb[130].mxu0  ;;  %v16112_v1 = vadd.f32 %v22849_v7, %v16080_v56  ;;  %v15889_v31 = vpop.f32.mrb[129].mxu1 }
 0x788   : > { %v17909_v55 = vpop.f32.mrb[131].mxu0  ;;  %v16111_v21 = vadd.f32 %v16079_v60, %v15889_v31 }
 0x789   : > { %16144 = vst.msk [vmem:[#allocation2 + $0x8] sm:$0xff] %vm2084_vm2, %v16112_v1 }
 0x78a   : > { %16143 = vst.msk [vmem:[#allocation2] sm:$0xff] %vm2084_vm2, %v16111_v21  ;;  %v22852_v9 = vpop.f32.mrb[130].mxu1 }
 0x78b   : > { %v23155_v54 = vpop.f32.mrb[132].mxu0  ;;  %v16114_v50 = vadd.f32 %v22852_v9, %v16082_v38  ;;  %v15901_v47 = vpop.f32.mrb[131].mxu1  ;;  %v16092_v38 = vld [vmem:[#allocation2 + $0x68] sm:$0xff] }
 0x78c   : > { %v17921_v19 = vpop.f32.mrb[133].mxu0  ;;  %v16113_v4 = vadd.f32 %v16081_v62, %v15901_v47 }
 0x78d   : > { %16146 = vst.msk [vmem:[#allocation2 + $0x18] sm:$0xff] %vm2084_vm2, %v16114_v50 }
 0x78e   : > { %16145 = vst.msk [vmem:[#allocation2 + $0x10] sm:$0xff] %vm2084_vm2, %v16113_v4  ;;  %v22855_v58 = vpop.f32.mrb[132].mxu1 }
 0x78f   : > { %v23158_v42 = vpop.f32.mrb[134].mxu0  ;;  %v16116_v11 = vadd.f32 %v22855_v58, %v16084_v45  ;;  %v15913_v36 = vpop.f32.mrb[133].mxu1 }
 0x790   : > { %v31088_v10 = vpop.f32.mrb[135].mxu0  ;;  %v18088_v24 = vld [vmem:[#allocation2 + $0x8] sm:$0xff]  ;;  %v16115_v26 = vadd.f32 %v16083_v14, %v15913_v36 }
 0x791   : > { %v18120_v8 = vadd.f32 %v23149_v32, %v18088_v24  ;;  %v18087_v22 = vld [vmem:[#allocation2] sm:$0xff]  ;;  %16148 = vst.msk [vmem:[#allocation2 + $0x28] sm:$0xff] %vm2084_vm2, %v16116_v11 }
 0x792   : > { %v18119_v59 = vadd.f32 %v18087_v22, %v17897_v61  ;;  %16147 = vst.msk [vmem:[#allocation2 + $0x20] sm:$0xff] %vm2084_vm2, %v16115_v26  ;;  %v22858_v5 = vpop.f32.mrb[134].mxu1  ;;  %v16091_v24 = vld [vmem:[#allocation2 + $0x60] sm:$0xff] }
 0x793   : > { %v31092_v41 = vpop.f32.mrb[136].mxu0  ;;  %18152 = vst.msk [vmem:[#allocation2 + $0x8] sm:$0xff] %vm2084_vm2, %v18120_v8  ;;  %v16118_v33 = vadd.f32 %v22858_v5, %v16086_v12  ;;  %v15925_v15 = vpop.f32.mrb[135].mxu1 }
 0x794   : > { %v31095_v3 = vpop.f32.mrb[137].mxu0  ;;  %18151 = vst.msk [vmem:[#allocation2] sm:$0xff] %vm2084_vm2, %v18119_v59  ;;  %v18090_v44 = vld [vmem:[#allocation2 + $0x18] sm:$0xff]  ;;  %v16117_v20 = vadd.f32 %v16085_v2, %v15925_v15 }
 0x795   : > { %v18122_v0 = vadd.f32 %v23152_v35, %v18090_v44  ;;  %v18089_v46 = vld [vmem:[#allocation2 + $0x10] sm:$0xff]  ;;  %16150 = vst.msk [vmem:[#allocation2 + $0x38] sm:$0xff] %vm2084_vm2, %v16118_v33  ;;  %v16094_v15 = vld [vmem:[#allocation2 + $0x78] sm:$0xff] }
 0x796   : > { %v18121_v23 = vadd.f32 %v18089_v46, %v17909_v55  ;;  %16149 = vst.msk [vmem:[#allocation2 + $0x30] sm:$0xff] %vm2084_vm2, %v16117_v20  ;;  %v22861_v28 = vpop.f32.mrb[136].mxu1 }
 0x797   : > { %v31100_v25 = vpop.f32.mrb[138].mxu0  ;;  %18154 = vst.msk [vmem:[#allocation2 + $0x18] sm:$0xff] %vm2084_vm2, %v18122_v0  ;;  %v16120_v63 = vadd.f32 %v22861_v28, %v16088_v13  ;;  %v15937_v48 = vpop.f32.mrb[137].mxu1 }
 0x798   : > { %v31103_v43 = vpop.f32.mrb[139].mxu0  ;;  %18153 = vst.msk [vmem:[#allocation2 + $0x10] sm:$0xff] %vm2084_vm2, %v18121_v23  ;;  %v18092_v53 = vld [vmem:[#allocation2 + $0x28] sm:$0xff]  ;;  %v16119_v39 = vadd.f32 %v16087_v17, %v15937_v48 }
 0x799   : > { %v18124_v49 = vadd.f32 %v23155_v54, %v18092_v53  ;;  %v18091_v6 = vld [vmem:[#allocation2 + $0x20] sm:$0xff]  ;;  %16152 = vst.msk [vmem:[#allocation2 + $0x48] sm:$0xff] %vm2084_vm2, %v16120_v63 }
 0x79a   : > { %v18184_v51 = vld [vmem:[#allocation2 + $0x8] sm:$0xff]  ;;  %v18123_v40 = vadd.f32 %v18091_v6, %v17921_v19  ;;  %16151 = vst.msk [vmem:[#allocation2 + $0x40] sm:$0xff] %vm2084_vm2, %v16119_v39  ;;  %v22864_v37 = vpop.f32.mrb[138].mxu1  ;;  %v16093_v39 = vld [vmem:[#allocation2 + $0x70] sm:$0xff] }
 0x79b   : > { %v31113_v34 = vpop.f32.mrb[140].mxu0  ;;  %v18216_v16 = vmul.f32 0.16666667, %v18184_v51  ;;  %v18183_v18 = vld [vmem:[#allocation2] sm:$0xff]  ;;  %18156 = vst.msk [vmem:[#allocation2 + $0x28] sm:$0xff] %vm2084_vm2, %v18124_v49  ;;  %v16122_v52 = vadd.f32 %v22864_v37, %v16090_v27  ;;  %v15949_v57 = vpop.f32.mrb[139].mxu1 }
 0x79c   : > { %v31116_v32 = vpop.f32.mrb[141].mxu0  ;;  %v18215_v61 = vmul.f32 0.16666667, %v18183_v18  ;;  %18155 = vst.msk [vmem:[#allocation2 + $0x20] sm:$0xff] %vm2084_vm2, %v18123_v40  ;;  %v18094_v7 = vld [vmem:[#allocation2 + $0x38] sm:$0xff]  ;;  %v16121_v56 = vadd.f32 %v16089_v29, %v15949_v57 }
 0x79d   : > { %v18255_v35 = vadd.f32 %v31110_v30, %v18216_v16  ;;  %v18126_v1 = vadd.f32 %v23158_v42, %v18094_v7  ;;  %v18093_v31 = vld [vmem:[#allocation2 + $0x30] sm:$0xff]  ;;  %16154 = vst.msk [vmem:[#allocation2 + $0x58] sm:$0xff] %vm2084_vm2, %v16122_v52 }
 0x79e   : > { %v18254_v60 = vadd.f32 %v31110_v30, %v18215_v61  ;;  %v18186_v55 = vld [vmem:[#allocation2 + $0x18] sm:$0xff]  ;;  %v18125_v21 = vadd.f32 %v18093_v31, %v31088_v10  ;;  %16153 = vst.msk [vmem:[#allocation2 + $0x50] sm:$0xff] %vm2084_vm2, %v16121_v56  ;;  %v22867_v9 = vpop.f32.mrb[140].mxu1 }
 0x79f   : > { %v31125_v54 = vpop.f32.mrb[142].mxu0  ;;  %vm18287_vm3 = vcmp.ge.f32.partialorder %v18255_v35, 0.0  ;;  %v18319_v50 = vmul.f32 0.2, %v18255_v35  ;;  %v18218_v47 = vmul.f32 0.16666667, %v18186_v55  ;;  %v16124_v19 = vadd.f32 %v22867_v9, %v16092_v38 }
 0x7a0   : > { %v18185_v62 = vld [vmem:[#allocation2 + $0x10] sm:$0xff]  ;;  %18158 = vst.msk [vmem:[#allocation2 + $0x38] sm:$0xff] %vm2084_vm2, %v18126_v1  ;;  %vm18286_vm4 = vcmp.ge.f32.partialorder %v18254_v60, 0.0  ;;  %v18318_v4 = vmul.f32 0.2, %v18254_v60  ;;  %18157 = vst.msk [vmem:[#allocation2 + $0x30] sm:$0xff] %vm2084_vm2, %v18125_v21 }
 0x7a1   : > { %v18217_v58 = vmul.f32 0.16666667, %v18185_v62  ;;  %v18096_v45 = vld [vmem:[#allocation2 + $0x48] sm:$0xff]  ;;  %v18351_v42 = vsel %vm18287_vm3, %v18255_v35, %v18319_v50  ;;  %v18257_v11 = vadd.f32 %v31110_v30, %v18218_v47  ;;  %v18095_v14 = vld [vmem:[#allocation2 + $0x40] sm:$0xff]  ;;  %16156 = vst.msk [vmem:[#allocation2 + $0x68] sm:$0xff] %vm2084_vm2, %v16124_v19  ;;  %v15961_v10 = vpop.f32.mrb[141].mxu1 }
 0x7a2   : > { %v18128_v36 = vadd.f32 %v31092_v41, %v18096_v45  ;;  %v31137_v26 = vpop.f32.mrb[143].mxu0  ;;  %v18383_v8 = vmul.f32 1.4142135, %v18351_v42  ;;  %v18350_v22 = vsel %vm18286_vm4, %v18254_v60, %v18318_v4  ;;  %v18188_v5 = vld [vmem:[#allocation2 + $0x28] sm:$0xff]  ;;  %v18127_v12 = vadd.f32 %v18095_v14, %v31095_v3  ;;  %v22870_v33 = vpop.f32.mrb[142].mxu1  ;;  %v16095_v9 = vld [vmem:[#allocation2 + $0x80] sm:$0xff] }
 0x7a3   : > { %v18256_v59 = vadd.f32 %v31110_v30, %v18217_v58  ;;  %v31141_v2 = vpop.f32.mrb[144].mxu0  ;;  %v18382_v41 = vmul.f32 1.4142135, %v18350_v22  ;;  %vm18289_vm5 = vcmp.ge.f32.partialorder %v18257_v11, 0.0  ;;  %v18321_v44 = vmul.f32 0.2, %v18257_v11 }
 0x7a4   : > { %v18187_v20 = vld [vmem:[#allocation2 + $0x20] sm:$0xff]  ;;  %18160 = vst.msk [vmem:[#allocation2 + $0x48] sm:$0xff] %vm2084_vm2, %v18128_v36  ;;  %v16123_v0 = vadd.f32 %v16091_v24, %v15961_v10  ;;  %18415 = vst.msk [vmem:[%s31132_s15 + $0x8] sm:$0xff] %vm2084_vm2, %v18383_v8  ;;  %v18220_v23 = vmul.f32 0.16666667, %v18188_v5  ;;  %v18098_v3 = vld [vmem:[#allocation2 + $0x58] sm:$0xff]  ;;  %v16126_v28 = vadd.f32 %v22870_v33, %v16094_v15 }
 0x7a5   : > { %vm18288_vm6 = vcmp.ge.f32.partialorder %v18256_v59, 0.0  ;;  %v18320_v46 = vmul.f32 0.2, %v18256_v59  ;;  %18159 = vst.msk [vmem:[#allocation2 + $0x40] sm:$0xff] %vm2084_vm2, %v18127_v12  ;;  %18414 = vst.msk [vmem:[%s31132_s15] sm:$0xff] %vm2084_vm2, %v18382_v41  ;;  %v18353_v13 = vsel %vm18289_vm5, %v18257_v11, %v18321_v44  ;;  %v18130_v48 = vadd.f32 %v31100_v25, %v18098_v3  ;;  %v18097_v17 = vld [vmem:[#allocation2 + $0x50] sm:$0xff] }
 0x7a6   : > { %v18219_v63 = vmul.f32 0.16666667, %v18187_v20  ;;  %16155 = vst.msk [vmem:[#allocation2 + $0x60] sm:$0xff] %vm2084_vm2, %v16123_v0  ;;  %v15973_v53 = vpop.f32.mrb[143].mxu1  ;;  %v31151_v49 = vpop.f32.mrb[145].mxu0  ;;  %v18259_v40 = vadd.f32 %v31110_v30, %v18220_v23  ;;  %v18129_v27 = vadd.f32 %v18097_v17, %v31103_v43  ;;  %16158 = vst.msk [vmem:[#allocation2 + $0x78] sm:$0xff] %vm2084_vm2, %v16126_v28 }
 0x7a7   : > { %v18385_v6 = vmul.f32 1.4142135, %v18353_v13  ;;  %v18352_v51 = vsel %vm18288_vm6, %v18256_v59, %v18320_v46  ;;  %v18190_v37 = vld [vmem:[#allocation2 + $0x38] sm:$0xff]  ;;  %v22873_v16 = vpop.f32.mrb[144].mxu1  ;;  %v16096_v25 = vld [vmem:[#allocation2 + $0x88] sm:$0xff]  ;;  %v31157_v18 = vpop.f32.mrb[146].mxu0  ;;  %v16125_v7 = vadd.f32 %v16093_v39, %v15973_v53 }
 0x7a8   : > { %v18384_v52 = vmul.f32 1.4142135, %v18352_v51  ;;  %v18258_v57 = vadd.f32 %v31110_v30, %v18219_v63  ;;  %v18222_v29 = vmul.f32 0.16666667, %v18190_v37  ;;  %v18189_v61 = vld [vmem:[#allocation2 + $0x30] sm:$0xff]  ;;  %18162 = vst.msk [vmem:[#allocation2 + $0x58] sm:$0xff] %vm2084_vm2, %v18130_v48  ;;  %v16128_v31 = vadd.f32 %v22873_v16, %v16096_v25 }
 0x7a9   : > { %v15985_v56 = vpop.f32.mrb[145].mxu1  ;;  %18417 = vst.msk [vmem:[%s31132_s15 + $0x18] sm:$0xff] %vm2084_vm2, %v18385_v6  ;;  %vm18291_vm7 = vcmp.ge.f32.partialorder %v18259_v40, 0.0  ;;  %v18323_v43 = vmul.f32 0.2, %v18259_v40  ;;  %18161 = vst.msk [vmem:[#allocation2 + $0x50] sm:$0xff] %vm2084_vm2, %v18129_v27 }
 0x7aa   : > { %v18221_v35 = vmul.f32 0.16666667, %v18189_v61  ;;  %v18100_v1 = vld [vmem:[#allocation2 + $0x68] sm:$0xff]  ;;  %18416 = vst.msk [vmem:[%s31132_s15 + $0x10] sm:$0xff] %vm2084_vm2, %v18384_v52  ;;  %vm18290_vm8 = vcmp.ge.f32.partialorder %v18258_v57, 0.0  ;;  %v18261_v55 = vadd.f32 %v31110_v30, %v18222_v29  ;;  %16157 = vst.msk [vmem:[#allocation2 + $0x70] sm:$0xff] %vm2084_vm2, %v16125_v7  ;;  %v16127_v19 = vadd.f32 %v16095_v9, %v15985_v56 }
 0x7ab   : > { %v18322_v60 = vmul.f32 0.2, %v18258_v57  ;;  %v18132_v21 = vadd.f32 %v31113_v34, %v18100_v1  ;;  %v31169_v38 = vpop.f32.mrb[147].mxu0  ;;  %v18355_v50 = vsel %vm18291_vm7, %v18259_v40, %v18323_v43  ;;  %v18192_v62 = vld [vmem:[#allocation2 + $0x48] sm:$0xff]  ;;  %16160 = vst.msk [vmem:[#allocation2 + $0x88] sm:$0xff] %vm2084_vm2, %v16128_v31  ;;  %v22876_v4 = vpop.f32.mrb[146].mxu1 }
 0x7ac   : > { %v18260_v47 = vadd.f32 %v31110_v30, %v18221_v35  ;;  %v16098_v58 = vld [vmem:[#allocation2 + $0x98] sm:$0xff]  ;;  %v31173_v45 = vpop.f32.mrb[148].mxu0  ;;  %v18387_v42 = vmul.f32 1.4142135, %v18355_v50  ;;  %vm18293_vm9 = vcmp.ge.f32.partialorder %v18261_v55, 0.0  ;;  %v18191_v36 = vld [vmem:[#allocation2 + $0x40] sm:$0xff] }
 0x7ad   : > { %v18354_v34 = vsel %vm18290_vm8, %v18258_v57, %v18322_v60  ;;  %v18325_v11 = vmul.f32 0.2, %v18261_v55  ;;  %18164 = vst.msk [vmem:[#allocation2 + $0x68] sm:$0xff] %vm2084_vm2, %v18132_v21  ;;  %v16097_v14 = vld [vmem:[#allocation2 + $0x90] sm:$0xff]  ;;  %v18099_v8 = vld [vmem:[#allocation2 + $0x60] sm:$0xff]  ;;  %16159 = vst.msk [vmem:[#allocation2 + $0x80] sm:$0xff] %vm2084_vm2, %v16127_v19  ;;  %v16130_v22 = vadd.f32 %v22876_v4, %v16098_v58 }
 0x7ae   : > { %v18386_v10 = vmul.f32 1.4142135, %v18354_v34  ;;  %vm18292_vm10 = vcmp.ge.f32.partialorder %v18260_v47, 0.0  ;;  %v18324_v24 = vmul.f32 0.2, %v18260_v47  ;;  %18419 = vst.msk [vmem:[%s31132_s15 + $0x28] sm:$0xff] %vm2084_vm2, %v18387_v42  ;;  %v18131_v33 = vadd.f32 %v18099_v8, %v31116_v32 }
 0x7af   : > { %v18357_v59 = vsel %vm18293_vm9, %v18261_v55, %v18325_v11  ;;  %v18224_v5 = vmul.f32 0.16666667, %v18192_v62  ;;  %v18223_v12 = vmul.f32 0.16666667, %v18191_v36  ;;  %v18102_v15 = vld [vmem:[#allocation2 + $0x78] sm:$0xff]  ;;  %v15997_v41 = vpop.f32.mrb[147].mxu1 }
 0x7b0   : > { %18418 = vst.msk [vmem:[%s31132_s15 + $0x20] sm:$0xff] %vm2084_vm2, %v18386_v10  ;;  %v18389_v44 = vmul.f32 1.4142135, %v18357_v59  ;;  %v18356_v20 = vsel %vm18292_vm10, %v18260_v47, %v18324_v24  ;;  %v18194_v0 = vld [vmem:[#allocation2 + $0x58] sm:$0xff]  ;;  %v18134_v46 = vadd.f32 %v31125_v54, %v18102_v15  ;;  %16162 = vst.msk [vmem:[#allocation2 + $0x98] sm:$0xff] %vm2084_vm2, %v16130_v22  ;;  %v16129_v23 = vadd.f32 %v16097_v14, %v15997_v41  ;;  %v31185_v3 = vpop.f32.mrb[149].mxu0 }
 0x7b1   : > { %v22879_v28 = vpop.f32.mrb[148].mxu1  ;;  %v16100_v13 = vld [vmem:[#allocation2 + $0xa8] sm:$0xff]  ;;  %v18388_v63 = vmul.f32 1.4142135, %v18356_v20  ;;  %v18263_v32 = vadd.f32 %v31110_v30, %v18224_v5  ;;  %v18262_v48 = vadd.f32 %v31110_v30, %v18223_v12  ;;  %v18226_v17 = vmul.f32 0.16666667, %v18194_v0 }
 0x7b2   : > { %v18193_v53 = vld [vmem:[#allocation2 + $0x50] sm:$0xff]  ;;  %18163 = vst.msk [vmem:[#allocation2 + $0x60] sm:$0xff] %vm2084_vm2, %v18131_v33  ;;  %v31190_v39 = vpop.f32.mrb[150].mxu0  ;;  %18421 = vst.msk [vmem:[%s31132_s15 + $0x38] sm:$0xff] %vm2084_vm2, %v18389_v44  ;;  %v16132_v51 = vadd.f32 %v22879_v28, %v16100_v13  ;;  %v16009_v40 = vpop.f32.mrb[149].mxu1  ;;  %v16099_v37 = vld [vmem:[#allocation2 + $0xa0] sm:$0xff] }
 0x7b3   : > { %v18225_v54 = vmul.f32 0.16666667, %v18193_v53  ;;  %18166 = vst.msk [vmem:[#allocation2 + $0x78] sm:$0xff] %vm2084_vm2, %v18134_v46  ;;  %v18101_v6 = vld [vmem:[#allocation2 + $0x70] sm:$0xff]  ;;  %16161 = vst.msk [vmem:[#allocation2 + $0x90] sm:$0xff] %vm2084_vm2, %v16129_v23  ;;  %v31196_v27 = vpop.f32.mrb[151].mxu0  ;;  %v18265_v52 = vadd.f32 %v31110_v30, %v18226_v17  ;;  %v16131_v56 = vadd.f32 %v16099_v37, %v16009_v40 }
 0x7b4   : > { %18420 = vst.msk [vmem:[%s31132_s15 + $0x30] sm:$0xff] %vm2084_vm2, %v18388_v63  ;;  %vm18295_vm11 = vcmp.ge.f32.partialorder %v18263_v32, 0.0  ;;  %v18327_v16 = vmul.f32 0.2, %v18263_v32  ;;  %vm18294_vm12 = vcmp.ge.f32.partialorder %v18262_v48, 0.0  ;;  %v18196_v29 = vld [vmem:[#allocation2 + $0x68] sm:$0xff]  ;;  %v18133_v61 = vadd.f32 %v18101_v6, %v31137_v26 }
 0x7b5   : > { %v18326_v25 = vmul.f32 0.2, %v18262_v48  ;;  %v18264_v57 = vadd.f32 %v31110_v30, %v18225_v54  ;;  %v18104_v7 = vld [vmem:[#allocation2 + $0x88] sm:$0xff]  ;;  %16164 = vst.msk [vmem:[#allocation2 + $0xa8] sm:$0xff] %vm2084_vm2, %v16132_v51  ;;  %v22882_v43 = vpop.f32.mrb[150].mxu1  ;;  %v31204_v35 = vpop.f32.mrb[152].mxu0 }
 0x7b6   : > { %v18359_v1 = vsel %vm18295_vm11, %v18263_v32, %v18327_v16  ;;  %v18228_v60 = vmul.f32 0.16666667, %v18196_v29  ;;  %v18136_v55 = vadd.f32 %v31141_v2, %v18104_v7  ;;  %v18103_v21 = vld [vmem:[#allocation2 + $0x80] sm:$0xff]  ;;  %v16102_v9 = vld [vmem:[#allocation2 + $0xb8] sm:$0xff]  ;;  %v16021_v50 = vpop.f32.mrb[151].mxu1  ;;  %v31207_v47 = vpop.f32.mrb[153].mxu0 }
 0x7b7   : > { %v18358_v31 = vsel %vm18294_vm12, %v18262_v48, %v18326_v25  ;;  %v18391_v26 = vmul.f32 1.4142135, %v18359_v1  ;;  %vm18297_vm13 = vcmp.ge.f32.partialorder %v18265_v52, 0.0  ;;  %vm18296_vm14 = vcmp.ge.f32.partialorder %v18264_v57, 0.0  ;;  %18165 = vst.msk [vmem:[#allocation2 + $0x70] sm:$0xff] %vm2084_vm2, %v18133_v61  ;;  %16163 = vst.msk [vmem:[#allocation2 + $0xa0] sm:$0xff] %vm2084_vm2, %v16131_v56 }
 0x7b8   : > { %v18390_v62 = vmul.f32 1.4142135, %v18358_v31  ;;  %v18329_v19 = vmul.f32 0.2, %v18265_v52  ;;  %v18328_v4 = vmul.f32 0.2, %v18264_v57  ;;  %v18267_v58 = vadd.f32 %v31110_v30, %v18228_v60 }
 0x7b9   : > { %18168 = vst.msk [vmem:[#allocation2 + $0x88] sm:$0xff] %vm2084_vm2, %v18136_v55  ;;  %v18135_v2 = vadd.f32 %v18103_v21, %v31151_v49  ;;  %v18106_v42 = vld [vmem:[#allocation2 + $0x98] sm:$0xff]  ;;  %v16101_v34 = vld [vmem:[#allocation2 + $0xb0] sm:$0xff]  ;;  %18423 = vst.msk [vmem:[%s31132_s15 + $0x48] sm:$0xff] %vm2084_vm2, %v18391_v26  ;;  %v16134_v14 = vadd.f32 %v22882_v43, %v16102_v9  ;;  %v22885_v24 = vpop.f32.mrb[152].mxu1  ;;  %v31219_v22 = vpop.f32.mrb[154].mxu0 }
 0x7ba   : > { %18422 = vst.msk [vmem:[%s31132_s15 + $0x40] sm:$0xff] %vm2084_vm2, %v18390_v62  ;;  %v18195_v11 = vld [vmem:[#allocation2 + $0x60] sm:$0xff]  ;;  %v18138_v36 = vadd.f32 %v31157_v18, %v18106_v42  ;;  %v16133_v10 = vadd.f32 %v16101_v34, %v16021_v50  ;;  %v16104_v8 = vld [vmem:[#allocation2 + $0xc8] sm:$0xff]  ;;  %v18361_v5 = vsel %vm18297_vm13, %v18265_v52, %v18329_v19  ;;  %v18360_v49 = vsel %vm18296_vm14, %v18264_v57, %v18328_v4  ;;  %v18198_v33 = vld [vmem:[#allocation2 + $0x78] sm:$0xff]  ;;  %v16033_v18 = vpop.f32.mrb[153].mxu1  ;;  %v31228_v32 = vpop.f32.mrb[155].mxu0 }
 0x7bb   : > { %v16103_v59 = vld [vmem:[#allocation2 + $0xc0] sm:$0xff]  ;;  %vm18299_vm15 = vcmp.ge.f32.partialorder %v18267_v58, 0.0  ;;  %v18331_v12 = vmul.f32 0.2, %v18267_v58  ;;  %18167 = vst.msk [vmem:[#allocation2 + $0x80] sm:$0xff] %vm2084_vm2, %v18135_v2  ;;  %v18105_v15 = vld [vmem:[#allocation2 + $0x90] sm:$0xff]  ;;  %v16136_v13 = vadd.f32 %v22885_v24, %v16104_v8 }
 0x7bc   : > { %v18393_v41 = vmul.f32 1.4142135, %v18361_v5  ;;  %v18392_v44 = vmul.f32 1.4142135, %v18360_v49  ;;  %v18227_v20 = vmul.f32 0.16666667, %v18195_v11  ;;  %v18137_v0 = vadd.f32 %v18105_v15, %v31169_v38 }
 0x7bd   : > { %18170 = vst.msk [vmem:[#allocation2 + $0x98] sm:$0xff] %vm2084_vm2, %v18138_v36  ;;  %16166 = vst.msk [vmem:[#allocation2 + $0xb8] sm:$0xff] %vm2084_vm2, %v16134_v14  ;;  %v18363_v46 = vsel %vm18299_vm15, %v18267_v58, %v18331_v12  ;;  %v18230_v23 = vmul.f32 0.16666667, %v18198_v33  ;;  %v18108_v28 = vld [vmem:[#allocation2 + $0xa8] sm:$0xff]  ;;  %v16135_v63 = vadd.f32 %v16103_v59, %v16033_v18  ;;  %v22888_v53 = vpop.f32.mrb[154].mxu1 }
 0x7be   : > { %16165 = vst.msk [vmem:[#allocation2 + $0xb0] sm:$0xff] %vm2084_vm2, %v16133_v10  ;;  %18425 = vst.msk [vmem:[%s31132_s15 + $0x58] sm:$0xff] %vm2084_vm2, %v18393_v41  ;;  %v18395_v48 = vmul.f32 1.4142135, %v18363_v46  ;;  %v18266_v17 = vadd.f32 %v31110_v30, %v18227_v20  ;;  %v18140_v38 = vadd.f32 %v31173_v45, %v18108_v28  ;;  %v16106_v54 = vld [vmem:[#allocation2 + $0xd8] sm:$0xff]  ;;  %v31237_v6 = vpop.f32.mrb[156].mxu0 }
 0x7bf   : > { %18424 = vst.msk [vmem:[%s31132_s15 + $0x50] sm:$0xff] %vm2084_vm2, %v18392_v44  ;;  %18169 = vst.msk [vmem:[#allocation2 + $0x90] sm:$0xff] %vm2084_vm2, %v18137_v0  ;;  %v18269_v51 = vadd.f32 %v31110_v30, %v18230_v23  ;;  %v18197_v40 = vld [vmem:[#allocation2 + $0x70] sm:$0xff]  ;;  %v18107_v37 = vld [vmem:[#allocation2 + $0xa0] sm:$0xff]  ;;  %v16138_v16 = vadd.f32 %v22888_v53, %v16106_v54  ;;  %v16045_v25 = vpop.f32.mrb[155].mxu1  ;;  %v31242_v57 = vpop.f32.mrb[157].mxu0 }
 0x7c0   : > { %16168 = vst.msk [vmem:[#allocation2 + $0xc8] sm:$0xff] %vm2084_vm2, %v16136_v13  ;;  %16167 = vst.msk [vmem:[#allocation2 + $0xc0] sm:$0xff] %vm2084_vm2, %v16135_v63  ;;  %v16105_v52 = vld [vmem:[#allocation2 + $0xd0] sm:$0xff]  ;;  %vm18298_vm0 = vcmp.ge.f32.partialorder %v18266_v17, 0.0  ;;  %v18330_v45 = vmul.f32 0.2, %v18266_v17  ;;  %v18139_v7 = vadd.f32 %v18107_v37, %v31185_v3 }
 0x7c1   : > { %18427 = vst.msk [vmem:[%s31132_s15 + $0x68] sm:$0xff] %vm2084_vm2, %v18395_v48  ;;  %v18229_v29 = vmul.f32 0.16666667, %v18197_v40  ;;  %v18200_v61 = vld [vmem:[#allocation2 + $0x88] sm:$0xff]  ;;  %18172 = vst.msk [vmem:[#allocation2 + $0xa8] sm:$0xff] %vm2084_vm2, %v18140_v38  ;;  %vm18301_vm1 = vcmp.ge.f32.partialorder %v18269_v51, 0.0  ;;  %v16137_v1 = vadd.f32 %v16105_v52, %v16045_v25 }
 0x7c2   : > { %v18333_v56 = vmul.f32 0.2, %v18269_v51  ;;  %v18232_v43 = vmul.f32 0.16666667, %v18200_v61  ;;  %16170 = vst.msk [vmem:[#allocation2 + $0xd8] sm:$0xff] %vm2084_vm2, %v16138_v16  ;;  %v18362_v31 = vsel %vm18298_vm0, %v18266_v17, %v18330_v45  ;;  %v18199_v55 = vld [vmem:[#allocation2 + $0x80] sm:$0xff] }
 0x7c3   : > { %v18268_v60 = vadd.f32 %v31110_v30, %v18229_v29  ;;  %18171 = vst.msk [vmem:[#allocation2 + $0xa0] sm:$0xff] %vm2084_vm2, %v18139_v7  ;;  %v22891_v21 = vpop.f32.mrb[156].mxu1  ;;  %v31251_v9 = vpop.f32.mrb[158].mxu0  ;;  %v18394_v50 = vmul.f32 1.4142135, %v18362_v31  ;;  %16169 = vst.msk [vmem:[#allocation2 + $0xd0] sm:$0xff] %vm2084_vm2, %v16137_v1 }
 0x7c4   : > { %v18365_v26 = vsel %vm18301_vm1, %v18269_v51, %v18333_v56  ;;  %v18271_v3 = vadd.f32 %v31110_v30, %v18232_v43  ;;  %v18231_v62 = vmul.f32 0.16666667, %v18199_v55  ;;  %v18202_v19 = vld [vmem:[#allocation2 + $0x98] sm:$0xff]  ;;  %v16108_v58 = vld [vmem:[#allocation2 + $0xe8] sm:$0xff]  ;;  %v16057_v33 = vpop.f32.mrb[157].mxu1  ;;  %v31263_v15 = vpop.f32.mrb[159].mxu0 }
 0x7c5   : > { %v18110_v4 = vld [vmem:[#allocation2 + $0xb8] sm:$0xff]  ;;  %v18397_v2 = vmul.f32 1.4142135, %v18365_v26  ;;  %vm18300_vm3 = vcmp.ge.f32.partialorder %v18268_v60, 0.0  ;;  %v18332_v42 = vmul.f32 0.2, %v18268_v60 }
 0x7c6   : > { %v18142_v34 = vadd.f32 %v31190_v39, %v18110_v4  ;;  %v18109_v11 = vld [vmem:[#allocation2 + $0xb0] sm:$0xff]  ;;  %18426 = vst.msk [vmem:[%s31132_s15 + $0x60] sm:$0xff] %vm2084_vm2, %v18394_v50  ;;  %vm18303_vm4 = vcmp.ge.f32.partialorder %v18271_v3, 0.0  ;;  %v18335_v36 = vmul.f32 0.2, %v18271_v3  ;;  %v18270_v14 = vadd.f32 %v31110_v30, %v18231_v62  ;;  %v22894_v13 = vpop.f32.mrb[158].mxu1 }
 0x7c7   : > { %v18234_v10 = vmul.f32 0.16666667, %v18202_v19  ;;  %v18201_v24 = vld [vmem:[#allocation2 + $0x90] sm:$0xff]  ;;  %18429 = vst.msk [vmem:[%s31132_s15 + $0x78] sm:$0xff] %vm2084_vm2, %v18397_v2  ;;  %v18364_v8 = vsel %vm18300_vm3, %v18268_v60, %v18332_v42  ;;  %v18141_v5 = vadd.f32 %v18109_v11, %v31196_v27  ;;  %v18112_v49 = vld [vmem:[#allocation2 + $0xc8] sm:$0xff]  ;;  %v18111_v12 = vld [vmem:[#allocation2 + $0xc0] sm:$0xff]  ;;  %v16140_v39 = vadd.f32 %v22891_v21, %v16108_v58 }
 0x7c8   : > { %v18233_v59 = vmul.f32 0.16666667, %v18201_v24  ;;  %18174 = vst.msk [vmem:[#allocation2 + $0xb8] sm:$0xff] %vm2084_vm2, %v18142_v34  ;;  %v18396_v18 = vmul.f32 1.4142135, %v18364_v8  ;;  %v18367_v41 = vsel %vm18303_vm4, %v18271_v3, %v18335_v36  ;;  %vm18302_vm5 = vcmp.ge.f32.partialorder %v18270_v14, 0.0 }
 0x7c9   : > { %v18334_v44 = vmul.f32 0.2, %v18270_v14  ;;  %v18204_v20 = vld [vmem:[#allocation2 + $0xa8] sm:$0xff]  ;;  %v18399_v0 = vmul.f32 1.4142135, %v18367_v41  ;;  %v18273_v46 = vadd.f32 %v31110_v30, %v18234_v10  ;;  %18173 = vst.msk [vmem:[#allocation2 + $0xb0] sm:$0xff] %vm2084_vm2, %v18141_v5  ;;  %v18144_v17 = vadd.f32 %v31204_v35, %v18112_v49 }
 0x7ca   : > { %v18272_v23 = vadd.f32 %v31110_v30, %v18233_v59  ;;  %v18236_v27 = vmul.f32 0.16666667, %v18204_v20  ;;  %v18114_v28 = vld [vmem:[#allocation2 + $0xd8] sm:$0xff]  ;;  %16172 = vst.msk [vmem:[#allocation2 + $0xe8] sm:$0xff] %vm2084_vm2, %v16140_v39  ;;  %18428 = vst.msk [vmem:[%s31132_s15 + $0x70] sm:$0xff] %vm2084_vm2, %v18396_v18  ;;  %v18203_v48 = vld [vmem:[#allocation2 + $0xa0] sm:$0xff]  ;;  %v18143_v38 = vadd.f32 %v18111_v12, %v31207_v47 }
 0x7cb   : > { %v18366_v63 = vsel %vm18302_vm5, %v18270_v14, %v18334_v44  ;;  %v18146_v53 = vadd.f32 %v31219_v22, %v18114_v28  ;;  %v16107_v54 = vld [vmem:[#allocation2 + $0xe0] sm:$0xff]  ;;  %v16110_v51 = vld [vmem:[#allocation2 + $0xf8] sm:$0xff]  ;;  %v16069_v40 = vpop.f32.mrb[159].mxu1  ;;  %18431 = vst.msk [vmem:[%s31132_s15 + $0x88] sm:$0xff] %vm2084_vm2, %v18399_v0  ;;  %vm18305_vm6 = vcmp.ge.f32.partialorder %v18273_v46, 0.0  ;;  %18176 = vst.msk [vmem:[#allocation2 + $0xc8] sm:$0xff] %vm2084_vm2, %v18144_v17 }
 0x7cc   : > { %v18398_v37 = vmul.f32 1.4142135, %v18366_v63  ;;  %v18337_v16 = vmul.f32 0.2, %v18273_v46  ;;  %vm18304_vm7 = vcmp.ge.f32.partialorder %v18272_v23, 0.0  ;;  %v18275_v52 = vadd.f32 %v31110_v30, %v18236_v27  ;;  %18175 = vst.msk [vmem:[#allocation2 + $0xc0] sm:$0xff] %vm2084_vm2, %v18143_v38 }
 0x7cd   : > { %v18336_v25 = vmul.f32 0.2, %v18272_v23  ;;  %v18235_v45 = vmul.f32 0.16666667, %v18203_v48  ;;  %18178 = vst.msk [vmem:[#allocation2 + $0xd8] sm:$0xff] %vm2084_vm2, %v18146_v53  ;;  %v18113_v35 = vld [vmem:[#allocation2 + $0xd0] sm:$0xff]  ;;  %v16139_v47 = vadd.f32 %v16107_v54, %v16057_v33  ;;  %v16142_v7 = vadd.f32 %v22894_v13, %v16110_v51 }
 0x7ce   : > { %v16109_v22 = vld [vmem:[#allocation2 + $0xf0] sm:$0xff]  ;;  %18430 = vst.msk [vmem:[%s31132_s15 + $0x80] sm:$0xff] %vm2084_vm2, %v18398_v37  ;;  %v18369_v29 = vsel %vm18305_vm6, %v18273_v46, %v18337_v16  ;;  %v18145_v61 = vadd.f32 %v18113_v35, %v31228_v32  ;;  %vm18307_vm8 = vcmp.ge.f32.partialorder %v18275_v52, 0.0  ;;  %v18339_v31 = vmul.f32 0.2, %v18275_v52 }
 0x7cf   : > { %v16141_v56 = vadd.f32 %v16109_v22, %v16069_v40  ;;  %v18401_v43 = vmul.f32 1.4142135, %v18369_v29  ;;  %v18368_v1 = vsel %vm18304_vm7, %v18272_v23, %v18336_v25  ;;  %v18206_v60 = vld [vmem:[#allocation2 + $0xb8] sm:$0xff]  ;;  %16171 = vst.msk [vmem:[#allocation2 + $0xe0] sm:$0xff] %vm2084_vm2, %v16139_v47  ;;  %v18274_v21 = vadd.f32 %v31110_v30, %v18235_v45  ;;  %16174 = vst.msk [vmem:[#allocation2 + $0xf8] sm:$0xff] %vm2084_vm2, %v16142_v7 }
 0x7d0   : > { %v18400_v55 = vmul.f32 1.4142135, %v18368_v1  ;;  %v18238_v50 = vmul.f32 0.16666667, %v18206_v60  ;;  %18177 = vst.msk [vmem:[#allocation2 + $0xd0] sm:$0xff] %vm2084_vm2, %v18145_v61  ;;  %v18371_v32 = vsel %vm18307_vm8, %v18275_v52, %v18339_v31  ;;  %v18205_v26 = vld [vmem:[#allocation2 + $0xb0] sm:$0xff] }
 0x7d1   : > { %16173 = vst.msk [vmem:[#allocation2 + $0xf0] sm:$0xff] %vm2084_vm2, %v16141_v56  ;;  %18433 = vst.msk [vmem:[%s31132_s15 + $0x98] sm:$0xff] %vm2084_vm2, %v18401_v43  ;;  %v18116_v3 = vld [vmem:[#allocation2 + $0xe8] sm:$0xff]  ;;  %v18403_v62 = vmul.f32 1.4142135, %v18371_v32  ;;  %vm18306_vm9 = vcmp.ge.f32.partialorder %v18274_v21, 0.0 }
 0x7d2   : > { %18432 = vst.msk [vmem:[%s31132_s15 + $0x90] sm:$0xff] %vm2084_vm2, %v18400_v55  ;;  %v18338_v19 = vmul.f32 0.2, %v18274_v21  ;;  %v18277_v4 = vadd.f32 %v31110_v30, %v18238_v50  ;;  %v18237_v58 = vmul.f32 0.16666667, %v18205_v26  ;;  %v18148_v2 = vadd.f32 %v31237_v6, %v18116_v3  ;;  %v18208_v11 = vld [vmem:[#allocation2 + $0xc8] sm:$0xff] }
 0x7d3   : > { %18435 = vst.msk [vmem:[%s31132_s15 + $0xa8] sm:$0xff] %vm2084_vm2, %v18403_v62  ;;  %v18207_v36 = vld [vmem:[#allocation2 + $0xc0] sm:$0xff]  ;;  %v18240_v8 = vmul.f32 0.16666667, %v18208_v11 }
 0x7d4   : > { %v18370_v42 = vsel %vm18306_vm9, %v18274_v21, %v18338_v19  ;;  %vm18309_vm10 = vcmp.ge.f32.partialorder %v18277_v4, 0.0  ;;  %v18341_v34 = vmul.f32 0.2, %v18277_v4  ;;  %v18210_v14 = vld [vmem:[#allocation2 + $0xd8] sm:$0xff]  ;;  %v18276_v24 = vadd.f32 %v31110_v30, %v18237_v58  ;;  %18180 = vst.msk [vmem:[#allocation2 + $0xe8] sm:$0xff] %vm2084_vm2, %v18148_v2 }
 0x7d5   : > { %v18402_v10 = vmul.f32 1.4142135, %v18370_v42  ;;  %v18239_v59 = vmul.f32 0.16666667, %v18207_v36  ;;  %v18242_v49 = vmul.f32 0.16666667, %v18210_v14  ;;  %v18279_v33 = vadd.f32 %v31110_v30, %v18240_v8 }
 0x7d6   : > { %v18373_v5 = vsel %vm18309_vm10, %v18277_v4, %v18341_v34  ;;  %v18115_v6 = vld [vmem:[#allocation2 + $0xe0] sm:$0xff]  ;;  %vm18308_vm11 = vcmp.ge.f32.partialorder %v18276_v24, 0.0  ;;  %v18340_v39 = vmul.f32 0.2, %v18276_v24  ;;  %v18118_v46 = vld [vmem:[#allocation2 + $0xf8] sm:$0xff] }
 0x7d7   : > { %18434 = vst.msk [vmem:[%s31132_s15 + $0xa0] sm:$0xff] %vm2084_vm2, %v18402_v10  ;;  %v18405_v12 = vmul.f32 1.4142135, %v18373_v5  ;;  %v18209_v18 = vld [vmem:[#allocation2 + $0xd0] sm:$0xff]  ;;  %v18278_v41 = vadd.f32 %v31110_v30, %v18239_v59  ;;  %v18281_v44 = vadd.f32 %v31110_v30, %v18242_v49  ;;  %v18147_v0 = vadd.f32 %v18115_v6, %v31242_v57 }
 0x7d8   : > { %v18241_v20 = vmul.f32 0.16666667, %v18209_v18  ;;  %v18117_v23 = vld [vmem:[#allocation2 + $0xf0] sm:$0xff]  ;;  %v18372_v27 = vsel %vm18308_vm11, %v18276_v24, %v18340_v39  ;;  %vm18311_vm12 = vcmp.ge.f32.partialorder %v18279_v33, 0.0  ;;  %v18343_v28 = vmul.f32 0.2, %v18279_v33 }
 0x7d9   : > { %18437 = vst.msk [vmem:[%s31132_s15 + $0xb8] sm:$0xff] %vm2084_vm2, %v18405_v12  ;;  %v18150_v13 = vadd.f32 %v31251_v9, %v18118_v46  ;;  %v18404_v63 = vmul.f32 1.4142135, %v18372_v27  ;;  %vm18310_vm13 = vcmp.ge.f32.partialorder %v18278_v41, 0.0  ;;  %v18342_v48 = vmul.f32 0.2, %v18278_v41 }
 0x7da   : > { %vm18313_vm14 = vcmp.ge.f32.partialorder %v18281_v44, 0.0  ;;  %18179 = vst.msk [vmem:[#allocation2 + $0xe0] sm:$0xff] %vm2084_vm2, %v18147_v0  ;;  %v18375_v17 = vsel %vm18311_vm12, %v18279_v33, %v18343_v28  ;;  %v18345_v38 = vmul.f32 0.2, %v18281_v44  ;;  %v18280_v57 = vadd.f32 %v31110_v30, %v18241_v20 }
 0x7db   : > { %18182 = vst.msk [vmem:[#allocation2 + $0xf8] sm:$0xff] %vm2084_vm2, %v18150_v13  ;;  %v18149_v53 = vadd.f32 %v18117_v23, %v31263_v15  ;;  %18436 = vst.msk [vmem:[%s31132_s15 + $0xb0] sm:$0xff] %vm2084_vm2, %v18404_v63  ;;  %v18407_v9 = vmul.f32 1.4142135, %v18375_v17  ;;  %v18374_v54 = vsel %vm18310_vm13, %v18278_v41, %v18342_v48  ;;  %v18212_v51 = vld [vmem:[#allocation2 + $0xe8] sm:$0xff] }
 0x7dc   : > { %v18406_v40 = vmul.f32 1.4142135, %v18374_v54  ;;  %v18377_v37 = vsel %vm18313_vm14, %v18281_v44, %v18345_v38  ;;  %vm18312_vm15 = vcmp.ge.f32.partialorder %v18280_v57, 0.0  ;;  %v18344_v16 = vmul.f32 0.2, %v18280_v57 }
 0x7dd   : > { %18181 = vst.msk [vmem:[#allocation2 + $0xf0] sm:$0xff] %vm2084_vm2, %v18149_v53  ;;  %18439 = vst.msk [vmem:[%s31132_s15 + $0xc8] sm:$0xff] %vm2084_vm2, %v18407_v9  ;;  %v18409_v25 = vmul.f32 1.4142135, %v18377_v37  ;;  %v18244_v52 = vmul.f32 0.16666667, %v18212_v51 }
 0x7de   : > { %18438 = vst.msk [vmem:[%s31132_s15 + $0xc0] sm:$0xff] %vm2084_vm2, %v18406_v40  ;;  %v18376_v45 = vsel %vm18312_vm15, %v18280_v57, %v18344_v16 }
 0x7df   : > { %18441 = vst.msk [vmem:[%s31132_s15 + $0xd8] sm:$0xff] %vm2084_vm2, %v18409_v25  ;;  %v18408_v15 = vmul.f32 1.4142135, %v18376_v45  ;;  %v18283_v35 = vadd.f32 %v31110_v30, %v18244_v52 }
 0x7e1   : > { %v18211_v47 = vld [vmem:[#allocation2 + $0xe0] sm:$0xff]  ;;  %18440 = vst.msk [vmem:[%s31132_s15 + $0xd0] sm:$0xff] %vm2084_vm2, %v18408_v15  ;;  %vm18315_vm0 = vcmp.ge.f32.partialorder %v18283_v35, 0.0  ;;  %v18347_v22 = vmul.f32 0.2, %v18283_v35 }
 0x7e2   : > { %v18243_v29 = vmul.f32 0.16666667, %v18211_v47  ;;  %v18214_v61 = vld [vmem:[#allocation2 + $0xf8] sm:$0xff] }
 0x7e3   : > { %v18246_v7 = vmul.f32 0.16666667, %v18214_v61  ;;  %v18379_v56 = vsel %vm18315_vm0, %v18283_v35, %v18347_v22 }
 0x7e4   : > { %v18282_v43 = vadd.f32 %v31110_v30, %v18243_v29  ;;  %v18213_v1 = vld [vmem:[#allocation2 + $0xf0] sm:$0xff]  ;;  %v18411_v31 = vmul.f32 1.4142135, %v18379_v56 }
 0x7e5   : > { %v18285_v60 = vadd.f32 %v31110_v30, %v18246_v7  ;;  %v18245_v55 = vmul.f32 0.16666667, %v18213_v1 }
 0x7e6   : > { %vm18314_vm1 = vcmp.ge.f32.partialorder %v18282_v43, 0.0  ;;  %v18346_v21 = vmul.f32 0.2, %v18282_v43  ;;  %18443 = vst.msk [vmem:[%s31132_s15 + $0xe8] sm:$0xff] %vm2084_vm2, %v18411_v31 }
 0x7e7   : > { %vm18317_vm3 = vcmp.ge.f32.partialorder %v18285_v60, 0.0  ;;  %v18349_v50 = vmul.f32 0.2, %v18285_v60  ;;  %v18284_v32 = vadd.f32 %v31110_v30, %v18245_v55 }
 0x7e8   : > { %v18378_v26 = vsel %vm18314_vm1, %v18282_v43, %v18346_v21 }
 0x7e9   : > { %v18410_v3 = vmul.f32 1.4142135, %v18378_v26  ;;  %v18381_v62 = vsel %vm18317_vm3, %v18285_v60, %v18349_v50  ;;  %vm18316_vm4 = vcmp.ge.f32.partialorder %v18284_v32, 0.0  ;;  %v18348_v19 = vmul.f32 0.2, %v18284_v32 }
 0x7ea   : > { %v18413_v4 = vmul.f32 1.4142135, %v18381_v62 }
 0x7eb   : > { %18442 = vst.msk [vmem:[%s31132_s15 + $0xe0] sm:$0xff] %vm2084_vm2, %v18410_v3  ;;  %v18380_v58 = vsel %vm18316_vm4, %v18284_v32, %v18348_v19 }
 0x7ec   : > { %18445 = vst.msk [vmem:[%s31132_s15 + $0xf8] sm:$0xff] %vm2084_vm2, %v18413_v4  ;;  %v18412_v2 = vmul.f32 1.4142135, %v18380_v58 }
 0x7ee   : > { %18444 = vst.msk [vmem:[%s31132_s15 + $0xf0] sm:$0xff] %vm2084_vm2, %v18412_v2 }
 0x7ef PF: > { %s13_s12 = sadd.s32 1, %s24650_s12  }
 0x7f0   : > { %p10_p4 = scmp.ge.s32.totalorder %s13_s12, 4  }
 0x7f2   :  { %12 = sbr.rel (!%p10_p4) target bundleno = 1 (0x1), region = 72 }

</bundles_post_ra>
